<compile_context>
chip_gen: v7x
topology: tpu7x:2x2x1
jax: 0.10.0
libtpu: 0.0.40
codegen_flags: <defaults>
</compile_context>

<pallas_src>
import functools

import numpy as np

import jax
import jax.numpy as jnp
from jax.experimental import pallas as pl
from jax.experimental.pallas import tpu as pltpu


# ----------------------------------------------------------------------------
# Host-side constant builders (0/1 selection matrices, all tiny)
# ----------------------------------------------------------------------------
def _sel_matrix(H, W, K):
    """(P, K*K*P) selection matrix: column t*P+p holds source pixel
    (h+dh, w+dw) of output pixel p (zero column if out of bounds)."""
    P = H * W
    pd = (K - 1) // 2
    sel = np.zeros((P, K * K * P), np.float32)
    for kh in range(K):
        for kw in range(K):
            t = kh * K + kw
            dh, dw = kh - pd, kw - pd
            for p in range(P):
                h, w = divmod(p, W)
                hh, ww = h + dh, w + dw
                if 0 <= hh < H and 0 <= ww < W:
                    sel[hh * W + ww, t * P + p] = 1.0
    return sel


def _pool_matrix(H, W):
    """(P, 4*(P//4)) matrix; block k selects pixel (2*h2+kh, 2*w2+kw)."""
    P = H * W
    H2, W2 = H // 2, W // 2
    P2 = H2 * W2
    m = np.zeros((P, 4 * P2), np.float32)
    for k, (kh, kw) in enumerate(((0, 0), (0, 1), (1, 0), (1, 1))):
        for p2 in range(P2):
            h2, w2 = divmod(p2, W2)
            m[(2 * h2 + kh) * W + (2 * w2 + kw), k * P2 + p2] = 1.0
    return m


# ----------------------------------------------------------------------------
# Parameter construction (deterministic, matches newCNN.__init__ shapes)
# ----------------------------------------------------------------------------
def _bn_fold(C, eps=1e-5):
    gamma = jnp.ones((C,), jnp.float32)
    beta = jnp.zeros((C,), jnp.float32)
    mean = jnp.zeros((C,), jnp.float32)
    var = jnp.ones((C,), jnp.float32)
    scale = gamma / jnp.sqrt(var + eps)
    bias = beta - mean * scale
    return scale, bias


def init_params(key, num_classes=9, in_ch=3):
    def convw(k, kh, kw, cin, cout):
        std = (2.0 / (kh * kw * cin)) ** 0.5
        return std * jax.random.normal(k, (kh, kw, cin, cout), jnp.float32)

    ks = jax.random.split(key, 10)
    p = {}
    p["conv1_w"] = convw(ks[0], 7, 7, in_ch, 16); p["bn1"] = _bn_fold(16)
    p["conv2_w"] = convw(ks[1], 5, 5, 16, 32);    p["bn2"] = _bn_fold(32)
    p["conv3_w"] = convw(ks[2], 3, 3, 32, 64);    p["bn3"] = _bn_fold(64)
    p["conv4_w"] = convw(ks[3], 1, 1, 64, 64);    p["bn4"] = _bn_fold(64)
    # BasicBlock(64, 64)
    p["rb_conv1_w"] = convw(ks[4], 3, 3, 64, 64); p["rb_bn1"] = _bn_fold(64)
    p["rb_conv2_w"] = convw(ks[5], 3, 3, 64, 64); p["rb_bn2"] = _bn_fold(64)
    # fc layers, stored as (out, in) for W @ x
    p["fc1_w"] = (1.0 / 64.0 ** 0.5) * jax.random.normal(ks[6], (128, 64), jnp.float32)
    p["fc1_b"] = (1.0 / 64.0 ** 0.5) * jax.random.normal(ks[7], (128,), jnp.float32)
    p["fc2_w"] = (1.0 / 128.0 ** 0.5) * jax.random.normal(ks[8], (num_classes, 128), jnp.float32)
    p["fc2_b"] = (1.0 / 128.0 ** 0.5) * jax.random.normal(ks[9], (num_classes,), jnp.float32)
    return p


def _fold_conv(w_hwio, bn):
    """HWIO conv weight + eval BN -> (Cout, K*K*Cin) bf16 weight (tap-major
    contraction index t*Cin + c) and (Cout, 1) f32 bias."""
    scale, bias = bn
    kh, kw, cin, cout = w_hwio.shape
    w = jnp.transpose(w_hwio, (3, 0, 1, 2)).reshape(cout, kh * kw * cin)
    w = w * scale[:, None]
    return w.astype(jnp.bfloat16), bias.reshape(cout, 1).astype(jnp.float32)


# ----------------------------------------------------------------------------
# newCNN.forward  /  simpleOverallModel.forward
# ----------------------------------------------------------------------------
def new_cnn_forward(params, x_nchw):
    N, Cin, H, W = x_nchw.shape
    assert H % 8 == 0 and W % 8 == 0, "spatial dims must survive three 2x2 pools"
    nc = params["fc2_w"].shape[0]

    H1, W1 = H, W                   # conv1 grid
    H2, W2 = H1 // 2, W1 // 2       # conv2 grid (after pool1)
    H3, W3 = H2 // 2, W2 // 2       # conv3 grid (after pool2)
    H4, W4 = H3 // 2, W3 // 2       # conv4 / resblock grid (after pool3)
    P1, P2, P3, P4 = H1 * W1, H2 * W2, H3 * W3, H4 * W4

    # ---- host-side constants ------------------------------------------------
    cw1, cb1 = _fold_conv(params["conv1_w"], params["bn1"])
    cw2, cb2 = _fold_conv(params["conv2_w"], params["bn2"])
    cw3, cb3 = _fold_conv(params["conv3_w"], params["bn3"])
    cw4, cb4 = _fold_conv(params["conv4_w"], params["bn4"])
    rw1, rbias1 = _fold_conv(params["rb_conv1_w"], params["rb_bn1"])
    rw2, rbias2 = _fold_conv(params["rb_conv2_w"], params["rb_bn2"])

    fc1w = params["fc1_w"].astype(jnp.bfloat16)
    fc1b = params["fc1_b"].reshape(-1, 1).astype(jnp.float32)
    fc2w = params["fc2_w"].astype(jnp.bfloat16)
    fc2b = params["fc2_b"].reshape(-1, 1).astype(jnp.float32)

    hw_idx = jnp.asarray(
        np.stack([np.arange(P1) // W1, np.arange(P1) % W1]).astype(np.int32))
    pm1 = jnp.asarray(_pool_matrix(H1, W1), jnp.bfloat16)
    pm2 = jnp.asarray(_pool_matrix(H2, W2), jnp.bfloat16)
    pm3 = jnp.asarray(_pool_matrix(H3, W3), jnp.bfloat16)
    sel2 = jnp.asarray(_sel_matrix(H2, W2, 5), jnp.bfloat16)
    sel3 = jnp.asarray(_sel_matrix(H3, W3, 3), jnp.bfloat16)
    selr = jnp.asarray(_sel_matrix(H4, W4, 3), jnp.bfloat16)

    # NCHW -> (N, C, H*W): channels in sublanes, pixels in lanes (no transpose).
    x = x_nchw.reshape(N, Cin, P1).astype(jnp.float32)

    # ---- fused kernel: one image per grid step ------------------------------
    def kernel(x_ref, hw_ref,
               w1_ref, b1_ref, pm1_ref,
               sel2_ref, w2_ref, b2_ref, pm2_ref,
               sel3_ref, w3_ref, b3_ref, pm3_ref,
               w4_ref, b4_ref,
               selr_ref, wr1_ref, br1_ref, wr2_ref, br2_ref,
               fc1w_ref, fc1b_ref, fc2w_ref, fc2b_ref,
               sm_ref, lg_ref, emb_ref):
        f32, bf16 = jnp.float32, jnp.bfloat16

        def mxu(a, b):
            return jnp.dot(a, b, preferred_element_type=f32)

        def pool2x2(a, pm_r, p_out):
            """(C, P) -> (C, P//4) 2x2 maxpool: one selection matmul + 3 maxes."""
            y = mxu(a.astype(bf16), pm_r[...])                    # (C, 4*p_out)
            return jnp.maximum(
                jnp.maximum(y[:, 0:p_out], y[:, p_out:2 * p_out]),
                jnp.maximum(y[:, 2 * p_out:3 * p_out], y[:, 3 * p_out:4 * p_out]))

        def small_conv(a, sel_r, w_r, b_r, cin, cout, taps, p):
            """KxK 'same' conv + folded BN on a tiny grid: im2col built by one
            MXU matmul against a 0/1 selection matrix (no VMEM tap stores)."""
            col = mxu(a.astype(bf16), sel_r[...]).astype(bf16)    # (cin, taps*p)
            acc = jnp.zeros((cout, p), f32)
            for t in range(taps):
                acc = acc + mxu(w_r[:, t * cin:(t + 1) * cin],
                                col[:, t * p:(t + 1) * p])
            return acc + b_r[...]

        # ---- conv1 (7x7): per-tap lane roll + mask, shifted-accumulate ------
        x1 = x_ref[0]                                   # (Cin, P1) f32
        h_idx = hw_ref[0:1, :]                          # (1, P1) int32
        w_idx = hw_ref[1:2, :]
        acc1 = jnp.zeros((16, P1), f32)
        for kh in range(7):
            dh = kh - 3
            h_ok = (h_idx >= -dh) & (h_idx < H1 - dh)
            for kw in range(7):
                dw = kw - 3
                w_ok = (w_idx >= -dw) & (w_idx < W1 - dw)
                d = dh * W1 + dw
                src = x1 if d == 0 else pltpu.roll(x1, (-d) % P1, axis=1)
                tap = jnp.where(h_ok & w_ok, src, 0.0).astype(bf16)
                t = kh * 7 + kw
                acc1 = acc1 + mxu(w1_ref[:, t * Cin:(t + 1) * Cin], tap)
        a1 = jnp.maximum(acc1 + b1_ref[...], 0.0)       # (16, P1)

        y1 = pool2x2(a1, pm1_ref, P2)                                   # (16, P2)
        a2 = jnp.maximum(small_conv(y1, sel2_ref, w2_ref, b2_ref,
                                    16, 32, 25, P2), 0.0)               # (32, P2)
        y2 = pool2x2(a2, pm2_ref, P3)                                   # (32, P3)
        a3 = jnp.maximum(small_conv(y2, sel3_ref, w3_ref, b3_ref,
                                    32, 64, 9, P3), 0.0)                # (64, P3)
        y3 = pool2x2(a3, pm3_ref, P4)                                   # (64, P4)
        a4 = jnp.maximum(mxu(w4_ref[...], y3.astype(bf16)) + b4_ref[...], 0.0)

        # ---- BasicBlock(64, 64): conv-bn-relu, conv-bn, +identity, relu -----
        r = jnp.maximum(small_conv(a4, selr_ref, wr1_ref, br1_ref,
                                   64, 64, 9, P4), 0.0)
        r = small_conv(r, selr_ref, wr2_ref, br2_ref, 64, 64, 9, P4)
        emb = jnp.maximum(r + a4, 0.0)                  # (64, P4)
        emb_ref[0] = emb

        # ---- head: avgpool -> fc1 -> relu -> (dropout=id) -> fc2 -> softmax -
        pooled = jnp.sum(emb, axis=1, keepdims=True) * (1.0 / P4)   # (64, 1)
        h1 = jnp.maximum(mxu(fc1w_ref[...], pooled.astype(bf16)) + fc1b_ref[...],
                         0.0)                                       # (128, 1)
        logits = mxu(fc2w_ref[...], h1.astype(bf16)) + fc2b_ref[...]  # (nc, 1)
        m = jnp.max(logits, axis=0, keepdims=True)
        ex = jnp.exp(logits - m)
        den = jnp.sum(ex, axis=0, keepdims=True)
        sm_ref[0] = ex * pl.reciprocal(den, approx=True)
        lg_ref[0] = logits

    def _const_spec(a):
        zeros = (0,) * a.ndim
        return pl.BlockSpec(a.shape, lambda i, _z=zeros: _z)

    consts = [hw_idx,
              cw1, cb1, pm1,
              sel2, cw2, cb2, pm2,
              sel3, cw3, cb3, pm3,
              cw4, cb4,
              selr, rw1, rbias1, rw2, rbias2,
              fc1w, fc1b, fc2w, fc2b]

    in_specs = ([pl.BlockSpec((1, Cin, P1), lambda i: (i, 0, 0))]
                + [_const_spec(a) for a in consts])

    out_shape = (jax.ShapeDtypeStruct((N, nc, 1), jnp.float32),
                 jax.ShapeDtypeStruct((N, nc, 1), jnp.float32),
                 jax.ShapeDtypeStruct((N, 64, P4), jnp.float32))
    out_specs = (pl.BlockSpec((1, nc, 1), lambda i: (i, 0, 0)),
                 pl.BlockSpec((1, nc, 1), lambda i: (i, 0, 0)),
                 pl.BlockSpec((1, 64, P4), lambda i: (i, 0, 0)))

    sm, lg, emb = pl.pallas_call(
        kernel,
        grid=(N,),
        in_specs=in_specs,
        out_specs=out_specs,
        out_shape=out_shape,
        compiler_params=pltpu.CompilerParams(
            dimension_semantics=("parallel",)),
    )(x, *consts)

    softmax = sm[:, :, 0]
    logits = lg[:, :, 0]
    embedding = emb.reshape(N, 64, H4, W4)              # NCHW
    return softmax, embedding, logits


def simple_overall_model_forward(params, x_nchw):
    classification, embedding, logits = new_cnn_forward(params, x_nchw)
    # simleGAN.forward(classification, embedding) is `pass` -> returns None.
    # TODO(synk): simleGAN defines no computation; overall model output is None.
    gan_out = None
    return gan_out, (classification, embedding, logits)


# ----------------------------------------------------------------------------
if __name__ == "__main__":
    key = jax.random.PRNGKey(0)
    pkey, xkey = jax.random.split(key)

    num_classes = 9
    params = init_params(pkey, num_classes=num_classes, in_ch=3)

    # Small NCHW input consistent with the module; 16x16 survives 3 maxpools.
    x = jax.random.normal(xkey, (2, 3, 16, 16), jnp.float32)

    fwd = jax.jit(functools.partial(simple_overall_model_forward, params))
    gan_out, (softmax, embedding, logits) = fwd(x)

    jax.block_until_ready((softmax, embedding, logits))
    assert gan_out is None
    assert softmax.shape == (2, num_classes)
    assert logits.shape == (2, num_classes)
    assert embedding.shape == (2, 64, 2, 2)
    # approx reciprocal in the softmax denominator -> loose tolerance
    assert jnp.allclose(jnp.sum(softmax, axis=1), 1.0, atol=1e-2)

    print("KERNEL_OK")
</pallas_src>

<mosaic_0001>
module attributes {stable_mosaic.version = 11 : i64} {
  func.func @kernel(%arg0: i32, %arg1: memref<1x3x256xf32, #tpu.memory_space<vmem>>, %arg2: memref<2x256xi32, #tpu.memory_space<vmem>>, %arg3: memref<16x147xbf16, #tpu.memory_space<vmem>>, %arg4: memref<16x1xf32, #tpu.memory_space<vmem>>, %arg5: memref<256x256xbf16, #tpu.memory_space<vmem>>, %arg6: memref<64x1600xbf16, #tpu.memory_space<vmem>>, %arg7: memref<32x400xbf16, #tpu.memory_space<vmem>>, %arg8: memref<32x1xf32, #tpu.memory_space<vmem>>, %arg9: memref<64x64xbf16, #tpu.memory_space<vmem>>, %arg10: memref<16x144xbf16, #tpu.memory_space<vmem>>, %arg11: memref<64x288xbf16, #tpu.memory_space<vmem>>, %arg12: memref<64x1xf32, #tpu.memory_space<vmem>>, %arg13: memref<16x16xbf16, #tpu.memory_space<vmem>>, %arg14: memref<64x64xbf16, #tpu.memory_space<vmem>>, %arg15: memref<64x1xf32, #tpu.memory_space<vmem>>, %arg16: memref<4x36xbf16, #tpu.memory_space<vmem>>, %arg17: memref<64x576xbf16, #tpu.memory_space<vmem>>, %arg18: memref<64x1xf32, #tpu.memory_space<vmem>>, %arg19: memref<64x576xbf16, #tpu.memory_space<vmem>>, %arg20: memref<64x1xf32, #tpu.memory_space<vmem>>, %arg21: memref<128x64xbf16, #tpu.memory_space<vmem>>, %arg22: memref<128x1xf32, #tpu.memory_space<vmem>>, %arg23: memref<9x128xbf16, #tpu.memory_space<vmem>>, %arg24: memref<9x1xf32, #tpu.memory_space<vmem>>, %arg25: memref<1x9x1xf32, #tpu.memory_space<vmem>>, %arg26: memref<1x9x1xf32, #tpu.memory_space<vmem>>, %arg27: memref<1x64x4xf32, #tpu.memory_space<vmem>>) attributes {dimension_semantics = [#tpu.dimension_semantics<parallel>], iteration_bounds = array<i64: 2>, scalar_prefetch = 0 : i64, scratch_operands = 0 : i64, tpu.core_type = #tpu.core_type<tc>, window_params = [{transform_indices = @transform_0, window_bounds = array<i64: 1, 3, 256>}, {pipeline_mode = #tpu.pipeline_mode<synchronous>, transform_indices = @transform_1, window_bounds = array<i64: 2, 256>}, {pipeline_mode = #tpu.pipeline_mode<synchronous>, transform_indices = @transform_2, window_bounds = array<i64: 16, 147>}, {pipeline_mode = #tpu.pipeline_mode<synchronous>, transform_indices = @transform_3, window_bounds = array<i64: 16, 1>}, {pipeline_mode = #tpu.pipeline_mode<synchronous>, transform_indices = @transform_4, window_bounds = array<i64: 256, 256>}, {pipeline_mode = #tpu.pipeline_mode<synchronous>, transform_indices = @transform_5, window_bounds = array<i64: 64, 1600>}, {pipeline_mode = #tpu.pipeline_mode<synchronous>, transform_indices = @transform_6, window_bounds = array<i64: 32, 400>}, {pipeline_mode = #tpu.pipeline_mode<synchronous>, transform_indices = @transform_7, window_bounds = array<i64: 32, 1>}, {pipeline_mode = #tpu.pipeline_mode<synchronous>, transform_indices = @transform_8, window_bounds = array<i64: 64, 64>}, {pipeline_mode = #tpu.pipeline_mode<synchronous>, transform_indices = @transform_9, window_bounds = array<i64: 16, 144>}, {pipeline_mode = #tpu.pipeline_mode<synchronous>, transform_indices = @transform_10, window_bounds = array<i64: 64, 288>}, {pipeline_mode = #tpu.pipeline_mode<synchronous>, transform_indices = @transform_11, window_bounds = array<i64: 64, 1>}, {pipeline_mode = #tpu.pipeline_mode<synchronous>, transform_indices = @transform_12, window_bounds = array<i64: 16, 16>}, {pipeline_mode = #tpu.pipeline_mode<synchronous>, transform_indices = @transform_13, window_bounds = array<i64: 64, 64>}, {pipeline_mode = #tpu.pipeline_mode<synchronous>, transform_indices = @transform_14, window_bounds = array<i64: 64, 1>}, {pipeline_mode = #tpu.pipeline_mode<synchronous>, transform_indices = @transform_15, window_bounds = array<i64: 4, 36>}, {pipeline_mode = #tpu.pipeline_mode<synchronous>, transform_indices = @transform_16, window_bounds = array<i64: 64, 576>}, {pipeline_mode = #tpu.pipeline_mode<synchronous>, transform_indices = @transform_17, window_bounds = array<i64: 64, 1>}, {pipeline_mode = #tpu.pipeline_mode<synchronous>, transform_indices = @transform_18, window_bounds = array<i64: 64, 576>}, {pipeline_mode = #tpu.pipeline_mode<synchronous>, transform_indices = @transform_19, window_bounds = array<i64: 64, 1>}, {pipeline_mode = #tpu.pipeline_mode<synchronous>, transform_indices = @transform_20, window_bounds = array<i64: 128, 64>}, {pipeline_mode = #tpu.pipeline_mode<synchronous>, transform_indices = @transform_21, window_bounds = array<i64: 128, 1>}, {pipeline_mode = #tpu.pipeline_mode<synchronous>, transform_indices = @transform_22, window_bounds = array<i64: 9, 128>}, {pipeline_mode = #tpu.pipeline_mode<synchronous>, transform_indices = @transform_23, window_bounds = array<i64: 9, 1>}, {transform_indices = @transform_24, window_bounds = array<i64: 1, 9, 1>}, {transform_indices = @transform_25, window_bounds = array<i64: 1, 9, 1>}, {transform_indices = @transform_26, window_bounds = array<i64: 1, 64, 4>}]} {
    %c0 = arith.constant 0 : index
    %c0_0 = arith.constant 0 : index
    %c0_1 = arith.constant 0 : index
    %0 = vector.load %arg1[%c0, %c0_0, %c0_1] : memref<1x3x256xf32, #tpu.memory_space<vmem>>, vector<1x3x256xf32>
    %1 = vector.shape_cast %0 : vector<1x3x256xf32> to vector<3x256xf32>
    %c0_2 = arith.constant 0 : index
    %c0_3 = arith.constant 0 : index
    %2 = vector.load %arg2[%c0_2, %c0_3] : memref<2x256xi32, #tpu.memory_space<vmem>>, vector<1x256xi32>
    %c1 = arith.constant 1 : index
    %c0_4 = arith.constant 0 : index
    %3 = vector.load %arg2[%c1, %c0_4] : memref<2x256xi32, #tpu.memory_space<vmem>>, vector<1x256xi32>
    %cst = arith.constant 0.000000e+00 : f32
    %4 = vector.broadcast %cst : f32 to vector<16x256xf32>
    %c3_i32 = arith.constant 3 : i32
    %5 = vector.broadcast %c3_i32 : i32 to vector<1x256xi32>
    %6 = arith.cmpi sge, %2, %5 : vector<1x256xi32>
    %c19_i32 = arith.constant 19 : i32
    %7 = vector.broadcast %c19_i32 : i32 to vector<1x256xi32>
    %8 = arith.cmpi slt, %2, %7 : vector<1x256xi32>
    %9 = arith.andi %6, %8 : vector<1x256xi1>
    %c3_i32_5 = arith.constant 3 : i32
    %10 = vector.broadcast %c3_i32_5 : i32 to vector<1x256xi32>
    %11 = arith.cmpi sge, %3, %10 : vector<1x256xi32>
    %c19_i32_6 = arith.constant 19 : i32
    %12 = vector.broadcast %c19_i32_6 : i32 to vector<1x256xi32>
    %13 = arith.cmpi slt, %3, %12 : vector<1x256xi32>
    %14 = arith.andi %11, %13 : vector<1x256xi1>
    %c51_i32 = arith.constant 51 : i32
    %15 = tpu.dynamic_rotate %1 by %c51_i32 dim 1 : vector<3x256xf32>, i32 -> vector<3x256xf32>
    %16 = arith.andi %9, %14 : vector<1x256xi1>
    %cst_7 = arith.constant 0.000000e+00 : f32
    %17 = vector.shape_cast %16 : vector<1x256xi1> to vector<1x256xi1>
    %18 = vector.broadcast %17 : vector<1x256xi1> to vector<3x256xi1>
    %19 = vector.broadcast %cst_7 : f32 to vector<3x256xf32>
    %20 = arith.select %18, %15, %19 : vector<3x256xi1>, vector<3x256xf32>
    %21 = arith.truncf %20 : vector<3x256xf32> to vector<3x256xbf16>
    %c0_8 = arith.constant 0 : index
    %c0_9 = arith.constant 0 : index
    %22 = vector.load %arg3[%c0_8, %c0_9] : memref<16x147xbf16, #tpu.memory_space<vmem>>, vector<16x3xbf16>
    %cst_10 = arith.constant dense<0.000000e+00> : vector<16x256xf32>
    %23 = tpu.matmul %22, %21, %cst_10 {dimension_numbers = #tpu.dot_dimension_numbers<[1], [0], [0], [1], [0, 0, 1, 1], [], []>} : vector<16x3xbf16>, vector<3x256xbf16>, vector<16x256xf32> -> vector<16x256xf32>
    %24 = arith.addf %4, %23 : vector<16x256xf32>
    %c2_i32 = arith.constant 2 : i32
    %25 = vector.broadcast %c2_i32 : i32 to vector<1x256xi32>
    %26 = arith.cmpi sge, %3, %25 : vector<1x256xi32>
    %c18_i32 = arith.constant 18 : i32
    %27 = vector.broadcast %c18_i32 : i32 to vector<1x256xi32>
    %28 = arith.cmpi slt, %3, %27 : vector<1x256xi32>
    %29 = arith.andi %26, %28 : vector<1x256xi1>
    %c50_i32 = arith.constant 50 : i32
    %30 = tpu.dynamic_rotate %1 by %c50_i32 dim 1 : vector<3x256xf32>, i32 -> vector<3x256xf32>
    %31 = arith.andi %9, %29 : vector<1x256xi1>
    %cst_11 = arith.constant 0.000000e+00 : f32
    %32 = vector.shape_cast %31 : vector<1x256xi1> to vector<1x256xi1>
    %33 = vector.broadcast %32 : vector<1x256xi1> to vector<3x256xi1>
    %34 = vector.broadcast %cst_11 : f32 to vector<3x256xf32>
    %35 = arith.select %33, %30, %34 : vector<3x256xi1>, vector<3x256xf32>
    %36 = arith.truncf %35 : vector<3x256xf32> to vector<3x256xbf16>
    %c0_12 = arith.constant 0 : index
    %c3 = arith.constant 3 : index
    %37 = vector.load %arg3[%c0_12, %c3] : memref<16x147xbf16, #tpu.memory_space<vmem>>, vector<16x3xbf16>
    %cst_13 = arith.constant dense<0.000000e+00> : vector<16x256xf32>
    %38 = tpu.matmul %37, %36, %cst_13 {dimension_numbers = #tpu.dot_dimension_numbers<[1], [0], [0], [1], [0, 0, 1, 1], [], []>} : vector<16x3xbf16>, vector<3x256xbf16>, vector<16x256xf32> -> vector<16x256xf32>
    %39 = arith.addf %24, %38 : vector<16x256xf32>
    %c1_i32 = arith.constant 1 : i32
    %40 = vector.broadcast %c1_i32 : i32 to vector<1x256xi32>
    %41 = arith.cmpi sge, %3, %40 : vector<1x256xi32>
    %c17_i32 = arith.constant 17 : i32
    %42 = vector.broadcast %c17_i32 : i32 to vector<1x256xi32>
    %43 = arith.cmpi slt, %3, %42 : vector<1x256xi32>
    %44 = arith.andi %41, %43 : vector<1x256xi1>
    %c49_i32 = arith.constant 49 : i32
    %45 = tpu.dynamic_rotate %1 by %c49_i32 dim 1 : vector<3x256xf32>, i32 -> vector<3x256xf32>
    %46 = arith.andi %9, %44 : vector<1x256xi1>
    %cst_14 = arith.constant 0.000000e+00 : f32
    %47 = vector.shape_cast %46 : vector<1x256xi1> to vector<1x256xi1>
    %48 = vector.broadcast %47 : vector<1x256xi1> to vector<3x256xi1>
    %49 = vector.broadcast %cst_14 : f32 to vector<3x256xf32>
    %50 = arith.select %48, %45, %49 : vector<3x256xi1>, vector<3x256xf32>
    %51 = arith.truncf %50 : vector<3x256xf32> to vector<3x256xbf16>
    %c0_15 = arith.constant 0 : index
    %c6 = arith.constant 6 : index
    %52 = vector.load %arg3[%c0_15, %c6] : memref<16x147xbf16, #tpu.memory_space<vmem>>, vector<16x3xbf16>
    %cst_16 = arith.constant dense<0.000000e+00> : vector<16x256xf32>
    %53 = tpu.matmul %52, %51, %cst_16 {dimension_numbers = #tpu.dot_dimension_numbers<[1], [0], [0], [1], [0, 0, 1, 1], [], []>} : vector<16x3xbf16>, vector<3x256xbf16>, vector<16x256xf32> -> vector<16x256xf32>
    %54 = arith.addf %39, %53 : vector<16x256xf32>
    %c0_i32 = arith.constant 0 : i32
    %55 = vector.broadcast %c0_i32 : i32 to vector<1x256xi32>
    %56 = arith.cmpi sge, %3, %55 : vector<1x256xi32>
    %c16_i32 = arith.constant 16 : i32
    %57 = vector.broadcast %c16_i32 : i32 to vector<1x256xi32>
    %58 = arith.cmpi slt, %3, %57 : vector<1x256xi32>
    %59 = arith.andi %56, %58 : vector<1x256xi1>
    %c48_i32 = arith.constant 48 : i32
    %60 = tpu.dynamic_rotate %1 by %c48_i32 dim 1 : vector<3x256xf32>, i32 -> vector<3x256xf32>
    %61 = arith.andi %9, %59 : vector<1x256xi1>
    %cst_17 = arith.constant 0.000000e+00 : f32
    %62 = vector.shape_cast %61 : vector<1x256xi1> to vector<1x256xi1>
    %63 = vector.broadcast %62 : vector<1x256xi1> to vector<3x256xi1>
    %64 = vector.broadcast %cst_17 : f32 to vector<3x256xf32>
    %65 = arith.select %63, %60, %64 : vector<3x256xi1>, vector<3x256xf32>
    %66 = arith.truncf %65 : vector<3x256xf32> to vector<3x256xbf16>
    %c0_18 = arith.constant 0 : index
    %c9 = arith.constant 9 : index
    %67 = vector.load %arg3[%c0_18, %c9] : memref<16x147xbf16, #tpu.memory_space<vmem>>, vector<16x3xbf16>
    %cst_19 = arith.constant dense<0.000000e+00> : vector<16x256xf32>
    %68 = tpu.matmul %67, %66, %cst_19 {dimension_numbers = #tpu.dot_dimension_numbers<[1], [0], [0], [1], [0, 0, 1, 1], [], []>} : vector<16x3xbf16>, vector<3x256xbf16>, vector<16x256xf32> -> vector<16x256xf32>
    %69 = arith.addf %54, %68 : vector<16x256xf32>
    %c-1_i32 = arith.constant -1 : i32
    %70 = vector.broadcast %c-1_i32 : i32 to vector<1x256xi32>
    %71 = arith.cmpi sge, %3, %70 : vector<1x256xi32>
    %c15_i32 = arith.constant 15 : i32
    %72 = vector.broadcast %c15_i32 : i32 to vector<1x256xi32>
    %73 = arith.cmpi slt, %3, %72 : vector<1x256xi32>
    %74 = arith.andi %71, %73 : vector<1x256xi1>
    %c47_i32 = arith.constant 47 : i32
    %75 = tpu.dynamic_rotate %1 by %c47_i32 dim 1 : vector<3x256xf32>, i32 -> vector<3x256xf32>
    %76 = arith.andi %9, %74 : vector<1x256xi1>
    %cst_20 = arith.constant 0.000000e+00 : f32
    %77 = vector.shape_cast %76 : vector<1x256xi1> to vector<1x256xi1>
    %78 = vector.broadcast %77 : vector<1x256xi1> to vector<3x256xi1>
    %79 = vector.broadcast %cst_20 : f32 to vector<3x256xf32>
    %80 = arith.select %78, %75, %79 : vector<3x256xi1>, vector<3x256xf32>
    %81 = arith.truncf %80 : vector<3x256xf32> to vector<3x256xbf16>
    %c0_21 = arith.constant 0 : index
    %c12 = arith.constant 12 : index
    %82 = vector.load %arg3[%c0_21, %c12] : memref<16x147xbf16, #tpu.memory_space<vmem>>, vector<16x3xbf16>
    %cst_22 = arith.constant dense<0.000000e+00> : vector<16x256xf32>
    %83 = tpu.matmul %82, %81, %cst_22 {dimension_numbers = #tpu.dot_dimension_numbers<[1], [0], [0], [1], [0, 0, 1, 1], [], []>} : vector<16x3xbf16>, vector<3x256xbf16>, vector<16x256xf32> -> vector<16x256xf32>
    %84 = arith.addf %69, %83 : vector<16x256xf32>
    %c-2_i32 = arith.constant -2 : i32
    %85 = vector.broadcast %c-2_i32 : i32 to vector<1x256xi32>
    %86 = arith.cmpi sge, %3, %85 : vector<1x256xi32>
    %c14_i32 = arith.constant 14 : i32
    %87 = vector.broadcast %c14_i32 : i32 to vector<1x256xi32>
    %88 = arith.cmpi slt, %3, %87 : vector<1x256xi32>
    %89 = arith.andi %86, %88 : vector<1x256xi1>
    %c46_i32 = arith.constant 46 : i32
    %90 = tpu.dynamic_rotate %1 by %c46_i32 dim 1 : vector<3x256xf32>, i32 -> vector<3x256xf32>
    %91 = arith.andi %9, %89 : vector<1x256xi1>
    %cst_23 = arith.constant 0.000000e+00 : f32
    %92 = vector.shape_cast %91 : vector<1x256xi1> to vector<1x256xi1>
    %93 = vector.broadcast %92 : vector<1x256xi1> to vector<3x256xi1>
    %94 = vector.broadcast %cst_23 : f32 to vector<3x256xf32>
    %95 = arith.select %93, %90, %94 : vector<3x256xi1>, vector<3x256xf32>
    %96 = arith.truncf %95 : vector<3x256xf32> to vector<3x256xbf16>
    %c0_24 = arith.constant 0 : index
    %c15 = arith.constant 15 : index
    %97 = vector.load %arg3[%c0_24, %c15] : memref<16x147xbf16, #tpu.memory_space<vmem>>, vector<16x3xbf16>
    %cst_25 = arith.constant dense<0.000000e+00> : vector<16x256xf32>
    %98 = tpu.matmul %97, %96, %cst_25 {dimension_numbers = #tpu.dot_dimension_numbers<[1], [0], [0], [1], [0, 0, 1, 1], [], []>} : vector<16x3xbf16>, vector<3x256xbf16>, vector<16x256xf32> -> vector<16x256xf32>
    %99 = arith.addf %84, %98 : vector<16x256xf32>
    %c-3_i32 = arith.constant -3 : i32
    %100 = vector.broadcast %c-3_i32 : i32 to vector<1x256xi32>
    %101 = arith.cmpi sge, %3, %100 : vector<1x256xi32>
    %c13_i32 = arith.constant 13 : i32
    %102 = vector.broadcast %c13_i32 : i32 to vector<1x256xi32>
    %103 = arith.cmpi slt, %3, %102 : vector<1x256xi32>
    %104 = arith.andi %101, %103 : vector<1x256xi1>
    %c45_i32 = arith.constant 45 : i32
    %105 = tpu.dynamic_rotate %1 by %c45_i32 dim 1 : vector<3x256xf32>, i32 -> vector<3x256xf32>
    %106 = arith.andi %9, %104 : vector<1x256xi1>
    %cst_26 = arith.constant 0.000000e+00 : f32
    %107 = vector.shape_cast %106 : vector<1x256xi1> to vector<1x256xi1>
    %108 = vector.broadcast %107 : vector<1x256xi1> to vector<3x256xi1>
    %109 = vector.broadcast %cst_26 : f32 to vector<3x256xf32>
    %110 = arith.select %108, %105, %109 : vector<3x256xi1>, vector<3x256xf32>
    %111 = arith.truncf %110 : vector<3x256xf32> to vector<3x256xbf16>
    %c0_27 = arith.constant 0 : index
    %c18 = arith.constant 18 : index
    %112 = vector.load %arg3[%c0_27, %c18] : memref<16x147xbf16, #tpu.memory_space<vmem>>, vector<16x3xbf16>
    %cst_28 = arith.constant dense<0.000000e+00> : vector<16x256xf32>
    %113 = tpu.matmul %112, %111, %cst_28 {dimension_numbers = #tpu.dot_dimension_numbers<[1], [0], [0], [1], [0, 0, 1, 1], [], []>} : vector<16x3xbf16>, vector<3x256xbf16>, vector<16x256xf32> -> vector<16x256xf32>
    %114 = arith.addf %99, %113 : vector<16x256xf32>
    %c2_i32_29 = arith.constant 2 : i32
    %115 = vector.broadcast %c2_i32_29 : i32 to vector<1x256xi32>
    %116 = arith.cmpi sge, %2, %115 : vector<1x256xi32>
    %c18_i32_30 = arith.constant 18 : i32
    %117 = vector.broadcast %c18_i32_30 : i32 to vector<1x256xi32>
    %118 = arith.cmpi slt, %2, %117 : vector<1x256xi32>
    %119 = arith.andi %116, %118 : vector<1x256xi1>
    %c3_i32_31 = arith.constant 3 : i32
    %120 = vector.broadcast %c3_i32_31 : i32 to vector<1x256xi32>
    %121 = arith.cmpi sge, %3, %120 : vector<1x256xi32>
    %c19_i32_32 = arith.constant 19 : i32
    %122 = vector.broadcast %c19_i32_32 : i32 to vector<1x256xi32>
    %123 = arith.cmpi slt, %3, %122 : vector<1x256xi32>
    %124 = arith.andi %121, %123 : vector<1x256xi1>
    %c35_i32 = arith.constant 35 : i32
    %125 = tpu.dynamic_rotate %1 by %c35_i32 dim 1 : vector<3x256xf32>, i32 -> vector<3x256xf32>
    %126 = arith.andi %119, %124 : vector<1x256xi1>
    %cst_33 = arith.constant 0.000000e+00 : f32
    %127 = vector.shape_cast %126 : vector<1x256xi1> to vector<1x256xi1>
    %128 = vector.broadcast %127 : vector<1x256xi1> to vector<3x256xi1>
    %129 = vector.broadcast %cst_33 : f32 to vector<3x256xf32>
    %130 = arith.select %128, %125, %129 : vector<3x256xi1>, vector<3x256xf32>
    %131 = arith.truncf %130 : vector<3x256xf32> to vector<3x256xbf16>
    %c0_34 = arith.constant 0 : index
    %c21 = arith.constant 21 : index
    %132 = vector.load %arg3[%c0_34, %c21] : memref<16x147xbf16, #tpu.memory_space<vmem>>, vector<16x3xbf16>
    %cst_35 = arith.constant dense<0.000000e+00> : vector<16x256xf32>
    %133 = tpu.matmul %132, %131, %cst_35 {dimension_numbers = #tpu.dot_dimension_numbers<[1], [0], [0], [1], [0, 0, 1, 1], [], []>} : vector<16x3xbf16>, vector<3x256xbf16>, vector<16x256xf32> -> vector<16x256xf32>
    %134 = arith.addf %114, %133 : vector<16x256xf32>
    %c2_i32_36 = arith.constant 2 : i32
    %135 = vector.broadcast %c2_i32_36 : i32 to vector<1x256xi32>
    %136 = arith.cmpi sge, %3, %135 : vector<1x256xi32>
    %c18_i32_37 = arith.constant 18 : i32
    %137 = vector.broadcast %c18_i32_37 : i32 to vector<1x256xi32>
    %138 = arith.cmpi slt, %3, %137 : vector<1x256xi32>
    %139 = arith.andi %136, %138 : vector<1x256xi1>
    %c34_i32 = arith.constant 34 : i32
    %140 = tpu.dynamic_rotate %1 by %c34_i32 dim 1 : vector<3x256xf32>, i32 -> vector<3x256xf32>
    %141 = arith.andi %119, %139 : vector<1x256xi1>
    %cst_38 = arith.constant 0.000000e+00 : f32
    %142 = vector.shape_cast %141 : vector<1x256xi1> to vector<1x256xi1>
    %143 = vector.broadcast %142 : vector<1x256xi1> to vector<3x256xi1>
    %144 = vector.broadcast %cst_38 : f32 to vector<3x256xf32>
    %145 = arith.select %143, %140, %144 : vector<3x256xi1>, vector<3x256xf32>
    %146 = arith.truncf %145 : vector<3x256xf32> to vector<3x256xbf16>
    %c0_39 = arith.constant 0 : index
    %c24 = arith.constant 24 : index
    %147 = vector.load %arg3[%c0_39, %c24] : memref<16x147xbf16, #tpu.memory_space<vmem>>, vector<16x3xbf16>
    %cst_40 = arith.constant dense<0.000000e+00> : vector<16x256xf32>
    %148 = tpu.matmul %147, %146, %cst_40 {dimension_numbers = #tpu.dot_dimension_numbers<[1], [0], [0], [1], [0, 0, 1, 1], [], []>} : vector<16x3xbf16>, vector<3x256xbf16>, vector<16x256xf32> -> vector<16x256xf32>
    %149 = arith.addf %134, %148 : vector<16x256xf32>
    %c1_i32_41 = arith.constant 1 : i32
    %150 = vector.broadcast %c1_i32_41 : i32 to vector<1x256xi32>
    %151 = arith.cmpi sge, %3, %150 : vector<1x256xi32>
    %c17_i32_42 = arith.constant 17 : i32
    %152 = vector.broadcast %c17_i32_42 : i32 to vector<1x256xi32>
    %153 = arith.cmpi slt, %3, %152 : vector<1x256xi32>
    %154 = arith.andi %151, %153 : vector<1x256xi1>
    %c33_i32 = arith.constant 33 : i32
    %155 = tpu.dynamic_rotate %1 by %c33_i32 dim 1 : vector<3x256xf32>, i32 -> vector<3x256xf32>
    %156 = arith.andi %119, %154 : vector<1x256xi1>
    %cst_43 = arith.constant 0.000000e+00 : f32
    %157 = vector.shape_cast %156 : vector<1x256xi1> to vector<1x256xi1>
    %158 = vector.broadcast %157 : vector<1x256xi1> to vector<3x256xi1>
    %159 = vector.broadcast %cst_43 : f32 to vector<3x256xf32>
    %160 = arith.select %158, %155, %159 : vector<3x256xi1>, vector<3x256xf32>
    %161 = arith.truncf %160 : vector<3x256xf32> to vector<3x256xbf16>
    %c0_44 = arith.constant 0 : index
    %c27 = arith.constant 27 : index
    %162 = vector.load %arg3[%c0_44, %c27] : memref<16x147xbf16, #tpu.memory_space<vmem>>, vector<16x3xbf16>
    %cst_45 = arith.constant dense<0.000000e+00> : vector<16x256xf32>
    %163 = tpu.matmul %162, %161, %cst_45 {dimension_numbers = #tpu.dot_dimension_numbers<[1], [0], [0], [1], [0, 0, 1, 1], [], []>} : vector<16x3xbf16>, vector<3x256xbf16>, vector<16x256xf32> -> vector<16x256xf32>
    %164 = arith.addf %149, %163 : vector<16x256xf32>
    %c0_i32_46 = arith.constant 0 : i32
    %165 = vector.broadcast %c0_i32_46 : i32 to vector<1x256xi32>
    %166 = arith.cmpi sge, %3, %165 : vector<1x256xi32>
    %c16_i32_47 = arith.constant 16 : i32
    %167 = vector.broadcast %c16_i32_47 : i32 to vector<1x256xi32>
    %168 = arith.cmpi slt, %3, %167 : vector<1x256xi32>
    %169 = arith.andi %166, %168 : vector<1x256xi1>
    %c32_i32 = arith.constant 32 : i32
    %170 = tpu.dynamic_rotate %1 by %c32_i32 dim 1 : vector<3x256xf32>, i32 -> vector<3x256xf32>
    %171 = arith.andi %119, %169 : vector<1x256xi1>
    %cst_48 = arith.constant 0.000000e+00 : f32
    %172 = vector.shape_cast %171 : vector<1x256xi1> to vector<1x256xi1>
    %173 = vector.broadcast %172 : vector<1x256xi1> to vector<3x256xi1>
    %174 = vector.broadcast %cst_48 : f32 to vector<3x256xf32>
    %175 = arith.select %173, %170, %174 : vector<3x256xi1>, vector<3x256xf32>
    %176 = arith.truncf %175 : vector<3x256xf32> to vector<3x256xbf16>
    %c0_49 = arith.constant 0 : index
    %c30 = arith.constant 30 : index
    %177 = vector.load %arg3[%c0_49, %c30] : memref<16x147xbf16, #tpu.memory_space<vmem>>, vector<16x3xbf16>
    %cst_50 = arith.constant dense<0.000000e+00> : vector<16x256xf32>
    %178 = tpu.matmul %177, %176, %cst_50 {dimension_numbers = #tpu.dot_dimension_numbers<[1], [0], [0], [1], [0, 0, 1, 1], [], []>} : vector<16x3xbf16>, vector<3x256xbf16>, vector<16x256xf32> -> vector<16x256xf32>
    %179 = arith.addf %164, %178 : vector<16x256xf32>
    %c-1_i32_51 = arith.constant -1 : i32
    %180 = vector.broadcast %c-1_i32_51 : i32 to vector<1x256xi32>
    %181 = arith.cmpi sge, %3, %180 : vector<1x256xi32>
    %c15_i32_52 = arith.constant 15 : i32
    %182 = vector.broadcast %c15_i32_52 : i32 to vector<1x256xi32>
    %183 = arith.cmpi slt, %3, %182 : vector<1x256xi32>
    %184 = arith.andi %181, %183 : vector<1x256xi1>
    %c31_i32 = arith.constant 31 : i32
    %185 = tpu.dynamic_rotate %1 by %c31_i32 dim 1 : vector<3x256xf32>, i32 -> vector<3x256xf32>
    %186 = arith.andi %119, %184 : vector<1x256xi1>
    %cst_53 = arith.constant 0.000000e+00 : f32
    %187 = vector.shape_cast %186 : vector<1x256xi1> to vector<1x256xi1>
    %188 = vector.broadcast %187 : vector<1x256xi1> to vector<3x256xi1>
    %189 = vector.broadcast %cst_53 : f32 to vector<3x256xf32>
    %190 = arith.select %188, %185, %189 : vector<3x256xi1>, vector<3x256xf32>
    %191 = arith.truncf %190 : vector<3x256xf32> to vector<3x256xbf16>
    %c0_54 = arith.constant 0 : index
    %c33 = arith.constant 33 : index
    %192 = vector.load %arg3[%c0_54, %c33] : memref<16x147xbf16, #tpu.memory_space<vmem>>, vector<16x3xbf16>
    %cst_55 = arith.constant dense<0.000000e+00> : vector<16x256xf32>
    %193 = tpu.matmul %192, %191, %cst_55 {dimension_numbers = #tpu.dot_dimension_numbers<[1], [0], [0], [1], [0, 0, 1, 1], [], []>} : vector<16x3xbf16>, vector<3x256xbf16>, vector<16x256xf32> -> vector<16x256xf32>
    %194 = arith.addf %179, %193 : vector<16x256xf32>
    %c-2_i32_56 = arith.constant -2 : i32
    %195 = vector.broadcast %c-2_i32_56 : i32 to vector<1x256xi32>
    %196 = arith.cmpi sge, %3, %195 : vector<1x256xi32>
    %c14_i32_57 = arith.constant 14 : i32
    %197 = vector.broadcast %c14_i32_57 : i32 to vector<1x256xi32>
    %198 = arith.cmpi slt, %3, %197 : vector<1x256xi32>
    %199 = arith.andi %196, %198 : vector<1x256xi1>
    %c30_i32 = arith.constant 30 : i32
    %200 = tpu.dynamic_rotate %1 by %c30_i32 dim 1 : vector<3x256xf32>, i32 -> vector<3x256xf32>
    %201 = arith.andi %119, %199 : vector<1x256xi1>
    %cst_58 = arith.constant 0.000000e+00 : f32
    %202 = vector.shape_cast %201 : vector<1x256xi1> to vector<1x256xi1>
    %203 = vector.broadcast %202 : vector<1x256xi1> to vector<3x256xi1>
    %204 = vector.broadcast %cst_58 : f32 to vector<3x256xf32>
    %205 = arith.select %203, %200, %204 : vector<3x256xi1>, vector<3x256xf32>
    %206 = arith.truncf %205 : vector<3x256xf32> to vector<3x256xbf16>
    %c0_59 = arith.constant 0 : index
    %c36 = arith.constant 36 : index
    %207 = vector.load %arg3[%c0_59, %c36] : memref<16x147xbf16, #tpu.memory_space<vmem>>, vector<16x3xbf16>
    %cst_60 = arith.constant dense<0.000000e+00> : vector<16x256xf32>
    %208 = tpu.matmul %207, %206, %cst_60 {dimension_numbers = #tpu.dot_dimension_numbers<[1], [0], [0], [1], [0, 0, 1, 1], [], []>} : vector<16x3xbf16>, vector<3x256xbf16>, vector<16x256xf32> -> vector<16x256xf32>
    %209 = arith.addf %194, %208 : vector<16x256xf32>
    %c-3_i32_61 = arith.constant -3 : i32
    %210 = vector.broadcast %c-3_i32_61 : i32 to vector<1x256xi32>
    %211 = arith.cmpi sge, %3, %210 : vector<1x256xi32>
    %c13_i32_62 = arith.constant 13 : i32
    %212 = vector.broadcast %c13_i32_62 : i32 to vector<1x256xi32>
    %213 = arith.cmpi slt, %3, %212 : vector<1x256xi32>
    %214 = arith.andi %211, %213 : vector<1x256xi1>
    %c29_i32 = arith.constant 29 : i32
    %215 = tpu.dynamic_rotate %1 by %c29_i32 dim 1 : vector<3x256xf32>, i32 -> vector<3x256xf32>
    %216 = arith.andi %119, %214 : vector<1x256xi1>
    %cst_63 = arith.constant 0.000000e+00 : f32
    %217 = vector.shape_cast %216 : vector<1x256xi1> to vector<1x256xi1>
    %218 = vector.broadcast %217 : vector<1x256xi1> to vector<3x256xi1>
    %219 = vector.broadcast %cst_63 : f32 to vector<3x256xf32>
    %220 = arith.select %218, %215, %219 : vector<3x256xi1>, vector<3x256xf32>
    %221 = arith.truncf %220 : vector<3x256xf32> to vector<3x256xbf16>
    %c0_64 = arith.constant 0 : index
    %c39 = arith.constant 39 : index
    %222 = vector.load %arg3[%c0_64, %c39] : memref<16x147xbf16, #tpu.memory_space<vmem>>, vector<16x3xbf16>
    %cst_65 = arith.constant dense<0.000000e+00> : vector<16x256xf32>
    %223 = tpu.matmul %222, %221, %cst_65 {dimension_numbers = #tpu.dot_dimension_numbers<[1], [0], [0], [1], [0, 0, 1, 1], [], []>} : vector<16x3xbf16>, vector<3x256xbf16>, vector<16x256xf32> -> vector<16x256xf32>
    %224 = arith.addf %209, %223 : vector<16x256xf32>
    %c1_i32_66 = arith.constant 1 : i32
    %225 = vector.broadcast %c1_i32_66 : i32 to vector<1x256xi32>
    %226 = arith.cmpi sge, %2, %225 : vector<1x256xi32>
    %c17_i32_67 = arith.constant 17 : i32
    %227 = vector.broadcast %c17_i32_67 : i32 to vector<1x256xi32>
    %228 = arith.cmpi slt, %2, %227 : vector<1x256xi32>
    %229 = arith.andi %226, %228 : vector<1x256xi1>
    %c3_i32_68 = arith.constant 3 : i32
    %230 = vector.broadcast %c3_i32_68 : i32 to vector<1x256xi32>
    %231 = arith.cmpi sge, %3, %230 : vector<1x256xi32>
    %c19_i32_69 = arith.constant 19 : i32
    %232 = vector.broadcast %c19_i32_69 : i32 to vector<1x256xi32>
    %233 = arith.cmpi slt, %3, %232 : vector<1x256xi32>
    %234 = arith.andi %231, %233 : vector<1x256xi1>
    %c19_i32_70 = arith.constant 19 : i32
    %235 = tpu.dynamic_rotate %1 by %c19_i32_70 dim 1 : vector<3x256xf32>, i32 -> vector<3x256xf32>
    %236 = arith.andi %229, %234 : vector<1x256xi1>
    %cst_71 = arith.constant 0.000000e+00 : f32
    %237 = vector.shape_cast %236 : vector<1x256xi1> to vector<1x256xi1>
    %238 = vector.broadcast %237 : vector<1x256xi1> to vector<3x256xi1>
    %239 = vector.broadcast %cst_71 : f32 to vector<3x256xf32>
    %240 = arith.select %238, %235, %239 : vector<3x256xi1>, vector<3x256xf32>
    %241 = arith.truncf %240 : vector<3x256xf32> to vector<3x256xbf16>
    %c0_72 = arith.constant 0 : index
    %c42 = arith.constant 42 : index
    %242 = vector.load %arg3[%c0_72, %c42] : memref<16x147xbf16, #tpu.memory_space<vmem>>, vector<16x3xbf16>
    %cst_73 = arith.constant dense<0.000000e+00> : vector<16x256xf32>
    %243 = tpu.matmul %242, %241, %cst_73 {dimension_numbers = #tpu.dot_dimension_numbers<[1], [0], [0], [1], [0, 0, 1, 1], [], []>} : vector<16x3xbf16>, vector<3x256xbf16>, vector<16x256xf32> -> vector<16x256xf32>
    %244 = arith.addf %224, %243 : vector<16x256xf32>
    %c2_i32_74 = arith.constant 2 : i32
    %245 = vector.broadcast %c2_i32_74 : i32 to vector<1x256xi32>
    %246 = arith.cmpi sge, %3, %245 : vector<1x256xi32>
    %c18_i32_75 = arith.constant 18 : i32
    %247 = vector.broadcast %c18_i32_75 : i32 to vector<1x256xi32>
    %248 = arith.cmpi slt, %3, %247 : vector<1x256xi32>
    %249 = arith.andi %246, %248 : vector<1x256xi1>
    %c18_i32_76 = arith.constant 18 : i32
    %250 = tpu.dynamic_rotate %1 by %c18_i32_76 dim 1 : vector<3x256xf32>, i32 -> vector<3x256xf32>
    %251 = arith.andi %229, %249 : vector<1x256xi1>
    %cst_77 = arith.constant 0.000000e+00 : f32
    %252 = vector.shape_cast %251 : vector<1x256xi1> to vector<1x256xi1>
    %253 = vector.broadcast %252 : vector<1x256xi1> to vector<3x256xi1>
    %254 = vector.broadcast %cst_77 : f32 to vector<3x256xf32>
    %255 = arith.select %253, %250, %254 : vector<3x256xi1>, vector<3x256xf32>
    %256 = arith.truncf %255 : vector<3x256xf32> to vector<3x256xbf16>
    %c0_78 = arith.constant 0 : index
    %c45 = arith.constant 45 : index
    %257 = vector.load %arg3[%c0_78, %c45] : memref<16x147xbf16, #tpu.memory_space<vmem>>, vector<16x3xbf16>
    %cst_79 = arith.constant dense<0.000000e+00> : vector<16x256xf32>
    %258 = tpu.matmul %257, %256, %cst_79 {dimension_numbers = #tpu.dot_dimension_numbers<[1], [0], [0], [1], [0, 0, 1, 1], [], []>} : vector<16x3xbf16>, vector<3x256xbf16>, vector<16x256xf32> -> vector<16x256xf32>
    %259 = arith.addf %244, %258 : vector<16x256xf32>
    %c1_i32_80 = arith.constant 1 : i32
    %260 = vector.broadcast %c1_i32_80 : i32 to vector<1x256xi32>
    %261 = arith.cmpi sge, %3, %260 : vector<1x256xi32>
    %c17_i32_81 = arith.constant 17 : i32
    %262 = vector.broadcast %c17_i32_81 : i32 to vector<1x256xi32>
    %263 = arith.cmpi slt, %3, %262 : vector<1x256xi32>
    %264 = arith.andi %261, %263 : vector<1x256xi1>
    %c17_i32_82 = arith.constant 17 : i32
    %265 = tpu.dynamic_rotate %1 by %c17_i32_82 dim 1 : vector<3x256xf32>, i32 -> vector<3x256xf32>
    %266 = arith.andi %229, %264 : vector<1x256xi1>
    %cst_83 = arith.constant 0.000000e+00 : f32
    %267 = vector.shape_cast %266 : vector<1x256xi1> to vector<1x256xi1>
    %268 = vector.broadcast %267 : vector<1x256xi1> to vector<3x256xi1>
    %269 = vector.broadcast %cst_83 : f32 to vector<3x256xf32>
    %270 = arith.select %268, %265, %269 : vector<3x256xi1>, vector<3x256xf32>
    %271 = arith.truncf %270 : vector<3x256xf32> to vector<3x256xbf16>
    %c0_84 = arith.constant 0 : index
    %c48 = arith.constant 48 : index
    %272 = vector.load %arg3[%c0_84, %c48] : memref<16x147xbf16, #tpu.memory_space<vmem>>, vector<16x3xbf16>
    %cst_85 = arith.constant dense<0.000000e+00> : vector<16x256xf32>
    %273 = tpu.matmul %272, %271, %cst_85 {dimension_numbers = #tpu.dot_dimension_numbers<[1], [0], [0], [1], [0, 0, 1, 1], [], []>} : vector<16x3xbf16>, vector<3x256xbf16>, vector<16x256xf32> -> vector<16x256xf32>
    %274 = arith.addf %259, %273 : vector<16x256xf32>
    %c0_i32_86 = arith.constant 0 : i32
    %275 = vector.broadcast %c0_i32_86 : i32 to vector<1x256xi32>
    %276 = arith.cmpi sge, %3, %275 : vector<1x256xi32>
    %c16_i32_87 = arith.constant 16 : i32
    %277 = vector.broadcast %c16_i32_87 : i32 to vector<1x256xi32>
    %278 = arith.cmpi slt, %3, %277 : vector<1x256xi32>
    %279 = arith.andi %276, %278 : vector<1x256xi1>
    %c16_i32_88 = arith.constant 16 : i32
    %280 = tpu.dynamic_rotate %1 by %c16_i32_88 dim 1 : vector<3x256xf32>, i32 -> vector<3x256xf32>
    %281 = arith.andi %229, %279 : vector<1x256xi1>
    %cst_89 = arith.constant 0.000000e+00 : f32
    %282 = vector.shape_cast %281 : vector<1x256xi1> to vector<1x256xi1>
    %283 = vector.broadcast %282 : vector<1x256xi1> to vector<3x256xi1>
    %284 = vector.broadcast %cst_89 : f32 to vector<3x256xf32>
    %285 = arith.select %283, %280, %284 : vector<3x256xi1>, vector<3x256xf32>
    %286 = arith.truncf %285 : vector<3x256xf32> to vector<3x256xbf16>
    %c0_90 = arith.constant 0 : index
    %c51 = arith.constant 51 : index
    %287 = vector.load %arg3[%c0_90, %c51] : memref<16x147xbf16, #tpu.memory_space<vmem>>, vector<16x3xbf16>
    %cst_91 = arith.constant dense<0.000000e+00> : vector<16x256xf32>
    %288 = tpu.matmul %287, %286, %cst_91 {dimension_numbers = #tpu.dot_dimension_numbers<[1], [0], [0], [1], [0, 0, 1, 1], [], []>} : vector<16x3xbf16>, vector<3x256xbf16>, vector<16x256xf32> -> vector<16x256xf32>
    %289 = arith.addf %274, %288 : vector<16x256xf32>
    %c-1_i32_92 = arith.constant -1 : i32
    %290 = vector.broadcast %c-1_i32_92 : i32 to vector<1x256xi32>
    %291 = arith.cmpi sge, %3, %290 : vector<1x256xi32>
    %c15_i32_93 = arith.constant 15 : i32
    %292 = vector.broadcast %c15_i32_93 : i32 to vector<1x256xi32>
    %293 = arith.cmpi slt, %3, %292 : vector<1x256xi32>
    %294 = arith.andi %291, %293 : vector<1x256xi1>
    %c15_i32_94 = arith.constant 15 : i32
    %295 = tpu.dynamic_rotate %1 by %c15_i32_94 dim 1 : vector<3x256xf32>, i32 -> vector<3x256xf32>
    %296 = arith.andi %229, %294 : vector<1x256xi1>
    %cst_95 = arith.constant 0.000000e+00 : f32
    %297 = vector.shape_cast %296 : vector<1x256xi1> to vector<1x256xi1>
    %298 = vector.broadcast %297 : vector<1x256xi1> to vector<3x256xi1>
    %299 = vector.broadcast %cst_95 : f32 to vector<3x256xf32>
    %300 = arith.select %298, %295, %299 : vector<3x256xi1>, vector<3x256xf32>
    %301 = arith.truncf %300 : vector<3x256xf32> to vector<3x256xbf16>
    %c0_96 = arith.constant 0 : index
    %c54 = arith.constant 54 : index
    %302 = vector.load %arg3[%c0_96, %c54] : memref<16x147xbf16, #tpu.memory_space<vmem>>, vector<16x3xbf16>
    %cst_97 = arith.constant dense<0.000000e+00> : vector<16x256xf32>
    %303 = tpu.matmul %302, %301, %cst_97 {dimension_numbers = #tpu.dot_dimension_numbers<[1], [0], [0], [1], [0, 0, 1, 1], [], []>} : vector<16x3xbf16>, vector<3x256xbf16>, vector<16x256xf32> -> vector<16x256xf32>
    %304 = arith.addf %289, %303 : vector<16x256xf32>
    %c-2_i32_98 = arith.constant -2 : i32
    %305 = vector.broadcast %c-2_i32_98 : i32 to vector<1x256xi32>
    %306 = arith.cmpi sge, %3, %305 : vector<1x256xi32>
    %c14_i32_99 = arith.constant 14 : i32
    %307 = vector.broadcast %c14_i32_99 : i32 to vector<1x256xi32>
    %308 = arith.cmpi slt, %3, %307 : vector<1x256xi32>
    %309 = arith.andi %306, %308 : vector<1x256xi1>
    %c14_i32_100 = arith.constant 14 : i32
    %310 = tpu.dynamic_rotate %1 by %c14_i32_100 dim 1 : vector<3x256xf32>, i32 -> vector<3x256xf32>
    %311 = arith.andi %229, %309 : vector<1x256xi1>
    %cst_101 = arith.constant 0.000000e+00 : f32
    %312 = vector.shape_cast %311 : vector<1x256xi1> to vector<1x256xi1>
    %313 = vector.broadcast %312 : vector<1x256xi1> to vector<3x256xi1>
    %314 = vector.broadcast %cst_101 : f32 to vector<3x256xf32>
    %315 = arith.select %313, %310, %314 : vector<3x256xi1>, vector<3x256xf32>
    %316 = arith.truncf %315 : vector<3x256xf32> to vector<3x256xbf16>
    %c0_102 = arith.constant 0 : index
    %c57 = arith.constant 57 : index
    %317 = vector.load %arg3[%c0_102, %c57] : memref<16x147xbf16, #tpu.memory_space<vmem>>, vector<16x3xbf16>
    %cst_103 = arith.constant dense<0.000000e+00> : vector<16x256xf32>
    %318 = tpu.matmul %317, %316, %cst_103 {dimension_numbers = #tpu.dot_dimension_numbers<[1], [0], [0], [1], [0, 0, 1, 1], [], []>} : vector<16x3xbf16>, vector<3x256xbf16>, vector<16x256xf32> -> vector<16x256xf32>
    %319 = arith.addf %304, %318 : vector<16x256xf32>
    %c-3_i32_104 = arith.constant -3 : i32
    %320 = vector.broadcast %c-3_i32_104 : i32 to vector<1x256xi32>
    %321 = arith.cmpi sge, %3, %320 : vector<1x256xi32>
    %c13_i32_105 = arith.constant 13 : i32
    %322 = vector.broadcast %c13_i32_105 : i32 to vector<1x256xi32>
    %323 = arith.cmpi slt, %3, %322 : vector<1x256xi32>
    %324 = arith.andi %321, %323 : vector<1x256xi1>
    %c13_i32_106 = arith.constant 13 : i32
    %325 = tpu.dynamic_rotate %1 by %c13_i32_106 dim 1 : vector<3x256xf32>, i32 -> vector<3x256xf32>
    %326 = arith.andi %229, %324 : vector<1x256xi1>
    %cst_107 = arith.constant 0.000000e+00 : f32
    %327 = vector.shape_cast %326 : vector<1x256xi1> to vector<1x256xi1>
    %328 = vector.broadcast %327 : vector<1x256xi1> to vector<3x256xi1>
    %329 = vector.broadcast %cst_107 : f32 to vector<3x256xf32>
    %330 = arith.select %328, %325, %329 : vector<3x256xi1>, vector<3x256xf32>
    %331 = arith.truncf %330 : vector<3x256xf32> to vector<3x256xbf16>
    %c0_108 = arith.constant 0 : index
    %c60 = arith.constant 60 : index
    %332 = vector.load %arg3[%c0_108, %c60] : memref<16x147xbf16, #tpu.memory_space<vmem>>, vector<16x3xbf16>
    %cst_109 = arith.constant dense<0.000000e+00> : vector<16x256xf32>
    %333 = tpu.matmul %332, %331, %cst_109 {dimension_numbers = #tpu.dot_dimension_numbers<[1], [0], [0], [1], [0, 0, 1, 1], [], []>} : vector<16x3xbf16>, vector<3x256xbf16>, vector<16x256xf32> -> vector<16x256xf32>
    %334 = arith.addf %319, %333 : vector<16x256xf32>
    %c0_i32_110 = arith.constant 0 : i32
    %335 = vector.broadcast %c0_i32_110 : i32 to vector<1x256xi32>
    %336 = arith.cmpi sge, %2, %335 : vector<1x256xi32>
    %c16_i32_111 = arith.constant 16 : i32
    %337 = vector.broadcast %c16_i32_111 : i32 to vector<1x256xi32>
    %338 = arith.cmpi slt, %2, %337 : vector<1x256xi32>
    %339 = arith.andi %336, %338 : vector<1x256xi1>
    %c3_i32_112 = arith.constant 3 : i32
    %340 = vector.broadcast %c3_i32_112 : i32 to vector<1x256xi32>
    %341 = arith.cmpi sge, %3, %340 : vector<1x256xi32>
    %c19_i32_113 = arith.constant 19 : i32
    %342 = vector.broadcast %c19_i32_113 : i32 to vector<1x256xi32>
    %343 = arith.cmpi slt, %3, %342 : vector<1x256xi32>
    %344 = arith.andi %341, %343 : vector<1x256xi1>
    %c3_i32_114 = arith.constant 3 : i32
    %345 = tpu.dynamic_rotate %1 by %c3_i32_114 dim 1 : vector<3x256xf32>, i32 -> vector<3x256xf32>
    %346 = arith.andi %339, %344 : vector<1x256xi1>
    %cst_115 = arith.constant 0.000000e+00 : f32
    %347 = vector.shape_cast %346 : vector<1x256xi1> to vector<1x256xi1>
    %348 = vector.broadcast %347 : vector<1x256xi1> to vector<3x256xi1>
    %349 = vector.broadcast %cst_115 : f32 to vector<3x256xf32>
    %350 = arith.select %348, %345, %349 : vector<3x256xi1>, vector<3x256xf32>
    %351 = arith.truncf %350 : vector<3x256xf32> to vector<3x256xbf16>
    %c0_116 = arith.constant 0 : index
    %c63 = arith.constant 63 : index
    %352 = vector.load %arg3[%c0_116, %c63] : memref<16x147xbf16, #tpu.memory_space<vmem>>, vector<16x3xbf16>
    %cst_117 = arith.constant dense<0.000000e+00> : vector<16x256xf32>
    %353 = tpu.matmul %352, %351, %cst_117 {dimension_numbers = #tpu.dot_dimension_numbers<[1], [0], [0], [1], [0, 0, 1, 1], [], []>} : vector<16x3xbf16>, vector<3x256xbf16>, vector<16x256xf32> -> vector<16x256xf32>
    %354 = arith.addf %334, %353 : vector<16x256xf32>
    %c2_i32_118 = arith.constant 2 : i32
    %355 = vector.broadcast %c2_i32_118 : i32 to vector<1x256xi32>
    %356 = arith.cmpi sge, %3, %355 : vector<1x256xi32>
    %c18_i32_119 = arith.constant 18 : i32
    %357 = vector.broadcast %c18_i32_119 : i32 to vector<1x256xi32>
    %358 = arith.cmpi slt, %3, %357 : vector<1x256xi32>
    %359 = arith.andi %356, %358 : vector<1x256xi1>
    %c2_i32_120 = arith.constant 2 : i32
    %360 = tpu.dynamic_rotate %1 by %c2_i32_120 dim 1 : vector<3x256xf32>, i32 -> vector<3x256xf32>
    %361 = arith.andi %339, %359 : vector<1x256xi1>
    %cst_121 = arith.constant 0.000000e+00 : f32
    %362 = vector.shape_cast %361 : vector<1x256xi1> to vector<1x256xi1>
    %363 = vector.broadcast %362 : vector<1x256xi1> to vector<3x256xi1>
    %364 = vector.broadcast %cst_121 : f32 to vector<3x256xf32>
    %365 = arith.select %363, %360, %364 : vector<3x256xi1>, vector<3x256xf32>
    %366 = arith.truncf %365 : vector<3x256xf32> to vector<3x256xbf16>
    %c0_122 = arith.constant 0 : index
    %c66 = arith.constant 66 : index
    %367 = vector.load %arg3[%c0_122, %c66] : memref<16x147xbf16, #tpu.memory_space<vmem>>, vector<16x3xbf16>
    %cst_123 = arith.constant dense<0.000000e+00> : vector<16x256xf32>
    %368 = tpu.matmul %367, %366, %cst_123 {dimension_numbers = #tpu.dot_dimension_numbers<[1], [0], [0], [1], [0, 0, 1, 1], [], []>} : vector<16x3xbf16>, vector<3x256xbf16>, vector<16x256xf32> -> vector<16x256xf32>
    %369 = arith.addf %354, %368 : vector<16x256xf32>
    %c1_i32_124 = arith.constant 1 : i32
    %370 = vector.broadcast %c1_i32_124 : i32 to vector<1x256xi32>
    %371 = arith.cmpi sge, %3, %370 : vector<1x256xi32>
    %c17_i32_125 = arith.constant 17 : i32
    %372 = vector.broadcast %c17_i32_125 : i32 to vector<1x256xi32>
    %373 = arith.cmpi slt, %3, %372 : vector<1x256xi32>
    %374 = arith.andi %371, %373 : vector<1x256xi1>
    %c1_i32_126 = arith.constant 1 : i32
    %375 = tpu.dynamic_rotate %1 by %c1_i32_126 dim 1 : vector<3x256xf32>, i32 -> vector<3x256xf32>
    %376 = arith.andi %339, %374 : vector<1x256xi1>
    %cst_127 = arith.constant 0.000000e+00 : f32
    %377 = vector.shape_cast %376 : vector<1x256xi1> to vector<1x256xi1>
    %378 = vector.broadcast %377 : vector<1x256xi1> to vector<3x256xi1>
    %379 = vector.broadcast %cst_127 : f32 to vector<3x256xf32>
    %380 = arith.select %378, %375, %379 : vector<3x256xi1>, vector<3x256xf32>
    %381 = arith.truncf %380 : vector<3x256xf32> to vector<3x256xbf16>
    %c0_128 = arith.constant 0 : index
    %c69 = arith.constant 69 : index
    %382 = vector.load %arg3[%c0_128, %c69] : memref<16x147xbf16, #tpu.memory_space<vmem>>, vector<16x3xbf16>
    %cst_129 = arith.constant dense<0.000000e+00> : vector<16x256xf32>
    %383 = tpu.matmul %382, %381, %cst_129 {dimension_numbers = #tpu.dot_dimension_numbers<[1], [0], [0], [1], [0, 0, 1, 1], [], []>} : vector<16x3xbf16>, vector<3x256xbf16>, vector<16x256xf32> -> vector<16x256xf32>
    %384 = arith.addf %369, %383 : vector<16x256xf32>
    %c0_i32_130 = arith.constant 0 : i32
    %385 = vector.broadcast %c0_i32_130 : i32 to vector<1x256xi32>
    %386 = arith.cmpi sge, %3, %385 : vector<1x256xi32>
    %c16_i32_131 = arith.constant 16 : i32
    %387 = vector.broadcast %c16_i32_131 : i32 to vector<1x256xi32>
    %388 = arith.cmpi slt, %3, %387 : vector<1x256xi32>
    %389 = arith.andi %386, %388 : vector<1x256xi1>
    %390 = arith.andi %339, %389 : vector<1x256xi1>
    %cst_132 = arith.constant 0.000000e+00 : f32
    %391 = vector.shape_cast %390 : vector<1x256xi1> to vector<1x256xi1>
    %392 = vector.broadcast %391 : vector<1x256xi1> to vector<3x256xi1>
    %393 = vector.broadcast %cst_132 : f32 to vector<3x256xf32>
    %394 = arith.select %392, %1, %393 : vector<3x256xi1>, vector<3x256xf32>
    %395 = arith.truncf %394 : vector<3x256xf32> to vector<3x256xbf16>
    %c0_133 = arith.constant 0 : index
    %c72 = arith.constant 72 : index
    %396 = vector.load %arg3[%c0_133, %c72] : memref<16x147xbf16, #tpu.memory_space<vmem>>, vector<16x3xbf16>
    %cst_134 = arith.constant dense<0.000000e+00> : vector<16x256xf32>
    %397 = tpu.matmul %396, %395, %cst_134 {dimension_numbers = #tpu.dot_dimension_numbers<[1], [0], [0], [1], [0, 0, 1, 1], [], []>} : vector<16x3xbf16>, vector<3x256xbf16>, vector<16x256xf32> -> vector<16x256xf32>
    %398 = arith.addf %384, %397 : vector<16x256xf32>
    %c-1_i32_135 = arith.constant -1 : i32
    %399 = vector.broadcast %c-1_i32_135 : i32 to vector<1x256xi32>
    %400 = arith.cmpi sge, %3, %399 : vector<1x256xi32>
    %c15_i32_136 = arith.constant 15 : i32
    %401 = vector.broadcast %c15_i32_136 : i32 to vector<1x256xi32>
    %402 = arith.cmpi slt, %3, %401 : vector<1x256xi32>
    %403 = arith.andi %400, %402 : vector<1x256xi1>
    %c255_i32 = arith.constant 255 : i32
    %404 = tpu.dynamic_rotate %1 by %c255_i32 dim 1 : vector<3x256xf32>, i32 -> vector<3x256xf32>
    %405 = arith.andi %339, %403 : vector<1x256xi1>
    %cst_137 = arith.constant 0.000000e+00 : f32
    %406 = vector.shape_cast %405 : vector<1x256xi1> to vector<1x256xi1>
    %407 = vector.broadcast %406 : vector<1x256xi1> to vector<3x256xi1>
    %408 = vector.broadcast %cst_137 : f32 to vector<3x256xf32>
    %409 = arith.select %407, %404, %408 : vector<3x256xi1>, vector<3x256xf32>
    %410 = arith.truncf %409 : vector<3x256xf32> to vector<3x256xbf16>
    %c0_138 = arith.constant 0 : index
    %c75 = arith.constant 75 : index
    %411 = vector.load %arg3[%c0_138, %c75] : memref<16x147xbf16, #tpu.memory_space<vmem>>, vector<16x3xbf16>
    %cst_139 = arith.constant dense<0.000000e+00> : vector<16x256xf32>
    %412 = tpu.matmul %411, %410, %cst_139 {dimension_numbers = #tpu.dot_dimension_numbers<[1], [0], [0], [1], [0, 0, 1, 1], [], []>} : vector<16x3xbf16>, vector<3x256xbf16>, vector<16x256xf32> -> vector<16x256xf32>
    %413 = arith.addf %398, %412 : vector<16x256xf32>
    %c-2_i32_140 = arith.constant -2 : i32
    %414 = vector.broadcast %c-2_i32_140 : i32 to vector<1x256xi32>
    %415 = arith.cmpi sge, %3, %414 : vector<1x256xi32>
    %c14_i32_141 = arith.constant 14 : i32
    %416 = vector.broadcast %c14_i32_141 : i32 to vector<1x256xi32>
    %417 = arith.cmpi slt, %3, %416 : vector<1x256xi32>
    %418 = arith.andi %415, %417 : vector<1x256xi1>
    %c254_i32 = arith.constant 254 : i32
    %419 = tpu.dynamic_rotate %1 by %c254_i32 dim 1 : vector<3x256xf32>, i32 -> vector<3x256xf32>
    %420 = arith.andi %339, %418 : vector<1x256xi1>
    %cst_142 = arith.constant 0.000000e+00 : f32
    %421 = vector.shape_cast %420 : vector<1x256xi1> to vector<1x256xi1>
    %422 = vector.broadcast %421 : vector<1x256xi1> to vector<3x256xi1>
    %423 = vector.broadcast %cst_142 : f32 to vector<3x256xf32>
    %424 = arith.select %422, %419, %423 : vector<3x256xi1>, vector<3x256xf32>
    %425 = arith.truncf %424 : vector<3x256xf32> to vector<3x256xbf16>
    %c0_143 = arith.constant 0 : index
    %c78 = arith.constant 78 : index
    %426 = vector.load %arg3[%c0_143, %c78] : memref<16x147xbf16, #tpu.memory_space<vmem>>, vector<16x3xbf16>
    %cst_144 = arith.constant dense<0.000000e+00> : vector<16x256xf32>
    %427 = tpu.matmul %426, %425, %cst_144 {dimension_numbers = #tpu.dot_dimension_numbers<[1], [0], [0], [1], [0, 0, 1, 1], [], []>} : vector<16x3xbf16>, vector<3x256xbf16>, vector<16x256xf32> -> vector<16x256xf32>
    %428 = arith.addf %413, %427 : vector<16x256xf32>
    %c-3_i32_145 = arith.constant -3 : i32
    %429 = vector.broadcast %c-3_i32_145 : i32 to vector<1x256xi32>
    %430 = arith.cmpi sge, %3, %429 : vector<1x256xi32>
    %c13_i32_146 = arith.constant 13 : i32
    %431 = vector.broadcast %c13_i32_146 : i32 to vector<1x256xi32>
    %432 = arith.cmpi slt, %3, %431 : vector<1x256xi32>
    %433 = arith.andi %430, %432 : vector<1x256xi1>
    %c253_i32 = arith.constant 253 : i32
    %434 = tpu.dynamic_rotate %1 by %c253_i32 dim 1 : vector<3x256xf32>, i32 -> vector<3x256xf32>
    %435 = arith.andi %339, %433 : vector<1x256xi1>
    %cst_147 = arith.constant 0.000000e+00 : f32
    %436 = vector.shape_cast %435 : vector<1x256xi1> to vector<1x256xi1>
    %437 = vector.broadcast %436 : vector<1x256xi1> to vector<3x256xi1>
    %438 = vector.broadcast %cst_147 : f32 to vector<3x256xf32>
    %439 = arith.select %437, %434, %438 : vector<3x256xi1>, vector<3x256xf32>
    %440 = arith.truncf %439 : vector<3x256xf32> to vector<3x256xbf16>
    %c0_148 = arith.constant 0 : index
    %c81 = arith.constant 81 : index
    %441 = vector.load %arg3[%c0_148, %c81] : memref<16x147xbf16, #tpu.memory_space<vmem>>, vector<16x3xbf16>
    %cst_149 = arith.constant dense<0.000000e+00> : vector<16x256xf32>
    %442 = tpu.matmul %441, %440, %cst_149 {dimension_numbers = #tpu.dot_dimension_numbers<[1], [0], [0], [1], [0, 0, 1, 1], [], []>} : vector<16x3xbf16>, vector<3x256xbf16>, vector<16x256xf32> -> vector<16x256xf32>
    %443 = arith.addf %428, %442 : vector<16x256xf32>
    %c-1_i32_150 = arith.constant -1 : i32
    %444 = vector.broadcast %c-1_i32_150 : i32 to vector<1x256xi32>
    %445 = arith.cmpi sge, %2, %444 : vector<1x256xi32>
    %c15_i32_151 = arith.constant 15 : i32
    %446 = vector.broadcast %c15_i32_151 : i32 to vector<1x256xi32>
    %447 = arith.cmpi slt, %2, %446 : vector<1x256xi32>
    %448 = arith.andi %445, %447 : vector<1x256xi1>
    %c3_i32_152 = arith.constant 3 : i32
    %449 = vector.broadcast %c3_i32_152 : i32 to vector<1x256xi32>
    %450 = arith.cmpi sge, %3, %449 : vector<1x256xi32>
    %c19_i32_153 = arith.constant 19 : i32
    %451 = vector.broadcast %c19_i32_153 : i32 to vector<1x256xi32>
    %452 = arith.cmpi slt, %3, %451 : vector<1x256xi32>
    %453 = arith.andi %450, %452 : vector<1x256xi1>
    %c243_i32 = arith.constant 243 : i32
    %454 = tpu.dynamic_rotate %1 by %c243_i32 dim 1 : vector<3x256xf32>, i32 -> vector<3x256xf32>
    %455 = arith.andi %448, %453 : vector<1x256xi1>
    %cst_154 = arith.constant 0.000000e+00 : f32
    %456 = vector.shape_cast %455 : vector<1x256xi1> to vector<1x256xi1>
    %457 = vector.broadcast %456 : vector<1x256xi1> to vector<3x256xi1>
    %458 = vector.broadcast %cst_154 : f32 to vector<3x256xf32>
    %459 = arith.select %457, %454, %458 : vector<3x256xi1>, vector<3x256xf32>
    %460 = arith.truncf %459 : vector<3x256xf32> to vector<3x256xbf16>
    %c0_155 = arith.constant 0 : index
    %c84 = arith.constant 84 : index
    %461 = vector.load %arg3[%c0_155, %c84] : memref<16x147xbf16, #tpu.memory_space<vmem>>, vector<16x3xbf16>
    %cst_156 = arith.constant dense<0.000000e+00> : vector<16x256xf32>
    %462 = tpu.matmul %461, %460, %cst_156 {dimension_numbers = #tpu.dot_dimension_numbers<[1], [0], [0], [1], [0, 0, 1, 1], [], []>} : vector<16x3xbf16>, vector<3x256xbf16>, vector<16x256xf32> -> vector<16x256xf32>
    %463 = arith.addf %443, %462 : vector<16x256xf32>
    %c2_i32_157 = arith.constant 2 : i32
    %464 = vector.broadcast %c2_i32_157 : i32 to vector<1x256xi32>
    %465 = arith.cmpi sge, %3, %464 : vector<1x256xi32>
    %c18_i32_158 = arith.constant 18 : i32
    %466 = vector.broadcast %c18_i32_158 : i32 to vector<1x256xi32>
    %467 = arith.cmpi slt, %3, %466 : vector<1x256xi32>
    %468 = arith.andi %465, %467 : vector<1x256xi1>
    %c242_i32 = arith.constant 242 : i32
    %469 = tpu.dynamic_rotate %1 by %c242_i32 dim 1 : vector<3x256xf32>, i32 -> vector<3x256xf32>
    %470 = arith.andi %448, %468 : vector<1x256xi1>
    %cst_159 = arith.constant 0.000000e+00 : f32
    %471 = vector.shape_cast %470 : vector<1x256xi1> to vector<1x256xi1>
    %472 = vector.broadcast %471 : vector<1x256xi1> to vector<3x256xi1>
    %473 = vector.broadcast %cst_159 : f32 to vector<3x256xf32>
    %474 = arith.select %472, %469, %473 : vector<3x256xi1>, vector<3x256xf32>
    %475 = arith.truncf %474 : vector<3x256xf32> to vector<3x256xbf16>
    %c0_160 = arith.constant 0 : index
    %c87 = arith.constant 87 : index
    %476 = vector.load %arg3[%c0_160, %c87] : memref<16x147xbf16, #tpu.memory_space<vmem>>, vector<16x3xbf16>
    %cst_161 = arith.constant dense<0.000000e+00> : vector<16x256xf32>
    %477 = tpu.matmul %476, %475, %cst_161 {dimension_numbers = #tpu.dot_dimension_numbers<[1], [0], [0], [1], [0, 0, 1, 1], [], []>} : vector<16x3xbf16>, vector<3x256xbf16>, vector<16x256xf32> -> vector<16x256xf32>
    %478 = arith.addf %463, %477 : vector<16x256xf32>
    %c1_i32_162 = arith.constant 1 : i32
    %479 = vector.broadcast %c1_i32_162 : i32 to vector<1x256xi32>
    %480 = arith.cmpi sge, %3, %479 : vector<1x256xi32>
    %c17_i32_163 = arith.constant 17 : i32
    %481 = vector.broadcast %c17_i32_163 : i32 to vector<1x256xi32>
    %482 = arith.cmpi slt, %3, %481 : vector<1x256xi32>
    %483 = arith.andi %480, %482 : vector<1x256xi1>
    %c241_i32 = arith.constant 241 : i32
    %484 = tpu.dynamic_rotate %1 by %c241_i32 dim 1 : vector<3x256xf32>, i32 -> vector<3x256xf32>
    %485 = arith.andi %448, %483 : vector<1x256xi1>
    %cst_164 = arith.constant 0.000000e+00 : f32
    %486 = vector.shape_cast %485 : vector<1x256xi1> to vector<1x256xi1>
    %487 = vector.broadcast %486 : vector<1x256xi1> to vector<3x256xi1>
    %488 = vector.broadcast %cst_164 : f32 to vector<3x256xf32>
    %489 = arith.select %487, %484, %488 : vector<3x256xi1>, vector<3x256xf32>
    %490 = arith.truncf %489 : vector<3x256xf32> to vector<3x256xbf16>
    %c0_165 = arith.constant 0 : index
    %c90 = arith.constant 90 : index
    %491 = vector.load %arg3[%c0_165, %c90] : memref<16x147xbf16, #tpu.memory_space<vmem>>, vector<16x3xbf16>
    %cst_166 = arith.constant dense<0.000000e+00> : vector<16x256xf32>
    %492 = tpu.matmul %491, %490, %cst_166 {dimension_numbers = #tpu.dot_dimension_numbers<[1], [0], [0], [1], [0, 0, 1, 1], [], []>} : vector<16x3xbf16>, vector<3x256xbf16>, vector<16x256xf32> -> vector<16x256xf32>
    %493 = arith.addf %478, %492 : vector<16x256xf32>
    %c0_i32_167 = arith.constant 0 : i32
    %494 = vector.broadcast %c0_i32_167 : i32 to vector<1x256xi32>
    %495 = arith.cmpi sge, %3, %494 : vector<1x256xi32>
    %c16_i32_168 = arith.constant 16 : i32
    %496 = vector.broadcast %c16_i32_168 : i32 to vector<1x256xi32>
    %497 = arith.cmpi slt, %3, %496 : vector<1x256xi32>
    %498 = arith.andi %495, %497 : vector<1x256xi1>
    %c240_i32 = arith.constant 240 : i32
    %499 = tpu.dynamic_rotate %1 by %c240_i32 dim 1 : vector<3x256xf32>, i32 -> vector<3x256xf32>
    %500 = arith.andi %448, %498 : vector<1x256xi1>
    %cst_169 = arith.constant 0.000000e+00 : f32
    %501 = vector.shape_cast %500 : vector<1x256xi1> to vector<1x256xi1>
    %502 = vector.broadcast %501 : vector<1x256xi1> to vector<3x256xi1>
    %503 = vector.broadcast %cst_169 : f32 to vector<3x256xf32>
    %504 = arith.select %502, %499, %503 : vector<3x256xi1>, vector<3x256xf32>
    %505 = arith.truncf %504 : vector<3x256xf32> to vector<3x256xbf16>
    %c0_170 = arith.constant 0 : index
    %c93 = arith.constant 93 : index
    %506 = vector.load %arg3[%c0_170, %c93] : memref<16x147xbf16, #tpu.memory_space<vmem>>, vector<16x3xbf16>
    %cst_171 = arith.constant dense<0.000000e+00> : vector<16x256xf32>
    %507 = tpu.matmul %506, %505, %cst_171 {dimension_numbers = #tpu.dot_dimension_numbers<[1], [0], [0], [1], [0, 0, 1, 1], [], []>} : vector<16x3xbf16>, vector<3x256xbf16>, vector<16x256xf32> -> vector<16x256xf32>
    %508 = arith.addf %493, %507 : vector<16x256xf32>
    %c-1_i32_172 = arith.constant -1 : i32
    %509 = vector.broadcast %c-1_i32_172 : i32 to vector<1x256xi32>
    %510 = arith.cmpi sge, %3, %509 : vector<1x256xi32>
    %c15_i32_173 = arith.constant 15 : i32
    %511 = vector.broadcast %c15_i32_173 : i32 to vector<1x256xi32>
    %512 = arith.cmpi slt, %3, %511 : vector<1x256xi32>
    %513 = arith.andi %510, %512 : vector<1x256xi1>
    %c239_i32 = arith.constant 239 : i32
    %514 = tpu.dynamic_rotate %1 by %c239_i32 dim 1 : vector<3x256xf32>, i32 -> vector<3x256xf32>
    %515 = arith.andi %448, %513 : vector<1x256xi1>
    %cst_174 = arith.constant 0.000000e+00 : f32
    %516 = vector.shape_cast %515 : vector<1x256xi1> to vector<1x256xi1>
    %517 = vector.broadcast %516 : vector<1x256xi1> to vector<3x256xi1>
    %518 = vector.broadcast %cst_174 : f32 to vector<3x256xf32>
    %519 = arith.select %517, %514, %518 : vector<3x256xi1>, vector<3x256xf32>
    %520 = arith.truncf %519 : vector<3x256xf32> to vector<3x256xbf16>
    %c0_175 = arith.constant 0 : index
    %c96 = arith.constant 96 : index
    %521 = vector.load %arg3[%c0_175, %c96] : memref<16x147xbf16, #tpu.memory_space<vmem>>, vector<16x3xbf16>
    %cst_176 = arith.constant dense<0.000000e+00> : vector<16x256xf32>
    %522 = tpu.matmul %521, %520, %cst_176 {dimension_numbers = #tpu.dot_dimension_numbers<[1], [0], [0], [1], [0, 0, 1, 1], [], []>} : vector<16x3xbf16>, vector<3x256xbf16>, vector<16x256xf32> -> vector<16x256xf32>
    %523 = arith.addf %508, %522 : vector<16x256xf32>
    %c-2_i32_177 = arith.constant -2 : i32
    %524 = vector.broadcast %c-2_i32_177 : i32 to vector<1x256xi32>
    %525 = arith.cmpi sge, %3, %524 : vector<1x256xi32>
    %c14_i32_178 = arith.constant 14 : i32
    %526 = vector.broadcast %c14_i32_178 : i32 to vector<1x256xi32>
    %527 = arith.cmpi slt, %3, %526 : vector<1x256xi32>
    %528 = arith.andi %525, %527 : vector<1x256xi1>
    %c238_i32 = arith.constant 238 : i32
    %529 = tpu.dynamic_rotate %1 by %c238_i32 dim 1 : vector<3x256xf32>, i32 -> vector<3x256xf32>
    %530 = arith.andi %448, %528 : vector<1x256xi1>
    %cst_179 = arith.constant 0.000000e+00 : f32
    %531 = vector.shape_cast %530 : vector<1x256xi1> to vector<1x256xi1>
    %532 = vector.broadcast %531 : vector<1x256xi1> to vector<3x256xi1>
    %533 = vector.broadcast %cst_179 : f32 to vector<3x256xf32>
    %534 = arith.select %532, %529, %533 : vector<3x256xi1>, vector<3x256xf32>
    %535 = arith.truncf %534 : vector<3x256xf32> to vector<3x256xbf16>
    %c0_180 = arith.constant 0 : index
    %c99 = arith.constant 99 : index
    %536 = vector.load %arg3[%c0_180, %c99] : memref<16x147xbf16, #tpu.memory_space<vmem>>, vector<16x3xbf16>
    %cst_181 = arith.constant dense<0.000000e+00> : vector<16x256xf32>
    %537 = tpu.matmul %536, %535, %cst_181 {dimension_numbers = #tpu.dot_dimension_numbers<[1], [0], [0], [1], [0, 0, 1, 1], [], []>} : vector<16x3xbf16>, vector<3x256xbf16>, vector<16x256xf32> -> vector<16x256xf32>
    %538 = arith.addf %523, %537 : vector<16x256xf32>
    %c-3_i32_182 = arith.constant -3 : i32
    %539 = vector.broadcast %c-3_i32_182 : i32 to vector<1x256xi32>
    %540 = arith.cmpi sge, %3, %539 : vector<1x256xi32>
    %c13_i32_183 = arith.constant 13 : i32
    %541 = vector.broadcast %c13_i32_183 : i32 to vector<1x256xi32>
    %542 = arith.cmpi slt, %3, %541 : vector<1x256xi32>
    %543 = arith.andi %540, %542 : vector<1x256xi1>
    %c237_i32 = arith.constant 237 : i32
    %544 = tpu.dynamic_rotate %1 by %c237_i32 dim 1 : vector<3x256xf32>, i32 -> vector<3x256xf32>
    %545 = arith.andi %448, %543 : vector<1x256xi1>
    %cst_184 = arith.constant 0.000000e+00 : f32
    %546 = vector.shape_cast %545 : vector<1x256xi1> to vector<1x256xi1>
    %547 = vector.broadcast %546 : vector<1x256xi1> to vector<3x256xi1>
    %548 = vector.broadcast %cst_184 : f32 to vector<3x256xf32>
    %549 = arith.select %547, %544, %548 : vector<3x256xi1>, vector<3x256xf32>
    %550 = arith.truncf %549 : vector<3x256xf32> to vector<3x256xbf16>
    %c0_185 = arith.constant 0 : index
    %c102 = arith.constant 102 : index
    %551 = vector.load %arg3[%c0_185, %c102] : memref<16x147xbf16, #tpu.memory_space<vmem>>, vector<16x3xbf16>
    %cst_186 = arith.constant dense<0.000000e+00> : vector<16x256xf32>
    %552 = tpu.matmul %551, %550, %cst_186 {dimension_numbers = #tpu.dot_dimension_numbers<[1], [0], [0], [1], [0, 0, 1, 1], [], []>} : vector<16x3xbf16>, vector<3x256xbf16>, vector<16x256xf32> -> vector<16x256xf32>
    %553 = arith.addf %538, %552 : vector<16x256xf32>
    %c-2_i32_187 = arith.constant -2 : i32
    %554 = vector.broadcast %c-2_i32_187 : i32 to vector<1x256xi32>
    %555 = arith.cmpi sge, %2, %554 : vector<1x256xi32>
    %c14_i32_188 = arith.constant 14 : i32
    %556 = vector.broadcast %c14_i32_188 : i32 to vector<1x256xi32>
    %557 = arith.cmpi slt, %2, %556 : vector<1x256xi32>
    %558 = arith.andi %555, %557 : vector<1x256xi1>
    %c3_i32_189 = arith.constant 3 : i32
    %559 = vector.broadcast %c3_i32_189 : i32 to vector<1x256xi32>
    %560 = arith.cmpi sge, %3, %559 : vector<1x256xi32>
    %c19_i32_190 = arith.constant 19 : i32
    %561 = vector.broadcast %c19_i32_190 : i32 to vector<1x256xi32>
    %562 = arith.cmpi slt, %3, %561 : vector<1x256xi32>
    %563 = arith.andi %560, %562 : vector<1x256xi1>
    %c227_i32 = arith.constant 227 : i32
    %564 = tpu.dynamic_rotate %1 by %c227_i32 dim 1 : vector<3x256xf32>, i32 -> vector<3x256xf32>
    %565 = arith.andi %558, %563 : vector<1x256xi1>
    %cst_191 = arith.constant 0.000000e+00 : f32
    %566 = vector.shape_cast %565 : vector<1x256xi1> to vector<1x256xi1>
    %567 = vector.broadcast %566 : vector<1x256xi1> to vector<3x256xi1>
    %568 = vector.broadcast %cst_191 : f32 to vector<3x256xf32>
    %569 = arith.select %567, %564, %568 : vector<3x256xi1>, vector<3x256xf32>
    %570 = arith.truncf %569 : vector<3x256xf32> to vector<3x256xbf16>
    %c0_192 = arith.constant 0 : index
    %c105 = arith.constant 105 : index
    %571 = vector.load %arg3[%c0_192, %c105] : memref<16x147xbf16, #tpu.memory_space<vmem>>, vector<16x3xbf16>
    %cst_193 = arith.constant dense<0.000000e+00> : vector<16x256xf32>
    %572 = tpu.matmul %571, %570, %cst_193 {dimension_numbers = #tpu.dot_dimension_numbers<[1], [0], [0], [1], [0, 0, 1, 1], [], []>} : vector<16x3xbf16>, vector<3x256xbf16>, vector<16x256xf32> -> vector<16x256xf32>
    %573 = arith.addf %553, %572 : vector<16x256xf32>
    %c2_i32_194 = arith.constant 2 : i32
    %574 = vector.broadcast %c2_i32_194 : i32 to vector<1x256xi32>
    %575 = arith.cmpi sge, %3, %574 : vector<1x256xi32>
    %c18_i32_195 = arith.constant 18 : i32
    %576 = vector.broadcast %c18_i32_195 : i32 to vector<1x256xi32>
    %577 = arith.cmpi slt, %3, %576 : vector<1x256xi32>
    %578 = arith.andi %575, %577 : vector<1x256xi1>
    %c226_i32 = arith.constant 226 : i32
    %579 = tpu.dynamic_rotate %1 by %c226_i32 dim 1 : vector<3x256xf32>, i32 -> vector<3x256xf32>
    %580 = arith.andi %558, %578 : vector<1x256xi1>
    %cst_196 = arith.constant 0.000000e+00 : f32
    %581 = vector.shape_cast %580 : vector<1x256xi1> to vector<1x256xi1>
    %582 = vector.broadcast %581 : vector<1x256xi1> to vector<3x256xi1>
    %583 = vector.broadcast %cst_196 : f32 to vector<3x256xf32>
    %584 = arith.select %582, %579, %583 : vector<3x256xi1>, vector<3x256xf32>
    %585 = arith.truncf %584 : vector<3x256xf32> to vector<3x256xbf16>
    %c0_197 = arith.constant 0 : index
    %c108 = arith.constant 108 : index
    %586 = vector.load %arg3[%c0_197, %c108] : memref<16x147xbf16, #tpu.memory_space<vmem>>, vector<16x3xbf16>
    %cst_198 = arith.constant dense<0.000000e+00> : vector<16x256xf32>
    %587 = tpu.matmul %586, %585, %cst_198 {dimension_numbers = #tpu.dot_dimension_numbers<[1], [0], [0], [1], [0, 0, 1, 1], [], []>} : vector<16x3xbf16>, vector<3x256xbf16>, vector<16x256xf32> -> vector<16x256xf32>
    %588 = arith.addf %573, %587 : vector<16x256xf32>
    %c1_i32_199 = arith.constant 1 : i32
    %589 = vector.broadcast %c1_i32_199 : i32 to vector<1x256xi32>
    %590 = arith.cmpi sge, %3, %589 : vector<1x256xi32>
    %c17_i32_200 = arith.constant 17 : i32
    %591 = vector.broadcast %c17_i32_200 : i32 to vector<1x256xi32>
    %592 = arith.cmpi slt, %3, %591 : vector<1x256xi32>
    %593 = arith.andi %590, %592 : vector<1x256xi1>
    %c225_i32 = arith.constant 225 : i32
    %594 = tpu.dynamic_rotate %1 by %c225_i32 dim 1 : vector<3x256xf32>, i32 -> vector<3x256xf32>
    %595 = arith.andi %558, %593 : vector<1x256xi1>
    %cst_201 = arith.constant 0.000000e+00 : f32
    %596 = vector.shape_cast %595 : vector<1x256xi1> to vector<1x256xi1>
    %597 = vector.broadcast %596 : vector<1x256xi1> to vector<3x256xi1>
    %598 = vector.broadcast %cst_201 : f32 to vector<3x256xf32>
    %599 = arith.select %597, %594, %598 : vector<3x256xi1>, vector<3x256xf32>
    %600 = arith.truncf %599 : vector<3x256xf32> to vector<3x256xbf16>
    %c0_202 = arith.constant 0 : index
    %c111 = arith.constant 111 : index
    %601 = vector.load %arg3[%c0_202, %c111] : memref<16x147xbf16, #tpu.memory_space<vmem>>, vector<16x3xbf16>
    %cst_203 = arith.constant dense<0.000000e+00> : vector<16x256xf32>
    %602 = tpu.matmul %601, %600, %cst_203 {dimension_numbers = #tpu.dot_dimension_numbers<[1], [0], [0], [1], [0, 0, 1, 1], [], []>} : vector<16x3xbf16>, vector<3x256xbf16>, vector<16x256xf32> -> vector<16x256xf32>
    %603 = arith.addf %588, %602 : vector<16x256xf32>
    %c0_i32_204 = arith.constant 0 : i32
    %604 = vector.broadcast %c0_i32_204 : i32 to vector<1x256xi32>
    %605 = arith.cmpi sge, %3, %604 : vector<1x256xi32>
    %c16_i32_205 = arith.constant 16 : i32
    %606 = vector.broadcast %c16_i32_205 : i32 to vector<1x256xi32>
    %607 = arith.cmpi slt, %3, %606 : vector<1x256xi32>
    %608 = arith.andi %605, %607 : vector<1x256xi1>
    %c224_i32 = arith.constant 224 : i32
    %609 = tpu.dynamic_rotate %1 by %c224_i32 dim 1 : vector<3x256xf32>, i32 -> vector<3x256xf32>
    %610 = arith.andi %558, %608 : vector<1x256xi1>
    %cst_206 = arith.constant 0.000000e+00 : f32
    %611 = vector.shape_cast %610 : vector<1x256xi1> to vector<1x256xi1>
    %612 = vector.broadcast %611 : vector<1x256xi1> to vector<3x256xi1>
    %613 = vector.broadcast %cst_206 : f32 to vector<3x256xf32>
    %614 = arith.select %612, %609, %613 : vector<3x256xi1>, vector<3x256xf32>
    %615 = arith.truncf %614 : vector<3x256xf32> to vector<3x256xbf16>
    %c0_207 = arith.constant 0 : index
    %c114 = arith.constant 114 : index
    %616 = vector.load %arg3[%c0_207, %c114] : memref<16x147xbf16, #tpu.memory_space<vmem>>, vector<16x3xbf16>
    %cst_208 = arith.constant dense<0.000000e+00> : vector<16x256xf32>
    %617 = tpu.matmul %616, %615, %cst_208 {dimension_numbers = #tpu.dot_dimension_numbers<[1], [0], [0], [1], [0, 0, 1, 1], [], []>} : vector<16x3xbf16>, vector<3x256xbf16>, vector<16x256xf32> -> vector<16x256xf32>
    %618 = arith.addf %603, %617 : vector<16x256xf32>
    %c-1_i32_209 = arith.constant -1 : i32
    %619 = vector.broadcast %c-1_i32_209 : i32 to vector<1x256xi32>
    %620 = arith.cmpi sge, %3, %619 : vector<1x256xi32>
    %c15_i32_210 = arith.constant 15 : i32
    %621 = vector.broadcast %c15_i32_210 : i32 to vector<1x256xi32>
    %622 = arith.cmpi slt, %3, %621 : vector<1x256xi32>
    %623 = arith.andi %620, %622 : vector<1x256xi1>
    %c223_i32 = arith.constant 223 : i32
    %624 = tpu.dynamic_rotate %1 by %c223_i32 dim 1 : vector<3x256xf32>, i32 -> vector<3x256xf32>
    %625 = arith.andi %558, %623 : vector<1x256xi1>
    %cst_211 = arith.constant 0.000000e+00 : f32
    %626 = vector.shape_cast %625 : vector<1x256xi1> to vector<1x256xi1>
    %627 = vector.broadcast %626 : vector<1x256xi1> to vector<3x256xi1>
    %628 = vector.broadcast %cst_211 : f32 to vector<3x256xf32>
    %629 = arith.select %627, %624, %628 : vector<3x256xi1>, vector<3x256xf32>
    %630 = arith.truncf %629 : vector<3x256xf32> to vector<3x256xbf16>
    %c0_212 = arith.constant 0 : index
    %c117 = arith.constant 117 : index
    %631 = vector.load %arg3[%c0_212, %c117] : memref<16x147xbf16, #tpu.memory_space<vmem>>, vector<16x3xbf16>
    %cst_213 = arith.constant dense<0.000000e+00> : vector<16x256xf32>
    %632 = tpu.matmul %631, %630, %cst_213 {dimension_numbers = #tpu.dot_dimension_numbers<[1], [0], [0], [1], [0, 0, 1, 1], [], []>} : vector<16x3xbf16>, vector<3x256xbf16>, vector<16x256xf32> -> vector<16x256xf32>
    %633 = arith.addf %618, %632 : vector<16x256xf32>
    %c-2_i32_214 = arith.constant -2 : i32
    %634 = vector.broadcast %c-2_i32_214 : i32 to vector<1x256xi32>
    %635 = arith.cmpi sge, %3, %634 : vector<1x256xi32>
    %c14_i32_215 = arith.constant 14 : i32
    %636 = vector.broadcast %c14_i32_215 : i32 to vector<1x256xi32>
    %637 = arith.cmpi slt, %3, %636 : vector<1x256xi32>
    %638 = arith.andi %635, %637 : vector<1x256xi1>
    %c222_i32 = arith.constant 222 : i32
    %639 = tpu.dynamic_rotate %1 by %c222_i32 dim 1 : vector<3x256xf32>, i32 -> vector<3x256xf32>
    %640 = arith.andi %558, %638 : vector<1x256xi1>
    %cst_216 = arith.constant 0.000000e+00 : f32
    %641 = vector.shape_cast %640 : vector<1x256xi1> to vector<1x256xi1>
    %642 = vector.broadcast %641 : vector<1x256xi1> to vector<3x256xi1>
    %643 = vector.broadcast %cst_216 : f32 to vector<3x256xf32>
    %644 = arith.select %642, %639, %643 : vector<3x256xi1>, vector<3x256xf32>
    %645 = arith.truncf %644 : vector<3x256xf32> to vector<3x256xbf16>
    %c0_217 = arith.constant 0 : index
    %c120 = arith.constant 120 : index
    %646 = vector.load %arg3[%c0_217, %c120] : memref<16x147xbf16, #tpu.memory_space<vmem>>, vector<16x3xbf16>
    %cst_218 = arith.constant dense<0.000000e+00> : vector<16x256xf32>
    %647 = tpu.matmul %646, %645, %cst_218 {dimension_numbers = #tpu.dot_dimension_numbers<[1], [0], [0], [1], [0, 0, 1, 1], [], []>} : vector<16x3xbf16>, vector<3x256xbf16>, vector<16x256xf32> -> vector<16x256xf32>
    %648 = arith.addf %633, %647 : vector<16x256xf32>
    %c-3_i32_219 = arith.constant -3 : i32
    %649 = vector.broadcast %c-3_i32_219 : i32 to vector<1x256xi32>
    %650 = arith.cmpi sge, %3, %649 : vector<1x256xi32>
    %c13_i32_220 = arith.constant 13 : i32
    %651 = vector.broadcast %c13_i32_220 : i32 to vector<1x256xi32>
    %652 = arith.cmpi slt, %3, %651 : vector<1x256xi32>
    %653 = arith.andi %650, %652 : vector<1x256xi1>
    %c221_i32 = arith.constant 221 : i32
    %654 = tpu.dynamic_rotate %1 by %c221_i32 dim 1 : vector<3x256xf32>, i32 -> vector<3x256xf32>
    %655 = arith.andi %558, %653 : vector<1x256xi1>
    %cst_221 = arith.constant 0.000000e+00 : f32
    %656 = vector.shape_cast %655 : vector<1x256xi1> to vector<1x256xi1>
    %657 = vector.broadcast %656 : vector<1x256xi1> to vector<3x256xi1>
    %658 = vector.broadcast %cst_221 : f32 to vector<3x256xf32>
    %659 = arith.select %657, %654, %658 : vector<3x256xi1>, vector<3x256xf32>
    %660 = arith.truncf %659 : vector<3x256xf32> to vector<3x256xbf16>
    %c0_222 = arith.constant 0 : index
    %c123 = arith.constant 123 : index
    %661 = vector.load %arg3[%c0_222, %c123] : memref<16x147xbf16, #tpu.memory_space<vmem>>, vector<16x3xbf16>
    %cst_223 = arith.constant dense<0.000000e+00> : vector<16x256xf32>
    %662 = tpu.matmul %661, %660, %cst_223 {dimension_numbers = #tpu.dot_dimension_numbers<[1], [0], [0], [1], [0, 0, 1, 1], [], []>} : vector<16x3xbf16>, vector<3x256xbf16>, vector<16x256xf32> -> vector<16x256xf32>
    %663 = arith.addf %648, %662 : vector<16x256xf32>
    %c-3_i32_224 = arith.constant -3 : i32
    %664 = vector.broadcast %c-3_i32_224 : i32 to vector<1x256xi32>
    %665 = arith.cmpi sge, %2, %664 : vector<1x256xi32>
    %c13_i32_225 = arith.constant 13 : i32
    %666 = vector.broadcast %c13_i32_225 : i32 to vector<1x256xi32>
    %667 = arith.cmpi slt, %2, %666 : vector<1x256xi32>
    %668 = arith.andi %665, %667 : vector<1x256xi1>
    %c3_i32_226 = arith.constant 3 : i32
    %669 = vector.broadcast %c3_i32_226 : i32 to vector<1x256xi32>
    %670 = arith.cmpi sge, %3, %669 : vector<1x256xi32>
    %c19_i32_227 = arith.constant 19 : i32
    %671 = vector.broadcast %c19_i32_227 : i32 to vector<1x256xi32>
    %672 = arith.cmpi slt, %3, %671 : vector<1x256xi32>
    %673 = arith.andi %670, %672 : vector<1x256xi1>
    %c211_i32 = arith.constant 211 : i32
    %674 = tpu.dynamic_rotate %1 by %c211_i32 dim 1 : vector<3x256xf32>, i32 -> vector<3x256xf32>
    %675 = arith.andi %668, %673 : vector<1x256xi1>
    %cst_228 = arith.constant 0.000000e+00 : f32
    %676 = vector.shape_cast %675 : vector<1x256xi1> to vector<1x256xi1>
    %677 = vector.broadcast %676 : vector<1x256xi1> to vector<3x256xi1>
    %678 = vector.broadcast %cst_228 : f32 to vector<3x256xf32>
    %679 = arith.select %677, %674, %678 : vector<3x256xi1>, vector<3x256xf32>
    %680 = arith.truncf %679 : vector<3x256xf32> to vector<3x256xbf16>
    %c0_229 = arith.constant 0 : index
    %c126 = arith.constant 126 : index
    %681 = vector.load %arg3[%c0_229, %c126] : memref<16x147xbf16, #tpu.memory_space<vmem>>, vector<16x3xbf16>
    %cst_230 = arith.constant dense<0.000000e+00> : vector<16x256xf32>
    %682 = tpu.matmul %681, %680, %cst_230 {dimension_numbers = #tpu.dot_dimension_numbers<[1], [0], [0], [1], [0, 0, 1, 1], [], []>} : vector<16x3xbf16>, vector<3x256xbf16>, vector<16x256xf32> -> vector<16x256xf32>
    %683 = arith.addf %663, %682 : vector<16x256xf32>
    %c2_i32_231 = arith.constant 2 : i32
    %684 = vector.broadcast %c2_i32_231 : i32 to vector<1x256xi32>
    %685 = arith.cmpi sge, %3, %684 : vector<1x256xi32>
    %c18_i32_232 = arith.constant 18 : i32
    %686 = vector.broadcast %c18_i32_232 : i32 to vector<1x256xi32>
    %687 = arith.cmpi slt, %3, %686 : vector<1x256xi32>
    %688 = arith.andi %685, %687 : vector<1x256xi1>
    %c210_i32 = arith.constant 210 : i32
    %689 = tpu.dynamic_rotate %1 by %c210_i32 dim 1 : vector<3x256xf32>, i32 -> vector<3x256xf32>
    %690 = arith.andi %668, %688 : vector<1x256xi1>
    %cst_233 = arith.constant 0.000000e+00 : f32
    %691 = vector.shape_cast %690 : vector<1x256xi1> to vector<1x256xi1>
    %692 = vector.broadcast %691 : vector<1x256xi1> to vector<3x256xi1>
    %693 = vector.broadcast %cst_233 : f32 to vector<3x256xf32>
    %694 = arith.select %692, %689, %693 : vector<3x256xi1>, vector<3x256xf32>
    %695 = arith.truncf %694 : vector<3x256xf32> to vector<3x256xbf16>
    %c0_234 = arith.constant 0 : index
    %c129 = arith.constant 129 : index
    %696 = vector.load %arg3[%c0_234, %c129] : memref<16x147xbf16, #tpu.memory_space<vmem>>, vector<16x3xbf16>
    %cst_235 = arith.constant dense<0.000000e+00> : vector<16x256xf32>
    %697 = tpu.matmul %696, %695, %cst_235 {dimension_numbers = #tpu.dot_dimension_numbers<[1], [0], [0], [1], [0, 0, 1, 1], [], []>} : vector<16x3xbf16>, vector<3x256xbf16>, vector<16x256xf32> -> vector<16x256xf32>
    %698 = arith.addf %683, %697 : vector<16x256xf32>
    %c1_i32_236 = arith.constant 1 : i32
    %699 = vector.broadcast %c1_i32_236 : i32 to vector<1x256xi32>
    %700 = arith.cmpi sge, %3, %699 : vector<1x256xi32>
    %c17_i32_237 = arith.constant 17 : i32
    %701 = vector.broadcast %c17_i32_237 : i32 to vector<1x256xi32>
    %702 = arith.cmpi slt, %3, %701 : vector<1x256xi32>
    %703 = arith.andi %700, %702 : vector<1x256xi1>
    %c209_i32 = arith.constant 209 : i32
    %704 = tpu.dynamic_rotate %1 by %c209_i32 dim 1 : vector<3x256xf32>, i32 -> vector<3x256xf32>
    %705 = arith.andi %668, %703 : vector<1x256xi1>
    %cst_238 = arith.constant 0.000000e+00 : f32
    %706 = vector.shape_cast %705 : vector<1x256xi1> to vector<1x256xi1>
    %707 = vector.broadcast %706 : vector<1x256xi1> to vector<3x256xi1>
    %708 = vector.broadcast %cst_238 : f32 to vector<3x256xf32>
    %709 = arith.select %707, %704, %708 : vector<3x256xi1>, vector<3x256xf32>
    %710 = arith.truncf %709 : vector<3x256xf32> to vector<3x256xbf16>
    %c0_239 = arith.constant 0 : index
    %c132 = arith.constant 132 : index
    %711 = vector.load %arg3[%c0_239, %c132] : memref<16x147xbf16, #tpu.memory_space<vmem>>, vector<16x3xbf16>
    %cst_240 = arith.constant dense<0.000000e+00> : vector<16x256xf32>
    %712 = tpu.matmul %711, %710, %cst_240 {dimension_numbers = #tpu.dot_dimension_numbers<[1], [0], [0], [1], [0, 0, 1, 1], [], []>} : vector<16x3xbf16>, vector<3x256xbf16>, vector<16x256xf32> -> vector<16x256xf32>
    %713 = arith.addf %698, %712 : vector<16x256xf32>
    %c0_i32_241 = arith.constant 0 : i32
    %714 = vector.broadcast %c0_i32_241 : i32 to vector<1x256xi32>
    %715 = arith.cmpi sge, %3, %714 : vector<1x256xi32>
    %c16_i32_242 = arith.constant 16 : i32
    %716 = vector.broadcast %c16_i32_242 : i32 to vector<1x256xi32>
    %717 = arith.cmpi slt, %3, %716 : vector<1x256xi32>
    %718 = arith.andi %715, %717 : vector<1x256xi1>
    %c208_i32 = arith.constant 208 : i32
    %719 = tpu.dynamic_rotate %1 by %c208_i32 dim 1 : vector<3x256xf32>, i32 -> vector<3x256xf32>
    %720 = arith.andi %668, %718 : vector<1x256xi1>
    %cst_243 = arith.constant 0.000000e+00 : f32
    %721 = vector.shape_cast %720 : vector<1x256xi1> to vector<1x256xi1>
    %722 = vector.broadcast %721 : vector<1x256xi1> to vector<3x256xi1>
    %723 = vector.broadcast %cst_243 : f32 to vector<3x256xf32>
    %724 = arith.select %722, %719, %723 : vector<3x256xi1>, vector<3x256xf32>
    %725 = arith.truncf %724 : vector<3x256xf32> to vector<3x256xbf16>
    %c0_244 = arith.constant 0 : index
    %c135 = arith.constant 135 : index
    %726 = vector.load %arg3[%c0_244, %c135] : memref<16x147xbf16, #tpu.memory_space<vmem>>, vector<16x3xbf16>
    %cst_245 = arith.constant dense<0.000000e+00> : vector<16x256xf32>
    %727 = tpu.matmul %726, %725, %cst_245 {dimension_numbers = #tpu.dot_dimension_numbers<[1], [0], [0], [1], [0, 0, 1, 1], [], []>} : vector<16x3xbf16>, vector<3x256xbf16>, vector<16x256xf32> -> vector<16x256xf32>
    %728 = arith.addf %713, %727 : vector<16x256xf32>
    %c-1_i32_246 = arith.constant -1 : i32
    %729 = vector.broadcast %c-1_i32_246 : i32 to vector<1x256xi32>
    %730 = arith.cmpi sge, %3, %729 : vector<1x256xi32>
    %c15_i32_247 = arith.constant 15 : i32
    %731 = vector.broadcast %c15_i32_247 : i32 to vector<1x256xi32>
    %732 = arith.cmpi slt, %3, %731 : vector<1x256xi32>
    %733 = arith.andi %730, %732 : vector<1x256xi1>
    %c207_i32 = arith.constant 207 : i32
    %734 = tpu.dynamic_rotate %1 by %c207_i32 dim 1 : vector<3x256xf32>, i32 -> vector<3x256xf32>
    %735 = arith.andi %668, %733 : vector<1x256xi1>
    %cst_248 = arith.constant 0.000000e+00 : f32
    %736 = vector.shape_cast %735 : vector<1x256xi1> to vector<1x256xi1>
    %737 = vector.broadcast %736 : vector<1x256xi1> to vector<3x256xi1>
    %738 = vector.broadcast %cst_248 : f32 to vector<3x256xf32>
    %739 = arith.select %737, %734, %738 : vector<3x256xi1>, vector<3x256xf32>
    %740 = arith.truncf %739 : vector<3x256xf32> to vector<3x256xbf16>
    %c0_249 = arith.constant 0 : index
    %c138 = arith.constant 138 : index
    %741 = vector.load %arg3[%c0_249, %c138] : memref<16x147xbf16, #tpu.memory_space<vmem>>, vector<16x3xbf16>
    %cst_250 = arith.constant dense<0.000000e+00> : vector<16x256xf32>
    %742 = tpu.matmul %741, %740, %cst_250 {dimension_numbers = #tpu.dot_dimension_numbers<[1], [0], [0], [1], [0, 0, 1, 1], [], []>} : vector<16x3xbf16>, vector<3x256xbf16>, vector<16x256xf32> -> vector<16x256xf32>
    %743 = arith.addf %728, %742 : vector<16x256xf32>
    %c-2_i32_251 = arith.constant -2 : i32
    %744 = vector.broadcast %c-2_i32_251 : i32 to vector<1x256xi32>
    %745 = arith.cmpi sge, %3, %744 : vector<1x256xi32>
    %c14_i32_252 = arith.constant 14 : i32
    %746 = vector.broadcast %c14_i32_252 : i32 to vector<1x256xi32>
    %747 = arith.cmpi slt, %3, %746 : vector<1x256xi32>
    %748 = arith.andi %745, %747 : vector<1x256xi1>
    %c206_i32 = arith.constant 206 : i32
    %749 = tpu.dynamic_rotate %1 by %c206_i32 dim 1 : vector<3x256xf32>, i32 -> vector<3x256xf32>
    %750 = arith.andi %668, %748 : vector<1x256xi1>
    %cst_253 = arith.constant 0.000000e+00 : f32
    %751 = vector.shape_cast %750 : vector<1x256xi1> to vector<1x256xi1>
    %752 = vector.broadcast %751 : vector<1x256xi1> to vector<3x256xi1>
    %753 = vector.broadcast %cst_253 : f32 to vector<3x256xf32>
    %754 = arith.select %752, %749, %753 : vector<3x256xi1>, vector<3x256xf32>
    %755 = arith.truncf %754 : vector<3x256xf32> to vector<3x256xbf16>
    %c0_254 = arith.constant 0 : index
    %c141 = arith.constant 141 : index
    %756 = vector.load %arg3[%c0_254, %c141] : memref<16x147xbf16, #tpu.memory_space<vmem>>, vector<16x3xbf16>
    %cst_255 = arith.constant dense<0.000000e+00> : vector<16x256xf32>
    %757 = tpu.matmul %756, %755, %cst_255 {dimension_numbers = #tpu.dot_dimension_numbers<[1], [0], [0], [1], [0, 0, 1, 1], [], []>} : vector<16x3xbf16>, vector<3x256xbf16>, vector<16x256xf32> -> vector<16x256xf32>
    %758 = arith.addf %743, %757 : vector<16x256xf32>
    %c-3_i32_256 = arith.constant -3 : i32
    %759 = vector.broadcast %c-3_i32_256 : i32 to vector<1x256xi32>
    %760 = arith.cmpi sge, %3, %759 : vector<1x256xi32>
    %c13_i32_257 = arith.constant 13 : i32
    %761 = vector.broadcast %c13_i32_257 : i32 to vector<1x256xi32>
    %762 = arith.cmpi slt, %3, %761 : vector<1x256xi32>
    %763 = arith.andi %760, %762 : vector<1x256xi1>
    %c205_i32 = arith.constant 205 : i32
    %764 = tpu.dynamic_rotate %1 by %c205_i32 dim 1 : vector<3x256xf32>, i32 -> vector<3x256xf32>
    %765 = arith.andi %668, %763 : vector<1x256xi1>
    %cst_258 = arith.constant 0.000000e+00 : f32
    %766 = vector.shape_cast %765 : vector<1x256xi1> to vector<1x256xi1>
    %767 = vector.broadcast %766 : vector<1x256xi1> to vector<3x256xi1>
    %768 = vector.broadcast %cst_258 : f32 to vector<3x256xf32>
    %769 = arith.select %767, %764, %768 : vector<3x256xi1>, vector<3x256xf32>
    %770 = arith.truncf %769 : vector<3x256xf32> to vector<3x256xbf16>
    %c0_259 = arith.constant 0 : index
    %c144 = arith.constant 144 : index
    %771 = vector.load %arg3[%c0_259, %c144] : memref<16x147xbf16, #tpu.memory_space<vmem>>, vector<16x3xbf16>
    %cst_260 = arith.constant dense<0.000000e+00> : vector<16x256xf32>
    %772 = tpu.matmul %771, %770, %cst_260 {dimension_numbers = #tpu.dot_dimension_numbers<[1], [0], [0], [1], [0, 0, 1, 1], [], []>} : vector<16x3xbf16>, vector<3x256xbf16>, vector<16x256xf32> -> vector<16x256xf32>
    %773 = arith.addf %758, %772 : vector<16x256xf32>
    %c0_261 = arith.constant 0 : index
    %c0_262 = arith.constant 0 : index
    %774 = vector.load %arg4[%c0_261, %c0_262] : memref<16x1xf32, #tpu.memory_space<vmem>>, vector<16x1xf32>
    %775 = vector.broadcast %774 : vector<16x1xf32> to vector<16x256xf32>
    %776 = arith.addf %773, %775 : vector<16x256xf32>
    %cst_263 = arith.constant 0.000000e+00 : f32
    %777 = vector.broadcast %cst_263 : f32 to vector<16x256xf32>
    %778 = arith.maximumf %776, %777 : vector<16x256xf32>
    %779 = arith.truncf %778 : vector<16x256xf32> to vector<16x256xbf16>
    %c0_264 = arith.constant 0 : index
    %c0_265 = arith.constant 0 : index
    %780 = vector.load %arg5[%c0_264, %c0_265] : memref<256x256xbf16, #tpu.memory_space<vmem>>, vector<256x256xbf16>
    %cst_266 = arith.constant dense<0.000000e+00> : vector<16x256xf32>
    %781 = tpu.matmul %779, %780, %cst_266 {dimension_numbers = #tpu.dot_dimension_numbers<[1], [0], [0], [1], [0, 0, 1, 1], [], []>} : vector<16x256xbf16>, vector<256x256xbf16>, vector<16x256xf32> -> vector<16x256xf32>
    %782 = vector.extract_strided_slice %781 {offsets = [0, 0], sizes = [16, 64], strides = [1, 1]} : vector<16x256xf32> to vector<16x64xf32>
    %783 = vector.extract_strided_slice %781 {offsets = [0, 64], sizes = [16, 64], strides = [1, 1]} : vector<16x256xf32> to vector<16x64xf32>
    %784 = arith.maximumf %782, %783 : vector<16x64xf32>
    %785 = vector.extract_strided_slice %781 {offsets = [0, 128], sizes = [16, 64], strides = [1, 1]} : vector<16x256xf32> to vector<16x64xf32>
    %786 = vector.extract_strided_slice %781 {offsets = [0, 192], sizes = [16, 64], strides = [1, 1]} : vector<16x256xf32> to vector<16x64xf32>
    %787 = arith.maximumf %785, %786 : vector<16x64xf32>
    %788 = arith.maximumf %784, %787 : vector<16x64xf32>
    %789 = arith.truncf %788 : vector<16x64xf32> to vector<16x64xbf16>
    %c0_267 = arith.constant 0 : index
    %c0_268 = arith.constant 0 : index
    %790 = vector.load %arg6[%c0_267, %c0_268] : memref<64x1600xbf16, #tpu.memory_space<vmem>>, vector<64x1600xbf16>
    %cst_269 = arith.constant dense<0.000000e+00> : vector<16x1600xf32>
    %791 = tpu.matmul %789, %790, %cst_269 {dimension_numbers = #tpu.dot_dimension_numbers<[1], [0], [0], [1], [0, 0, 1, 1], [], []>} : vector<16x64xbf16>, vector<64x1600xbf16>, vector<16x1600xf32> -> vector<16x1600xf32>
    %792 = arith.truncf %791 : vector<16x1600xf32> to vector<16x1600xbf16>
    %cst_270 = arith.constant 0.000000e+00 : f32
    %793 = vector.broadcast %cst_270 : f32 to vector<32x64xf32>
    %c0_271 = arith.constant 0 : index
    %c0_272 = arith.constant 0 : index
    %794 = vector.load %arg7[%c0_271, %c0_272] : memref<32x400xbf16, #tpu.memory_space<vmem>>, vector<32x16xbf16>
    %795 = vector.extract_strided_slice %792 {offsets = [0, 0], sizes = [16, 64], strides = [1, 1]} : vector<16x1600xbf16> to vector<16x64xbf16>
    %cst_273 = arith.constant dense<0.000000e+00> : vector<32x64xf32>
    %796 = tpu.matmul %794, %795, %cst_273 {dimension_numbers = #tpu.dot_dimension_numbers<[1], [0], [0], [1], [0, 0, 1, 1], [], []>} : vector<32x16xbf16>, vector<16x64xbf16>, vector<32x64xf32> -> vector<32x64xf32>
    %797 = arith.addf %793, %796 : vector<32x64xf32>
    %c0_274 = arith.constant 0 : index
    %c16 = arith.constant 16 : index
    %798 = vector.load %arg7[%c0_274, %c16] : memref<32x400xbf16, #tpu.memory_space<vmem>>, vector<32x16xbf16>
    %799 = vector.extract_strided_slice %792 {offsets = [0, 64], sizes = [16, 64], strides = [1, 1]} : vector<16x1600xbf16> to vector<16x64xbf16>
    %cst_275 = arith.constant dense<0.000000e+00> : vector<32x64xf32>
    %800 = tpu.matmul %798, %799, %cst_275 {dimension_numbers = #tpu.dot_dimension_numbers<[1], [0], [0], [1], [0, 0, 1, 1], [], []>} : vector<32x16xbf16>, vector<16x64xbf16>, vector<32x64xf32> -> vector<32x64xf32>
    %801 = arith.addf %797, %800 : vector<32x64xf32>
    %c0_276 = arith.constant 0 : index
    %c32 = arith.constant 32 : index
    %802 = vector.load %arg7[%c0_276, %c32] : memref<32x400xbf16, #tpu.memory_space<vmem>>, vector<32x16xbf16>
    %803 = vector.extract_strided_slice %792 {offsets = [0, 128], sizes = [16, 64], strides = [1, 1]} : vector<16x1600xbf16> to vector<16x64xbf16>
    %cst_277 = arith.constant dense<0.000000e+00> : vector<32x64xf32>
    %804 = tpu.matmul %802, %803, %cst_277 {dimension_numbers = #tpu.dot_dimension_numbers<[1], [0], [0], [1], [0, 0, 1, 1], [], []>} : vector<32x16xbf16>, vector<16x64xbf16>, vector<32x64xf32> -> vector<32x64xf32>
    %805 = arith.addf %801, %804 : vector<32x64xf32>
    %c0_278 = arith.constant 0 : index
    %c48_279 = arith.constant 48 : index
    %806 = vector.load %arg7[%c0_278, %c48_279] : memref<32x400xbf16, #tpu.memory_space<vmem>>, vector<32x16xbf16>
    %807 = vector.extract_strided_slice %792 {offsets = [0, 192], sizes = [16, 64], strides = [1, 1]} : vector<16x1600xbf16> to vector<16x64xbf16>
    %cst_280 = arith.constant dense<0.000000e+00> : vector<32x64xf32>
    %808 = tpu.matmul %806, %807, %cst_280 {dimension_numbers = #tpu.dot_dimension_numbers<[1], [0], [0], [1], [0, 0, 1, 1], [], []>} : vector<32x16xbf16>, vector<16x64xbf16>, vector<32x64xf32> -> vector<32x64xf32>
    %809 = arith.addf %805, %808 : vector<32x64xf32>
    %c0_281 = arith.constant 0 : index
    %c64 = arith.constant 64 : index
    %810 = vector.load %arg7[%c0_281, %c64] : memref<32x400xbf16, #tpu.memory_space<vmem>>, vector<32x16xbf16>
    %811 = vector.extract_strided_slice %792 {offsets = [0, 256], sizes = [16, 64], strides = [1, 1]} : vector<16x1600xbf16> to vector<16x64xbf16>
    %cst_282 = arith.constant dense<0.000000e+00> : vector<32x64xf32>
    %812 = tpu.matmul %810, %811, %cst_282 {dimension_numbers = #tpu.dot_dimension_numbers<[1], [0], [0], [1], [0, 0, 1, 1], [], []>} : vector<32x16xbf16>, vector<16x64xbf16>, vector<32x64xf32> -> vector<32x64xf32>
    %813 = arith.addf %809, %812 : vector<32x64xf32>
    %c0_283 = arith.constant 0 : index
    %c80 = arith.constant 80 : index
    %814 = vector.load %arg7[%c0_283, %c80] : memref<32x400xbf16, #tpu.memory_space<vmem>>, vector<32x16xbf16>
    %815 = vector.extract_strided_slice %792 {offsets = [0, 320], sizes = [16, 64], strides = [1, 1]} : vector<16x1600xbf16> to vector<16x64xbf16>
    %cst_284 = arith.constant dense<0.000000e+00> : vector<32x64xf32>
    %816 = tpu.matmul %814, %815, %cst_284 {dimension_numbers = #tpu.dot_dimension_numbers<[1], [0], [0], [1], [0, 0, 1, 1], [], []>} : vector<32x16xbf16>, vector<16x64xbf16>, vector<32x64xf32> -> vector<32x64xf32>
    %817 = arith.addf %813, %816 : vector<32x64xf32>
    %c0_285 = arith.constant 0 : index
    %c96_286 = arith.constant 96 : index
    %818 = vector.load %arg7[%c0_285, %c96_286] : memref<32x400xbf16, #tpu.memory_space<vmem>>, vector<32x16xbf16>
    %819 = vector.extract_strided_slice %792 {offsets = [0, 384], sizes = [16, 64], strides = [1, 1]} : vector<16x1600xbf16> to vector<16x64xbf16>
    %cst_287 = arith.constant dense<0.000000e+00> : vector<32x64xf32>
    %820 = tpu.matmul %818, %819, %cst_287 {dimension_numbers = #tpu.dot_dimension_numbers<[1], [0], [0], [1], [0, 0, 1, 1], [], []>} : vector<32x16xbf16>, vector<16x64xbf16>, vector<32x64xf32> -> vector<32x64xf32>
    %821 = arith.addf %817, %820 : vector<32x64xf32>
    %c0_288 = arith.constant 0 : index
    %c112 = arith.constant 112 : index
    %822 = vector.load %arg7[%c0_288, %c112] : memref<32x400xbf16, #tpu.memory_space<vmem>>, vector<32x16xbf16>
    %823 = vector.extract_strided_slice %792 {offsets = [0, 448], sizes = [16, 64], strides = [1, 1]} : vector<16x1600xbf16> to vector<16x64xbf16>
    %cst_289 = arith.constant dense<0.000000e+00> : vector<32x64xf32>
    %824 = tpu.matmul %822, %823, %cst_289 {dimension_numbers = #tpu.dot_dimension_numbers<[1], [0], [0], [1], [0, 0, 1, 1], [], []>} : vector<32x16xbf16>, vector<16x64xbf16>, vector<32x64xf32> -> vector<32x64xf32>
    %825 = arith.addf %821, %824 : vector<32x64xf32>
    %c0_290 = arith.constant 0 : index
    %c128 = arith.constant 128 : index
    %826 = vector.load %arg7[%c0_290, %c128] : memref<32x400xbf16, #tpu.memory_space<vmem>>, vector<32x16xbf16>
    %827 = vector.extract_strided_slice %792 {offsets = [0, 512], sizes = [16, 64], strides = [1, 1]} : vector<16x1600xbf16> to vector<16x64xbf16>
    %cst_291 = arith.constant dense<0.000000e+00> : vector<32x64xf32>
    %828 = tpu.matmul %826, %827, %cst_291 {dimension_numbers = #tpu.dot_dimension_numbers<[1], [0], [0], [1], [0, 0, 1, 1], [], []>} : vector<32x16xbf16>, vector<16x64xbf16>, vector<32x64xf32> -> vector<32x64xf32>
    %829 = arith.addf %825, %828 : vector<32x64xf32>
    %c0_292 = arith.constant 0 : index
    %c144_293 = arith.constant 144 : index
    %830 = vector.load %arg7[%c0_292, %c144_293] : memref<32x400xbf16, #tpu.memory_space<vmem>>, vector<32x16xbf16>
    %831 = vector.extract_strided_slice %792 {offsets = [0, 576], sizes = [16, 64], strides = [1, 1]} : vector<16x1600xbf16> to vector<16x64xbf16>
    %cst_294 = arith.constant dense<0.000000e+00> : vector<32x64xf32>
    %832 = tpu.matmul %830, %831, %cst_294 {dimension_numbers = #tpu.dot_dimension_numbers<[1], [0], [0], [1], [0, 0, 1, 1], [], []>} : vector<32x16xbf16>, vector<16x64xbf16>, vector<32x64xf32> -> vector<32x64xf32>
    %833 = arith.addf %829, %832 : vector<32x64xf32>
    %c0_295 = arith.constant 0 : index
    %c160 = arith.constant 160 : index
    %834 = vector.load %arg7[%c0_295, %c160] : memref<32x400xbf16, #tpu.memory_space<vmem>>, vector<32x16xbf16>
    %835 = vector.extract_strided_slice %792 {offsets = [0, 640], sizes = [16, 64], strides = [1, 1]} : vector<16x1600xbf16> to vector<16x64xbf16>
    %cst_296 = arith.constant dense<0.000000e+00> : vector<32x64xf32>
    %836 = tpu.matmul %834, %835, %cst_296 {dimension_numbers = #tpu.dot_dimension_numbers<[1], [0], [0], [1], [0, 0, 1, 1], [], []>} : vector<32x16xbf16>, vector<16x64xbf16>, vector<32x64xf32> -> vector<32x64xf32>
    %837 = arith.addf %833, %836 : vector<32x64xf32>
    %c0_297 = arith.constant 0 : index
    %c176 = arith.constant 176 : index
    %838 = vector.load %arg7[%c0_297, %c176] : memref<32x400xbf16, #tpu.memory_space<vmem>>, vector<32x16xbf16>
    %839 = vector.extract_strided_slice %792 {offsets = [0, 704], sizes = [16, 64], strides = [1, 1]} : vector<16x1600xbf16> to vector<16x64xbf16>
    %cst_298 = arith.constant dense<0.000000e+00> : vector<32x64xf32>
    %840 = tpu.matmul %838, %839, %cst_298 {dimension_numbers = #tpu.dot_dimension_numbers<[1], [0], [0], [1], [0, 0, 1, 1], [], []>} : vector<32x16xbf16>, vector<16x64xbf16>, vector<32x64xf32> -> vector<32x64xf32>
    %841 = arith.addf %837, %840 : vector<32x64xf32>
    %c0_299 = arith.constant 0 : index
    %c192 = arith.constant 192 : index
    %842 = vector.load %arg7[%c0_299, %c192] : memref<32x400xbf16, #tpu.memory_space<vmem>>, vector<32x16xbf16>
    %843 = vector.extract_strided_slice %792 {offsets = [0, 768], sizes = [16, 64], strides = [1, 1]} : vector<16x1600xbf16> to vector<16x64xbf16>
    %cst_300 = arith.constant dense<0.000000e+00> : vector<32x64xf32>
    %844 = tpu.matmul %842, %843, %cst_300 {dimension_numbers = #tpu.dot_dimension_numbers<[1], [0], [0], [1], [0, 0, 1, 1], [], []>} : vector<32x16xbf16>, vector<16x64xbf16>, vector<32x64xf32> -> vector<32x64xf32>
    %845 = arith.addf %841, %844 : vector<32x64xf32>
    %c0_301 = arith.constant 0 : index
    %c208 = arith.constant 208 : index
    %846 = vector.load %arg7[%c0_301, %c208] : memref<32x400xbf16, #tpu.memory_space<vmem>>, vector<32x16xbf16>
    %847 = vector.extract_strided_slice %792 {offsets = [0, 832], sizes = [16, 64], strides = [1, 1]} : vector<16x1600xbf16> to vector<16x64xbf16>
    %cst_302 = arith.constant dense<0.000000e+00> : vector<32x64xf32>
    %848 = tpu.matmul %846, %847, %cst_302 {dimension_numbers = #tpu.dot_dimension_numbers<[1], [0], [0], [1], [0, 0, 1, 1], [], []>} : vector<32x16xbf16>, vector<16x64xbf16>, vector<32x64xf32> -> vector<32x64xf32>
    %849 = arith.addf %845, %848 : vector<32x64xf32>
    %c0_303 = arith.constant 0 : index
    %c224 = arith.constant 224 : index
    %850 = vector.load %arg7[%c0_303, %c224] : memref<32x400xbf16, #tpu.memory_space<vmem>>, vector<32x16xbf16>
    %851 = vector.extract_strided_slice %792 {offsets = [0, 896], sizes = [16, 64], strides = [1, 1]} : vector<16x1600xbf16> to vector<16x64xbf16>
    %cst_304 = arith.constant dense<0.000000e+00> : vector<32x64xf32>
    %852 = tpu.matmul %850, %851, %cst_304 {dimension_numbers = #tpu.dot_dimension_numbers<[1], [0], [0], [1], [0, 0, 1, 1], [], []>} : vector<32x16xbf16>, vector<16x64xbf16>, vector<32x64xf32> -> vector<32x64xf32>
    %853 = arith.addf %849, %852 : vector<32x64xf32>
    %c0_305 = arith.constant 0 : index
    %c240 = arith.constant 240 : index
    %854 = vector.load %arg7[%c0_305, %c240] : memref<32x400xbf16, #tpu.memory_space<vmem>>, vector<32x16xbf16>
    %855 = vector.extract_strided_slice %792 {offsets = [0, 960], sizes = [16, 64], strides = [1, 1]} : vector<16x1600xbf16> to vector<16x64xbf16>
    %cst_306 = arith.constant dense<0.000000e+00> : vector<32x64xf32>
    %856 = tpu.matmul %854, %855, %cst_306 {dimension_numbers = #tpu.dot_dimension_numbers<[1], [0], [0], [1], [0, 0, 1, 1], [], []>} : vector<32x16xbf16>, vector<16x64xbf16>, vector<32x64xf32> -> vector<32x64xf32>
    %857 = arith.addf %853, %856 : vector<32x64xf32>
    %c0_307 = arith.constant 0 : index
    %c256 = arith.constant 256 : index
    %858 = vector.load %arg7[%c0_307, %c256] : memref<32x400xbf16, #tpu.memory_space<vmem>>, vector<32x16xbf16>
    %859 = vector.extract_strided_slice %792 {offsets = [0, 1024], sizes = [16, 64], strides = [1, 1]} : vector<16x1600xbf16> to vector<16x64xbf16>
    %cst_308 = arith.constant dense<0.000000e+00> : vector<32x64xf32>
    %860 = tpu.matmul %858, %859, %cst_308 {dimension_numbers = #tpu.dot_dimension_numbers<[1], [0], [0], [1], [0, 0, 1, 1], [], []>} : vector<32x16xbf16>, vector<16x64xbf16>, vector<32x64xf32> -> vector<32x64xf32>
    %861 = arith.addf %857, %860 : vector<32x64xf32>
    %c0_309 = arith.constant 0 : index
    %c272 = arith.constant 272 : index
    %862 = vector.load %arg7[%c0_309, %c272] : memref<32x400xbf16, #tpu.memory_space<vmem>>, vector<32x16xbf16>
    %863 = vector.extract_strided_slice %792 {offsets = [0, 1088], sizes = [16, 64], strides = [1, 1]} : vector<16x1600xbf16> to vector<16x64xbf16>
    %cst_310 = arith.constant dense<0.000000e+00> : vector<32x64xf32>
    %864 = tpu.matmul %862, %863, %cst_310 {dimension_numbers = #tpu.dot_dimension_numbers<[1], [0], [0], [1], [0, 0, 1, 1], [], []>} : vector<32x16xbf16>, vector<16x64xbf16>, vector<32x64xf32> -> vector<32x64xf32>
    %865 = arith.addf %861, %864 : vector<32x64xf32>
    %c0_311 = arith.constant 0 : index
    %c288 = arith.constant 288 : index
    %866 = vector.load %arg7[%c0_311, %c288] : memref<32x400xbf16, #tpu.memory_space<vmem>>, vector<32x16xbf16>
    %867 = vector.extract_strided_slice %792 {offsets = [0, 1152], sizes = [16, 64], strides = [1, 1]} : vector<16x1600xbf16> to vector<16x64xbf16>
    %cst_312 = arith.constant dense<0.000000e+00> : vector<32x64xf32>
    %868 = tpu.matmul %866, %867, %cst_312 {dimension_numbers = #tpu.dot_dimension_numbers<[1], [0], [0], [1], [0, 0, 1, 1], [], []>} : vector<32x16xbf16>, vector<16x64xbf16>, vector<32x64xf32> -> vector<32x64xf32>
    %869 = arith.addf %865, %868 : vector<32x64xf32>
    %c0_313 = arith.constant 0 : index
    %c304 = arith.constant 304 : index
    %870 = vector.load %arg7[%c0_313, %c304] : memref<32x400xbf16, #tpu.memory_space<vmem>>, vector<32x16xbf16>
    %871 = vector.extract_strided_slice %792 {offsets = [0, 1216], sizes = [16, 64], strides = [1, 1]} : vector<16x1600xbf16> to vector<16x64xbf16>
    %cst_314 = arith.constant dense<0.000000e+00> : vector<32x64xf32>
    %872 = tpu.matmul %870, %871, %cst_314 {dimension_numbers = #tpu.dot_dimension_numbers<[1], [0], [0], [1], [0, 0, 1, 1], [], []>} : vector<32x16xbf16>, vector<16x64xbf16>, vector<32x64xf32> -> vector<32x64xf32>
    %873 = arith.addf %869, %872 : vector<32x64xf32>
    %c0_315 = arith.constant 0 : index
    %c320 = arith.constant 320 : index
    %874 = vector.load %arg7[%c0_315, %c320] : memref<32x400xbf16, #tpu.memory_space<vmem>>, vector<32x16xbf16>
    %875 = vector.extract_strided_slice %792 {offsets = [0, 1280], sizes = [16, 64], strides = [1, 1]} : vector<16x1600xbf16> to vector<16x64xbf16>
    %cst_316 = arith.constant dense<0.000000e+00> : vector<32x64xf32>
    %876 = tpu.matmul %874, %875, %cst_316 {dimension_numbers = #tpu.dot_dimension_numbers<[1], [0], [0], [1], [0, 0, 1, 1], [], []>} : vector<32x16xbf16>, vector<16x64xbf16>, vector<32x64xf32> -> vector<32x64xf32>
    %877 = arith.addf %873, %876 : vector<32x64xf32>
    %c0_317 = arith.constant 0 : index
    %c336 = arith.constant 336 : index
    %878 = vector.load %arg7[%c0_317, %c336] : memref<32x400xbf16, #tpu.memory_space<vmem>>, vector<32x16xbf16>
    %879 = vector.extract_strided_slice %792 {offsets = [0, 1344], sizes = [16, 64], strides = [1, 1]} : vector<16x1600xbf16> to vector<16x64xbf16>
    %cst_318 = arith.constant dense<0.000000e+00> : vector<32x64xf32>
    %880 = tpu.matmul %878, %879, %cst_318 {dimension_numbers = #tpu.dot_dimension_numbers<[1], [0], [0], [1], [0, 0, 1, 1], [], []>} : vector<32x16xbf16>, vector<16x64xbf16>, vector<32x64xf32> -> vector<32x64xf32>
    %881 = arith.addf %877, %880 : vector<32x64xf32>
    %c0_319 = arith.constant 0 : index
    %c352 = arith.constant 352 : index
    %882 = vector.load %arg7[%c0_319, %c352] : memref<32x400xbf16, #tpu.memory_space<vmem>>, vector<32x16xbf16>
    %883 = vector.extract_strided_slice %792 {offsets = [0, 1408], sizes = [16, 64], strides = [1, 1]} : vector<16x1600xbf16> to vector<16x64xbf16>
    %cst_320 = arith.constant dense<0.000000e+00> : vector<32x64xf32>
    %884 = tpu.matmul %882, %883, %cst_320 {dimension_numbers = #tpu.dot_dimension_numbers<[1], [0], [0], [1], [0, 0, 1, 1], [], []>} : vector<32x16xbf16>, vector<16x64xbf16>, vector<32x64xf32> -> vector<32x64xf32>
    %885 = arith.addf %881, %884 : vector<32x64xf32>
    %c0_321 = arith.constant 0 : index
    %c368 = arith.constant 368 : index
    %886 = vector.load %arg7[%c0_321, %c368] : memref<32x400xbf16, #tpu.memory_space<vmem>>, vector<32x16xbf16>
    %887 = vector.extract_strided_slice %792 {offsets = [0, 1472], sizes = [16, 64], strides = [1, 1]} : vector<16x1600xbf16> to vector<16x64xbf16>
    %cst_322 = arith.constant dense<0.000000e+00> : vector<32x64xf32>
    %888 = tpu.matmul %886, %887, %cst_322 {dimension_numbers = #tpu.dot_dimension_numbers<[1], [0], [0], [1], [0, 0, 1, 1], [], []>} : vector<32x16xbf16>, vector<16x64xbf16>, vector<32x64xf32> -> vector<32x64xf32>
    %889 = arith.addf %885, %888 : vector<32x64xf32>
    %c0_323 = arith.constant 0 : index
    %c384 = arith.constant 384 : index
    %890 = vector.load %arg7[%c0_323, %c384] : memref<32x400xbf16, #tpu.memory_space<vmem>>, vector<32x16xbf16>
    %891 = vector.extract_strided_slice %792 {offsets = [0, 1536], sizes = [16, 64], strides = [1, 1]} : vector<16x1600xbf16> to vector<16x64xbf16>
    %cst_324 = arith.constant dense<0.000000e+00> : vector<32x64xf32>
    %892 = tpu.matmul %890, %891, %cst_324 {dimension_numbers = #tpu.dot_dimension_numbers<[1], [0], [0], [1], [0, 0, 1, 1], [], []>} : vector<32x16xbf16>, vector<16x64xbf16>, vector<32x64xf32> -> vector<32x64xf32>
    %893 = arith.addf %889, %892 : vector<32x64xf32>
    %c0_325 = arith.constant 0 : index
    %c0_326 = arith.constant 0 : index
    %894 = vector.load %arg8[%c0_325, %c0_326] : memref<32x1xf32, #tpu.memory_space<vmem>>, vector<32x1xf32>
    %895 = vector.broadcast %894 : vector<32x1xf32> to vector<32x64xf32>
    %896 = arith.addf %893, %895 : vector<32x64xf32>
    %cst_327 = arith.constant 0.000000e+00 : f32
    %897 = vector.broadcast %cst_327 : f32 to vector<32x64xf32>
    %898 = arith.maximumf %896, %897 : vector<32x64xf32>
    %899 = arith.truncf %898 : vector<32x64xf32> to vector<32x64xbf16>
    %c0_328 = arith.constant 0 : index
    %c0_329 = arith.constant 0 : index
    %900 = vector.load %arg9[%c0_328, %c0_329] : memref<64x64xbf16, #tpu.memory_space<vmem>>, vector<64x64xbf16>
    %cst_330 = arith.constant dense<0.000000e+00> : vector<32x64xf32>
    %901 = tpu.matmul %899, %900, %cst_330 {dimension_numbers = #tpu.dot_dimension_numbers<[1], [0], [0], [1], [0, 0, 1, 1], [], []>} : vector<32x64xbf16>, vector<64x64xbf16>, vector<32x64xf32> -> vector<32x64xf32>
    %902 = vector.extract_strided_slice %901 {offsets = [0, 0], sizes = [32, 16], strides = [1, 1]} : vector<32x64xf32> to vector<32x16xf32>
    %903 = vector.extract_strided_slice %901 {offsets = [0, 16], sizes = [32, 16], strides = [1, 1]} : vector<32x64xf32> to vector<32x16xf32>
    %904 = arith.maximumf %902, %903 : vector<32x16xf32>
    %905 = vector.extract_strided_slice %901 {offsets = [0, 32], sizes = [32, 16], strides = [1, 1]} : vector<32x64xf32> to vector<32x16xf32>
    %906 = vector.extract_strided_slice %901 {offsets = [0, 48], sizes = [32, 16], strides = [1, 1]} : vector<32x64xf32> to vector<32x16xf32>
    %907 = arith.maximumf %905, %906 : vector<32x16xf32>
    %908 = arith.maximumf %904, %907 : vector<32x16xf32>
    %909 = arith.truncf %908 : vector<32x16xf32> to vector<32x16xbf16>
    %c0_331 = arith.constant 0 : index
    %c0_332 = arith.constant 0 : index
    %910 = vector.load %arg10[%c0_331, %c0_332] : memref<16x144xbf16, #tpu.memory_space<vmem>>, vector<16x144xbf16>
    %cst_333 = arith.constant dense<0.000000e+00> : vector<32x144xf32>
    %911 = tpu.matmul %909, %910, %cst_333 {dimension_numbers = #tpu.dot_dimension_numbers<[1], [0], [0], [1], [0, 0, 1, 1], [], []>} : vector<32x16xbf16>, vector<16x144xbf16>, vector<32x144xf32> -> vector<32x144xf32>
    %912 = arith.truncf %911 : vector<32x144xf32> to vector<32x144xbf16>
    %cst_334 = arith.constant 0.000000e+00 : f32
    %913 = vector.broadcast %cst_334 : f32 to vector<64x16xf32>
    %c0_335 = arith.constant 0 : index
    %c0_336 = arith.constant 0 : index
    %914 = vector.load %arg11[%c0_335, %c0_336] : memref<64x288xbf16, #tpu.memory_space<vmem>>, vector<64x32xbf16>
    %915 = vector.extract_strided_slice %912 {offsets = [0, 0], sizes = [32, 16], strides = [1, 1]} : vector<32x144xbf16> to vector<32x16xbf16>
    %cst_337 = arith.constant dense<0.000000e+00> : vector<64x16xf32>
    %916 = tpu.matmul %914, %915, %cst_337 {dimension_numbers = #tpu.dot_dimension_numbers<[1], [0], [0], [1], [0, 0, 1, 1], [], []>} : vector<64x32xbf16>, vector<32x16xbf16>, vector<64x16xf32> -> vector<64x16xf32>
    %917 = arith.addf %913, %916 : vector<64x16xf32>
    %c0_338 = arith.constant 0 : index
    %c32_339 = arith.constant 32 : index
    %918 = vector.load %arg11[%c0_338, %c32_339] : memref<64x288xbf16, #tpu.memory_space<vmem>>, vector<64x32xbf16>
    %919 = vector.extract_strided_slice %912 {offsets = [0, 16], sizes = [32, 16], strides = [1, 1]} : vector<32x144xbf16> to vector<32x16xbf16>
    %cst_340 = arith.constant dense<0.000000e+00> : vector<64x16xf32>
    %920 = tpu.matmul %918, %919, %cst_340 {dimension_numbers = #tpu.dot_dimension_numbers<[1], [0], [0], [1], [0, 0, 1, 1], [], []>} : vector<64x32xbf16>, vector<32x16xbf16>, vector<64x16xf32> -> vector<64x16xf32>
    %921 = arith.addf %917, %920 : vector<64x16xf32>
    %c0_341 = arith.constant 0 : index
    %c64_342 = arith.constant 64 : index
    %922 = vector.load %arg11[%c0_341, %c64_342] : memref<64x288xbf16, #tpu.memory_space<vmem>>, vector<64x32xbf16>
    %923 = vector.extract_strided_slice %912 {offsets = [0, 32], sizes = [32, 16], strides = [1, 1]} : vector<32x144xbf16> to vector<32x16xbf16>
    %cst_343 = arith.constant dense<0.000000e+00> : vector<64x16xf32>
    %924 = tpu.matmul %922, %923, %cst_343 {dimension_numbers = #tpu.dot_dimension_numbers<[1], [0], [0], [1], [0, 0, 1, 1], [], []>} : vector<64x32xbf16>, vector<32x16xbf16>, vector<64x16xf32> -> vector<64x16xf32>
    %925 = arith.addf %921, %924 : vector<64x16xf32>
    %c0_344 = arith.constant 0 : index
    %c96_345 = arith.constant 96 : index
    %926 = vector.load %arg11[%c0_344, %c96_345] : memref<64x288xbf16, #tpu.memory_space<vmem>>, vector<64x32xbf16>
    %927 = vector.extract_strided_slice %912 {offsets = [0, 48], sizes = [32, 16], strides = [1, 1]} : vector<32x144xbf16> to vector<32x16xbf16>
    %cst_346 = arith.constant dense<0.000000e+00> : vector<64x16xf32>
    %928 = tpu.matmul %926, %927, %cst_346 {dimension_numbers = #tpu.dot_dimension_numbers<[1], [0], [0], [1], [0, 0, 1, 1], [], []>} : vector<64x32xbf16>, vector<32x16xbf16>, vector<64x16xf32> -> vector<64x16xf32>
    %929 = arith.addf %925, %928 : vector<64x16xf32>
    %c0_347 = arith.constant 0 : index
    %c128_348 = arith.constant 128 : index
    %930 = vector.load %arg11[%c0_347, %c128_348] : memref<64x288xbf16, #tpu.memory_space<vmem>>, vector<64x32xbf16>
    %931 = vector.extract_strided_slice %912 {offsets = [0, 64], sizes = [32, 16], strides = [1, 1]} : vector<32x144xbf16> to vector<32x16xbf16>
    %cst_349 = arith.constant dense<0.000000e+00> : vector<64x16xf32>
    %932 = tpu.matmul %930, %931, %cst_349 {dimension_numbers = #tpu.dot_dimension_numbers<[1], [0], [0], [1], [0, 0, 1, 1], [], []>} : vector<64x32xbf16>, vector<32x16xbf16>, vector<64x16xf32> -> vector<64x16xf32>
    %933 = arith.addf %929, %932 : vector<64x16xf32>
    %c0_350 = arith.constant 0 : index
    %c160_351 = arith.constant 160 : index
    %934 = vector.load %arg11[%c0_350, %c160_351] : memref<64x288xbf16, #tpu.memory_space<vmem>>, vector<64x32xbf16>
    %935 = vector.extract_strided_slice %912 {offsets = [0, 80], sizes = [32, 16], strides = [1, 1]} : vector<32x144xbf16> to vector<32x16xbf16>
    %cst_352 = arith.constant dense<0.000000e+00> : vector<64x16xf32>
    %936 = tpu.matmul %934, %935, %cst_352 {dimension_numbers = #tpu.dot_dimension_numbers<[1], [0], [0], [1], [0, 0, 1, 1], [], []>} : vector<64x32xbf16>, vector<32x16xbf16>, vector<64x16xf32> -> vector<64x16xf32>
    %937 = arith.addf %933, %936 : vector<64x16xf32>
    %c0_353 = arith.constant 0 : index
    %c192_354 = arith.constant 192 : index
    %938 = vector.load %arg11[%c0_353, %c192_354] : memref<64x288xbf16, #tpu.memory_space<vmem>>, vector<64x32xbf16>
    %939 = vector.extract_strided_slice %912 {offsets = [0, 96], sizes = [32, 16], strides = [1, 1]} : vector<32x144xbf16> to vector<32x16xbf16>
    %cst_355 = arith.constant dense<0.000000e+00> : vector<64x16xf32>
    %940 = tpu.matmul %938, %939, %cst_355 {dimension_numbers = #tpu.dot_dimension_numbers<[1], [0], [0], [1], [0, 0, 1, 1], [], []>} : vector<64x32xbf16>, vector<32x16xbf16>, vector<64x16xf32> -> vector<64x16xf32>
    %941 = arith.addf %937, %940 : vector<64x16xf32>
    %c0_356 = arith.constant 0 : index
    %c224_357 = arith.constant 224 : index
    %942 = vector.load %arg11[%c0_356, %c224_357] : memref<64x288xbf16, #tpu.memory_space<vmem>>, vector<64x32xbf16>
    %943 = vector.extract_strided_slice %912 {offsets = [0, 112], sizes = [32, 16], strides = [1, 1]} : vector<32x144xbf16> to vector<32x16xbf16>
    %cst_358 = arith.constant dense<0.000000e+00> : vector<64x16xf32>
    %944 = tpu.matmul %942, %943, %cst_358 {dimension_numbers = #tpu.dot_dimension_numbers<[1], [0], [0], [1], [0, 0, 1, 1], [], []>} : vector<64x32xbf16>, vector<32x16xbf16>, vector<64x16xf32> -> vector<64x16xf32>
    %945 = arith.addf %941, %944 : vector<64x16xf32>
    %c0_359 = arith.constant 0 : index
    %c256_360 = arith.constant 256 : index
    %946 = vector.load %arg11[%c0_359, %c256_360] : memref<64x288xbf16, #tpu.memory_space<vmem>>, vector<64x32xbf16>
    %947 = vector.extract_strided_slice %912 {offsets = [0, 128], sizes = [32, 16], strides = [1, 1]} : vector<32x144xbf16> to vector<32x16xbf16>
    %cst_361 = arith.constant dense<0.000000e+00> : vector<64x16xf32>
    %948 = tpu.matmul %946, %947, %cst_361 {dimension_numbers = #tpu.dot_dimension_numbers<[1], [0], [0], [1], [0, 0, 1, 1], [], []>} : vector<64x32xbf16>, vector<32x16xbf16>, vector<64x16xf32> -> vector<64x16xf32>
    %949 = arith.addf %945, %948 : vector<64x16xf32>
    %c0_362 = arith.constant 0 : index
    %c0_363 = arith.constant 0 : index
    %950 = vector.load %arg12[%c0_362, %c0_363] : memref<64x1xf32, #tpu.memory_space<vmem>>, vector<64x1xf32>
    %951 = vector.broadcast %950 : vector<64x1xf32> to vector<64x16xf32>
    %952 = arith.addf %949, %951 : vector<64x16xf32>
    %cst_364 = arith.constant 0.000000e+00 : f32
    %953 = vector.broadcast %cst_364 : f32 to vector<64x16xf32>
    %954 = arith.maximumf %952, %953 : vector<64x16xf32>
    %955 = arith.truncf %954 : vector<64x16xf32> to vector<64x16xbf16>
    %c0_365 = arith.constant 0 : index
    %c0_366 = arith.constant 0 : index
    %956 = vector.load %arg13[%c0_365, %c0_366] : memref<16x16xbf16, #tpu.memory_space<vmem>>, vector<16x16xbf16>
    %cst_367 = arith.constant dense<0.000000e+00> : vector<64x16xf32>
    %957 = tpu.matmul %955, %956, %cst_367 {dimension_numbers = #tpu.dot_dimension_numbers<[1], [0], [0], [1], [0, 0, 1, 1], [], []>} : vector<64x16xbf16>, vector<16x16xbf16>, vector<64x16xf32> -> vector<64x16xf32>
    %958 = vector.extract_strided_slice %957 {offsets = [0, 0], sizes = [64, 4], strides = [1, 1]} : vector<64x16xf32> to vector<64x4xf32>
    %959 = vector.extract_strided_slice %957 {offsets = [0, 4], sizes = [64, 4], strides = [1, 1]} : vector<64x16xf32> to vector<64x4xf32>
    %960 = arith.maximumf %958, %959 : vector<64x4xf32>
    %961 = vector.extract_strided_slice %957 {offsets = [0, 8], sizes = [64, 4], strides = [1, 1]} : vector<64x16xf32> to vector<64x4xf32>
    %962 = vector.extract_strided_slice %957 {offsets = [0, 12], sizes = [64, 4], strides = [1, 1]} : vector<64x16xf32> to vector<64x4xf32>
    %963 = arith.maximumf %961, %962 : vector<64x4xf32>
    %964 = arith.maximumf %960, %963 : vector<64x4xf32>
    %c0_368 = arith.constant 0 : index
    %c0_369 = arith.constant 0 : index
    %965 = vector.load %arg14[%c0_368, %c0_369] : memref<64x64xbf16, #tpu.memory_space<vmem>>, vector<64x64xbf16>
    %966 = arith.truncf %964 : vector<64x4xf32> to vector<64x4xbf16>
    %cst_370 = arith.constant dense<0.000000e+00> : vector<64x4xf32>
    %967 = tpu.matmul %965, %966, %cst_370 {dimension_numbers = #tpu.dot_dimension_numbers<[1], [0], [0], [1], [0, 0, 1, 1], [], []>} : vector<64x64xbf16>, vector<64x4xbf16>, vector<64x4xf32> -> vector<64x4xf32>
    %c0_371 = arith.constant 0 : index
    %c0_372 = arith.constant 0 : index
    %968 = vector.load %arg15[%c0_371, %c0_372] : memref<64x1xf32, #tpu.memory_space<vmem>>, vector<64x1xf32>
    %969 = vector.broadcast %968 : vector<64x1xf32> to vector<64x4xf32>
    %970 = arith.addf %967, %969 : vector<64x4xf32>
    %cst_373 = arith.constant 0.000000e+00 : f32
    %971 = vector.broadcast %cst_373 : f32 to vector<64x4xf32>
    %972 = arith.maximumf %970, %971 : vector<64x4xf32>
    %973 = arith.truncf %972 : vector<64x4xf32> to vector<64x4xbf16>
    %c0_374 = arith.constant 0 : index
    %c0_375 = arith.constant 0 : index
    %974 = vector.load %arg16[%c0_374, %c0_375] : memref<4x36xbf16, #tpu.memory_space<vmem>>, vector<4x36xbf16>
    %cst_376 = arith.constant dense<0.000000e+00> : vector<64x36xf32>
    %975 = tpu.matmul %973, %974, %cst_376 {dimension_numbers = #tpu.dot_dimension_numbers<[1], [0], [0], [1], [0, 0, 1, 1], [], []>} : vector<64x4xbf16>, vector<4x36xbf16>, vector<64x36xf32> -> vector<64x36xf32>
    %976 = arith.truncf %975 : vector<64x36xf32> to vector<64x36xbf16>
    %cst_377 = arith.constant 0.000000e+00 : f32
    %977 = vector.broadcast %cst_377 : f32 to vector<64x4xf32>
    %c0_378 = arith.constant 0 : index
    %c0_379 = arith.constant 0 : index
    %978 = vector.load %arg17[%c0_378, %c0_379] : memref<64x576xbf16, #tpu.memory_space<vmem>>, vector<64x64xbf16>
    %979 = vector.extract_strided_slice %976 {offsets = [0, 0], sizes = [64, 4], strides = [1, 1]} : vector<64x36xbf16> to vector<64x4xbf16>
    %cst_380 = arith.constant dense<0.000000e+00> : vector<64x4xf32>
    %980 = tpu.matmul %978, %979, %cst_380 {dimension_numbers = #tpu.dot_dimension_numbers<[1], [0], [0], [1], [0, 0, 1, 1], [], []>} : vector<64x64xbf16>, vector<64x4xbf16>, vector<64x4xf32> -> vector<64x4xf32>
    %981 = arith.addf %977, %980 : vector<64x4xf32>
    %c0_381 = arith.constant 0 : index
    %c64_382 = arith.constant 64 : index
    %982 = vector.load %arg17[%c0_381, %c64_382] : memref<64x576xbf16, #tpu.memory_space<vmem>>, vector<64x64xbf16>
    %983 = vector.extract_strided_slice %976 {offsets = [0, 4], sizes = [64, 4], strides = [1, 1]} : vector<64x36xbf16> to vector<64x4xbf16>
    %cst_383 = arith.constant dense<0.000000e+00> : vector<64x4xf32>
    %984 = tpu.matmul %982, %983, %cst_383 {dimension_numbers = #tpu.dot_dimension_numbers<[1], [0], [0], [1], [0, 0, 1, 1], [], []>} : vector<64x64xbf16>, vector<64x4xbf16>, vector<64x4xf32> -> vector<64x4xf32>
    %985 = arith.addf %981, %984 : vector<64x4xf32>
    %c0_384 = arith.constant 0 : index
    %c128_385 = arith.constant 128 : index
    %986 = vector.load %arg17[%c0_384, %c128_385] : memref<64x576xbf16, #tpu.memory_space<vmem>>, vector<64x64xbf16>
    %987 = vector.extract_strided_slice %976 {offsets = [0, 8], sizes = [64, 4], strides = [1, 1]} : vector<64x36xbf16> to vector<64x4xbf16>
    %cst_386 = arith.constant dense<0.000000e+00> : vector<64x4xf32>
    %988 = tpu.matmul %986, %987, %cst_386 {dimension_numbers = #tpu.dot_dimension_numbers<[1], [0], [0], [1], [0, 0, 1, 1], [], []>} : vector<64x64xbf16>, vector<64x4xbf16>, vector<64x4xf32> -> vector<64x4xf32>
    %989 = arith.addf %985, %988 : vector<64x4xf32>
    %c0_387 = arith.constant 0 : index
    %c192_388 = arith.constant 192 : index
    %990 = vector.load %arg17[%c0_387, %c192_388] : memref<64x576xbf16, #tpu.memory_space<vmem>>, vector<64x64xbf16>
    %991 = vector.extract_strided_slice %976 {offsets = [0, 12], sizes = [64, 4], strides = [1, 1]} : vector<64x36xbf16> to vector<64x4xbf16>
    %cst_389 = arith.constant dense<0.000000e+00> : vector<64x4xf32>
    %992 = tpu.matmul %990, %991, %cst_389 {dimension_numbers = #tpu.dot_dimension_numbers<[1], [0], [0], [1], [0, 0, 1, 1], [], []>} : vector<64x64xbf16>, vector<64x4xbf16>, vector<64x4xf32> -> vector<64x4xf32>
    %993 = arith.addf %989, %992 : vector<64x4xf32>
    %c0_390 = arith.constant 0 : index
    %c256_391 = arith.constant 256 : index
    %994 = vector.load %arg17[%c0_390, %c256_391] : memref<64x576xbf16, #tpu.memory_space<vmem>>, vector<64x64xbf16>
    %995 = vector.extract_strided_slice %976 {offsets = [0, 16], sizes = [64, 4], strides = [1, 1]} : vector<64x36xbf16> to vector<64x4xbf16>
    %cst_392 = arith.constant dense<0.000000e+00> : vector<64x4xf32>
    %996 = tpu.matmul %994, %995, %cst_392 {dimension_numbers = #tpu.dot_dimension_numbers<[1], [0], [0], [1], [0, 0, 1, 1], [], []>} : vector<64x64xbf16>, vector<64x4xbf16>, vector<64x4xf32> -> vector<64x4xf32>
    %997 = arith.addf %993, %996 : vector<64x4xf32>
    %c0_393 = arith.constant 0 : index
    %c320_394 = arith.constant 320 : index
    %998 = vector.load %arg17[%c0_393, %c320_394] : memref<64x576xbf16, #tpu.memory_space<vmem>>, vector<64x64xbf16>
    %999 = vector.extract_strided_slice %976 {offsets = [0, 20], sizes = [64, 4], strides = [1, 1]} : vector<64x36xbf16> to vector<64x4xbf16>
    %cst_395 = arith.constant dense<0.000000e+00> : vector<64x4xf32>
    %1000 = tpu.matmul %998, %999, %cst_395 {dimension_numbers = #tpu.dot_dimension_numbers<[1], [0], [0], [1], [0, 0, 1, 1], [], []>} : vector<64x64xbf16>, vector<64x4xbf16>, vector<64x4xf32> -> vector<64x4xf32>
    %1001 = arith.addf %997, %1000 : vector<64x4xf32>
    %c0_396 = arith.constant 0 : index
    %c384_397 = arith.constant 384 : index
    %1002 = vector.load %arg17[%c0_396, %c384_397] : memref<64x576xbf16, #tpu.memory_space<vmem>>, vector<64x64xbf16>
    %1003 = vector.extract_strided_slice %976 {offsets = [0, 24], sizes = [64, 4], strides = [1, 1]} : vector<64x36xbf16> to vector<64x4xbf16>
    %cst_398 = arith.constant dense<0.000000e+00> : vector<64x4xf32>
    %1004 = tpu.matmul %1002, %1003, %cst_398 {dimension_numbers = #tpu.dot_dimension_numbers<[1], [0], [0], [1], [0, 0, 1, 1], [], []>} : vector<64x64xbf16>, vector<64x4xbf16>, vector<64x4xf32> -> vector<64x4xf32>
    %1005 = arith.addf %1001, %1004 : vector<64x4xf32>
    %c0_399 = arith.constant 0 : index
    %c448 = arith.constant 448 : index
    %1006 = vector.load %arg17[%c0_399, %c448] : memref<64x576xbf16, #tpu.memory_space<vmem>>, vector<64x64xbf16>
    %1007 = vector.extract_strided_slice %976 {offsets = [0, 28], sizes = [64, 4], strides = [1, 1]} : vector<64x36xbf16> to vector<64x4xbf16>
    %cst_400 = arith.constant dense<0.000000e+00> : vector<64x4xf32>
    %1008 = tpu.matmul %1006, %1007, %cst_400 {dimension_numbers = #tpu.dot_dimension_numbers<[1], [0], [0], [1], [0, 0, 1, 1], [], []>} : vector<64x64xbf16>, vector<64x4xbf16>, vector<64x4xf32> -> vector<64x4xf32>
    %1009 = arith.addf %1005, %1008 : vector<64x4xf32>
    %c0_401 = arith.constant 0 : index
    %c512 = arith.constant 512 : index
    %1010 = vector.load %arg17[%c0_401, %c512] : memref<64x576xbf16, #tpu.memory_space<vmem>>, vector<64x64xbf16>
    %1011 = vector.extract_strided_slice %976 {offsets = [0, 32], sizes = [64, 4], strides = [1, 1]} : vector<64x36xbf16> to vector<64x4xbf16>
    %cst_402 = arith.constant dense<0.000000e+00> : vector<64x4xf32>
    %1012 = tpu.matmul %1010, %1011, %cst_402 {dimension_numbers = #tpu.dot_dimension_numbers<[1], [0], [0], [1], [0, 0, 1, 1], [], []>} : vector<64x64xbf16>, vector<64x4xbf16>, vector<64x4xf32> -> vector<64x4xf32>
    %1013 = arith.addf %1009, %1012 : vector<64x4xf32>
    %c0_403 = arith.constant 0 : index
    %c0_404 = arith.constant 0 : index
    %1014 = vector.load %arg18[%c0_403, %c0_404] : memref<64x1xf32, #tpu.memory_space<vmem>>, vector<64x1xf32>
    %1015 = vector.broadcast %1014 : vector<64x1xf32> to vector<64x4xf32>
    %1016 = arith.addf %1013, %1015 : vector<64x4xf32>
    %cst_405 = arith.constant 0.000000e+00 : f32
    %1017 = vector.broadcast %cst_405 : f32 to vector<64x4xf32>
    %1018 = arith.maximumf %1016, %1017 : vector<64x4xf32>
    %1019 = arith.truncf %1018 : vector<64x4xf32> to vector<64x4xbf16>
    %c0_406 = arith.constant 0 : index
    %c0_407 = arith.constant 0 : index
    %1020 = vector.load %arg16[%c0_406, %c0_407] : memref<4x36xbf16, #tpu.memory_space<vmem>>, vector<4x36xbf16>
    %cst_408 = arith.constant dense<0.000000e+00> : vector<64x36xf32>
    %1021 = tpu.matmul %1019, %1020, %cst_408 {dimension_numbers = #tpu.dot_dimension_numbers<[1], [0], [0], [1], [0, 0, 1, 1], [], []>} : vector<64x4xbf16>, vector<4x36xbf16>, vector<64x36xf32> -> vector<64x36xf32>
    %1022 = arith.truncf %1021 : vector<64x36xf32> to vector<64x36xbf16>
    %cst_409 = arith.constant 0.000000e+00 : f32
    %1023 = vector.broadcast %cst_409 : f32 to vector<64x4xf32>
    %c0_410 = arith.constant 0 : index
    %c0_411 = arith.constant 0 : index
    %1024 = vector.load %arg19[%c0_410, %c0_411] : memref<64x576xbf16, #tpu.memory_space<vmem>>, vector<64x64xbf16>
    %1025 = vector.extract_strided_slice %1022 {offsets = [0, 0], sizes = [64, 4], strides = [1, 1]} : vector<64x36xbf16> to vector<64x4xbf16>
    %cst_412 = arith.constant dense<0.000000e+00> : vector<64x4xf32>
    %1026 = tpu.matmul %1024, %1025, %cst_412 {dimension_numbers = #tpu.dot_dimension_numbers<[1], [0], [0], [1], [0, 0, 1, 1], [], []>} : vector<64x64xbf16>, vector<64x4xbf16>, vector<64x4xf32> -> vector<64x4xf32>
    %1027 = arith.addf %1023, %1026 : vector<64x4xf32>
    %c0_413 = arith.constant 0 : index
    %c64_414 = arith.constant 64 : index
    %1028 = vector.load %arg19[%c0_413, %c64_414] : memref<64x576xbf16, #tpu.memory_space<vmem>>, vector<64x64xbf16>
    %1029 = vector.extract_strided_slice %1022 {offsets = [0, 4], sizes = [64, 4], strides = [1, 1]} : vector<64x36xbf16> to vector<64x4xbf16>
    %cst_415 = arith.constant dense<0.000000e+00> : vector<64x4xf32>
    %1030 = tpu.matmul %1028, %1029, %cst_415 {dimension_numbers = #tpu.dot_dimension_numbers<[1], [0], [0], [1], [0, 0, 1, 1], [], []>} : vector<64x64xbf16>, vector<64x4xbf16>, vector<64x4xf32> -> vector<64x4xf32>
    %1031 = arith.addf %1027, %1030 : vector<64x4xf32>
    %c0_416 = arith.constant 0 : index
    %c128_417 = arith.constant 128 : index
    %1032 = vector.load %arg19[%c0_416, %c128_417] : memref<64x576xbf16, #tpu.memory_space<vmem>>, vector<64x64xbf16>
    %1033 = vector.extract_strided_slice %1022 {offsets = [0, 8], sizes = [64, 4], strides = [1, 1]} : vector<64x36xbf16> to vector<64x4xbf16>
    %cst_418 = arith.constant dense<0.000000e+00> : vector<64x4xf32>
    %1034 = tpu.matmul %1032, %1033, %cst_418 {dimension_numbers = #tpu.dot_dimension_numbers<[1], [0], [0], [1], [0, 0, 1, 1], [], []>} : vector<64x64xbf16>, vector<64x4xbf16>, vector<64x4xf32> -> vector<64x4xf32>
    %1035 = arith.addf %1031, %1034 : vector<64x4xf32>
    %c0_419 = arith.constant 0 : index
    %c192_420 = arith.constant 192 : index
    %1036 = vector.load %arg19[%c0_419, %c192_420] : memref<64x576xbf16, #tpu.memory_space<vmem>>, vector<64x64xbf16>
    %1037 = vector.extract_strided_slice %1022 {offsets = [0, 12], sizes = [64, 4], strides = [1, 1]} : vector<64x36xbf16> to vector<64x4xbf16>
    %cst_421 = arith.constant dense<0.000000e+00> : vector<64x4xf32>
    %1038 = tpu.matmul %1036, %1037, %cst_421 {dimension_numbers = #tpu.dot_dimension_numbers<[1], [0], [0], [1], [0, 0, 1, 1], [], []>} : vector<64x64xbf16>, vector<64x4xbf16>, vector<64x4xf32> -> vector<64x4xf32>
    %1039 = arith.addf %1035, %1038 : vector<64x4xf32>
    %c0_422 = arith.constant 0 : index
    %c256_423 = arith.constant 256 : index
    %1040 = vector.load %arg19[%c0_422, %c256_423] : memref<64x576xbf16, #tpu.memory_space<vmem>>, vector<64x64xbf16>
    %1041 = vector.extract_strided_slice %1022 {offsets = [0, 16], sizes = [64, 4], strides = [1, 1]} : vector<64x36xbf16> to vector<64x4xbf16>
    %cst_424 = arith.constant dense<0.000000e+00> : vector<64x4xf32>
    %1042 = tpu.matmul %1040, %1041, %cst_424 {dimension_numbers = #tpu.dot_dimension_numbers<[1], [0], [0], [1], [0, 0, 1, 1], [], []>} : vector<64x64xbf16>, vector<64x4xbf16>, vector<64x4xf32> -> vector<64x4xf32>
    %1043 = arith.addf %1039, %1042 : vector<64x4xf32>
    %c0_425 = arith.constant 0 : index
    %c320_426 = arith.constant 320 : index
    %1044 = vector.load %arg19[%c0_425, %c320_426] : memref<64x576xbf16, #tpu.memory_space<vmem>>, vector<64x64xbf16>
    %1045 = vector.extract_strided_slice %1022 {offsets = [0, 20], sizes = [64, 4], strides = [1, 1]} : vector<64x36xbf16> to vector<64x4xbf16>
    %cst_427 = arith.constant dense<0.000000e+00> : vector<64x4xf32>
    %1046 = tpu.matmul %1044, %1045, %cst_427 {dimension_numbers = #tpu.dot_dimension_numbers<[1], [0], [0], [1], [0, 0, 1, 1], [], []>} : vector<64x64xbf16>, vector<64x4xbf16>, vector<64x4xf32> -> vector<64x4xf32>
    %1047 = arith.addf %1043, %1046 : vector<64x4xf32>
    %c0_428 = arith.constant 0 : index
    %c384_429 = arith.constant 384 : index
    %1048 = vector.load %arg19[%c0_428, %c384_429] : memref<64x576xbf16, #tpu.memory_space<vmem>>, vector<64x64xbf16>
    %1049 = vector.extract_strided_slice %1022 {offsets = [0, 24], sizes = [64, 4], strides = [1, 1]} : vector<64x36xbf16> to vector<64x4xbf16>
    %cst_430 = arith.constant dense<0.000000e+00> : vector<64x4xf32>
    %1050 = tpu.matmul %1048, %1049, %cst_430 {dimension_numbers = #tpu.dot_dimension_numbers<[1], [0], [0], [1], [0, 0, 1, 1], [], []>} : vector<64x64xbf16>, vector<64x4xbf16>, vector<64x4xf32> -> vector<64x4xf32>
    %1051 = arith.addf %1047, %1050 : vector<64x4xf32>
    %c0_431 = arith.constant 0 : index
    %c448_432 = arith.constant 448 : index
    %1052 = vector.load %arg19[%c0_431, %c448_432] : memref<64x576xbf16, #tpu.memory_space<vmem>>, vector<64x64xbf16>
    %1053 = vector.extract_strided_slice %1022 {offsets = [0, 28], sizes = [64, 4], strides = [1, 1]} : vector<64x36xbf16> to vector<64x4xbf16>
    %cst_433 = arith.constant dense<0.000000e+00> : vector<64x4xf32>
    %1054 = tpu.matmul %1052, %1053, %cst_433 {dimension_numbers = #tpu.dot_dimension_numbers<[1], [0], [0], [1], [0, 0, 1, 1], [], []>} : vector<64x64xbf16>, vector<64x4xbf16>, vector<64x4xf32> -> vector<64x4xf32>
    %1055 = arith.addf %1051, %1054 : vector<64x4xf32>
    %c0_434 = arith.constant 0 : index
    %c512_435 = arith.constant 512 : index
    %1056 = vector.load %arg19[%c0_434, %c512_435] : memref<64x576xbf16, #tpu.memory_space<vmem>>, vector<64x64xbf16>
    %1057 = vector.extract_strided_slice %1022 {offsets = [0, 32], sizes = [64, 4], strides = [1, 1]} : vector<64x36xbf16> to vector<64x4xbf16>
    %cst_436 = arith.constant dense<0.000000e+00> : vector<64x4xf32>
    %1058 = tpu.matmul %1056, %1057, %cst_436 {dimension_numbers = #tpu.dot_dimension_numbers<[1], [0], [0], [1], [0, 0, 1, 1], [], []>} : vector<64x64xbf16>, vector<64x4xbf16>, vector<64x4xf32> -> vector<64x4xf32>
    %1059 = arith.addf %1055, %1058 : vector<64x4xf32>
    %c0_437 = arith.constant 0 : index
    %c0_438 = arith.constant 0 : index
    %1060 = vector.load %arg20[%c0_437, %c0_438] : memref<64x1xf32, #tpu.memory_space<vmem>>, vector<64x1xf32>
    %1061 = vector.broadcast %1060 : vector<64x1xf32> to vector<64x4xf32>
    %1062 = arith.addf %1059, %1061 : vector<64x4xf32>
    %1063 = arith.addf %1062, %972 : vector<64x4xf32>
    %cst_439 = arith.constant 0.000000e+00 : f32
    %1064 = vector.broadcast %cst_439 : f32 to vector<64x4xf32>
    %1065 = arith.maximumf %1063, %1064 : vector<64x4xf32>
    %c0_440 = arith.constant 0 : index
    %c0_441 = arith.constant 0 : index
    %c0_442 = arith.constant 0 : index
    %1066 = vector.load %arg27[%c0_440, %c0_441, %c0_442] : memref<1x64x4xf32, #tpu.memory_space<vmem>>, vector<1x64x4xf32>
    %1067 = vector.shape_cast %1066 : vector<1x64x4xf32> to vector<64x4xf32>
    %1068 = vector.shape_cast %1065 : vector<64x4xf32> to vector<1x64x4xf32>
    tpu.vector_store %arg27[%c0_440, %c0_441, %c0_442], %1068 {strides = array<i32>} : memref<1x64x4xf32, #tpu.memory_space<vmem>>, vector<1x64x4xf32>,
    %cst_443 = arith.constant dense<0.000000e+00> : vector<64xf32>
    %1069 = vector.multi_reduction <add>, %1065, %cst_443 [1] : vector<64x4xf32> to vector<64xf32>
    %1070 = vector.shape_cast %1069 : vector<64xf32> to vector<64x1xf32>
    %cst_444 = arith.constant 2.500000e-01 : f32
    %1071 = vector.broadcast %cst_444 : f32 to vector<64x1xf32>
    %1072 = arith.mulf %1070, %1071 : vector<64x1xf32>
    %c0_445 = arith.constant 0 : index
    %c0_446 = arith.constant 0 : index
    %1073 = vector.load %arg21[%c0_445, %c0_446] : memref<128x64xbf16, #tpu.memory_space<vmem>>, vector<128x64xbf16>
    %1074 = arith.truncf %1072 : vector<64x1xf32> to vector<64x1xbf16>
    %cst_447 = arith.constant dense<0.000000e+00> : vector<128x1xf32>
    %1075 = tpu.matmul %1073, %1074, %cst_447 {dimension_numbers = #tpu.dot_dimension_numbers<[1], [0], [0], [1], [0, 0, 1, 1], [], []>} : vector<128x64xbf16>, vector<64x1xbf16>, vector<128x1xf32> -> vector<128x1xf32>
    %c0_448 = arith.constant 0 : index
    %c0_449 = arith.constant 0 : index
    %1076 = vector.load %arg22[%c0_448, %c0_449] : memref<128x1xf32, #tpu.memory_space<vmem>>, vector<128x1xf32>
    %1077 = arith.addf %1075, %1076 : vector<128x1xf32>
    %cst_450 = arith.constant 0.000000e+00 : f32
    %1078 = vector.broadcast %cst_450 : f32 to vector<128x1xf32>
    %1079 = arith.maximumf %1077, %1078 : vector<128x1xf32>
    %c0_451 = arith.constant 0 : index
    %c0_452 = arith.constant 0 : index
    %1080 = vector.load %arg23[%c0_451, %c0_452] : memref<9x128xbf16, #tpu.memory_space<vmem>>, vector<9x128xbf16>
    %1081 = arith.truncf %1079 : vector<128x1xf32> to vector<128x1xbf16>
    %cst_453 = arith.constant dense<0.000000e+00> : vector<9x1xf32>
    %1082 = tpu.matmul %1080, %1081, %cst_453 {dimension_numbers = #tpu.dot_dimension_numbers<[1], [0], [0], [1], [0, 0, 1, 1], [], []>} : vector<9x128xbf16>, vector<128x1xbf16>, vector<9x1xf32> -> vector<9x1xf32>
    %c0_454 = arith.constant 0 : index
    %c0_455 = arith.constant 0 : index
    %1083 = vector.load %arg24[%c0_454, %c0_455] : memref<9x1xf32, #tpu.memory_space<vmem>>, vector<9x1xf32>
    %1084 = arith.addf %1082, %1083 : vector<9x1xf32>
    %cst_456 = arith.constant dense<0xFF800000> : vector<1xf32>
    %1085 = vector.multi_reduction <maximumf>, %1084, %cst_456 [0] : vector<9x1xf32> to vector<1xf32>
    %1086 = vector.shape_cast %1085 : vector<1xf32> to vector<1x1xf32>
    %1087 = vector.broadcast %1086 : vector<1x1xf32> to vector<9x1xf32>
    %1088 = arith.subf %1084, %1087 : vector<9x1xf32>
    %1089 = math.exp %1088 : vector<9x1xf32>
    %cst_457 = arith.constant dense<0.000000e+00> : vector<1xf32>
    %1090 = vector.multi_reduction <add>, %1089, %cst_457 [0] : vector<9x1xf32> to vector<1xf32>
    %1091 = vector.shape_cast %1090 : vector<1xf32> to vector<1x1xf32>
    %1092 = tpu.reciprocal %1091 {approx = true} : vector<1x1xf32> -> vector<1x1xf32>
    %1093 = vector.broadcast %1092 : vector<1x1xf32> to vector<9x1xf32>
    %1094 = arith.mulf %1089, %1093 : vector<9x1xf32>
    %c0_458 = arith.constant 0 : index
    %c0_459 = arith.constant 0 : index
    %c0_460 = arith.constant 0 : index
    %1095 = vector.load %arg25[%c0_458, %c0_459, %c0_460] : memref<1x9x1xf32, #tpu.memory_space<vmem>>, vector<1x9x1xf32>
    %1096 = vector.shape_cast %1095 : vector<1x9x1xf32> to vector<9x1xf32>
    %1097 = vector.shape_cast %1094 : vector<9x1xf32> to vector<1x9x1xf32>
    tpu.vector_store %arg25[%c0_458, %c0_459, %c0_460], %1097 {strides = array<i32>} : memref<1x9x1xf32, #tpu.memory_space<vmem>>, vector<1x9x1xf32>,
    %c0_461 = arith.constant 0 : index
    %c0_462 = arith.constant 0 : index
    %c0_463 = arith.constant 0 : index
    %1098 = vector.load %arg26[%c0_461, %c0_462, %c0_463] : memref<1x9x1xf32, #tpu.memory_space<vmem>>, vector<1x9x1xf32>
    %1099 = vector.shape_cast %1098 : vector<1x9x1xf32> to vector<9x1xf32>
    %1100 = vector.shape_cast %1084 : vector<9x1xf32> to vector<1x9x1xf32>
    tpu.vector_store %arg26[%c0_461, %c0_462, %c0_463], %1100 {strides = array<i32>} : memref<1x9x1xf32, #tpu.memory_space<vmem>>, vector<1x9x1xf32>,
    return
  }
  func.func @transform_0(%arg0: i32) -> (i32, i32, i32) {
    %c0_i32 = arith.constant 0 : i32
    %c0_i32_0 = arith.constant 0 : i32
    %c0_i32_1 = arith.constant 0 : i32
    return %arg0, %c0_i32, %c0_i32_0 : i32, i32, i32
  }
  func.func @transform_1(%arg0: i32) -> (i32, i32) {
    %c0_i32 = arith.constant 0 : i32
    %c0_i32_0 = arith.constant 0 : i32
    %c0_i32_1 = arith.constant 0 : i32
    return %c0_i32, %c0_i32_0 : i32, i32
  }
  func.func @transform_2(%arg0: i32) -> (i32, i32) {
    %c0_i32 = arith.constant 0 : i32
    %c0_i32_0 = arith.constant 0 : i32
    %c0_i32_1 = arith.constant 0 : i32
    return %c0_i32, %c0_i32_0 : i32, i32
  }
  func.func @transform_3(%arg0: i32) -> (i32, i32) {
    %c0_i32 = arith.constant 0 : i32
    %c0_i32_0 = arith.constant 0 : i32
    %c0_i32_1 = arith.constant 0 : i32
    return %c0_i32, %c0_i32_0 : i32, i32
  }
  func.func @transform_4(%arg0: i32) -> (i32, i32) {
    %c0_i32 = arith.constant 0 : i32
    %c0_i32_0 = arith.constant 0 : i32
    %c0_i32_1 = arith.constant 0 : i32
    return %c0_i32, %c0_i32_0 : i32, i32
  }
  func.func @transform_5(%arg0: i32) -> (i32, i32) {
    %c0_i32 = arith.constant 0 : i32
    %c0_i32_0 = arith.constant 0 : i32
    %c0_i32_1 = arith.constant 0 : i32
    return %c0_i32, %c0_i32_0 : i32, i32
  }
  func.func @transform_6(%arg0: i32) -> (i32, i32) {
    %c0_i32 = arith.constant 0 : i32
    %c0_i32_0 = arith.constant 0 : i32
    %c0_i32_1 = arith.constant 0 : i32
    return %c0_i32, %c0_i32_0 : i32, i32
  }
  func.func @transform_7(%arg0: i32) -> (i32, i32) {
    %c0_i32 = arith.constant 0 : i32
    %c0_i32_0 = arith.constant 0 : i32
    %c0_i32_1 = arith.constant 0 : i32
    return %c0_i32, %c0_i32_0 : i32, i32
  }
  func.func @transform_8(%arg0: i32) -> (i32, i32) {
    %c0_i32 = arith.constant 0 : i32
    %c0_i32_0 = arith.constant 0 : i32
    %c0_i32_1 = arith.constant 0 : i32
    return %c0_i32, %c0_i32_0 : i32, i32
  }
  func.func @transform_9(%arg0: i32) -> (i32, i32) {
    %c0_i32 = arith.constant 0 : i32
    %c0_i32_0 = arith.constant 0 : i32
    %c0_i32_1 = arith.constant 0 : i32
    return %c0_i32, %c0_i32_0 : i32, i32
  }
  func.func @transform_10(%arg0: i32) -> (i32, i32) {
    %c0_i32 = arith.constant 0 : i32
    %c0_i32_0 = arith.constant 0 : i32
    %c0_i32_1 = arith.constant 0 : i32
    return %c0_i32, %c0_i32_0 : i32, i32
  }
  func.func @transform_11(%arg0: i32) -> (i32, i32) {
    %c0_i32 = arith.constant 0 : i32
    %c0_i32_0 = arith.constant 0 : i32
    %c0_i32_1 = arith.constant 0 : i32
    return %c0_i32, %c0_i32_0 : i32, i32
  }
  func.func @transform_12(%arg0: i32) -> (i32, i32) {
    %c0_i32 = arith.constant 0 : i32
    %c0_i32_0 = arith.constant 0 : i32
    %c0_i32_1 = arith.constant 0 : i32
    return %c0_i32, %c0_i32_0 : i32, i32
  }
  func.func @transform_13(%arg0: i32) -> (i32, i32) {
    %c0_i32 = arith.constant 0 : i32
    %c0_i32_0 = arith.constant 0 : i32
    %c0_i32_1 = arith.constant 0 : i32
    return %c0_i32, %c0_i32_0 : i32, i32
  }
  func.func @transform_14(%arg0: i32) -> (i32, i32) {
    %c0_i32 = arith.constant 0 : i32
    %c0_i32_0 = arith.constant 0 : i32
    %c0_i32_1 = arith.constant 0 : i32
    return %c0_i32, %c0_i32_0 : i32, i32
  }
  func.func @transform_15(%arg0: i32) -> (i32, i32) {
    %c0_i32 = arith.constant 0 : i32
    %c0_i32_0 = arith.constant 0 : i32
    %c0_i32_1 = arith.constant 0 : i32
    return %c0_i32, %c0_i32_0 : i32, i32
  }
  func.func @transform_16(%arg0: i32) -> (i32, i32) {
    %c0_i32 = arith.constant 0 : i32
    %c0_i32_0 = arith.constant 0 : i32
    %c0_i32_1 = arith.constant 0 : i32
    return %c0_i32, %c0_i32_0 : i32, i32
  }
  func.func @transform_17(%arg0: i32) -> (i32, i32) {
    %c0_i32 = arith.constant 0 : i32
    %c0_i32_0 = arith.constant 0 : i32
    %c0_i32_1 = arith.constant 0 : i32
    return %c0_i32, %c0_i32_0 : i32, i32
  }
  func.func @transform_18(%arg0: i32) -> (i32, i32) {
    %c0_i32 = arith.constant 0 : i32
    %c0_i32_0 = arith.constant 0 : i32
    %c0_i32_1 = arith.constant 0 : i32
    return %c0_i32, %c0_i32_0 : i32, i32
  }
  func.func @transform_19(%arg0: i32) -> (i32, i32) {
    %c0_i32 = arith.constant 0 : i32
    %c0_i32_0 = arith.constant 0 : i32
    %c0_i32_1 = arith.constant 0 : i32
    return %c0_i32, %c0_i32_0 : i32, i32
  }
  func.func @transform_20(%arg0: i32) -> (i32, i32) {
    %c0_i32 = arith.constant 0 : i32
    %c0_i32_0 = arith.constant 0 : i32
    %c0_i32_1 = arith.constant 0 : i32
    return %c0_i32, %c0_i32_0 : i32, i32
  }
  func.func @transform_21(%arg0: i32) -> (i32, i32) {
    %c0_i32 = arith.constant 0 : i32
    %c0_i32_0 = arith.constant 0 : i32
    %c0_i32_1 = arith.constant 0 : i32
    return %c0_i32, %c0_i32_0 : i32, i32
  }
  func.func @transform_22(%arg0: i32) -> (i32, i32) {
    %c0_i32 = arith.constant 0 : i32
    %c0_i32_0 = arith.constant 0 : i32
    %c0_i32_1 = arith.constant 0 : i32
    return %c0_i32, %c0_i32_0 : i32, i32
  }
  func.func @transform_23(%arg0: i32) -> (i32, i32) {
    %c0_i32 = arith.constant 0 : i32
    %c0_i32_0 = arith.constant 0 : i32
    %c0_i32_1 = arith.constant 0 : i32
    return %c0_i32, %c0_i32_0 : i32, i32
  }
  func.func @transform_24(%arg0: i32) -> (i32, i32, i32) {
    %c0_i32 = arith.constant 0 : i32
    %c0_i32_0 = arith.constant 0 : i32
    %c0_i32_1 = arith.constant 0 : i32
    return %arg0, %c0_i32, %c0_i32_0 : i32, i32, i32
  }
  func.func @transform_25(%arg0: i32) -> (i32, i32, i32) {
    %c0_i32 = arith.constant 0 : i32
    %c0_i32_0 = arith.constant 0 : i32
    %c0_i32_1 = arith.constant 0 : i32
    return %arg0, %c0_i32, %c0_i32_0 : i32, i32, i32
  }
  func.func @transform_26(%arg0: i32) -> (i32, i32, i32) {
    %c0_i32 = arith.constant 0 : i32
    %c0_i32_0 = arith.constant 0 : i32
    %c0_i32_1 = arith.constant 0 : i32
    return %arg0, %c0_i32, %c0_i32_0 : i32, i32, i32
  }
}

</mosaic_0001>

<bundles_post_ra>
// kernel: simple_overall_model_forward.1
= control target key start
LH: loop header
LB: loop body
LE: loop exit
PB: predicated region body
PF: predicated region fallthrough
CT: control target
= control target key end

     0   :  { %s14967_s27 = smov 0   ;;  %s17831_s0 = inlined_call_operand.vmem [shape: f32[2,3,256], index: 0, kind: input, shape index: {}]   ;;  %s17832_s1 = inlined_call_operand.vmem [shape: s32[2,256], index: 1, kind: input, shape index: {}]   ;;  %s17833_s2 = inlined_call_operand.vmem [shape: bf16[16,147], index: 2, kind: input, shape index: {}]   ;;  %s17834_s3 = inlined_call_operand.vmem [shape: f32[16,1], index: 3, kind: input, shape index: {}]   ;;  %s17835_s4 = inlined_call_operand.vmem [shape: bf16[256,256], index: 4, kind: input, shape index: {}]   ;;  %s17836_s5 = inlined_call_operand.vmem [shape: bf16[64,1600], index: 5, kind: input, shape index: {}]   ;;  %s17837_s6 = inlined_call_operand.vmem [shape: bf16[32,400], index: 6, kind: input, shape index: {}]   ;;  %s17838_s7 = inlined_call_operand.vmem [shape: f32[32,1], index: 7, kind: input, shape index: {}]   ;;  %s17839_s8 = inlined_call_operand.vmem [shape: bf16[64,64], index: 8, kind: input, shape index: {}]   ;;  %s17840_s9 = inlined_call_operand.vmem [shape: bf16[16,144], index: 9, kind: input, shape index: {}]   ;;  %s17841_s10 = inlined_call_operand.vmem [shape: bf16[64,288], index: 10, kind: input, shape index: {}]   ;;  %s17842_s11 = inlined_call_operand.vmem [shape: f32[64,1], index: 11, kind: input, shape index: {}, may-alias: {11,14,17,19}]   ;;  %s17843_s12 = inlined_call_operand.vmem [shape: bf16[16,16], index: 12, kind: input, shape index: {}]   ;;  %s17844_s13 = inlined_call_operand.vmem [shape: bf16[64,64], index: 13, kind: input, shape index: {}]   ;;  %s17845_s14 = inlined_call_operand.vmem [shape: f32[64,1], index: 14, kind: input, shape index: {}, may-alias: {11,14,17,19}]   ;;  %s17846_s15 = inlined_call_operand.vmem [shape: bf16[4,36], index: 15, kind: input, shape index: {}]   ;;  %s17847_s16 = inlined_call_operand.vmem [shape: bf16[64,576], index: 16, kind: input, shape index: {}]   ;;  %s17848_s17 = inlined_call_operand.vmem [shape: f32[64,1], index: 17, kind: input, shape index: {}, may-alias: {11,14,17,19}]   ;;  %s17849_s18 = inlined_call_operand.vmem [shape: bf16[64,576], index: 18, kind: input, shape index: {}]   ;;  %s17850_s19 = inlined_call_operand.vmem [shape: f32[64,1], index: 19, kind: input, shape index: {}, may-alias: {11,14,17,19}]   ;;  %s17851_s20 = inlined_call_operand.vmem [shape: bf16[128,64], index: 20, kind: input, shape index: {}]   ;;  %s17852_s21 = inlined_call_operand.vmem [shape: f32[128,1], index: 21, kind: input, shape index: {}]   ;;  %s17853_s22 = inlined_call_operand.vmem [shape: bf16[9,128], index: 22, kind: input, shape index: {}]   ;;  %s17854_s23 = inlined_call_operand.vmem [shape: f32[9,1], index: 23, kind: input, shape index: {}]   ;;  %s17855_s24 = inlined_call_operand.vmem [shape: f32[2,9,1], index: 24, kind: output, shape index: {0}]   ;;  %s17856_s25 = inlined_call_operand.vmem [shape: f32[2,9,1], index: 25, kind: output, shape index: {1}]   ;;  %s17857_s26 = inlined_call_operand.vmem [shape: f32[2,64,4], index: 26, kind: output, shape index: {2}]  }
   0x1   :  { %17916 = sst [smem:[#allocation3_spill]] %s17831_s0 }
   0x2   :  { %17917 = sst [smem:[#allocation4_spill]] %s17832_s1 }
   0x3   :  { %17918 = sst [smem:[#allocation5_spill]] %s17833_s2 }
   0x4   :  { %17919 = sst [smem:[#allocation6_spill]] %s17834_s3 }
   0x5   :  { %17920 = sst [smem:[#allocation7_spill]] %s17835_s4 }
   0x6   :  { %17921 = sst [smem:[#allocation8_spill]] %s17836_s5 }
   0x7   :  { %17922 = sst [smem:[#allocation9_spill]] %s17837_s6 }
   0x8   :  { %17923 = sst [smem:[#allocation10_spill]] %s17838_s7 }
   0x9   :  { %17924 = sst [smem:[#allocation11_spill]] %s17839_s8 }
   0xa   :  { %17925 = sst [smem:[#allocation12_spill]] %s17840_s9 }
   0xb   :  { %17926 = sst [smem:[#allocation13_spill]] %s17841_s10 }
   0xc   :  { %17927 = sst [smem:[#allocation14_spill]] %s17842_s11 }
   0xd   :  { %17928 = sst [smem:[#allocation15_spill]] %s17843_s12 }
   0xe   :  { %17929 = sst [smem:[#allocation16_spill]] %s17854_s23 }
   0xf   :  { %17930 = sst [smem:[#allocation17_spill]] %s17855_s24 }
  0x10   :  { %17931 = sst [smem:[#allocation18_spill]] %s17856_s25 }
  0x11 LB: > { %17932 = sst [smem:[#allocation2_spill]] %s14745_s27  ;;  %s12122_s3 = sadd.s32 4294967295, %s14745_s27   ;;  %s14745_s27 = sphi %s14967_s27, %s37_s27  }
  0x12   : > { %p12126_p0 = scmp.ge.s32.totalorder %s14745_s27, 1  ;;  %p717_p1 = scmp.lt.s32.totalorder %s14745_s27, 3 }
  0x14   : > { %p718_p2 = pnand %p12126_p0, %p717_p1 }
  0x15   : > { %p797_p3 = scmp.lt.s32.totalorder (!%p718_p2), %s12122_s3, 1  ;;  %s17933_s4 = sld [smem:[#allocation3_spill]] (!%p718_p2)  ;;  %v14751_v5 = vmov (!%p718_p2), 0   ;;  %v835_v26 = vlaneseq (!%p718_p2)  ;;  %vm895_vm14 = vcmask (!%p718_p2), 1040384   ;;  %v14787_v36 = vmov (!%p718_p2), 65535  }
  0x16   : > { %721 = sbr.rel (%p718_p2) target bundleno = 6088 (0x17c8), region = 116  ;;  %s17934_s30 = sld [smem:[#allocation5_spill]] (!%p718_p2)  ;;  %937 = vmatprep.mubr.bf16.mxu0 (!%p718_p2), %v14751_v5  ;;  %14400 = vset.pattern.permute.xlu1 (!%p718_p2), %v14751_v5  ;;  %v897_v37 = vsel (!%p718_p2), %vm895_vm14, 4294967295, %v14787_v36 }
  0x17   : > { %s17868_s2 = smov (!%p718_p2), 50   ;;  %s14748_s5 = smov (!%p718_p2), 51   ;;  %14401 = vset.pattern.permute.xlu0 (!%p718_p2), %v14751_v5  ;;  %v843_v27 = vshrl.u32 (!%p718_p2), %v835_v26, 7  ;;  %v15145_v34 = vand.u32 (!%p718_p2), 127, %v835_v26 }
  0x18   : > { %s14749_s10 = smov (!%p718_p2), 125   ;;  %s14750_s6 = smov (!%p718_p2), 49  }
  0x19   : > { %s14753_s0 = smov (!%p718_p2), 122   ;;  %s17871_s9 = smov (!%p718_p2), 47   ;;  %v15124_v29 = vsub.s32 (!%p718_p2), 0, %v843_v27  ;;  %v15126_v30 = vsub.s32 (!%p718_p2), 1, %v843_v27 }
  0x1a   : > { %s14756_s28 = smov (!%p718_p2), 46   ;;  %s17872_s8 = smov (!%p718_p2), 116  }
  0x1b   : > { %s17879_s1 = smov (!%p718_p2), 32   ;;  %s17994_s24 = smov (!%p718_p2), 96  }
  0x1c   : > { %v14473_v3 = vld [vmem:[%s17934_s30] ss:$8 sps:$4 sm:$0xff] (!%p718_p2)   ;;  %s18000_s25 = sld [smem:[#allocation12_spill]] (!%p718_p2)  ;;  %s18002_s11 = sld [smem:[#allocation14_spill]] (!%p718_p2) }
  0x1d   : > { %s18019_s3 = smov (!%p797_p3, %s12122_s3), 1  ;;  %v14474_v4 = vld [vmem:[%s17934_s30] ss:$8 sps:$4 sm:$0xff]   ;;  %s18003_s12 = sld [smem:[#allocation15_spill]] }
  0x1e   : > { %s12593_s7 = sshll.u32 %s18019_s3, 3  ;;  %v14475_v6 = vld [vmem:[%s17934_s30] ss:$8 sps:$4 sm:$0xff]   ;;  %s17908_s27 = smov 120  }
  0x1f   : > { %s14981_s29 = scalar_lea.vmem %s17933_s4, %s12593_s7  ;;  %s17869_s4 = smov 48   ;;  %v14476_v7 = vld [vmem:[%s17934_s30] ss:$8 sps:$4 sm:$0xff]  }
  0x20   : > { %v818_v0 = vld [vmem:[%s14981_s29] sm:$0x77]  ;;  %s14767_s7 = smov 101  }
  0x21   : > { %v14984_v1 = vcombine.high %v818_v0, %v818_v0  ;;  %v14477_v8 = vld [vmem:[%s17934_s30] ss:$8 sps:$4 sm:$0xff]  }
  0x22   : > { %v14478_v9 = vld [vmem:[%s17934_s30] ss:$8 sps:$4 sm:$0xff]  }
  0x23   : > { %v14987_v2 = vpack.i.bf16 %v14984_v1, %v818_v0  ;;  %v14479_v10 = vld [vmem:[%s17934_s30] ss:$8 sps:$4 sm:$0xff]  }
  0x24   : > { %v14480_v11 = vld [vmem:[%s17934_s30] ss:$8 sps:$4 sm:$0xff]  }
  0x25   : > { %14161 = vrot.lane.b32.xlu0 %v14987_v2, %s17868_s2  ;;  %14166 = vrot.lane.b32.xlu1 %v14987_v2, %s14748_s5  ;;  %s14755_s5 = smov 119   ;;  %s17876_s2 = smov 110   ;;  %v14481_v12 = vld [vmem:[%s17934_s30] ss:$8 sps:$4 sm:$0xff]  }
  0x26   : > { %v14482_v13 = vld [vmem:[%s17934_s30] ss:$8 sps:$4 sm:$0xff]  }
  0x27   : > { %v14483_v14 = vld [vmem:[%s17934_s30] ss:$8 sps:$4 sm:$0xff]  }
  0x28   : > { %v14484_v15 = vld [vmem:[%s17934_s30] ss:$8 sps:$4 sm:$0xff]  }
  0x29   : > { %889 = vrot.lane.b32.xlu0 %v14473_v3, %s14749_s10  ;;  %14171 = vrot.lane.b32.xlu1 %v14987_v2, %s14750_s6  ;;  %s17875_s6 = smov 35   ;;  %v14485_v16 = vld [vmem:[%s17934_s30] ss:$8 sps:$4 sm:$0xff]  }
  0x2a   : > { %v14486_v17 = vld [vmem:[%s17934_s30] ss:$8 sps:$4 sm:$0xff]  }
  0x2b   : > { %v14487_v18 = vld [vmem:[%s17934_s30] ss:$8 sps:$4 sm:$0xff]  }
  0x2c   : > { %v14488_v21 = vld [vmem:[%s17934_s30] ss:$8 sps:$4 sm:$0xff]  }
  0x2d   : > { %14176 = vrot.lane.b32.xlu1 %v14987_v2, %s17869_s4  ;;  %1033 = vrot.lane.b32.xlu0 %v14474_v4, %s14753_s0  ;;  %s14762_s0 = smov 34   ;;  %s14773_s4 = smov 92   ;;  %v14489_v24 = vld [vmem:[%s17934_s30] ss:$8 sps:$4 sm:$0xff]  }
  0x2e   : > { %v14490_v31 = vld [vmem:[%s17934_s30] ss:$8 sps:$4 sm:$0xff]  }
  0x2f   : > { %v14491_v45 = vld [vmem:[%s17934_s30] ss:$8 sps:$4 sm:$0xff]  }
  0x30   : > { %v14734_v36 = vld [vmem:[%s14981_s29] sm:$0x77] }
  0x31   : > { %14181 = vrot.lane.b32.xlu1 %v14987_v2, %s17871_s9  ;;  %1124 = vrot.lane.b32.xlu0 %v14475_v6, %s14755_s5  ;;  %s14758_s9 = smov 45   ;;  %s17874_s5 = smov 113   ;;  %v14493_v48 = vld [vmem:[%s17934_s30] ss:$8 sps:$4 sm:$0xff]  }
  0x35   : > { %14186 = vrot.lane.b32.xlu1 %v14987_v2, %s14756_s28  ;;  %1215 = vrot.lane.b32.xlu0 %v14476_v7, %s17872_s8  ;;  %s14768_s8 = smov 31   ;;  %s17883_s28 = smov 29  }
  0x39   : > { %14191 = vrot.lane.b32.xlu1 %v14987_v2, %s14758_s9  ;;  %1306 = vrot.lane.b32.xlu0 %v14477_v8, %s17874_s5  ;;  %s14763_s9 = smov 107   ;;  %s17881_s5 = smov 98  }
  0x3d   : > { %14196 = vrot.lane.b32.xlu1 %v14987_v2, %s17875_s6  ;;  %1397 = vrot.lane.b32.xlu0 %v14478_v9, %s17876_s2  ;;  %s14764_s6 = smov 33   ;;  %s17877_s2 = smov 104  }
  0x41   : > { %14201 = vrot.lane.b32.xlu1 %v14987_v2, %s14762_s0  ;;  %1488 = vrot.lane.b32.xlu0 %v14479_v10, %s14763_s9  ;;  %s17885_s9 = smov 16   ;;  %s14784_s0 = smov 14  }
  0x45   : > { %14206 = vrot.lane.b32.xlu1 %v14987_v2, %s14764_s6  ;;  %1576 = vrot.lane.b32.xlu0 %v14480_v11, %s17877_s2  ;;  %s14774_s2 = smov 19   ;;  %s14776_s6 = smov 18  }
  0x49   : > { %14211 = vrot.lane.b32.xlu1 %v14987_v2, %s17879_s1  ;;  %1664 = vrot.lane.b32.xlu0 %v14481_v12, %s14767_s7  ;;  %s14770_s1 = smov 30   ;;  %s17882_s7 = smov 95   ;;  %v14492_v12 = vld [vmem:[%s17934_s30] ss:$8 sps:$4 sm:$0xff]  }
  0x4d   : > { %14216 = vrot.lane.b32.xlu1 %v14987_v2, %s14768_s8  ;;  %1752 = vrot.lane.b32.xlu0 %v14482_v13, %s17881_s5  ;;  %s14779_s5 = smov 83   ;;  %s17888_s8 = smov 80  }
  0x51   : > { %14221 = vrot.lane.b32.xlu1 %v14987_v2, %s14770_s1  ;;  %1840 = vrot.lane.b32.xlu0 %v14483_v14, %s17882_s7  ;;  %s14775_s1 = smov 89   ;;  %s14777_s7 = smov 86  }
  0x55   : > { %14226 = vrot.lane.b32.xlu1 %v14987_v2, %s17883_s28  ;;  %1928 = vrot.lane.b32.xlu0 %v14484_v15, %s14773_s4  ;;  %s14778_s28 = smov 17   ;;  %s17887_s4 = smov 77  }
  0x59   : > { %14231 = vrot.lane.b32.xlu1 %v14987_v2, %s14774_s2  ;;  %2016 = vrot.lane.b32.xlu0 %v14485_v16, %s14775_s1  ;;  %s17935_s1 = sld [smem:[#allocation4_spill]]  ;;  %s14782_s2 = smov 15  }
  0x5d   : > { %14236 = vrot.lane.b32.xlu1 %v14987_v2, %s14776_s6  ;;  %2107 = vrot.lane.b32.xlu0 %v14486_v17, %s14777_s7  ;;  %s14785_s6 = smov 74   ;;  %s14789_s7 = smov 3  }
  0x5f   : > { %v15074_v19 = vld [vmem:[%s17935_s1] ss:$2 sm:$0x3]  ;;  %v15079_v20 = vld [vmem:[%s17935_s1 + $0x1] ss:$2 sm:$0x3] }
  0x60   : > { %vm822_vm0 = vcmp.ge.s32.totalorder %v15074_v19, 3  ;;  %vm823_vm1 = vcmp.lt.s32.totalorder %v15074_v19, 19  ;;  %vm858_vm2 = vcmp.ge.s32.totalorder %v15079_v20, 2  ;;  %vm859_vm3 = vcmp.lt.s32.totalorder %v15079_v20, 18 }
  0x61   : > { %14241 = vrot.lane.b32.xlu1 %v14987_v2, %s14778_s28  ;;  %2195 = vrot.lane.b32.xlu0 %v14487_v18, %s14779_s5  ;;  %vm15090_vm4 = vmand %vm822_vm0, %vm823_vm1  ;;  %vm825_vm6 = vcmp.ge.s32.totalorder %v15079_v20, 3  ;;  %vm826_vm7 = vcmp.lt.s32.totalorder %v15079_v20, 19  ;;  %vm1000_vm10 = vcmp.ge.s32.totalorder %v15079_v20, 1  ;;  %vm1001_vm11 = vcmp.lt.s32.totalorder %v15079_v20, 17 }
  0x62   : > { %vm15094_vm5 = vmand %vm858_vm2, %vm859_vm3  ;;  %vm1091_vm0 = vcmp.ge.s32.totalorder %v15079_v20, 0  ;;  %vm1092_vm1 = vcmp.lt.s32.totalorder %v15079_v20, 16  ;;  %vm17884_vm2 = vcmask 1041408  }
  0x63   : > { %vm868_vm8 = vmand %vm15090_vm4, %vm15094_vm5  ;;  %v15162_v43 = vsel %vm17884_vm2, %v897_v37, 0  ;;  %vm1182_vm2 = vcmp.ge.s32.totalorder %v15079_v20, 4294967295  ;;  %v15244_v37 = vpack.i.bf16 %v14984_v1, %v14734_v36 }
  0x64   : > { %vm15107_vm9 = vmand %vm825_vm6, %vm826_vm7  ;;  %v869_v32 = vsel %vm868_vm8, 1, %v14751_v5  ;;  %vm837_vm6 = vcmp.lt.s32.totalorder %v15145_v34, 51  ;;  %vm865_vm7 = vcmp.lt.s32.totalorder %v15145_v34, 50 }
  0x65   : > { %14246 = vrot.lane.b32.xlu1 %v14987_v2, %s17885_s9  ;;  %2283 = vrot.lane.b32.xlu0 %v14488_v21, %s17888_s8  ;;  %vm840_vm12 = vmand %vm15090_vm4, %vm15107_vm9  ;;  %v877_v35 = vrot.slane %v869_v32, %v15126_v30  ;;  %v873_v38 = vrot.slane %v869_v32, %v15124_v29  ;;  %s14792_s9 = smov 65   ;;  %s14798_s8 = smov 126  }
  0x66   : > { %vm15120_vm13 = vmand %vm1000_vm10, %vm1001_vm11  ;;  %v841_v33 = vsel %vm840_vm12, 1, %v14751_v5 }
  0x67   : > { %vm1010_vm15 = vmand %vm15090_vm4, %vm15120_vm13  ;;  %v845_v41 = vrot.slane %v841_v33, %v15124_v29  ;;  %v849_v42 = vrot.slane %v841_v33, %v15126_v30  ;;  %vm15169_vm8 = vcmp.eq.s32.totalorder %v877_v35, 1  ;;  %vm15173_vm10 = vcmp.eq.s32.totalorder %v873_v38, 1 }
  0x68   : > { %v15151_v39 = vsel %vm1010_vm15, 1, %v14751_v5  ;;  %vm15153_vm3 = vmand %vm1091_vm0, %vm1092_vm1  ;;  %vm1007_vm15 = vcmp.lt.s32.totalorder %v15145_v34, 49  ;;  %vm891_vm1 = vcmask 23552  }
  0x69   : > { %14251 = vrot.lane.b32.xlu1 %v14987_v2, %s14782_s2  ;;  %2371 = vrot.lane.b32.xlu0 %v14489_v24, %s17887_s4  ;;  %s14786_s2 = smov 13   ;;  %v1019_v44 = vrot.slane %v15151_v39, %v15126_v30  ;;  %vm15177_vm11 = vcmp.eq.s32.totalorder %v845_v41, 1  ;;  %vm15181_vm12 = vcmp.eq.s32.totalorder %v849_v42, 1  ;;  %vm1101_vm14 = vmand %vm15090_vm4, %vm15153_vm3  ;;  %v1015_v8 = vrot.slane %v15151_v39, %v15124_v29  ;;  %s14793_s4 = smov 1  }
  0x6a   : > { %v15196_v57 = vsel %vm1101_vm14, 1, %v14751_v5  ;;  %vm1274_vm14 = vcmp.lt.s32.totalorder %v15079_v20, 14 }
  0x6b   : > { %vm15191_vm0 = vcmp.eq.s32.totalorder %v1019_v44, 1  ;;  %v1110_v18 = vrot.slane %v15196_v57, %v15126_v30  ;;  %v1106_v42 = vrot.slane %v15196_v57, %v15124_v29 }
  0x6d   : > { %14256 = vrot.lane.b32.xlu1 %v14987_v2, %s14784_s0  ;;  %2459 = vrot.lane.b32.xlu0 %v14490_v31, %s14785_s6  ;;  %s14791_s6 = smov 2  }
  0x71   : > { %14261 = vrot.lane.b32.xlu1 %v14987_v2, %s14786_s2  ;;  %s14788_s2 = smov 71  }
  0x72   : > { %2547 = vrot.lane.b32.xlu0 %v14491_v45, %s14788_s2  ;;  %s14794_s2 = smov 62  }
  0x75   : > { %14266 = vrot.lane.b32.xlu1 %v14987_v2, %s14789_s7  ;;  %s14790_s7 = smov 68  }
  0x76   : > { %2635 = vrot.lane.b32.xlu0 %v14492_v12, %s14790_s7  ;;  %s17892_s7 = smov 115  }
  0x79   : > { %14271 = vrot.lane.b32.xlu1 %v15244_v37, %s14791_s6 }
  0x7a   : > { %2726 = vrot.lane.b32.xlu0 %v14493_v48, %s14792_s9  ;;  %s14799_s9 = smov 53  }
  0x7d   : > { %14276 = vrot.lane.b32.xlu1 %v15244_v37, %s14793_s4  ;;  %s14795_s4 = smov 59  }
  0x97   : > { %v14162_v51 = vpop.permute.xlu0 %14161  ;;  %v14167_v52 = vpop.permute.xlu1 %14166 }
  0x98   : > { %v14164_v53 = vunpack.i.h.bf16 %v14162_v51  ;;  %v14163_v54 = vunpack.i.l.bf16 %v14162_v51  ;;  %v14169_v55 = vunpack.i.h.bf16 %v14167_v52  ;;  %v14168_v56 = vunpack.i.l.bf16 %v14167_v52 }
  0x9a   : > { %v839_v58 = vsel %vm837_vm6, %v14169_v55, %v14168_v56  ;;  %v866_v59 = vsel %vm865_vm7, %v14163_v54, %v14164_v53  ;;  %v867_v60 = vsel %vm865_vm7, %v14164_v53, %v14163_v54  ;;  %v838_v61 = vsel %vm837_vm6, %v14168_v56, %v14169_v55 }
  0x9b   : > { %v881_v62 = vsel %vm15169_vm8, %v866_v59, 0.0  ;;  %v880_v63 = vsel %vm15173_vm10, %v867_v60, 0.0  ;;  %v853_v0 = vsel %vm15181_vm12, %v838_v61, 0.0  ;;  %v852_v2 = vsel %vm15177_vm11, %v839_v58, 0.0  ;;  %v14172_v3 = vpop.permute.xlu1 %14171  ;;  %v890_v31 = vpop.permute.xlu0 %889  ;;  %v14735_v58 = vld [vmem:[%s17934_s30] ss:$8 sps:$4 sm:$0xff]  }
  0x9c   : > { %v883_v4 = vpack.c.bf16 %v881_v62, %v881_v62  ;;  %v882_v6 = vpack.c.bf16 %v880_v63, %v880_v63  ;;  %v855_v7 = vpack.c.bf16 %v853_v0, %v853_v0  ;;  %v854_v9 = vpack.c.bf16 %v852_v2, %v852_v2  ;;  %v14494_v2 = vld [vmem:[%s17934_s30] ss:$8 sps:$4 sm:$0xff]  }
  0x9d   : > { %v14174_v10 = vunpack.i.h.bf16 %v14172_v3  ;;  %v14173_v11 = vunpack.i.l.bf16 %v14172_v3  ;;  %vm1183_vm6 = vcmp.lt.s32.totalorder %v15079_v20, 15  ;;  %vm1098_vm7 = vcmp.lt.s32.totalorder %v15145_v34, 48  ;;  %2814 = vrot.lane.b32.xlu0 %v14494_v2, %s14794_s2  ;;  %s17893_s2 = smov 127  }
  0x9e   : > { %v903_v13 = vand.u32 %v15162_v43, %v883_v4  ;;  %v900_v14 = vand.u32 %v15162_v43, %v882_v6  ;;  %v955_v15 = vand.u32 %v15162_v43, %v855_v7  ;;  %vm15235_vm8 = vmand %vm1182_vm2, %vm1183_vm6  ;;  %v952_v32 = vand.u32 %v15162_v43, %v854_v9 }
  0x9f   : > { %v1008_v16 = vsel %vm1007_vm15, %v14173_v11, %v14174_v10  ;;  %v14177_v17 = vpop.permute.xlu1 %14176  ;;  %vm1020_vm10 = vcmp.eq.s32.totalorder %v1015_v8, 1  ;;  %v1009_v35 = vsel %vm1007_vm15, %v14174_v10, %v14173_v11  ;;  %vm1112_vm2 = vcmp.eq.s32.totalorder %v1110_v18, 1  ;;  %vm1192_vm11 = vmand %vm15090_vm4, %vm15235_vm8  ;;  %v1034_v9 = vpop.permute.xlu0 %1033 }
  0xa0   : > { %905 = vmatprep.subr.bf16.mxu0 %v903_v13  ;;  %v1023_v21 = vsel %vm15191_vm0, %v1008_v16, 0.0  ;;  %v14179_v24 = vunpack.i.h.bf16 %v14177_v17  ;;  %v14178_v26 = vunpack.i.l.bf16 %v14177_v17  ;;  %v1022_v41 = vsel %vm1020_vm10, %v1009_v35, 0.0 }
  0xa1   : > { %906 = vmatpush1.bf16.msra.mxu0 %v900_v14  ;;  %v1025_v33 = vpack.c.bf16 %v1023_v21, %v1023_v21  ;;  %v1193_v45 = vsel %vm1192_vm11, 1, %v14751_v5  ;;  %vm1273_vm12 = vcmp.ge.s32.totalorder %v15079_v20, 4294967294  ;;  %v1024_v46 = vpack.c.bf16 %v1022_v41, %v1022_v41  ;;  %v14495_v21 = vld [vmem:[%s17934_s30] ss:$8 sps:$4 sm:$0xff]  }
  0xa2   : > { %957 = vmatprep.subr.bf16.mxu0 %v955_v15  ;;  %v1099_v39 = vsel %vm1098_vm7, %v14178_v26, %v14179_v24  ;;  %vm15265_vm15 = vcmp.eq.s32.totalorder %v1106_v42, 1  ;;  %vm1189_vm0 = vcmp.lt.s32.totalorder %v15145_v34, 47  ;;  %v1201_v51 = vrot.slane %v1193_v45, %v15126_v30  ;;  %vm15271_vm6 = vmand %vm1273_vm12, %vm1274_vm14  ;;  %2902 = vrot.lane.b32.xlu0 %v14495_v21, %s14795_s4  ;;  %s14797_s4 = smov 56  }
  0xa3   : > { %v1042_v38 = vand.u32 %v1025_v33, %v15162_v43  ;;  %v1114_v44 = vsel %vm1112_vm2, %v1099_v39, 0.0  ;;  %v14182_v47 = vpop.permute.xlu1 %14181  ;;  %v1039_v55 = vand.u32 %v1024_v46, %v15162_v43  ;;  %v1100_v56 = vsel %vm1098_vm7, %v14179_v24, %v14178_v26  ;;  %vm1283_vm7 = vmand %vm15090_vm4, %vm15271_vm6  ;;  %v1125_v33 = vpop.permute.xlu0 %1124 }
  0xa4   : > { %12137 = vmatmul.mubr.msk.bf16.vlgmr.msra.gmra.mrb[0].mxu0 %vm891_vm1, %v890_v31  ;;  %v1116_v49 = vpack.c.bf16 %v1114_v44, %v1114_v44  ;;  %v14184_v53 = vunpack.i.h.bf16 %v14182_v47  ;;  %v14183_v54 = vunpack.i.l.bf16 %v14182_v47  ;;  %vm1203_vm10 = vcmp.eq.s32.totalorder %v1201_v51, 1  ;;  %v14496_v47 = vld [vmem:[%s17934_s30] ss:$8 sps:$4 sm:$0xff]  }
  0xa5   : > { %958 = vmatpush1.bf16.msra.mxu0 %v952_v32  ;;  %989 = vmatprep.mubr.bf16.mxu0 %v14751_v5  ;;  %v1113_v60 = vsel %vm15265_vm15, %v1100_v56, 0.0  ;;  %v1284_v0 = vsel %vm1283_vm7, 1, %v14751_v5  ;;  %v1197_v4 = vrot.slane %v1193_v45, %v15124_v29  ;;  %vm1364_vm2 = vcmp.ge.s32.totalorder %v15079_v20, 4294967293 }
  0xa6   : > { %1044 = vmatprep.subr.bf16.mxu0 %v1042_v38  ;;  %v1133_v57 = vand.u32 %v1116_v49, %v15162_v43  ;;  %v1190_v59 = vsel %vm1189_vm0, %v14183_v54, %v14184_v53  ;;  %v1115_v62 = vpack.c.bf16 %v1113_v60, %v1113_v60  ;;  %vm1365_vm11 = vcmp.lt.s32.totalorder %v15079_v20, 13  ;;  %14281 = vrot.lane.b32.xlu0 %v15244_v37, %s17893_s2  ;;  %s17973_s2 = smov 32  }
  0xa7   : > { %v1205_v61 = vsel %vm1203_vm10, %v1190_v59, 0.0  ;;  %v14187_v63 = vpop.permute.xlu1 %14186  ;;  %v1292_v8 = vrot.slane %v1284_v0, %v15126_v30  ;;  %vm1280_vm12 = vcmp.lt.s32.totalorder %v15145_v34, 46  ;;  %vm15304_vm14 = vmand %vm1364_vm2, %vm1365_vm11  ;;  %v1191_v20 = vsel %vm1189_vm0, %v14184_v53, %v14183_v54  ;;  %2983 = vrot.lane.b32.xlu1 %v14496_v47, %s14797_s4  ;;  %v1216_v54 = vpop.permute.xlu0 %1215  ;;  %s17967_s4 = smov 47  }
  0xa8   : > { %v1207_v3 = vpack.c.bf16 %v1205_v61, %v1205_v61  ;;  %v14189_v6 = vunpack.i.h.bf16 %v14187_v63  ;;  %v14188_v7 = vunpack.i.l.bf16 %v14187_v63  ;;  %v1130_v10 = vand.u32 %v1115_v62, %v15162_v43  ;;  %vm1374_vm7 = vmand %vm15090_vm4, %vm15304_vm14 }
  0xa9   : > { %vm1202_vm15 = vcmp.eq.s32.totalorder %v1197_v4, 1  ;;  %vm1294_vm10 = vcmp.eq.s32.totalorder %v1292_v8, 1  ;;  %v1375_v16 = vsel %vm1374_vm7, 1, %v14751_v5  ;;  %v1288_v26 = vrot.slane %v1284_v0, %v15124_v29  ;;  %v14497_v0 = vld [vmem:[%s17934_s30] ss:$8 sps:$4 sm:$0xff]  }
  0xaa   : > { %v1224_v11 = vand.u32 %v1207_v3, %v15162_v43  ;;  %v1281_v13 = vsel %vm1280_vm12, %v14188_v7, %v14189_v6  ;;  %v1204_v14 = vsel %vm1202_vm15, %v1191_v20, 0.0  ;;  %v1383_v31 = vrot.slane %v1375_v16, %v15126_v30  ;;  %14286 = vrot.lane.b32.xlu0 %v15244_v37, %s14798_s8  ;;  %s17966_s8 = smov 50  }
  0xab   : > { %v1296_v15 = vsel %vm1294_vm10, %v1281_v13, 0.0  ;;  %v1206_v17 = vpack.c.bf16 %v1204_v14, %v1204_v14  ;;  %v14192_v18 = vpop.permute.xlu1 %14191  ;;  %vm1455_vm4 = vcmp.ge.s32.totalorder %v15074_v19, 2  ;;  %vm1456_vm0 = vcmp.lt.s32.totalorder %v15074_v19, 18  ;;  %3071 = vrot.lane.b32.xlu1 %v14497_v0, %s14799_s9  ;;  %v1307_v8 = vpop.permute.xlu0 %1306  ;;  %s17972_s9 = smov 110  }
  0xac   : > { %v1298_v24 = vpack.c.bf16 %v1296_v15, %v1296_v15  ;;  %v14194_v22 = vunpack.i.h.bf16 %v14192_v18  ;;  %v14193_v32 = vunpack.i.l.bf16 %v14192_v18  ;;  %vm1371_vm2 = vcmp.lt.s32.totalorder %v15145_v34, 45  ;;  %vm15331_vm15 = vmand %vm1455_vm4, %vm1456_vm0  ;;  %v14498_v18 = vld [vmem:[%s17934_s30] ss:$8 sps:$4 sm:$0xff]  }
  0xad   : > { %v1221_v35 = vand.u32 %v1206_v17, %v15162_v43  ;;  %v1282_v38 = vsel %vm1280_vm12, %v14189_v6, %v14188_v7  ;;  %vm1293_vm11 = vcmp.eq.s32.totalorder %v1288_v26, 1  ;;  %vm1385_vm10 = vcmp.eq.s32.totalorder %v1383_v31, 1  ;;  %vm1465_vm12 = vmand %vm15331_vm15, %vm15107_vm9 }
  0xae   : > { %v1315_v36 = vand.u32 %v1298_v24, %v15162_v43  ;;  %v1372_v19 = vsel %vm1371_vm2, %v14193_v32, %v14194_v22  ;;  %v1295_v41 = vsel %vm1293_vm11, %v1282_v38, 0.0  ;;  %v1466_v46 = vsel %vm1465_vm12, 1, %v14751_v5  ;;  %vm1553_vm11 = vmand %vm15331_vm15, %vm15094_vm5  ;;  %14291 = vrot.lane.b32.xlu0 %v15244_v37, %s14749_s10  ;;  %s17974_s10 = smov 29  }
  0xaf   : > { %v1387_v42 = vsel %vm1385_vm10, %v1372_v19, 0.0  ;;  %v1297_v44 = vpack.c.bf16 %v1295_v41, %v1295_v41  ;;  %v14197_v45 = vpop.permute.xlu1 %14196  ;;  %v1379_v49 = vrot.slane %v1375_v16, %v15124_v29  ;;  %v1474_v53 = vrot.slane %v1466_v46, %v15126_v30  ;;  %3159 = vrot.lane.b32.xlu1 %v14498_v18, %s17966_s8  ;;  %s14801_s8 = smov 114  }
  0xb0   : > { %12138 = vmatmul.mubr.msk.bf16.vlgmr.msra.gmra.mrb[0].mxu0 %vm891_vm1, %v14735_v58  ;;  %v1389_v48 = vpack.c.bf16 %v1387_v42, %v1387_v42  ;;  %v14199_v50 = vunpack.i.h.bf16 %v14197_v45  ;;  %v14198_v51 = vunpack.i.l.bf16 %v14197_v45  ;;  %vm1462_vm7 = vcmp.lt.s32.totalorder %v15145_v34, 35 }
  0xb1   : > { %1045 = vmatpush1.bf16.msra.mxu0 %v1039_v55  ;;  %1076 = vmatprep.mubr.bf16.mxu0 %v14751_v5  ;;  %v1312_v55 = vand.u32 %v1297_v44, %v15162_v43  ;;  %vm1384_vm4 = vcmp.eq.s32.totalorder %v1379_v49, 1  ;;  %vm1476_vm0 = vcmp.eq.s32.totalorder %v1474_v53, 1  ;;  %v1554_v63 = vsel %vm1553_vm11, 1, %v14751_v5 }
  0xb2   : > { %1135 = vmatprep.subr.bf16.mxu0 %v1133_v57  ;;  %v1406_v56 = vand.u32 %v1389_v48, %v15162_v43  ;;  %v1373_v57 = vsel %vm1371_vm2, %v14194_v22, %v14193_v32  ;;  %v1463_v58 = vsel %vm1462_vm7, %v14198_v51, %v14199_v50  ;;  %v1470_v3 = vrot.slane %v1466_v46, %v15124_v29  ;;  %v1398_v32 = vpop.permute.xlu0 %1397  ;;  %v14499_v46 = vld [vmem:[%s17934_s30] ss:$8 sps:$4 sm:$0xff]  }
  0xb3   : > { %v1386_v59 = vsel %vm1384_vm4, %v1373_v57, 0.0  ;;  %v1478_v60 = vsel %vm1476_vm0, %v1463_v58, 0.0  ;;  %v14202_v62 = vpop.permute.xlu1 %14201  ;;  %v1562_v7 = vrot.slane %v1554_v63, %v15126_v30  ;;  %vm1550_vm2 = vcmp.lt.s32.totalorder %v15145_v34, 34  ;;  %vm1641_vm4 = vmand %vm15331_vm15, %vm15120_vm13  ;;  %14296 = vrot.lane.b32.xlu0 %v15244_v37, %s17892_s7  ;;  %3247 = vrot.lane.b32.xlu1 %v14499_v46, %s17967_s4  ;;  %s14802_s4 = smov 44   ;;  %s14807_s7 = smov 109  }
  0xb4   : > { %v1388_v61 = vpack.c.bf16 %v1386_v59, %v1386_v59  ;;  %v1480_v2 = vpack.c.bf16 %v1478_v60, %v1478_v60  ;;  %v14204_v4 = vunpack.i.h.bf16 %v14202_v62  ;;  %v14203_v6 = vunpack.i.l.bf16 %v14202_v62 }
  0xb5   : > { %vm1475_vm10 = vcmp.eq.s32.totalorder %v1470_v3, 1  ;;  %vm1564_vm12 = vcmp.eq.s32.totalorder %v1562_v7, 1  ;;  %v1642_v17 = vsel %vm1641_vm4, 1, %v14751_v5  ;;  %v1558_v24 = vrot.slane %v1554_v63, %v15124_v29  ;;  %v14500_v63 = vld [vmem:[%s17934_s30] ss:$8 sps:$4 sm:$0xff]  }
  0xb6   : > { %v1551_v20 = vsel %vm1550_vm2, %v14203_v6, %v14204_v4  ;;  %v1650_v22 = vrot.slane %v1642_v17, %v15126_v30  ;;  %v1646_v48 = vrot.slane %v1642_v17, %v15124_v29  ;;  %v1489_v53 = vpop.permute.xlu0 %1488  ;;  %v14501_v17 = vld [vmem:[%s17934_s30] ss:$8 sps:$4 sm:$0xff]  }
  0xb7   : > { %v1566_v14 = vsel %vm1564_vm12, %v1551_v20, 0.0  ;;  %v14207_v16 = vpop.permute.xlu1 %14206  ;;  %vm1563_vm0 = vcmp.eq.s32.totalorder %v1558_v24, 1  ;;  %14301 = vrot.lane.b32.xlu0 %v15244_v37, %s14801_s8  ;;  %3338 = vrot.lane.b32.xlu1 %v14500_v63, %s14802_s4  ;;  %s17968_s8 = smov 113   ;;  %s14803_s4 = smov 41   ;;  %v14503_v63 = vld [vmem:[%s17934_s30] ss:$8 sps:$4 sm:$0xff]  }
  0xb8   : > { %v1568_v21 = vpack.c.bf16 %v1566_v14, %v1566_v14  ;;  %v14209_v26 = vunpack.i.h.bf16 %v14207_v16  ;;  %v14208_v31 = vunpack.i.l.bf16 %v14207_v16  ;;  %vm1652_vm11 = vcmp.eq.s32.totalorder %v1650_v22, 1 }
  0xb9   : > { %vm1651_vm12 = vcmp.eq.s32.totalorder %v1646_v48, 1 }
  0xba   : > { %v1577_v7 = vpop.permute.xlu0 %1576 }
  0xbb   : > { %v14212_v44 = vpop.permute.xlu1 %14211  ;;  %14306 = vrot.lane.b32.xlu0 %v15244_v37, %s17968_s8  ;;  %3426 = vrot.lane.b32.xlu1 %v14501_v17, %s14803_s4  ;;  %s17890_s8 = smov 112   ;;  %s14805_s4 = smov 38   ;;  %v14504_v17 = vld [vmem:[%s17934_s30] ss:$8 sps:$4 sm:$0xff]  }
  0xbc   : > { %12140 = vmatmul.mubr.msk.bf16.vlgmr.msra.gmra.mrb[0].mxu0 %vm891_vm1, %v1034_v9  ;;  %v1403_v9 = vand.u32 %v1388_v61, %v15162_v43  ;;  %v14214_v49 = vunpack.i.h.bf16 %v14212_v44 }
  0xbd   : > { %1136 = vmatpush1.bf16.msra.mxu0 %v1130_v10  ;;  %1167 = vmatprep.mubr.bf16.mxu0 %v14751_v5  ;;  %v1497_v10 = vand.u32 %v1480_v2, %v15162_v43 }
  0xbe   : > { %1226 = vmatprep.subr.bf16.mxu0 %v1224_v11  ;;  %v1464_v11 = vsel %vm1462_vm7, %v14199_v50, %v14198_v51  ;;  %vm1638_vm7 = vcmp.lt.s32.totalorder %v15145_v34, 33  ;;  %v14213_v50 = vunpack.i.l.bf16 %v14212_v44  ;;  %v1665_v22 = vpop.permute.xlu0 %1664 }
  0xbf   : > { %v1477_v13 = vsel %vm1475_vm10, %v1464_v11, 0.0  ;;  %v1639_v38 = vsel %vm1638_vm7, %v14208_v31, %v14209_v26  ;;  %vm1729_vm10 = vmand %vm15331_vm15, %vm15153_vm3  ;;  %v14217_v61 = vpop.permute.xlu1 %14216  ;;  %14311 = vrot.lane.b32.xlu0 %v15244_v37, %s17890_s8  ;;  %s14806_s8 = smov 111  }
  0xc0   : > { %v1479_v15 = vpack.c.bf16 %v1477_v13, %v1477_v13  ;;  %v1654_v41 = vsel %vm1652_vm11, %v1639_v38, 0.0  ;;  %v1730_v45 = vsel %vm1729_vm10, 1, %v14751_v5  ;;  %v14219_v3 = vunpack.i.h.bf16 %v14217_v61 }
  0xc1   : > { %v1656_v47 = vpack.c.bf16 %v1654_v41, %v1654_v41  ;;  %v1738_v51 = vrot.slane %v1730_v45, %v15126_v30  ;;  %v1734_v2 = vrot.slane %v1730_v45, %v15124_v29  ;;  %v14502_v45 = vld [vmem:[%s17934_s30] ss:$8 sps:$4 sm:$0xff]  }
  0xc2   : > { %3514 = vrot.lane.b32.xlu1 %v14502_v45, %s14805_s4  ;;  %s14808_s4 = smov 99  }
  0xc3   : > { %vm1740_vm4 = vcmp.eq.s32.totalorder %v1738_v51, 1  ;;  %vm1739_vm11 = vcmp.eq.s32.totalorder %v1734_v2, 1  ;;  %14316 = vrot.lane.b32.xlu0 %v15244_v37, %s14806_s8  ;;  %v1753_v51 = vpop.permute.xlu0 %1752  ;;  %s17971_s8 = smov 35  }
  0xc6   : > { %3602 = vrot.lane.b32.xlu1 %v14503_v63, %s17971_s8  ;;  %v14506_v63 = vld [vmem:[%s17934_s30] ss:$8 sps:$4 sm:$0xff]   ;;  %s14810_s8 = smov 23  }
  0xc7   : > { %14321 = vrot.lane.b32.xlu0 %v15244_v37, %s17972_s9  ;;  %s14809_s9 = smov 26  }
  0xc8   : > { %12142 = vmatmul.mubr.msk.bf16.vlgmr.msra.gmra.mrb[0].mxu0 %vm891_vm1, %v1125_v33  ;;  %v1494_v33 = vand.u32 %v1479_v15, %v15162_v43  ;;  %v14222_v15 = vpop.permute.xlu1 %14221 }
  0xc9   : > { %1227 = vmatpush1.bf16.msra.mxu0 %v1221_v35  ;;  %1258 = vmatprep.mubr.bf16.mxu0 %v14751_v5  ;;  %v1585_v35 = vand.u32 %v1568_v21, %v15162_v43  ;;  %v14224_v24 = vunpack.i.h.bf16 %v14222_v15 }
  0xca   : > { %1317 = vmatprep.subr.bf16.mxu0 %v1315_v36  ;;  %v1552_v36 = vsel %vm1550_vm2, %v14204_v4, %v14203_v6  ;;  %vm1726_vm2 = vcmp.lt.s32.totalorder %v15145_v34, 32  ;;  %v14218_v4 = vunpack.i.l.bf16 %v14217_v61  ;;  %3690 = vrot.lane.b32.xlu1 %v14504_v17, %s17973_s2  ;;  %v14507_v17 = vld [vmem:[%s17934_s30] ss:$8 sps:$4 sm:$0xff]  }
  0xcb   : > { %v1565_v19 = vsel %vm1563_vm0, %v1552_v36, 0.0  ;;  %v1727_v57 = vsel %vm1726_vm2, %v14213_v50, %v14214_v49  ;;  %vm1817_vm0 = vmand %vm15331_vm15, %vm15235_vm8  ;;  %14326 = vrot.lane.b32.xlu0 %v15244_v37, %s14807_s7  ;;  %s14812_s7 = smov 20  }
  0xcc   : > { %v1567_v42 = vpack.c.bf16 %v1565_v19, %v1565_v19  ;;  %v1742_v59 = vsel %vm1740_vm4, %v1727_v57, 0.0  ;;  %v1818_v62 = vsel %vm1817_vm0, 1, %v14751_v5  ;;  %v14227_v44 = vpop.permute.xlu1 %14226 }
  0xcd   : > { %v1744_v0 = vpack.c.bf16 %v1742_v59, %v1742_v59  ;;  %v1826_v6 = vrot.slane %v1818_v62, %v15126_v30  ;;  %v1822_v21 = vrot.slane %v1818_v62, %v15124_v29  ;;  %v14229_v39 = vunpack.i.h.bf16 %v14227_v44 }
  0xcf   : > { %vm1828_vm10 = vcmp.eq.s32.totalorder %v1826_v6, 1  ;;  %vm1827_vm4 = vcmp.eq.s32.totalorder %v1822_v21, 1  ;;  %14331 = vrot.lane.b32.xlu0 %v15244_v37, %s14808_s4  ;;  %s17976_s4 = smov 95  }
  0xd0   : > { %v14232_v61 = vpop.permute.xlu1 %14231 }
  0xd4   : > { %12144 = vmatmul.mubr.msk.bf16.vlgmr.msra.gmra.mrb[0].mxu0 %vm891_vm1, %v1216_v54  ;;  %v1582_v54 = vand.u32 %v1567_v42, %v15162_v43 }
  0xd5   : > { %1318 = vmatpush1.bf16.msra.mxu0 %v1312_v55  ;;  %1349 = vmatprep.mubr.bf16.mxu0 %v14751_v5  ;;  %v1673_v55 = vand.u32 %v1656_v47, %v15162_v43 }
  0xd6   : > { %1408 = vmatprep.subr.bf16.mxu0 %v1406_v56  ;;  %v1640_v56 = vsel %vm1638_vm7, %v14209_v26, %v14208_v31  ;;  %vm1814_vm7 = vcmp.lt.s32.totalorder %v15145_v34, 31  ;;  %v14223_v26 = vunpack.i.l.bf16 %v14222_v15  ;;  %v14237_v15 = vpop.permute.xlu1 %14236 }
  0xd7   : > { %v1653_v58 = vsel %vm1651_vm12, %v1640_v56, 0.0  ;;  %v1815_v11 = vsel %vm1814_vm7, %v14218_v4, %v14219_v3  ;;  %vm1905_vm12 = vmand %vm15331_vm15, %vm15271_vm6 }
  0xd8   : > { %v1655_v60 = vpack.c.bf16 %v1653_v58, %v1653_v58  ;;  %v1830_v13 = vsel %vm1828_vm10, %v1815_v11, 0.0  ;;  %v1906_v16 = vsel %vm1905_vm12, 1, %v14751_v5  ;;  %vm1990_vm10 = vcmp.lt.s32.totalorder %v15145_v34, 29 }
  0xd9   : > { %v1832_v18 = vpack.c.bf16 %v1830_v13, %v1830_v13  ;;  %v1914_v31 = vrot.slane %v1906_v16, %v15126_v30  ;;  %v1910_v47 = vrot.slane %v1906_v16, %v15124_v29 }
  0xdb   : > { %vm1916_vm0 = vcmp.eq.s32.totalorder %v1914_v31, 1  ;;  %vm1915_vm12 = vcmp.eq.s32.totalorder %v1910_v47, 1 }
  0xe0   : > { %12146 = vmatmul.mubr.msk.bf16.vlgmr.msra.gmra.mrb[0].mxu0 %vm891_vm1, %v1307_v8  ;;  %v1670_v8 = vand.u32 %v1655_v60, %v15162_v43 }
  0xe1   : > { %1409 = vmatpush1.bf16.msra.mxu0 %v1403_v9  ;;  %1440 = vmatprep.mubr.bf16.mxu0 %v14751_v5  ;;  %v1761_v9 = vand.u32 %v1744_v0, %v15162_v43 }
  0xe2   : > { %1499 = vmatprep.subr.bf16.mxu0 %v1497_v10  ;;  %v1728_v10 = vsel %vm1726_vm2, %v14214_v49, %v14213_v50  ;;  %vm1902_vm2 = vcmp.lt.s32.totalorder %v15145_v34, 30  ;;  %v14228_v49 = vunpack.i.l.bf16 %v14227_v44  ;;  %v15481_v50 = vld [vmem:[%s17935_s1] ss:$2 sm:$0x3]  ;;  %v14242_v44 = vpop.permute.xlu1 %14241 }
  0xe3   : > { %v1741_v20 = vsel %vm1739_vm11, %v1728_v10, 0.0  ;;  %v1903_v36 = vsel %vm1902_vm2, %v14223_v26, %v14224_v24  ;;  %vm1993_vm11 = vmand %vm15331_vm15, %vm15304_vm14  ;;  %vm2074_vm15 = vcmp.ge.s32.totalorder %v15481_v50, 1 }
  0xe4   : > { %v1743_v14 = vpack.c.bf16 %v1741_v20, %v1741_v20  ;;  %v1918_v19 = vsel %vm1916_vm0, %v1903_v36, 0.0  ;;  %v1994_v41 = vsel %vm1993_vm11, 1, %v14751_v5  ;;  %v1991_v57 = vsel %vm1990_vm10, %v14228_v49, %v14229_v39 }
  0xe5   : > { %v1920_v46 = vpack.c.bf16 %v1918_v19, %v1918_v19  ;;  %v2002_v48 = vrot.slane %v1994_v41, %v15126_v30  ;;  %v1998_v2 = vrot.slane %v1994_v41, %v15124_v29  ;;  %vm2081_vm11 = vcmp.lt.s32.totalorder %v15145_v34, 19  ;;  %v14505_v41 = vld [vmem:[%s17934_s30] ss:$8 sps:$4 sm:$0xff]  }
  0xe6   : > { %v1992_v10 = vsel %vm1990_vm10, %v14229_v39, %v14228_v49  ;;  %vm2169_vm10 = vcmp.lt.s32.totalorder %v15145_v34, 18  ;;  %3778 = vrot.lane.b32.xlu1 %v14505_v41, %s17974_s10  ;;  %v14243_v39 = vunpack.i.l.bf16 %v14242_v44  ;;  %s17975_s10 = smov 98  }
  0xe7   : > { %vm2004_vm0 = vcmp.eq.s32.totalorder %v2002_v48, 1  ;;  %v14244_v48 = vunpack.i.h.bf16 %v14242_v44  ;;  %14336 = vrot.lane.b32.xlu0 %v15244_v37, %s17975_s10  ;;  %s14815_s10 = smov 11  }
  0xe8   : > { %v2006_v59 = vsel %vm2004_vm0, %v1991_v57, 0.0 }
  0xe9   : > { %v2008_v0 = vpack.c.bf16 %v2006_v59, %v2006_v59 }
  0xea   : > { %3866 = vrot.lane.b32.xlu1 %v14506_v63, %s14809_s9  ;;  %s14811_s9 = smov 97   ;;  %v15633_v63 = vld [vmem:[%s14981_s29] sm:$0x77]  ;;  %s17999_s29 = sld [smem:[#allocation11_spill]] }
  0xeb   : > { %14341 = vrot.lane.b32.xlu0 %v15244_v37, %s14811_s9  ;;  %s17979_s9 = smov 127  }
  0xec   : > { %12148 = vmatmul.mubr.msk.bf16.vlgmr.msra.gmra.mrb[0].mxu0 %vm891_vm1, %v1398_v32  ;;  %v1758_v32 = vand.u32 %v1743_v14, %v15162_v43 }
  0xed   : > { %1500 = vmatpush1.bf16.msra.mxu0 %v1494_v33  ;;  %1531 = vmatprep.mubr.bf16.mxu0 %v14751_v5  ;;  %v1849_v33 = vand.u32 %v1832_v18, %v15162_v43 }
  0xee   : > { %1587 = vmatprep.subr.bf16.mxu0 %v1585_v35  ;;  %v1816_v35 = vsel %vm1814_vm7, %v14219_v3, %v14218_v4  ;;  %vm2075_vm7 = vcmp.lt.s32.totalorder %v15481_v50, 17  ;;  %v14234_v3 = vunpack.i.h.bf16 %v14232_v61  ;;  %v14233_v4 = vunpack.i.l.bf16 %v14232_v61  ;;  %v14247_v61 = vpop.permute.xlu1 %14246  ;;  %3957 = vrot.lane.b32.xlu1 %v14507_v17, %s14810_s8  ;;  %s17896_s8 = smov 96  }
  0xef   : > { %v1829_v38 = vsel %vm1827_vm4, %v1816_v35, 0.0  ;;  %vm15490_vm4 = vmand %vm2074_vm15, %vm2075_vm7  ;;  %vm2003_vm15 = vcmp.eq.s32.totalorder %v1998_v2, 1  ;;  %14346 = vrot.lane.b32.xlu0 %v15244_v37, %s17896_s8  ;;  %s17989_s8 = sld [smem:[#allocation7_spill]] }
  0xf0   : > { %v1831_v42 = vpack.c.bf16 %v1829_v38, %v1829_v38  ;;  %v2082_v11 = vsel %vm2081_vm11, %v14233_v4, %v14234_v3  ;;  %v2005_v20 = vsel %vm2003_vm15, %v1992_v10, 0.0  ;;  %v2083_v35 = vsel %vm2081_vm11, %v14234_v3, %v14233_v4  ;;  %vm2260_vm15 = vmand %vm15490_vm4, %vm15120_vm13 }
  0xf1   : > { %v2007_v14 = vpack.c.bf16 %v2005_v20, %v2005_v20  ;;  %v2261_v45 = vsel %vm2260_vm15, 1, %v14751_v5  ;;  %vm2257_vm11 = vcmp.lt.s32.totalorder %v15145_v34, 17  ;;  %v14249_v3 = vunpack.i.h.bf16 %v14247_v61 }
  0xf2   : > { %v2269_v49 = vrot.slane %v2261_v45, %v15126_v30  ;;  %v2258_v57 = vsel %vm2257_vm11, %v14243_v39, %v14244_v48  ;;  %v2265_v2 = vrot.slane %v2261_v45, %v15124_v29  ;;  %v14248_v4 = vunpack.i.l.bf16 %v14247_v61  ;;  %v14508_v45 = vld [vmem:[%s17934_s30] ss:$8 sps:$4 sm:$0xff]  }
  0xf3   : > { %v2259_v10 = vsel %vm2257_vm11, %v14244_v48, %v14243_v39  ;;  %vm2433_vm11 = vcmp.lt.s32.totalorder %v15145_v34, 15  ;;  %4045 = vrot.lane.b32.xlu1 %v14508_v45, %s14812_s7  ;;  %s14814_s7 = smov 94  }
  0xf8   : > { %12150 = vmatmul.mubr.msk.bf16.vlgmr.msra.gmra.mrb[0].mxu0 %vm891_vm1, %v1489_v53  ;;  %v1846_v53 = vand.u32 %v1831_v42, %v15162_v43 }
  0xf9   : > { %1588 = vmatpush1.bf16.msra.mxu0 %v1582_v54  ;;  %1619 = vmatprep.mubr.bf16.mxu0 %v14751_v5  ;;  %v1937_v54 = vand.u32 %v1920_v46, %v15162_v43 }
  0xfa   : > { %1675 = vmatprep.subr.bf16.mxu0 %v1673_v55  ;;  %v1904_v55 = vsel %vm1902_vm2, %v14224_v24, %v14223_v26  ;;  %vm2084_vm2 = vmand %vm15490_vm4, %vm15107_vm9  ;;  %v14239_v24 = vunpack.i.h.bf16 %v14237_v15  ;;  %v14238_v26 = vunpack.i.l.bf16 %v14237_v15  ;;  %v14252_v15 = vpop.permute.xlu1 %14251 }
  0xfb   : > { %v1917_v58 = vsel %vm1915_vm12, %v1904_v55, 0.0  ;;  %v2085_v62 = vsel %vm2084_vm2, 1, %v14751_v5  ;;  %vm2172_vm12 = vmand %vm15490_vm4, %vm15094_vm5 }
  0xfc   : > { %v1919_v60 = vpack.c.bf16 %v1917_v58, %v1917_v58  ;;  %v2093_v6 = vrot.slane %v2085_v62, %v15126_v30  ;;  %v2173_v16 = vsel %vm2172_vm12, 1, %v14751_v5  ;;  %v2089_v21 = vrot.slane %v2085_v62, %v15124_v29 }
  0xfd   : > { %v2181_v31 = vrot.slane %v2173_v16, %v15126_v30  ;;  %v2170_v36 = vsel %vm2169_vm10, %v14238_v26, %v14239_v24  ;;  %v2177_v47 = vrot.slane %v2173_v16, %v15124_v29  ;;  %v2171_v55 = vsel %vm2169_vm10, %v14239_v24, %v14238_v26 }
  0xfe   : > { %vm2095_vm7 = vcmp.eq.s32.totalorder %v2093_v6, 1  ;;  %vm2094_vm0 = vcmp.eq.s32.totalorder %v2089_v21, 1  ;;  %vm2271_vm12 = vcmp.eq.s32.totalorder %v2269_v49, 1  ;;  %vm2345_vm10 = vcmp.lt.s32.totalorder %v15145_v34, 16 }
  0xff   : > { %v2097_v13 = vsel %vm2095_vm7, %v2082_v11, 0.0  ;;  %vm2183_vm2 = vcmp.eq.s32.totalorder %v2181_v31, 1  ;;  %v2096_v38 = vsel %vm2094_vm0, %v2083_v35, 0.0  ;;  %vm2182_vm7 = vcmp.eq.s32.totalorder %v2177_v47, 1  ;;  %vm2348_vm0 = vmand %vm15490_vm4, %vm15153_vm3 }
 0x100   : > { %v2099_v18 = vpack.c.bf16 %v2097_v13, %v2097_v13  ;;  %v2185_v19 = vsel %vm2183_vm2, %v2170_v36, 0.0  ;;  %v2098_v42 = vpack.c.bf16 %v2096_v38, %v2096_v38  ;;  %v2184_v58 = vsel %vm2182_vm7, %v2171_v55, 0.0  ;;  %vm2436_vm7 = vmand %vm15490_vm4, %vm15235_vm8 }
 0x101   : > { %v2187_v46 = vpack.c.bf16 %v2185_v19, %v2185_v19  ;;  %v2273_v59 = vsel %vm2271_vm12, %v2258_v57, 0.0  ;;  %v2349_v62 = vsel %vm2348_vm0, 1, %v14751_v5  ;;  %vm2270_vm2 = vcmp.eq.s32.totalorder %v2265_v2, 1 }
 0x102   : > { %v2357_v6 = vrot.slane %v2349_v62, %v15126_v30  ;;  %v2346_v11 = vsel %vm2345_vm10, %v14248_v4, %v14249_v3  ;;  %v2272_v20 = vsel %vm2270_vm2, %v2259_v10, 0.0  ;;  %v2437_v16 = vsel %vm2436_vm7, 1, %v14751_v5  ;;  %vm2524_vm2 = vmand %vm15490_vm4, %vm15271_vm6 }
 0x103   : > { %v2353_v21 = vrot.slane %v2349_v62, %v15124_v29  ;;  %v14254_v24 = vunpack.i.h.bf16 %v14252_v15  ;;  %v14253_v26 = vunpack.i.l.bf16 %v14252_v15  ;;  %v2445_v31 = vrot.slane %v2437_v16, %v15126_v30  ;;  %v14509_v62 = vld [vmem:[%s17934_s30] ss:$8 sps:$4 sm:$0xff]  }
 0x104   : > { %12152 = vmatmul.mubr.msk.bf16.vlgmr.msra.gmra.mrb[0].mxu0 %vm891_vm1, %v1577_v7  ;;  %v1841_v7 = vpop.permute.xlu0 %1840  ;;  %vm2359_vm15 = vcmp.eq.s32.totalorder %v2357_v6, 1  ;;  %v2347_v35 = vsel %vm2345_vm10, %v14249_v3, %v14248_v4  ;;  %v2525_v44 = vsel %vm2524_vm2, 1, %v14751_v5  ;;  %v2441_v47 = vrot.slane %v2437_v16, %v15124_v29  ;;  %4133 = vrot.lane.b32.xlu1 %v14509_v62, %s14778_s28  ;;  %s17894_s28 = smov 124  }
 0x105   : > { %1676 = vmatpush1.bf16.msra.mxu0 %v1670_v8  ;;  %1707 = vmatprep.mubr.bf16.mxu0 %v14751_v5  ;;  %v1934_v8 = vand.u32 %v1919_v60, %v15162_v43  ;;  %v2186_v60 = vpack.c.bf16 %v2184_v58, %v2184_v58  ;;  %v2361_v13 = vsel %vm2359_vm15, %v2346_v11, 0.0  ;;  %vm2358_vm12 = vcmp.eq.s32.totalorder %v2353_v21, 1 }
 0x106   : > { %1763 = vmatprep.subr.bf16.mxu0 %v1761_v9  ;;  %v2025_v9 = vand.u32 %v2008_v0, %v15162_v43  ;;  %v2275_v0 = vpack.c.bf16 %v2273_v59, %v2273_v59  ;;  %v2434_v36 = vsel %vm2433_vm11, %v14253_v26, %v14254_v24  ;;  %vm2447_vm0 = vcmp.eq.s32.totalorder %v2445_v31, 1 }
 0x107   : > { %v2360_v38 = vsel %vm2358_vm12, %v2347_v35, 0.0  ;;  %v2449_v19 = vsel %vm2447_vm0, %v2434_v36, 0.0  ;;  %v2533_v49 = vrot.slane %v2525_v44, %v15126_v30  ;;  %vm2521_vm10 = vcmp.lt.s32.totalorder %v15145_v34, 14  ;;  %vm2612_vm12 = vmand %vm15490_vm4, %vm15304_vm14 }
 0x108   : > { %v2362_v41 = vpack.c.bf16 %v2360_v38, %v2360_v38  ;;  %v2435_v55 = vsel %vm2433_vm11, %v14254_v24, %v14253_v26  ;;  %vm2446_vm15 = vcmp.eq.s32.totalorder %v2441_v47, 1  ;;  %v2613_v61 = vsel %vm2612_vm12, 1, %v14751_v5 }
 0x109   : > { %vm2535_vm7 = vcmp.eq.s32.totalorder %v2533_v49, 1  ;;  %v2448_v57 = vsel %vm2446_vm15, %v2435_v55, 0.0  ;;  %v2529_v3 = vrot.slane %v2525_v44, %v15124_v29  ;;  %v2621_v6 = vrot.slane %v2613_v61, %v15126_v30 }
 0x10a   : > { %vm2693_vm4 = vcmp.ge.s32.totalorder %v15481_v50, 0  ;;  %vm2694_vm11 = vcmp.lt.s32.totalorder %v15481_v50, 16  ;;  %vm2609_vm0 = vcmp.lt.s32.totalorder %v15145_v34, 13  ;;  %v2617_v24 = vrot.slane %v2613_v61, %v15124_v29 }
 0x10b   : > { %vm2534_vm2 = vcmp.eq.s32.totalorder %v2529_v3, 1  ;;  %vm15651_vm15 = vmand %vm2693_vm4, %vm2694_vm11  ;;  %vm2700_vm12 = vcmp.lt.s32.totalorder %v15145_v34, 3 }
 0x10c   : > { %vm2622_vm4 = vcmp.eq.s32.totalorder %v2617_v24, 1  ;;  %v14516_v24 = vld [vmem:[%s17934_s30 + $0x4] ss:$8 sps:$4 sm:$0xff]  }
 0x110   : > { %12154 = vmatmul.mubr.msk.bf16.vlgmr.msra.gmra.mrb[0].mxu0 %vm891_vm1, %v1665_v22  ;;  %v1929_v22 = vpop.permute.xlu0 %1928 }
 0x111   : > { %1764 = vmatpush1.bf16.msra.mxu0 %v1758_v32  ;;  %1795 = vmatprep.mubr.bf16.mxu0 %v14751_v5  ;;  %v2022_v32 = vand.u32 %v2007_v14, %v15162_v43  ;;  %v2274_v14 = vpack.c.bf16 %v2272_v20, %v2272_v20 }
 0x112   : > { %1851 = vmatprep.subr.bf16.mxu0 %v1849_v33  ;;  %v2116_v33 = vand.u32 %v2099_v18, %v15162_v43  ;;  %v2363_v18 = vpack.c.bf16 %v2361_v13, %v2361_v13 }
 0x11c   : > { %12156 = vmatmul.mubr.msk.bf16.vlgmr.msra.gmra.mrb[0].mxu0 %vm891_vm1, %v1753_v51  ;;  %v2017_v51 = vpop.permute.xlu0 %2016 }
 0x11d   : > { %1852 = vmatpush1.bf16.msra.mxu0 %v1846_v53  ;;  %1883 = vmatprep.mubr.bf16.mxu0 %v14751_v5  ;;  %v2113_v53 = vand.u32 %v2098_v42, %v15162_v43  ;;  %v14257_v42 = vpop.permute.xlu1 %14256 }
 0x11e   : > { %1939 = vmatprep.subr.bf16.mxu0 %v1937_v54  ;;  %v2204_v54 = vand.u32 %v2187_v46, %v15162_v43  ;;  %v2451_v46 = vpack.c.bf16 %v2449_v19, %v2449_v19  ;;  %v14259_v48 = vunpack.i.h.bf16 %v14257_v42  ;;  %v14258_v39 = vunpack.i.l.bf16 %v14257_v42 }
 0x120   : > { %v2522_v37 = vsel %vm2521_vm10, %v14258_v39, %v14259_v48  ;;  %v2523_v10 = vsel %vm2521_vm10, %v14259_v48, %v14258_v39  ;;  %vm2703_vm10 = vmand %vm15651_vm15, %vm15107_vm9 }
 0x121   : > { %v2537_v58 = vsel %vm2535_vm7, %v2522_v37, 0.0  ;;  %v14262_v59 = vpop.permute.xlu1 %14261  ;;  %vm2623_vm7 = vcmp.eq.s32.totalorder %v2621_v6, 1  ;;  %v2536_v13 = vsel %vm2534_vm2, %v2523_v10, 0.0  ;;  %v2704_v17 = vsel %vm2703_vm10, 1, %v14751_v5  ;;  %vm2791_vm2 = vmand %vm15651_vm15, %vm15094_vm5 }
 0x122   : > { %v2539_v2 = vpack.c.bf16 %v2537_v58, %v2537_v58  ;;  %v14264_v56 = vunpack.i.h.bf16 %v14262_v59  ;;  %v14263_v4 = vunpack.i.l.bf16 %v14262_v59  ;;  %v2538_v15 = vpack.c.bf16 %v2536_v13, %v2536_v13 }
 0x123   : > { %v2792_v45 = vsel %vm2791_vm2, 1, %v14751_v5  ;;  %v2708_v48 = vrot.slane %v2704_v17, %v15124_v29 }
 0x124   : > { %v2610_v20 = vsel %vm2609_vm0, %v14263_v4, %v14264_v56  ;;  %v2611_v36 = vsel %vm2609_vm0, %v14264_v56, %v14263_v4  ;;  %vm2788_vm0 = vcmp.lt.s32.totalorder %v15145_v34, 2  ;;  %v2796_v56 = vrot.slane %v2792_v45, %v15124_v29 }
 0x125   : > { %v14267_v16 = vpop.permute.xlu1 %14266  ;;  %v2624_v19 = vsel %vm2622_vm4, %v2611_v36, 0.0  ;;  %vm2879_vm4 = vmand %vm15651_vm15, %vm15120_vm13 }
 0x126   : > { %v14269_v26 = vunpack.i.h.bf16 %v14267_v16  ;;  %v14268_v31 = vunpack.i.l.bf16 %v14267_v16  ;;  %v2626_v42 = vpack.c.bf16 %v2624_v19, %v2624_v19  ;;  %v2880_v62 = vsel %vm2879_vm4, 1, %v14751_v5  ;;  %v14513_v16 = vld [vmem:[%s17934_s30] ss:$8 sps:$4 sm:$0xff]   ;;  %vm3048_vm4 = vmand %vm15651_vm15, %vm15235_vm8 }
 0x128   : > { %12158 = vmatmul.mubr.msk.bf16.vlgmr.msra.gmra.mrb[0].mxu0 %vm891_vm1, %v1841_v7  ;;  %v2108_v7 = vpop.permute.xlu0 %2107  ;;  %v2701_v38 = vsel %vm2700_vm12, %v14268_v31, %v14269_v26  ;;  %v2702_v37 = vsel %vm2700_vm12, %v14269_v26, %v14268_v31  ;;  %vm2876_vm12 = vcmp.lt.s32.totalorder %v15145_v34, 1  ;;  %v14514_v31 = vld [vmem:[%s17934_s30] ss:$8 sps:$4 sm:$0xff]  }
 0x129   : > { %1940 = vmatpush1.bf16.msra.mxu0 %v1934_v8  ;;  %1971 = vmatprep.mubr.bf16.mxu0 %v14751_v5  ;;  %v2201_v8 = vand.u32 %v2186_v60, %v15162_v43  ;;  %v2450_v60 = vpack.c.bf16 %v2448_v57, %v2448_v57  ;;  %v14272_v44 = vpop.permute.xlu1 %14271 }
 0x12a   : > { %2027 = vmatprep.subr.bf16.mxu0 %v2025_v9  ;;  %v2292_v9 = vand.u32 %v2275_v0, %v15162_v43  ;;  %v15637_v0 = vpack.i.bf16 %v14984_v1, %v15633_v63  ;;  %v14274_v39 = vunpack.i.h.bf16 %v14272_v44  ;;  %v14273_v49 = vunpack.i.l.bf16 %v14272_v44 }
 0x12c   : > { %14351 = vrot.lane.b32.xlu0 %v15637_v0, %s17976_s4  ;;  %s14816_s4 = smov 93   ;;  %v2789_v57 = vsel %vm2788_vm0, %v14273_v49, %v14274_v39 }
 0x12d   : > { %v14277_v61 = vpop.permute.xlu1 %14276 }
 0x12e   : > { %v14279_v4 = vunpack.i.h.bf16 %v14277_v61  ;;  %v14278_v6 = vunpack.i.l.bf16 %v14277_v61 }
 0x130   : > { %14356 = vrot.lane.b32.xlu0 %v15637_v0, %s14814_s7  ;;  %s14817_s7 = smov 8   ;;  %v2877_v13 = vsel %vm2876_vm12, %v14278_v6, %v14279_v4 }
 0x134   : > { %12160 = vmatmul.mubr.msk.bf16.vlgmr.msra.gmra.mrb[0].mxu0 %vm891_vm1, %v1929_v22  ;;  %v2196_v22 = vpop.permute.xlu0 %2195  ;;  %14361 = vrot.lane.b32.xlu0 %v15637_v0, %s14816_s4  ;;  %s14818_s4 = smov 5  }
 0x135   : > { %2028 = vmatpush1.bf16.msra.mxu0 %v2022_v32  ;;  %2059 = vmatprep.mubr.bf16.mxu0 %v14751_v5  ;;  %v2289_v32 = vand.u32 %v2274_v14, %v15162_v43  ;;  %v2625_v14 = vsel %vm2623_vm7, %v2610_v20, 0.0  ;;  %vm2713_vm7 = vcmp.eq.s32.totalorder %v2708_v48, 1  ;;  %v2790_v20 = vsel %vm2788_vm0, %v14274_v39, %v14273_v49 }
 0x136   : > { %2118 = vmatprep.subr.bf16.mxu0 %v2116_v33  ;;  %v2380_v33 = vand.u32 %v2363_v18, %v15162_v43  ;;  %v14510_v18 = vld [vmem:[%s17934_s30] ss:$8 sps:$4 sm:$0xff]   ;;  %v2627_v21 = vpack.c.bf16 %v2625_v14, %v2625_v14  ;;  %v2715_v58 = vsel %vm2713_vm7, %v2702_v37, 0.0  ;;  %vm2960_vm7 = vmand %vm15651_vm15, %vm15153_vm3 }
 0x137   : > { %4221 = vrot.lane.b32.xlu1 %v14510_v18, %s14784_s0  ;;  %s14823_s0 = smov 121  }
 0x138   : > { %v2644_v35 = vand.u32 %v2627_v21, %v15162_v43  ;;  %14366 = vrot.lane.b32.xlu0 %v15637_v0, %s14779_s5  ;;  %v2961_v21 = vsel %vm2960_vm7, 1, %v14751_v5  ;;  %vm3136_vm7 = vmand %vm15651_vm15, %vm15271_vm6  ;;  %s17996_s5 = smov 48  }
 0x139   : > { %v2965_v48 = vrot.slane %v2961_v21, %v15124_v29 }
 0x13c   : > { %4581 = vrot.lane.b32.xlu0 %v14516_v24, %s14791_s6 }
 0x140   : > { %12162 = vmatmul.mubr.msk.bf16.vlgmr.msra.gmra.mrb[0].mxu0 %vm891_vm1, %v2017_v51  ;;  %v2284_v51 = vpop.permute.xlu0 %2283 }
 0x141   : > { %2119 = vmatpush1.bf16.msra.mxu0 %v2113_v53  ;;  %2150 = vmatprep.mubr.bf16.mxu0 %v14751_v5  ;;  %v2377_v53 = vand.u32 %v2362_v41, %v15162_v43 }
 0x142   : > { %2206 = vmatprep.subr.bf16.mxu0 %v2204_v54  ;;  %v2468_v54 = vand.u32 %v2451_v46, %v15162_v43  ;;  %v14511_v46 = vld [vmem:[%s17934_s30] ss:$8 sps:$4 sm:$0xff]  }
 0x143   : > { %4309 = vrot.lane.b32.xlu1 %v14511_v46, %s14815_s10  ;;  %v3049_v46 = vsel %vm3048_vm4, 1, %v14751_v5  ;;  %s17980_s10 = smov 80  }
 0x14c   : > { %12164 = vmatmul.mubr.msk.bf16.vlgmr.msra.gmra.mrb[0].mxu0 %vm891_vm1, %v2108_v7  ;;  %v2372_v7 = vpop.permute.xlu0 %2371 }
 0x14d   : > { %2207 = vmatpush1.bf16.msra.mxu0 %v2201_v8  ;;  %2238 = vmatprep.mubr.bf16.mxu0 %v14751_v5  ;;  %v2465_v8 = vand.u32 %v2450_v60, %v15162_v43  ;;  %v2717_v60 = vpack.c.bf16 %v2715_v58, %v2715_v58 }
 0x14e   : > { %2294 = vmatprep.subr.bf16.mxu0 %v2292_v9  ;;  %v2556_v9 = vand.u32 %v2539_v2, %v15162_v43  ;;  %v14512_v2 = vld [vmem:[%s17934_s30] ss:$8 sps:$4 sm:$0xff]  }
 0x14f   : > { %4397 = vrot.lane.b32.xlu1 %v14512_v2, %s14817_s7  ;;  %s14819_s7 = smov 82  }
 0x153   : > { %4485 = vrot.lane.b32.xlu1 %v14513_v16, %s14818_s4  ;;  %s17988_s4 = sld [smem:[#allocation6_spill]] }
 0x157   : > { %4579 = vrot.lane.b32.xlu1 %v14514_v31, %s14791_s6  ;;  %s14820_s6 = smov 81  }
 0x158   : > { %12166 = vmatmul.mubr.msk.bf16.vlgmr.msra.gmra.mrb[0].mxu0 %vm891_vm1, %v2196_v22  ;;  %v2712_v22 = vrot.slane %v2704_v17, %v15126_v30 }
 0x159   : > { %2295 = vmatpush1.bf16.msra.mxu0 %v2289_v32  ;;  %2326 = vmatprep.mubr.bf16.mxu0 %v14751_v5  ;;  %v2460_v32 = vpop.permute.xlu0 %2459 }
 0x15a   : > { %2382 = vmatprep.subr.bf16.mxu0 %v2380_v33  ;;  %v2553_v33 = vand.u32 %v2538_v15, %v15162_v43  ;;  %vm2714_vm11 = vcmp.eq.s32.totalorder %v2712_v22, 1  ;;  %v2884_v22 = vrot.slane %v2880_v62, %v15124_v29 }
 0x15b   : > { %v2716_v41 = vsel %vm2714_vm11, %v2701_v38, 0.0  ;;  %vm2801_vm11 = vcmp.eq.s32.totalorder %v2796_v56, 1  ;;  %v2878_v38 = vsel %vm2876_vm12, %v14279_v4, %v14278_v6  ;;  %14371 = vrot.lane.b32.xlu1 %v15637_v0, %s14819_s7  ;;  %vm3045_vm12 = vcmp.lt.s32.totalorder %v15145_v34, 127  ;;  %s14822_s7 = smov 79  }
 0x15c   : > { %v2718_v47 = vpack.c.bf16 %v2716_v41, %v2716_v41  ;;  %v2803_v14 = vsel %vm2801_vm11, %v2790_v20, 0.0  ;;  %vm2889_vm0 = vcmp.eq.s32.totalorder %v2884_v22, 1  ;;  %vm2970_vm11 = vcmp.eq.s32.totalorder %v2965_v48, 1 }
 0x15d   : > { %v2805_v18 = vpack.c.bf16 %v2803_v14, %v2803_v14  ;;  %v2891_v41 = vsel %vm2889_vm0, %v2878_v38, 0.0  ;;  %vm3133_vm0 = vcmp.lt.s32.totalorder %v15145_v34, 126  ;;  %v14518_v14 = vld [vmem:[%s17934_s30 + $0x4] ss:$8 sps:$4 sm:$0xff]  }
 0x15e   : > { %v2735_v55 = vand.u32 %v2718_v47, %v15162_v43  ;;  %v2893_v44 = vpack.c.bf16 %v2891_v41, %v2891_v41 }
 0x15f   : > { %14376 = vrot.lane.b32.xlu1 %v15637_v0, %s14820_s6  ;;  %s17983_s6 = smov 77  }
 0x163   : > { %14381 = vrot.lane.b32.xlu1 %v15637_v0, %s17980_s10 }
 0x164   : > { %12168 = vmatmul.mubr.msk.bf16.vlgmr.msra.gmra.mrb[0].mxu0 %vm891_vm1, %v2284_v51  ;;  %v2800_v51 = vrot.slane %v2792_v45, %v15126_v30 }
 0x165   : > { %2383 = vmatpush1.bf16.msra.mxu0 %v2377_v53  ;;  %2414 = vmatprep.mubr.bf16.mxu0 %v14751_v5  ;;  %v2548_v53 = vpop.permute.xlu0 %2547 }
 0x166   : > { %2470 = vmatprep.subr.bf16.mxu0 %v2468_v54  ;;  %v2641_v54 = vand.u32 %v2626_v42, %v15162_v43  ;;  %vm2802_vm10 = vcmp.eq.s32.totalorder %v2800_v51, 1  ;;  %v3057_v51 = vrot.slane %v3049_v46, %v15126_v30 }
 0x167   : > { %v2804_v59 = vsel %vm2802_vm10, %v2789_v57, 0.0  ;;  %14386 = vrot.lane.b32.xlu1 %v15637_v0, %s14822_s7  ;;  %s14825_s7 = smov 118  }
 0x168   : > { %v2806_v3 = vpack.c.bf16 %v2804_v59, %v2804_v59  ;;  %v3137_v59 = vsel %vm3136_vm7, 1, %v14751_v5 }
 0x169   : > { %v3141_v16 = vrot.slane %v3137_v59, %v15124_v29 }
 0x16a   : > { %v2823_v10 = vand.u32 %v2806_v3, %v15162_v43  ;;  %v3145_v3 = vrot.slane %v3137_v59, %v15126_v30 }
 0x16b   : > { %vm3146_vm7 = vcmp.eq.s32.totalorder %v3141_v16, 1 }
 0x16c   : > { %vm3147_vm4 = vcmp.eq.s32.totalorder %v3145_v3, 1 }
 0x170   : > { %12170 = vmatmul.mubr.msk.bf16.vlgmr.msra.gmra.mrb[0].mxu0 %vm891_vm1, %v2372_v7  ;;  %v2888_v7 = vrot.slane %v2880_v62, %v15126_v30  ;;  %v3053_v62 = vrot.slane %v3049_v46, %v15124_v29 }
 0x171   : > { %2471 = vmatpush1.bf16.msra.mxu0 %v2465_v8  ;;  %2502 = vmatprep.mubr.bf16.mxu0 %v14751_v5  ;;  %v2636_v8 = vpop.permute.xlu0 %2635 }
 0x172   : > { %2558 = vmatprep.subr.bf16.mxu0 %v2556_v9  ;;  %v2732_v9 = vand.u32 %v2717_v60, %v15162_v43  ;;  %vm2890_vm2 = vcmp.eq.s32.totalorder %v2888_v7, 1  ;;  %v14517_v60 = vld [vmem:[%s17934_s30 + $0x4] ss:$8 sps:$4 sm:$0xff]  }
 0x173   : > { %v2892_v15 = vsel %vm2890_vm2, %v2877_v13, 0.0  ;;  %vm3059_vm2 = vcmp.eq.s32.totalorder %v3057_v51, 1  ;;  %4671 = vrot.lane.b32.xlu0 %v14517_v60, %s17979_s9  ;;  %s14824_s9 = smov 78  }
 0x174   : > { %v2894_v26 = vpack.c.bf16 %v2892_v15, %v2892_v15  ;;  %14391 = vrot.lane.b32.xlu1 %v15637_v0, %s14824_s9  ;;  %s17984_s9 = smov 115  }
 0x175   : > { %v2727_v17 = vpop.permute.xlu0 %2726 }
 0x176   : > { %v2911_v36 = vand.u32 %v2894_v26, %v15162_v43 }
 0x177   : > { %4759 = vrot.lane.b32.xlu0 %v14518_v14, %s17894_s28  ;;  %s17997_s28 = smov 16  }
 0x178   : > { %14396 = vrot.lane.b32.xlu1 %v15637_v0, %s17983_s6  ;;  %s17992_s6 = sld [smem:[#allocation8_spill]] }
 0x17c   : > { %12172 = vmatmul.mubr.msk.bf16.vlgmr.msra.gmra.mrb[0].mxu0 %vm891_vm1, %v2460_v32  ;;  %v2969_v32 = vrot.slane %v2961_v21, %v15126_v30  ;;  %v2984_v21 = vpop.permute.xlu1 %2983 }
 0x17d   : > { %2559 = vmatpush1.bf16.msra.mxu0 %v2553_v33  ;;  %2590 = vmatprep.mubr.bf16.mxu0 %v14751_v5  ;;  %v2820_v33 = vand.u32 %v2805_v18, %v15162_v43 }
 0x17e   : > { %2646 = vmatprep.subr.bf16.mxu0 %v2644_v35  ;;  %v2815_v35 = vpop.permute.xlu0 %2814  ;;  %vm2971_vm10 = vcmp.eq.s32.totalorder %v2969_v32, 1 }
 0x17f   : > { %v2973_v42 = vsel %vm2971_vm10, %v14984_v1, 0.0  ;;  %vm3058_vm10 = vcmp.eq.s32.totalorder %v3053_v62, 1 }
 0x180   : > { %v2975_v47 = vpack.c.bf16 %v2973_v42, %v2973_v42 }
 0x182   : > { %v2903_v19 = vpop.permute.xlu0 %2902  ;;  %v2992_v1 = vand.u32 %v2975_v47, %v15162_v43  ;;  %v3072_v47 = vpop.permute.xlu1 %3071 }
 0x186   : > { %v14282_v45 = vpop.permute.xlu0 %14281 }
 0x187   : > { %v14284_v39 = vunpack.i.h.bf16 %v14282_v45  ;;  %v14283_v49 = vunpack.i.l.bf16 %v14282_v45 }
 0x188   : > { %12174 = vmatmul.mubr.msk.bf16.vlgmr.msra.gmra.mrb[0].mxu0 %vm891_vm1, %v2548_v53  ;;  %v2908_v53 = vand.u32 %v2893_v44, %v15162_v43 }
 0x189   : > { %2647 = vmatpush1.bf16.msra.mxu0 %v2641_v54  ;;  %2678 = vmatprep.mubr.bf16.mxu0 %v14751_v5  ;;  %v3047_v54 = vsel %vm3045_vm12, %v14284_v39, %v14283_v49  ;;  %v3046_v6 = vsel %vm3045_vm12, %v14283_v49, %v14284_v39  ;;  %vm3306_vm12 = vcmp.lt.s32.totalorder %v15481_v50, 15 }
 0x18a   : > { %2737 = vmatprep.subr.bf16.mxu0 %v2735_v55  ;;  %v2972_v55 = vsel %vm2970_vm11, %v15633_v63, 0.0  ;;  %v3061_v37 = vsel %vm3059_vm2, %v3047_v54, 0.0  ;;  %v14287_v58 = vpop.permute.xlu0 %14286  ;;  %vm3224_vm11 = vmand %vm15651_vm15, %vm15304_vm14  ;;  %vm3305_vm15 = vcmp.ge.s32.totalorder %v15481_v50, 4294967295  ;;  %vm3221_vm2 = vcmp.lt.s32.totalorder %v15145_v34, 125 }
 0x18b   : > { %v2974_v57 = vpack.c.bf16 %v2972_v55, %v2972_v55  ;;  %v3063_v61 = vpack.c.bf16 %v3061_v37, %v3061_v37  ;;  %v14289_v63 = vunpack.i.h.bf16 %v14287_v58  ;;  %v14288_v2 = vunpack.i.l.bf16 %v14287_v58 }
 0x18c   : > { %v3225_v13 = vsel %vm3224_vm11, 1, %v14751_v5  ;;  %vm3312_vm11 = vcmp.lt.s32.totalorder %v15145_v34, 115 }
 0x18d   : > { %v2989_v56 = vand.u32 %v2974_v57, %v15162_v43  ;;  %v3080_v4 = vand.u32 %v3063_v61, %v15162_v43  ;;  %v3135_v7 = vsel %vm3133_vm0, %v14289_v63, %v14288_v2  ;;  %v3233_v18 = vrot.slane %v3225_v13, %v15126_v30  ;;  %v14520_v57 = vld [vmem:[%s17934_s30 + $0x4] ss:$8 sps:$4 sm:$0xff]  }
 0x18e   : > { %v3134_v31 = vsel %vm3133_vm0, %v14288_v2, %v14289_v63  ;;  %v3229_v42 = vrot.slane %v3225_v13, %v15124_v29  ;;  %v3160_v63 = vpop.permute.xlu1 %3159 }
 0x18f   : > { %v3148_v32 = vsel %vm3146_vm7, %v3134_v31, 0.0 }
 0x194   : > { %12176 = vmatmul.mubr.msk.bf16.vlgmr.msra.gmra.mrb[0].mxu0 %vm891_vm1, %v2636_v8  ;;  %v3060_v8 = vsel %vm3058_vm10, %v3046_v6, 0.0  ;;  %vm15804_vm10 = vmand %vm3305_vm15, %vm3306_vm12  ;;  %vm3234_vm15 = vcmp.eq.s32.totalorder %v3229_v42, 1 }
 0x195   : > { %2738 = vmatpush1.bf16.msra.mxu0 %v2732_v9  ;;  %2769 = vmatprep.mubr.bf16.mxu0 %v14751_v5  ;;  %v3149_v9 = vsel %vm3147_vm4, %v3135_v7, 0.0  ;;  %v3062_v20 = vpack.c.bf16 %v3060_v8, %v3060_v8  ;;  %vm3235_vm4 = vcmp.eq.s32.totalorder %v3233_v18, 1  ;;  %vm3315_vm0 = vmand %vm15804_vm10, %vm15107_vm9 }
 0x196   : > { %2825 = vmatprep.subr.bf16.mxu0 %v2823_v10  ;;  %v14292_v10 = vpop.permute.xlu0 %14291  ;;  %v3151_v15 = vpack.c.bf16 %v3149_v9, %v3149_v9  ;;  %v3316_v38 = vsel %vm3315_vm0, 1, %v14751_v5  ;;  %vm3403_vm7 = vmand %vm15804_vm10, %vm15094_vm5 }
 0x197   : > { %v14293_v11 = vunpack.i.l.bf16 %v14292_v10  ;;  %v3077_v24 = vand.u32 %v3062_v20, %v15162_v43  ;;  %v3324_v46 = vrot.slane %v3316_v38, %v15126_v30  ;;  %v3404_v37 = vsel %vm3403_vm7, 1, %v14751_v5 }
 0x198   : > { %v3168_v26 = vand.u32 %v3151_v15, %v15162_v43  ;;  %v3320_v59 = vrot.slane %v3316_v38, %v15124_v29  ;;  %v3412_v62 = vrot.slane %v3404_v37, %v15126_v30  ;;  %v3408_v13 = vrot.slane %v3404_v37, %v15124_v29 }
 0x199   : > { %vm3326_vm12 = vcmp.eq.s32.totalorder %v3324_v46, 1 }
 0x19a   : > { %vm3414_vm0 = vcmp.eq.s32.totalorder %v3412_v62, 1 }
 0x1a0   : > { %12178 = vmatmul.mubr.msk.bf16.vlgmr.msra.gmra.mrb[0].mxu0 %vm891_vm1, %v2727_v17  ;;  %v14294_v17 = vunpack.i.h.bf16 %v14292_v10  ;;  %v14521_v10 = vld [vmem:[%s17934_s30 + $0x4] ss:$8 sps:$4 sm:$0xff]  }
 0x1a1   : > { %2826 = vmatpush1.bf16.msra.mxu0 %v2820_v33  ;;  %2857 = vmatprep.mubr.bf16.mxu0 %v14751_v5 }
 0x1a2   : > { %2913 = vmatprep.subr.bf16.mxu0 %v2911_v36  ;;  %v3223_v50 = vsel %vm3221_vm2, %v14294_v17, %v14293_v11  ;;  %v14297_v36 = vpop.permute.xlu0 %14296  ;;  %v3222_v49 = vsel %vm3221_vm2, %v14293_v11, %v14294_v17  ;;  %vm3400_vm2 = vcmp.lt.s32.totalorder %v15145_v34, 114  ;;  %v3248_v17 = vpop.permute.xlu1 %3247 }
 0x1a3   : > { %v3237_v33 = vsel %vm3235_vm4, %v3223_v50, 0.0  ;;  %v14299_v44 = vunpack.i.h.bf16 %v14297_v36  ;;  %v14298_v45 = vunpack.i.l.bf16 %v14297_v36  ;;  %vm3325_vm4 = vcmp.eq.s32.totalorder %v3320_v59, 1 }
 0x1a4   : > { %v3239_v41 = vpack.c.bf16 %v3237_v33, %v3237_v33 }
 0x1a5   : > { %v3314_v51 = vsel %vm3312_vm11, %v14299_v44, %v14298_v45 }
 0x1a6   : > { %v3256_v39 = vand.u32 %v3239_v41, %v15162_v43  ;;  %v14302_v55 = vpop.permute.xlu0 %14301 }
 0x1a7   : > { %v14304_v60 = vunpack.i.h.bf16 %v14302_v55  ;;  %v14303_v61 = vunpack.i.l.bf16 %v14302_v55 }
 0x1a9   : > { %v3402_v0 = vsel %vm3400_vm2, %v14304_v60, %v14303_v61 }
 0x1aa   : > { %v3416_v6 = vsel %vm3414_vm0, %v3402_v0, 0.0  ;;  %v14307_v8 = vpop.permute.xlu0 %14306 }
 0x1ab   : > { %v3418_v20 = vpack.c.bf16 %v3416_v6, %v3416_v6  ;;  %v14309_v14 = vunpack.i.h.bf16 %v14307_v8  ;;  %v14308_v15 = vunpack.i.l.bf16 %v14307_v8 }
 0x1ac   : > { %12180 = vmatmul.mubr.msk.bf16.vlgmr.msra.gmra.mrb[0].mxu0 %vm891_vm1, %v2815_v35  ;;  %v3150_v35 = vpack.c.bf16 %v3148_v32, %v3148_v32 }
 0x1ad   : > { %2914 = vmatpush1.bf16.msra.mxu0 %v2908_v53  ;;  %2945 = vmatprep.mubr.bf16.mxu0 %v14751_v5  ;;  %v3236_v53 = vsel %vm3234_vm15, %v3222_v49, 0.0  ;;  %vm3491_vm15 = vmand %vm15804_vm10, %vm15120_vm13  ;;  %v3435_v18 = vand.u32 %v3418_v20, %v15162_v43 }
 0x1ae   : > { %2994 = vmatprep.subr.bf16.mxu0 %v2992_v1  ;;  %v3165_v48 = vand.u32 %v3150_v35, %v15162_v43  ;;  %v3328_v1 = vsel %vm3326_vm12, %v3314_v51, 0.0  ;;  %v3238_v54 = vpack.c.bf16 %v3236_v53, %v3236_v53  ;;  %v3492_v9 = vsel %vm3491_vm15, 1, %v14751_v5  ;;  %v14312_v32 = vpop.permute.xlu0 %14311  ;;  %v14522_v35 = vld [vmem:[%s17934_s30 + $0x4] ss:$8 sps:$4 sm:$0xff]  }
 0x1af   : > { %v3330_v58 = vpack.c.bf16 %v3328_v1, %v3328_v1  ;;  %v3500_v16 = vrot.slane %v3492_v9, %v15126_v30  ;;  %vm3413_vm12 = vcmp.eq.s32.totalorder %v3408_v13, 1  ;;  %v3496_v38 = vrot.slane %v3492_v9, %v15124_v29 }
 0x1b0   : > { %v3253_v2 = vand.u32 %v3238_v54, %v15162_v43  ;;  %v14313_v41 = vunpack.i.l.bf16 %v14312_v32 }
 0x1b1   : > { %v3347_v3 = vand.u32 %v3330_v58, %v15162_v43  ;;  %vm3502_vm7 = vcmp.eq.s32.totalorder %v3500_v16, 1  ;;  %vm3501_vm0 = vcmp.eq.s32.totalorder %v3496_v38, 1 }
 0x1b2   : > { %v14317_v53 = vpop.permute.xlu0 %14316 }
 0x1b3   : > { %v14319_v37 = vunpack.i.h.bf16 %v14317_v53 }
 0x1b6   : > { %v14322_v0 = vpop.permute.xlu0 %14321 }
 0x1b7   : > { %v14324_v8 = vunpack.i.h.bf16 %v14322_v0  ;;  %v14323_v9 = vunpack.i.l.bf16 %v14322_v0 }
 0x1b8   : > { %12182 = vmatmul.mubr.msk.bf16.vlgmr.msra.gmra.mrb[0].mxu0 %vm891_vm1, %v2903_v19  ;;  %v14519_v19 = vld [vmem:[%s17934_s30 + $0x4] ss:$8 sps:$4 sm:$0xff]   ;;  %s17995_s30 = smov 64  }
 0x1b9   : > { %2995 = vmatpush1.bf16.msra.mxu0 %v2989_v56  ;;  %3026 = vmatprep.mubr.bf16.mxu0 %v14751_v5  ;;  %v3313_v56 = vsel %vm3312_vm11, %v14298_v45, %v14299_v44  ;;  %vm3488_vm11 = vcmp.lt.s32.totalorder %v15145_v34, 113  ;;  %v3339_v44 = vpop.permute.xlu1 %3338 }
 0x1ba   : > { %3082 = vmatprep.subr.bf16.mxu0 %v3080_v4  ;;  %4847 = vrot.lane.b32.xlu0 %v14519_v19, %s14823_s0  ;;  %v3327_v4 = vsel %vm3325_vm4, %v3313_v56, 0.0  ;;  %vm3579_vm4 = vmand %vm15804_vm10, %vm15153_vm3  ;;  %v14314_v19 = vunpack.i.h.bf16 %v14312_v32  ;;  %s17903_s0 = smov 64  }
 0x1bb   : > { %v3329_v7 = vpack.c.bf16 %v3327_v4, %v3327_v4  ;;  %v3580_v33 = vsel %vm3579_vm4, 1, %v14751_v5 }
 0x1bc   : > { %v3588_v42 = vrot.slane %v3580_v33, %v15126_v30  ;;  %v3584_v55 = vrot.slane %v3580_v33, %v15124_v29 }
 0x1bd   : > { %v3344_v11 = vand.u32 %v3329_v7, %v15162_v43  ;;  %v3427_v59 = vpop.permute.xlu1 %3426 }
 0x1be   : > { %4935 = vrot.lane.b32.xlu0 %v14520_v57, %s14825_s7  ;;  %s17985_s7 = smov 112   ;;  %vm3590_vm15 = vcmp.eq.s32.totalorder %v3588_v42, 1  ;;  %v14318_v57 = vunpack.i.l.bf16 %v14317_v53 }
 0x1c1   : > { %v3515_v20 = vpop.permute.xlu1 %3514 }
 0x1c2   : > { %5023 = vrot.lane.b32.xlu0 %v14521_v10, %s17984_s9  ;;  %s17998_s9 = sld [smem:[#allocation10_spill]] }
 0x1c4   : > { %12184 = vmatmul.mubr.msk.bf16.vlgmr.msra.gmra.mrb[0].mxu0 %vm891_vm1, %v2984_v21  ;;  %v3401_v21 = vsel %vm3400_vm2, %v14303_v61, %v14304_v60  ;;  %vm3576_vm2 = vcmp.lt.s32.totalorder %v15145_v34, 112 }
 0x1c5   : > { %3083 = vmatpush1.bf16.msra.mxu0 %v3077_v24  ;;  %3114 = vmatprep.mubr.bf16.mxu0 %v14751_v5  ;;  %v3490_v24 = vsel %vm3488_vm11, %v14309_v14, %v14308_v15  ;;  %v3577_v62 = vsel %vm3576_vm2, %v14313_v41, %v14314_v19  ;;  %v3603_v22 = vpop.permute.xlu1 %3602 }
 0x1c6   : > { %3170 = vmatprep.subr.bf16.mxu0 %v3168_v26  ;;  %v3415_v26 = vsel %vm3413_vm12, %v3401_v21, 0.0  ;;  %v3504_v31 = vsel %vm3502_vm7, %v3490_v24, 0.0  ;;  %5111 = vrot.lane.b32.xlu0 %v14522_v35, %s17985_s7  ;;  %vm3667_vm12 = vmand %vm15804_vm10, %vm15235_vm8  ;;  %vm3589_vm7 = vcmp.eq.s32.totalorder %v3584_v55, 1  ;;  %v15935_v35 = vld [vmem:[%s17935_s1] ss:$2 sm:$0x3] }
 0x1c7   : > { %v3417_v50 = vpack.c.bf16 %v3415_v26, %v3415_v26  ;;  %v3506_v36 = vpack.c.bf16 %v3504_v31, %v3504_v31  ;;  %v3668_v1 = vsel %vm3667_vm12, 1, %v14751_v5  ;;  %s18001_s1 = sld [smem:[#allocation13_spill]] }
 0x1c8   : > { %v3676_v58 = vrot.slane %v3668_v1, %v15126_v30  ;;  %v3672_v7 = vrot.slane %v3668_v1, %v15124_v29 }
 0x1c9   : > { %v3432_v45 = vand.u32 %v3417_v50, %v15162_v43  ;;  %v3523_v46 = vand.u32 %v3506_v36, %v15162_v43 }
 0x1ca   : > { %vm3678_vm4 = vcmp.eq.s32.totalorder %v3676_v58, 1 }
 0x1d0   : > { %12186 = vmatmul.mubr.msk.bf16.vlgmr.msra.gmra.mrb[0].mxu0 %vm891_vm1, %v3072_v47  ;;  %v3489_v47 = vsel %vm3488_vm11, %v14308_v15, %v14309_v14  ;;  %vm3664_vm11 = vcmp.lt.s32.totalorder %v15145_v34, 111 }
 0x1d1   : > { %3171 = vmatpush1.bf16.msra.mxu0 %v3165_v48  ;;  %3202 = vmatprep.mubr.bf16.mxu0 %v14751_v5  ;;  %v3578_v48 = vsel %vm3576_vm2, %v14314_v19, %v14313_v41  ;;  %vm3752_vm2 = vcmp.lt.s32.totalorder %v15145_v34, 110  ;;  %v3665_v15 = vsel %vm3664_vm11, %v14318_v57, %v14319_v37  ;;  %v14525_v41 = vld [vmem:[%s17989_s8] ss:$8 sps:$4 sm:$0xff]  }
 0x1d2   : > { %3258 = vmatprep.subr.bf16.mxu0 %v3256_v39  ;;  %v3503_v39 = vsel %vm3501_vm0, %v3489_v47, 0.0  ;;  %v3592_v49 = vsel %vm3590_vm15, %v3578_v48, 0.0  ;;  %vm3755_vm0 = vmand %vm15804_vm10, %vm15271_vm6  ;;  %vm3677_vm15 = vcmp.eq.s32.totalorder %v3672_v7, 1  ;;  %v3754_v16 = vsel %vm3752_vm2, %v14324_v8, %v14323_v9 }
 0x1d3   : > { %v3505_v51 = vpack.c.bf16 %v3503_v39, %v3503_v39  ;;  %v3594_v54 = vpack.c.bf16 %v3592_v49, %v3592_v49  ;;  %v3756_v4 = vsel %vm3755_vm0, 1, %v14751_v5  ;;  %v3753_v19 = vsel %vm3752_vm2, %v14323_v9, %v14324_v8 }
 0x1d4   : > { %v3764_v10 = vrot.slane %v3756_v4, %v15126_v30  ;;  %v3760_v31 = vrot.slane %v3756_v4, %v15124_v29 }
 0x1d5   : > { %v3520_v60 = vand.u32 %v3505_v51, %v15162_v43  ;;  %v3611_v61 = vand.u32 %v3594_v54, %v15162_v43  ;;  %v3691_v54 = vpop.permute.xlu1 %3690 }
 0x1d6   : > { %vm3766_vm12 = vcmp.eq.s32.totalorder %v3764_v10, 1  ;;  %vm3765_vm0 = vcmp.eq.s32.totalorder %v3760_v31, 1 }
 0x1dc   : > { %12188 = vmatmul.mubr.msk.bf16.vlgmr.msra.gmra.mrb[0].mxu0 %vm891_vm1, %v3160_v63  ;;  %v3666_v63 = vsel %vm3664_vm11, %v14319_v37, %v14318_v57  ;;  %vm3924_vm11 = vcmp.ge.s32.totalorder %v15935_v35, 4294967294 }
 0x1dd   : > { %3259 = vmatpush1.bf16.msra.mxu0 %v3253_v2  ;;  %3290 = vmatprep.mubr.bf16.mxu0 %v14751_v5  ;;  %v3591_v2 = vsel %vm3589_vm7, %v3577_v62, 0.0  ;;  %vm3843_vm7 = vmand %vm15804_vm10, %vm15304_vm14  ;;  %vm3925_vm10 = vcmp.lt.s32.totalorder %v15935_v35, 14 }
 0x1de   : > { %3349 = vmatprep.subr.bf16.mxu0 %v3347_v3  ;;  %v3680_v3 = vsel %vm3678_vm4, %v3666_v63, 0.0  ;;  %v3593_v56 = vpack.c.bf16 %v3591_v2, %v3591_v2  ;;  %v3844_v24 = vsel %vm3843_vm7, 1, %v14751_v5  ;;  %vm3840_vm4 = vcmp.lt.s32.totalorder %v15145_v34, 109 }
 0x1df   : > { %v3682_v6 = vpack.c.bf16 %v3680_v3, %v3680_v3  ;;  %v3852_v33 = vrot.slane %v3844_v24, %v15126_v30  ;;  %v3848_v49 = vrot.slane %v3844_v24, %v15124_v29  ;;  %vm3931_vm7 = vcmp.lt.s32.totalorder %v15145_v34, 99 }
 0x1e0   : > { %v3608_v13 = vand.u32 %v3593_v56, %v15162_v43 }
 0x1e1   : > { %v3699_v14 = vand.u32 %v3682_v6, %v15162_v43  ;;  %v3779_v6 = vpop.permute.xlu1 %3778 }
 0x1e8   : > { %12190 = vmatmul.mubr.msk.bf16.vlgmr.msra.gmra.mrb[0].mxu0 %vm891_vm1, %v3248_v17  ;;  %v3679_v17 = vsel %vm3677_vm15, %v3665_v15, 0.0  ;;  %vm15944_vm15 = vmand %vm3924_vm11, %vm3925_vm10  ;;  %vm3853_vm11 = vcmp.eq.s32.totalorder %v3848_v49, 1 }
 0x1e9   : > { %3350 = vmatpush1.bf16.msra.mxu0 %v3344_v11  ;;  %3381 = vmatprep.mubr.bf16.mxu0 %v14751_v5  ;;  %v3768_v11 = vsel %vm3766_vm12, %v3754_v16, 0.0  ;;  %v3681_v21 = vpack.c.bf16 %v3679_v17, %v3679_v17  ;;  %vm3854_vm12 = vcmp.eq.s32.totalorder %v3852_v33, 1  ;;  %vm3934_vm2 = vmand %vm15944_vm15, %vm15107_vm9 }
 0x1ea   : > { %3437 = vmatprep.subr.bf16.mxu0 %v3435_v18  ;;  %v14327_v18 = vpop.permute.xlu0 %14326  ;;  %v3770_v26 = vpack.c.bf16 %v3768_v11, %v3768_v11  ;;  %v3935_v48 = vsel %vm3934_vm2, 1, %v14751_v5 }
 0x1eb   : > { %v14329_v50 = vunpack.i.h.bf16 %v14327_v18  ;;  %v14328_v32 = vunpack.i.l.bf16 %v14327_v18  ;;  %v3696_v36 = vand.u32 %v3681_v21, %v15162_v43  ;;  %v3943_v1 = vrot.slane %v3935_v48, %v15126_v30 }
 0x1ec   : > { %v3787_v38 = vand.u32 %v3770_v26, %v15162_v43  ;;  %v3939_v3 = vrot.slane %v3935_v48, %v15124_v29  ;;  %v3867_v26 = vpop.permute.xlu1 %3866 }
 0x1ed   : > { %v3842_v42 = vsel %vm3840_vm4, %v14329_v50, %v14328_v32  ;;  %v3841_v57 = vsel %vm3840_vm4, %v14328_v32, %v14329_v50  ;;  %vm3945_vm10 = vcmp.eq.s32.totalorder %v3943_v1, 1  ;;  %vm4019_vm4 = vcmp.lt.s32.totalorder %v15145_v34, 98 }
 0x1ee   : > { %v14332_v47 = vpop.permute.xlu0 %14331 }
 0x1ef   : > { %v14334_v51 = vunpack.i.h.bf16 %v14332_v47  ;;  %v14333_v53 = vunpack.i.l.bf16 %v14332_v47 }
 0x1f1   : > { %v3933_v58 = vsel %vm3931_vm7, %v14334_v51, %v14333_v53  ;;  %v3932_v9 = vsel %vm3931_vm7, %v14333_v53, %v14334_v51  ;;  %vm4107_vm7 = vcmp.lt.s32.totalorder %v15145_v34, 97 }
 0x1f2   : > { %v14337_v62 = vpop.permute.xlu0 %14336 }
 0x1f3   : > { %v14339_v56 = vunpack.i.h.bf16 %v14337_v62  ;;  %v14338_v0 = vunpack.i.l.bf16 %v14337_v62 }
 0x1f4   : > { %12192 = vmatmul.mubr.msk.bf16.vlgmr.msra.gmra.mrb[0].mxu0 %vm891_vm1, %v3339_v44  ;;  %v3767_v44 = vsel %vm3765_vm0, %v3753_v19, 0.0  ;;  %vm4022_vm0 = vmand %vm15944_vm15, %vm15094_vm5 }
 0x1f5   : > { %3438 = vmatpush1.bf16.msra.mxu0 %v3432_v45  ;;  %3469 = vmatprep.mubr.bf16.mxu0 %v14751_v5  ;;  %v3856_v45 = vsel %vm3854_vm12, %v3842_v42, 0.0  ;;  %v4023_v63 = vsel %vm4022_vm0, 1, %v14751_v5  ;;  %vm3944_vm12 = vcmp.eq.s32.totalorder %v3939_v3, 1  ;;  %v4021_v10 = vsel %vm4019_vm4, %v14339_v56, %v14338_v0 }
 0x1f6   : > { %3525 = vmatprep.subr.bf16.mxu0 %v3523_v46  ;;  %v3769_v46 = vpack.c.bf16 %v3767_v44, %v3767_v44  ;;  %v3858_v39 = vpack.c.bf16 %v3856_v45, %v3856_v45  ;;  %v4031_v4 = vrot.slane %v4023_v63, %v15126_v30  ;;  %v14342_v15 = vpop.permute.xlu0 %14341  ;;  %v4027_v11 = vrot.slane %v4023_v63, %v15124_v29 }
 0x1f7   : > { %v14344_v18 = vunpack.i.h.bf16 %v14342_v15  ;;  %v14343_v21 = vunpack.i.l.bf16 %v14342_v15  ;;  %v4020_v32 = vsel %vm4019_vm4, %v14338_v0, %v14339_v56  ;;  %vm4195_vm4 = vcmp.lt.s32.totalorder %v15145_v34, 96 }
 0x1f8   : > { %v3784_v55 = vand.u32 %v3769_v46, %v15162_v43  ;;  %v3875_v37 = vand.u32 %v3858_v39, %v15162_v43  ;;  %vm4033_vm2 = vcmp.eq.s32.totalorder %v4031_v4, 1  ;;  %v3958_v39 = vpop.permute.xlu1 %3957 }
 0x1f9   : > { %v4109_v33 = vsel %vm4107_vm7, %v14344_v18, %v14343_v21  ;;  %v4108_v53 = vsel %vm4107_vm7, %v14343_v21, %v14344_v18  ;;  %vm4283_vm7 = vcmp.lt.s32.totalorder %v15145_v34, 95 }
 0x1fa   : > { %v14347_v19 = vpop.permute.xlu0 %14346 }
 0x1fb   : > { %v14349_v46 = vunpack.i.h.bf16 %v14347_v19  ;;  %v14348_v47 = vunpack.i.l.bf16 %v14347_v19  ;;  %v14526_v19 = vld [vmem:[%s17989_s8 + $0x14] ss:$8 sps:$4 sm:$0xff]  }
 0x1fd   : > { %v4197_v1 = vsel %vm4195_vm4, %v14349_v46, %v14348_v47  ;;  %v4196_v0 = vsel %vm4195_vm4, %v14348_v47, %v14349_v46  ;;  %vm4371_vm4 = vcmp.lt.s32.totalorder %v15145_v34, 94  ;;  %v14528_v47 = vld [vmem:[%s17989_s8 + $0x10] ss:$8 sps:$4 sm:$0xff]  }
 0x200   : > { %12194 = vmatmul.mubr.msk.bf16.vlgmr.msra.gmra.mrb[0].mxu0 %vm891_vm1, %v3427_v59  ;;  %v3855_v59 = vsel %vm3853_vm11, %v3841_v57, 0.0  ;;  %vm4110_vm11 = vmand %vm15944_vm15, %vm15120_vm13  ;;  %v14352_v57 = vpop.permute.xlu0 %14351 }
 0x201   : > { %3526 = vmatpush1.bf16.msra.mxu0 %v3520_v60  ;;  %3557 = vmatprep.mubr.bf16.mxu0 %v14751_v5  ;;  %v3947_v60 = vsel %vm3945_vm10, %v3933_v58, 0.0  ;;  %v4111_v16 = vsel %vm4110_vm11, 1, %v14751_v5  ;;  %vm4032_vm10 = vcmp.eq.s32.totalorder %v4027_v11, 1  ;;  %v14353_v62 = vunpack.i.l.bf16 %v14352_v57 }
 0x202   : > { %3613 = vmatprep.subr.bf16.mxu0 %v3611_v61  ;;  %v3857_v61 = vpack.c.bf16 %v3855_v59, %v3855_v59  ;;  %v3949_v2 = vpack.c.bf16 %v3947_v60, %v3947_v60  ;;  %v4119_v24 = vrot.slane %v4111_v16, %v15126_v30  ;;  %v4115_v45 = vrot.slane %v4111_v16, %v15124_v29 }
 0x204   : > { %v3872_v7 = vand.u32 %v3857_v61, %v15162_v43  ;;  %v3966_v8 = vand.u32 %v3949_v2, %v15162_v43  ;;  %vm4121_vm0 = vcmp.eq.s32.totalorder %v4119_v24, 1  ;;  %v14354_v61 = vunpack.i.h.bf16 %v14352_v57  ;;  %v4046_v2 = vpop.permute.xlu1 %4045  ;;  %v14532_v57 = vld [vmem:[%s17989_s8 + $0x34] ss:$8 sps:$4 sm:$0xff]  }
 0x206   : > { %v4285_v4 = vsel %vm4283_vm7, %v14354_v61, %v14353_v62  ;;  %v4284_v21 = vsel %vm4283_vm7, %v14353_v62, %v14354_v61  ;;  %vm4544_vm7 = vcmp.lt.s32.totalorder %v15935_v35, 13  ;;  %v14534_v61 = vld [vmem:[%s17989_s8 + $0x30] ss:$8 sps:$4 sm:$0xff]   ;;  %v14535_v62 = vld [vmem:[%s17989_s8 + $0x44] ss:$8 sps:$4 sm:$0xff]  }
 0x20c   : > { %12196 = vmatmul.mubr.msk.bf16.vlgmr.msra.gmra.mrb[0].mxu0 %vm891_vm1, %v3515_v20  ;;  %v3946_v20 = vsel %vm3944_vm12, %v3932_v9, 0.0  ;;  %vm4198_vm12 = vmand %vm15944_vm15, %vm15153_vm3  ;;  %v14357_v9 = vpop.permute.xlu0 %14356 }
 0x20d   : > { %3614 = vmatpush1.bf16.msra.mxu0 %v3608_v13  ;;  %3645 = vmatprep.mubr.bf16.mxu0 %v14751_v5  ;;  %v4035_v13 = vsel %vm4033_vm2, %v4021_v10, 0.0  ;;  %v4199_v42 = vsel %vm4198_vm12, 1, %v14751_v5  ;;  %vm4120_vm2 = vcmp.eq.s32.totalorder %v4115_v45, 1  ;;  %v14358_v15 = vunpack.i.l.bf16 %v14357_v9 }
 0x20e   : > { %3701 = vmatprep.subr.bf16.mxu0 %v3699_v14  ;;  %v3948_v14 = vpack.c.bf16 %v3946_v20, %v3946_v20  ;;  %v4037_v17 = vpack.c.bf16 %v4035_v13, %v4035_v13  ;;  %v4207_v48 = vrot.slane %v4199_v42, %v15126_v30  ;;  %v4203_v60 = vrot.slane %v4199_v42, %v15124_v29 }
 0x210   : > { %v3963_v31 = vand.u32 %v3948_v14, %v15162_v43  ;;  %v4054_v50 = vand.u32 %v4037_v17, %v15162_v43  ;;  %vm4209_vm11 = vcmp.eq.s32.totalorder %v4207_v48, 1  ;;  %v14359_v14 = vunpack.i.h.bf16 %v14357_v9  ;;  %v4134_v17 = vpop.permute.xlu1 %4133  ;;  %v14538_v9 = vld [vmem:[%s17989_s8 + $0x54] ss:$8 sps:$4 sm:$0xff]  }
 0x212   : > { %v4373_v24 = vsel %vm4371_vm4, %v14359_v14, %v14358_v15 }
 0x218   : > { %12198 = vmatmul.mubr.msk.bf16.vlgmr.msra.gmra.mrb[0].mxu0 %vm891_vm1, %v3603_v22  ;;  %v4034_v22 = vsel %vm4032_vm10, %v4020_v32, 0.0  ;;  %vm4286_vm10 = vmand %vm15944_vm15, %vm15235_vm8  ;;  %v5169_v32 = vld [vmem:[%s17988_s4] sm:$0xff] }
 0x219   : > { %3702 = vmatpush1.bf16.msra.mxu0 %v3696_v36  ;;  %3733 = vmatprep.mubr.bf16.mxu0 %v14751_v5  ;;  %v4123_v36 = vsel %vm4121_vm0, %v4109_v33, 0.0  ;;  %v4287_v58 = vsel %vm4286_vm10, 1, %v14751_v5  ;;  %vm4208_vm0 = vcmp.eq.s32.totalorder %v4203_v60, 1  ;;  %v5170_v33 = vld [vmem:[%s17988_s4 + $0x8] sm:$0xff]  ;;  %s17993_s4 = sld [smem:[#allocation9_spill]] }
 0x21a   : > { %3789 = vmatprep.subr.bf16.mxu0 %v3787_v38  ;;  %v4036_v38 = vpack.c.bf16 %v4034_v22, %v4034_v22  ;;  %v4125_v44 = vpack.c.bf16 %v4123_v36, %v4123_v36  ;;  %v4295_v63 = vrot.slane %v4287_v58, %v15126_v30  ;;  %v4291_v13 = vrot.slane %v4287_v58, %v15124_v29  ;;  %v14523_v22 = vld [vmem:[%s17989_s8 + $0x4] ss:$8 sps:$4 sm:$0xff]  }
 0x21b   : > { %5173 = vperm.xlu1 %14400, %v5169_v32   ;;  %5178 = vperm.xlu0 %14401, %v5170_v33   ;;  %v14546_v33 = vld [vmem:[%s17989_s8 + $0x70] ss:$8 sps:$4 sm:$0xff]  }
 0x21c   : > { %v4051_v49 = vand.u32 %v4036_v38, %v15162_v43  ;;  %v4142_v51 = vand.u32 %v4125_v44, %v15162_v43  ;;  %vm4297_vm12 = vcmp.eq.s32.totalorder %v4295_v63, 1  ;;  %5383 = vmatprep.subr.bf16.mxu1 %v14523_v22  ;;  %v4222_v44 = vpop.permute.xlu1 %4221 }
 0x21d   : > { %5384 = vmatpush1.bf16.msra.mxu1 %v14525_v41  ;;  %v14547_v41 = vld [vmem:[%s17989_s8 + $0x84] ss:$8 sps:$4 sm:$0xff]  }
 0x21e   : > { %5385 = vmatprep.subr.bf16.mxu1 %v14526_v19 }
 0x221   : > { %5386 = vmatpush1.bf16.msra.mxu1 %v14528_v47  ;;  %v14550_v47 = vld [vmem:[%s17989_s8 + $0x94] ss:$8 sps:$4 sm:$0xff]  }
 0x224   : > { %12200 = vmatmul.mubr.msk.bf16.vlgmr.msra.gmra.mrb[0].mxu0 %vm891_vm1, %v3691_v54  ;;  %v4122_v54 = vsel %vm4120_vm2, %v4108_v53, 0.0  ;;  %vm4374_vm2 = vmand %vm15944_vm15, %vm15271_vm6 }
 0x225   : > { %3790 = vmatpush1.bf16.msra.mxu0 %v3784_v55  ;;  %3821 = vmatprep.mubr.bf16.mxu0 %v14751_v5  ;;  %v4211_v55 = vsel %vm4209_vm11, %v4197_v1, 0.0  ;;  %v4375_v10 = vsel %vm4374_vm2, 1, %v14751_v5  ;;  %vm4296_vm11 = vcmp.eq.s32.totalorder %v4291_v13, 1  ;;  %v4372_v1 = vsel %vm4371_vm4, %v14358_v15, %v14359_v14  ;;  %v14540_v15 = vld [vmem:[%s17989_s8 + $0x50] ss:$8 sps:$4 sm:$0xff]  }
 0x226   : > { %3877 = vmatprep.subr.bf16.mxu0 %v3875_v37  ;;  %v4124_v37 = vpack.c.bf16 %v4122_v54, %v4122_v54  ;;  %v4213_v59 = vpack.c.bf16 %v4211_v55, %v4211_v55  ;;  %v4383_v16 = vrot.slane %v4375_v10, %v15126_v30  ;;  %v4379_v45 = vrot.slane %v4375_v10, %v15124_v29  ;;  %v4310_v54 = vpop.permute.xlu1 %4309 }
 0x228   : > { %v4139_v3 = vand.u32 %v4124_v37, %v15162_v43  ;;  %v4230_v56 = vand.u32 %v4213_v59, %v15162_v43  ;;  %vm4385_vm10 = vcmp.eq.s32.totalorder %v4383_v16, 1  ;;  %vm4384_vm2 = vcmp.eq.s32.totalorder %v4379_v45, 1  ;;  %v14549_v45 = vld [vmem:[%s17989_s8 + $0x80] ss:$8 sps:$4 sm:$0xff]  }
 0x229   : > { %v4386_v58 = vsel %vm4384_vm2, %v4372_v1, 0.0 }
 0x22a   : > { %v4398_v59 = vpop.permute.xlu1 %4397  ;;  %v4388_v63 = vpack.c.bf16 %v4386_v58, %v4386_v58 }
 0x22c   : > { %v4403_v10 = vand.u32 %v4388_v63, %v15162_v43 }
 0x230   : > { %12202 = vmatmul.mubr.msk.bf16.vlgmr.msra.gmra.mrb[0].mxu0 %vm891_vm1, %v3779_v6  ;;  %v4210_v6 = vsel %vm4208_vm0, %v4196_v0, 0.0  ;;  %vm4462_vm0 = vmand %vm15944_vm15, %vm15304_vm14  ;;  %vm4543_vm15 = vcmp.ge.s32.totalorder %v15935_v35, 4294967293  ;;  %v14531_v35 = vld [vmem:[%s17989_s8 + $0x20] ss:$8 sps:$4 sm:$0xff]   ;;  %v16113_v0 = vpop.permute.xlu1 %4485 }
 0x231   : > { %3878 = vmatpush1.bf16.msra.mxu0 %v3872_v7  ;;  %3909 = vmatprep.mubr.bf16.mxu0 %v14751_v5  ;;  %v4299_v7 = vsel %vm4297_vm12, %v4285_v4, 0.0  ;;  %v4463_v38 = vsel %vm4462_vm0, 1, %v14751_v5  ;;  %vm4459_vm12 = vcmp.lt.s32.totalorder %v15145_v34, 93  ;;  %v14537_v4 = vld [vmem:[%s17989_s8 + $0x40] ss:$8 sps:$4 sm:$0xff]  }
 0x232   : > { %3968 = vmatprep.subr.bf16.mxu0 %v3966_v8  ;;  %v4212_v8 = vpack.c.bf16 %v4210_v6, %v4210_v6  ;;  %v4301_v20 = vpack.c.bf16 %v4299_v7, %v4299_v7 }
 0x234   : > { %v4227_v11 = vand.u32 %v4212_v8, %v15162_v43  ;;  %v4318_v18 = vand.u32 %v4301_v20, %v15162_v43  ;;  %v16127_v14 = vpop.permute.xlu1 %4579 }
 0x23c   : > { %12204 = vmatmul.mubr.msk.bf16.vlgmr.msra.gmra.mrb[0].mxu0 %vm891_vm1, %v3867_v26  ;;  %v4298_v26 = vsel %vm4296_vm11, %v4284_v21, 0.0  ;;  %vm16087_vm11 = vmand %vm4543_vm15, %vm4544_vm7  ;;  %v14543_v21 = vld [vmem:[%s17989_s8 + $0x60] ss:$8 sps:$4 sm:$0xff]  }
 0x23d   : > { %3969 = vmatpush1.bf16.msra.mxu0 %v3963_v31  ;;  %4000 = vmatprep.mubr.bf16.mxu0 %v14751_v5  ;;  %v4387_v31 = vsel %vm4385_vm10, %v4373_v24, 0.0  ;;  %v4300_v36 = vpack.c.bf16 %v4298_v26, %v4298_v26  ;;  %vm4553_vm4 = vmand %vm16087_vm11, %vm15107_vm9  ;;  %vm4550_vm9 = vcmp.lt.s32.totalorder %v15145_v34, 83  ;;  %v14544_v24 = vld [vmem:[%s17989_s8 + $0x74] ss:$8 sps:$4 sm:$0xff]  }
 0x23e   : > { %4056 = vmatprep.subr.bf16.mxu0 %v4054_v50  ;;  %v16052_v50 = vpop.permute.xlu0 %14361  ;;  %v4389_v42 = vpack.c.bf16 %v4387_v31, %v4387_v31  ;;  %vm4648_vm7 = vmand %vm16087_vm11, %vm15094_vm5  ;;  %v14372_v31 = vpop.permute.xlu1 %14371  ;;  %vm4645_vm5 = vcmp.lt.s32.totalorder %v15145_v34, 82 }
 0x23f   : > { %v14364_v46 = vunpack.i.h.bf16 %v16052_v50  ;;  %v14363_v48 = vunpack.i.l.bf16 %v16052_v50  ;;  %v4649_v50 = vsel %vm4648_vm7, 1, %v14751_v5  ;;  %v14374_v22 = vunpack.i.h.bf16 %v14372_v31 }
 0x240   : > { %v4406_v53 = vand.u32 %v4389_v42, %v15162_v43  ;;  %v4653_v28 = vrot.slane %v4649_v50, %v15124_v29 }
 0x241   : > { %v4461_v37 = vsel %vm4459_vm12, %v14364_v46, %v14363_v48  ;;  %v4460_v13 = vsel %vm4459_vm12, %v14363_v48, %v14364_v46 }
 0x242   : > { %v14377_v1 = vpop.permute.xlu1 %14376 }
 0x243   : > { %v14378_v58 = vunpack.i.l.bf16 %v14377_v1 }
 0x248   : > { %12206 = vmatmul.mubr.msk.bf16.vlgmr.msra.gmra.mrb[0].mxu0 %vm891_vm1, %v3958_v39  ;;  %v4471_v39 = vrot.slane %v4463_v38, %v15126_v30 }
 0x249   : > { %4057 = vmatpush1.bf16.msra.mxu0 %v4051_v49  ;;  %4088 = vmatprep.mubr.bf16.mxu0 %v14751_v5  ;;  %v14529_v49 = vld [vmem:[%s17989_s8 + $0x24] ss:$8 sps:$4 sm:$0xff]  }
 0x24a   : > { %4144 = vmatprep.subr.bf16.mxu0 %v4142_v51  ;;  %v4315_v51 = vand.u32 %v4300_v36, %v15162_v43  ;;  %vm4473_vm10 = vcmp.eq.s32.totalorder %v4471_v39, 1  ;;  %5387 = vmatprep.subr.bf16.mxu1 %v14529_v49  ;;  %v14373_v36 = vunpack.i.l.bf16 %v14372_v31  ;;  %v14552_v49 = vld [vmem:[%s17989_s8 + $0x90] ss:$8 sps:$4 sm:$0xff]  }
 0x24b   : > { %v4475_v60 = vsel %vm4473_vm10, %v4461_v37, 0.0  ;;  %5388 = vmatpush1.bf16.msra.mxu1 %v14531_v35  ;;  %vm4736_vm10 = vmand %vm16087_vm11, %vm15120_vm13  ;;  %v14555_v37 = vld [vmem:[%s17989_s8 + $0xa0] ss:$8 sps:$4 sm:$0xff]   ;;  %vm4733_vm13 = vcmp.lt.s32.totalorder %v15145_v34, 81 }
 0x24c   : > { %5389 = vmatprep.subr.bf16.mxu1 %v14532_v57  ;;  %v4477_v25 = vpack.c.bf16 %v4475_v60, %v4475_v60  ;;  %v4647_v46 = vsel %vm4645_vm5, %v14374_v22, %v14373_v36  ;;  %v14379_v57 = vunpack.i.h.bf16 %v14377_v1  ;;  %v14556_v60 = vld [vmem:[%s17989_s8 + $0xb4] ss:$8 sps:$4 sm:$0xff]   ;;  %v4646_v63 = vsel %vm4645_vm5, %v14373_v36, %v14374_v22 }
 0x24e   : > { %v4494_v20 = vand.u32 %v4477_v25, %v15162_v43  ;;  %v14559_v25 = vld [vmem:[%s17989_s8 + $0xc4] ss:$8 sps:$4 sm:$0xff]  }
 0x24f   : > { %5390 = vmatpush1.bf16.msra.mxu1 %v14534_v61 }
 0x250   : > { %5391 = vmatprep.subr.bf16.mxu1 %v14535_v62 }
 0x253   : > { %5392 = vmatpush1.bf16.msra.mxu1 %v14537_v4  ;;  %v14561_v4 = vld [vmem:[%s17989_s8 + $0xc0] ss:$8 sps:$4 sm:$0xff]  }
 0x254   : > { %12208 = vmatmul.mubr.msk.bf16.vlgmr.msra.gmra.mrb[0].mxu0 %vm891_vm1, %v4046_v2  ;;  %v14367_v2 = vpop.permute.xlu0 %14366  ;;  %5393 = vmatprep.subr.bf16.mxu1 %v14538_v9 }
 0x255   : > { %4145 = vmatpush1.bf16.msra.mxu0 %v4139_v3  ;;  %4176 = vmatprep.mubr.bf16.mxu0 %v14751_v5  ;;  %v4554_v3 = vsel %vm4553_vm4, 1, %v14751_v5  ;;  %v14369_v6 = vunpack.i.h.bf16 %v14367_v2  ;;  %v14368_v7 = vunpack.i.l.bf16 %v14367_v2  ;;  %vm4658_vm4 = vcmp.eq.s32.totalorder %v4653_v28, 1  ;;  %v14558_v2 = vld [vmem:[%s17989_s8 + $0xb0] ss:$8 sps:$4 sm:$0xff]  }
 0x256   : > { %4232 = vmatprep.subr.bf16.mxu0 %v4230_v56  ;;  %v4467_v56 = vrot.slane %v4463_v38, %v15124_v29  ;;  %v4562_v8 = vrot.slane %v4554_v3, %v15126_v30  ;;  %v4558_v23 = vrot.slane %v4554_v3, %v15124_v29  ;;  %v4657_v38 = vrot.slane %v4649_v50, %v15126_v30 }
 0x257   : > { %v4552_v16 = vsel %vm4550_vm9, %v14369_v6, %v14368_v7  ;;  %5394 = vmatpush1.bf16.msra.mxu1 %v14540_v15  ;;  %v4735_v3 = vsel %vm4733_vm13, %v14379_v57, %v14378_v58 }
 0x258   : > { %vm4472_vm0 = vcmp.eq.s32.totalorder %v4467_v56, 1  ;;  %vm4564_vm15 = vcmp.eq.s32.totalorder %v4562_v8, 1  ;;  %vm4563_vm12 = vcmp.eq.s32.totalorder %v4558_v23, 1  ;;  %vm4659_vm2 = vcmp.eq.s32.totalorder %v4657_v38, 1  ;;  %v14382_v8 = vpop.permute.xlu1 %14381 }
 0x259   : > { %v4661_v39 = vsel %vm4659_vm2, %v4647_v46, 0.0  ;;  %v4660_v56 = vsel %vm4658_vm4, %v4646_v63, 0.0  ;;  %v14384_v15 = vunpack.i.h.bf16 %v14382_v8  ;;  %vm4909_vm2 = vcmp.lt.s32.totalorder %v15145_v34, 79 }
 0x25a   : > { %v4663_v35 = vpack.c.bf16 %v4661_v39, %v4661_v39  ;;  %vm4997_vm4 = vcmp.lt.s32.totalorder %v15145_v34, 78 }
 0x25c   : > { %v4680_v62 = vand.u32 %v4663_v35, %v15162_v43 }
 0x260   : > { %12210 = vmatmul.mubr.msk.bf16.vlgmr.msra.gmra.mrb[0].mxu0 %vm891_vm1, %v4134_v17  ;;  %v14541_v17 = vld [vmem:[%s17989_s8 + $0x64] ss:$8 sps:$4 sm:$0xff]  }
 0x261   : > { %4233 = vmatpush1.bf16.msra.mxu0 %v4227_v11  ;;  %4264 = vmatprep.mubr.bf16.mxu0 %v14751_v5  ;;  %v4474_v11 = vsel %vm4472_vm0, %v4460_v13, 0.0  ;;  %vm4824_vm0 = vmand %vm16087_vm11, %vm15153_vm3  ;;  %vm4583_vm3 = vcmask 15360   ;;  %v4582_v13 = vpop.permute.xlu0 %4581 }
 0x262   : > { %4320 = vmatprep.subr.bf16.mxu0 %v4318_v18  ;;  %v4566_v18 = vsel %vm4564_vm15, %v4552_v16, 0.0  ;;  %5395 = vmatprep.subr.bf16.mxu1 %v14541_v17  ;;  %v4476_v26 = vpack.c.bf16 %v4474_v11, %v4474_v11  ;;  %v4825_v9 = vsel %vm4824_vm0, 1, %v14751_v5  ;;  %v14383_v16 = vunpack.i.l.bf16 %v14382_v8  ;;  %vm5088_vm0 = vmand %vm16087_vm11, %vm15304_vm14 }
 0x263   : > { %v4568_v32 = vpack.c.bf16 %v4566_v18, %v4566_v18  ;;  %5396 = vmatpush1.bf16.msra.mxu1 %v14543_v21  ;;  %v4833_v17 = vrot.slane %v4825_v9, %v15126_v30  ;;  %vm4821_vm15 = vcmp.lt.s32.totalorder %v15145_v34, 80  ;;  %v4584_v21 = vsel %vm4583_vm3, %v16127_v14, %v4582_v13 }
 0x264   : > { %5397 = vmatprep.subr.bf16.mxu1 %v14544_v24  ;;  %v4491_v19 = vand.u32 %v4476_v26, %v15162_v43  ;;  %v4734_v24 = vsel %vm4733_vm13, %v14378_v58, %v14379_v57  ;;  %v4823_v26 = vsel %vm4821_vm15, %v14384_v15, %v14383_v16  ;;  %v4829_v22 = vrot.slane %v4825_v9, %v15124_v29  ;;  %vm5000_vm13 = vmand %vm16087_vm11, %vm15271_vm6 }
 0x265   : > { %v4592_v42 = vand.u32 %v4568_v32, %v15162_v43  ;;  %vm4835_vm5 = vcmp.eq.s32.totalorder %v4833_v17, 1  ;;  %v14387_v32 = vpop.permute.xlu1 %14386  ;;  %v5089_v63 = vsel %vm5088_vm0, 1, %v14751_v5  ;;  %vm5085_vm3 = vcmp.lt.s32.totalorder %v15145_v34, 77  ;;  %v14565_v34 = vld [vmem:[%s17989_s8 + $0xe4] ss:$8 sps:$4 sm:$0xff]  }
 0x266   : > { %v4837_v14 = vsel %vm4835_vm5, %v4823_v26, 0.0  ;;  %v14389_v36 = vunpack.i.h.bf16 %v14387_v32  ;;  %v14388_v38 = vunpack.i.l.bf16 %v14387_v32  ;;  %v14570_v26 = vld [vmem:[%s17989_s8 + $0xf0] ss:$8 sps:$4 sm:$0xff]   ;;  %vm6107_vm5 = vcmask 130048  }
 0x267   : > { %5398 = vmatpush1.bf16.msra.mxu1 %v14546_v33  ;;  %v4839_v33 = vpack.c.bf16 %v4837_v14, %v4837_v14 }
 0x268   : > { %5399 = vmatprep.subr.bf16.mxu1 %v14547_v41  ;;  %v4910_v57 = vsel %vm4909_vm2, %v14388_v38, %v14389_v36 }
 0x269   : > { %v4856_v27 = vand.u32 %v4839_v33, %v15162_v43  ;;  %v14392_v39 = vpop.permute.xlu1 %14391 }
 0x26a   : > { %v14394_v1 = vunpack.i.h.bf16 %v14392_v39 }
 0x26b   : > { %5400 = vmatpush1.bf16.msra.mxu1 %v14549_v45  ;;  %v4911_v45 = vsel %vm4909_vm2, %v14389_v36, %v14388_v38  ;;  %vm18005_vm2 = vcmask 1041408  }
 0x26c   : > { %12212 = vmatmul.mubr.msk.bf16.vlgmr.msra.gmra.mrb[0].mxu0 %vm891_vm1, %v4222_v44  ;;  %v4551_v44 = vsel %vm4550_vm9, %v14368_v7, %v14369_v6  ;;  %5401 = vmatprep.subr.bf16.mxu1 %v14550_v47  ;;  %v14562_v6 = vld [vmem:[%s17989_s8 + $0xd4] ss:$8 sps:$4 sm:$0xff]   ;;  %v4662_v7 = vpack.c.bf16 %v4660_v56, %v4660_v56 }
 0x26d   : > { %4321 = vmatpush1.bf16.msra.mxu0 %v4315_v51  ;;  %4352 = vmatprep.mubr.bf16.mxu0 %v14751_v5  ;;  %v4565_v48 = vsel %vm4563_vm12, %v4551_v44, 0.0  ;;  %v14553_v51 = vld [vmem:[%s17989_s8 + $0xa4] ss:$8 sps:$4 sm:$0xff]   ;;  %vm4912_vm12 = vmand %vm16087_vm11, %vm15235_vm8  ;;  %v4822_v44 = vsel %vm4821_vm15, %v14383_v16, %v14384_v15  ;;  %vm4834_vm8 = vcmp.eq.s32.totalorder %v4829_v22, 1 }
 0x26e   : > { %4408 = vmatprep.subr.bf16.mxu0 %v4406_v53  ;;  %v4567_v53 = vpack.c.bf16 %v4565_v48, %v4565_v48  ;;  %v4677_v11 = vand.u32 %v4662_v7, %v15162_v43  ;;  %v4913_v23 = vsel %vm4912_vm12, 1, %v14751_v5  ;;  %v4836_v46 = vsel %vm4834_vm8, %v4822_v44, 0.0  ;;  %vm18006_vm8 = vmmov %vm18005_vm2 }
 0x26f   : > { %5402 = vmatpush1.bf16.msra.mxu1 %v14552_v49  ;;  %v4921_v41 = vrot.slane %v4913_v23, %v15126_v30  ;;  %v4838_v48 = vpack.c.bf16 %v4836_v46, %v4836_v46  ;;  %v5001_v49 = vsel %vm5000_vm13, 1, %v14751_v5  ;;  %vm8023_vm12 = vcmask 261120  }
 0x270   : > { %5403 = vmatprep.subr.bf16.mxu1 %v14553_v51  ;;  %v4589_v61 = vand.u32 %v4567_v53, %v15162_v43  ;;  %v4917_v53 = vrot.slane %v4913_v23, %v15124_v29  ;;  %v5009_v35 = vrot.slane %v5001_v49, %v15126_v30  ;;  %vm9308_vm13 = vcmask 31744  }
 0x272   : > { %vm4922_vm6 = vcmp.eq.s32.totalorder %v4917_v53, 1  ;;  %v14582_v53 = vld [vmem:[%s17992_s6 + $0x7c] ss:$52 sps:$4 sm:$0xff]  }
 0x273   : > { %5404 = vmatpush1.bf16.msra.mxu1 %v14555_v37  ;;  %v4853_v37 = vand.u32 %v4838_v48, %v15162_v43  ;;  %v14573_v48 = vld [vmem:[%s17992_s6 + $0x4] ss:$52 sps:$4 sm:$0xff]  }
 0x274   : > { %5405 = vmatprep.subr.bf16.mxu1 %v14556_v60 }
 0x277   : > { %5406 = vmatpush1.bf16.msra.mxu1 %v14558_v2 }
 0x278   : > { %12214 = vmatmul.mubr.msk.bf16.vlgmr.msra.gmra.mrb[0].mxu0 %vm891_vm1, %v4310_v54  ;;  %v4737_v54 = vsel %vm4736_vm10, 1, %v14751_v5  ;;  %5407 = vmatprep.subr.bf16.mxu1 %v14559_v25  ;;  %vm4923_vm10 = vcmp.eq.s32.totalorder %v4921_v41, 1 }
 0x279   : > { %4409 = vmatpush1.bf16.msra.mxu0 %v4403_v10  ;;  %4440 = vmatprep.mubr.bf16.mxu0 %v14751_v5  ;;  %v4741_v40 = vrot.slane %v4737_v54, %v15124_v29  ;;  %v4925_v47 = vsel %vm4923_vm10, %v4911_v45, 0.0  ;;  %vm18007_vm10 = vmmov %vm18005_vm2 }
 0x27a   : > { %4496 = vmatprep.subr.bf16.mxu0 %v4494_v20  ;;  %v14564_v20 = vld [vmem:[%s17989_s8 + $0xd0] ss:$8 sps:$4 sm:$0xff]   ;;  %v4927_v51 = vpack.c.bf16 %v4925_v47, %v4925_v47  ;;  %v14571_v47 = vld [vmem:[%s17992_s6] ss:$52 sps:$4 sm:$0xff]  }
 0x27b   : > { %5408 = vmatpush1.bf16.msra.mxu1 %v14561_v4  ;;  %vm4746_vm7 = vcmp.eq.s32.totalorder %v4741_v40, 1  ;;  %v5093_v40 = vrot.slane %v5089_v63, %v15124_v29 }
 0x27c   : > { %5409 = vmatprep.subr.bf16.mxu1 %v14562_v6  ;;  %v4748_v31 = vsel %vm4746_vm7, %v4734_v24, 0.0  ;;  %v4944_v52 = vand.u32 %v4927_v51, %v15162_v43  ;;  %v14567_v24 = vld [vmem:[%s17989_s8 + $0xe0] ss:$8 sps:$4 sm:$0xff]   ;;  %vm14828_vm7 = vmmov 0  }
 0x27d   : > { %v4750_v50 = vpack.c.bf16 %v4748_v31, %v4748_v31  ;;  %vm5098_vm15 = vcmp.eq.s32.totalorder %v5093_v40, 1  ;;  %v14579_v51 = vld [vmem:[%s17992_s6 + $0x6c] ss:$52 sps:$4 sm:$0xff]  }
 0x27f   : > { %5410 = vmatpush1.bf16.msra.mxu1 %v14564_v20 }
 0x280   : > { %5411 = vmatprep.subr.bf16.mxu1 %v14565_v34  ;;  %v14604_v34 = vld [vmem:[%s17992_s6 + $0x80] ss:$52 sps:$4 sm:$0xff]  }
 0x283   : > { %5412 = vmatpush1.bf16.msra.mxu1 %v14567_v24  ;;  %v14609_v24 = vld [vmem:[%s17992_s6 + $0xdc] ss:$52 sps:$4 sm:$0xff]  }
 0x284   : > { %12216 = vmatmul.mubr.msk.bf16.vlgmr.msra.gmra.mrb[0].mxu0 %vm891_vm1, %v4398_v59  ;;  %v4745_v59 = vrot.slane %v4737_v54, %v15126_v30  ;;  %v14393_v54 = vunpack.i.l.bf16 %v14392_v39  ;;  %v14574_v39 = vld [vmem:[%s17992_s6 + $0x10] ss:$52 sps:$4 sm:$0xff]  }
 0x285   : > { %4497 = vmatpush1.bf16.msra.mxu0 %v4491_v19  ;;  %4528 = vmatprep.mubr.bf16.mxu0 %v14751_v5  ;;  %v4672_v19 = vpop.permute.xlu0 %4671 }
 0x286   : > { %4594 = vmatprep.subr.bf16.mxu0 %v4592_v42  ;;  %vm4747_vm9 = vcmp.eq.s32.totalorder %v4745_v59, 1  ;;  %v4765_v42 = vand.u32 %v4750_v50, %v15162_v43  ;;  %v4999_v58 = vsel %vm4997_vm4, %v14394_v1, %v14393_v54  ;;  %v4924_v59 = vsel %vm4922_vm6, %v4910_v57, 0.0  ;;  %v14591_v57 = vld [vmem:[%s17992_s6 + $0x13c] ss:$52 sps:$4 sm:$0xff]  }
 0x287   : > { %v4998_v55 = vsel %vm4997_vm4, %v14393_v54, %v14394_v1  ;;  %v14577_v1 = vld [vmem:[%s17992_s6 + $0x68] ss:$52 sps:$4 sm:$0xff]   ;;  %v14580_v54 = vld [vmem:[%s17992_s6 + $0x78] ss:$52 sps:$4 sm:$0xff]   ;;  %vm11968_vm4 = vcmask 7168   ;;  %vm11970_vm6 = vcmask 0  }
 0x289   : > { %v4760_v28 = vpop.permute.xlu0 %4759 }
 0x28d   : > { %v4848_v4 = vpop.permute.xlu0 %4847 }
 0x290   : > { %12218 = vmatmul.mubr.msk.bf16.vlgmr.msra.gmra.mrb[0].mxu0 %vm891_vm1, %v16113_v0  ;;  %v4749_v0 = vsel %vm4747_vm9, %v4735_v3, 0.0  ;;  %vm5011_vm9 = vcmp.eq.s32.totalorder %v5009_v35, 1  ;;  %v5005_v3 = vrot.slane %v5001_v49, %v15124_v29  ;;  %v14576_v49 = vld [vmem:[%s17992_s6 + $0x14] ss:$52 sps:$4 sm:$0xff]  }
 0x291   : > { %4595 = vmatpush1.bf16.msra.mxu0 %v4589_v61  ;;  %4626 = vmatprep.mubr.bf16.mxu0 %v14751_v5  ;;  %v4751_v10 = vpack.c.bf16 %v4749_v0, %v4749_v0  ;;  %v5013_v60 = vsel %vm5011_vm9, %v4999_v58, 0.0  ;;  %v4926_v61 = vpack.c.bf16 %v4924_v59, %v4924_v59  ;;  %v5097_v0 = vrot.slane %v5089_v63, %v15126_v30  ;;  %v4936_v20 = vpop.permute.xlu0 %4935  ;;  %v14585_v35 = vld [vmem:[%s17992_s6 + $0xd4] ss:$52 sps:$4 sm:$0xff]   ;;  %v14594_v58 = vld [vmem:[%s17992_s6 + $0x14c] ss:$52 sps:$4 sm:$0xff]  }
 0x292   : > { %4682 = vmatprep.subr.bf16.mxu0 %v4680_v62  ;;  %v14397_v62 = vpop.permute.xlu1 %14396  ;;  %v5015_v2 = vpack.c.bf16 %v5013_v60, %v5013_v60  ;;  %vm5010_vm14 = vcmp.eq.s32.totalorder %v5005_v3, 1  ;;  %v14589_v59 = vld [vmem:[%s17992_s6 + $0x138] ss:$52 sps:$4 sm:$0xff]   ;;  %v14592_v60 = vld [vmem:[%s17992_s6 + $0x148] ss:$52 sps:$4 sm:$0xff]  }
 0x293   : > { %v4768_v18 = vand.u32 %v4751_v10, %v15162_v43  ;;  %v14399_v25 = vunpack.i.h.bf16 %v14397_v62  ;;  %v14398_v56 = vunpack.i.l.bf16 %v14397_v62  ;;  %v4941_v6 = vand.u32 %v4926_v61, %v15162_v43  ;;  %v14597_v63 = vld [vmem:[%s17992_s6 + $0xc] ss:$52 sps:$4 sm:$0xff]  }
 0x294   : > { %v5032_v12 = vand.u32 %v5015_v2, %v15162_v43  ;;  %vm5099_vm11 = vcmp.eq.s32.totalorder %v5097_v0, 1  ;;  %v5012_v30 = vsel %vm5010_vm14, %v4998_v55, 0.0  ;;  %v14600_v2 = vld [vmem:[%s17992_s6 + $0x1c] ss:$52 sps:$4 sm:$0xff]  }
 0x295   : > { %v5087_v7 = vsel %vm5085_vm3, %v14399_v25, %v14398_v56  ;;  %v5014_v9 = vpack.c.bf16 %v5012_v30, %v5012_v30  ;;  %v5086_v16 = vsel %vm5085_vm3, %v14398_v56, %v14399_v25 }
 0x296   : > { %v5101_v8 = vsel %vm5099_vm11, %v5087_v7, 0.0  ;;  %v5100_v17 = vsel %vm5098_vm15, %v5086_v16, 0.0  ;;  %v14595_v16 = vld [vmem:[%s17992_s6 + $0x8] ss:$52 sps:$4 sm:$0xff]  }
 0x297   : > { %v5103_v10 = vpack.c.bf16 %v5101_v8, %v5101_v8  ;;  %v5029_v13 = vand.u32 %v5014_v9, %v15162_v43 }
 0x299   : > { %v5120_v15 = vand.u32 %v5103_v10, %v15162_v43 }
 0x29a   : > { %v5174_v31 = vpop.permute.xlu1 %5173 }
 0x29c   : > { %12221 = vmatmul.mubr.msk.bf16.vlgmr.msra.gmra.mrb[0].mxu0 %vm891_vm1, %v4584_v21 }
 0x29d   : > { %4683 = vmatpush1.bf16.msra.mxu0 %v4677_v11  ;;  %4714 = vmatprep.mubr.bf16.mxu0 %v14751_v5  ;;  %v5102_v11 = vpack.c.bf16 %v5100_v17, %v5100_v17  ;;  %v14598_v17 = vld [vmem:[%s17992_s6 + $0x18] ss:$52 sps:$4 sm:$0xff]  }
 0x29e   : > { %4770 = vmatprep.subr.bf16.mxu0 %v4768_v18  ;;  %v5024_v18 = vpop.permute.xlu0 %5023 }
 0x29f   : > { %v5117_v29 = vand.u32 %v5102_v11, %v15162_v43  ;;  %v14568_v43 = vld [vmem:[%s17989_s8 + $0xf4] ss:$8 sps:$4 sm:$0xff]   ;;  %s18015_s8 = sld [smem:[#allocation18_spill]] }
 0x2a0   : > { %5413 = vmatprep.subr.bf16.mxu1 %v14568_v43  ;;  %v14612_v43 = vld [vmem:[%s17992_s6 + $0xec] ss:$52 sps:$4 sm:$0xff]  }
 0x2a1   : > { %5414 = vmatpush1.bf16.msra.mxu1 %v14570_v26  ;;  %v14607_v26 = vld [vmem:[%s17992_s6 + $0xd8] ss:$52 sps:$4 sm:$0xff]  }
 0x2a2   : > { %v5112_v21 = vpop.permute.xlu0 %5111  ;;  %5859 = vmatprep.subr.bf16.mxu1 %v14576_v49  ;;  %v14642_v49 = vld [vmem:[%s17992_s6 + $0x164] ss:$52 sps:$4 sm:$0xff]  }
 0x2a6   : > { %v5179_v50 = vpop.permute.xlu0 %5178 }
 0x2a8   : > { %12223 = vmatmul.mubr.msk.bf16.vlgmr.msra.gmra.mrb[0].mxu0 %vm891_vm1, %v4672_v19 }
 0x2a9   : > { %4771 = vmatpush1.bf16.msra.mxu0 %v4765_v42  ;;  %4802 = vmatprep.mubr.bf16.mxu0 %v14751_v5 }
 0x2aa   : > { %4858 = vmatprep.subr.bf16.mxu0 %v4856_v27 }
 0x2b4   : > { %12225 = vmatmul.mubr.msk.bf16.vlgmr.msra.gmra.mrb[0].mxu0 %vm891_vm1, %v4760_v28  ;;  %v14588_v28 = vld [vmem:[%s17992_s6 + $0xe4] ss:$52 sps:$4 sm:$0xff]  }
 0x2b5   : > { %4859 = vmatpush1.bf16.msra.mxu0 %v4853_v37  ;;  %4890 = vmatprep.mubr.bf16.mxu0 %v14751_v5  ;;  %v14583_v37 = vld [vmem:[%s17992_s6 + $0xd0] ss:$52 sps:$4 sm:$0xff]  }
 0x2b6   : > { %4946 = vmatprep.subr.bf16.mxu0 %v4944_v52  ;;  %v14586_v52 = vld [vmem:[%s17992_s6 + $0xe0] ss:$52 sps:$4 sm:$0xff]  }
 0x2c0   : > { %12227 = vmatmul.mubr.msk.bf16.vlgmr.msra.gmra.mrb[0].mxu0 %vm891_vm1, %v4848_v4  ;;  %v16366_v4 = vld [vmem:[%s17993_s4] ss:$16 sps:$4 sm:$0xff]  }
 0x2c1   : > { %4947 = vmatpush1.bf16.msra.mxu0 %v4941_v6  ;;  %4978 = vmatprep.mubr.bf16.mxu0 %v14751_v5 }
 0x2c2   : > { %5034 = vmatprep.subr.bf16.mxu0 %v5032_v12 }
 0x2cc   : > { %12229 = vmatmul.mubr.msk.bf16.vlgmr.msra.gmra.mrb[0].mxu0 %vm891_vm1, %v4936_v20 }
 0x2cd   : > { %5035 = vmatpush1.bf16.msra.mxu0 %v5029_v13  ;;  %5066 = vmatprep.mubr.bf16.mxu0 %v14751_v5 }
 0x2ce   : > { %5122 = vmatprep.subr.bf16.mxu0 %v5120_v15 }
 0x2d8   : > { %12231 = vmatmul.mubr.msk.bf16.vlgmr.msra.gmra.mrb[0].mxu0 %vm891_vm1, %v5024_v18  ;;  %v14603_v18 = vld [vmem:[%s17992_s6 + $0x74] ss:$52 sps:$4 sm:$0xff]  }
 0x2d9   : > { %5123 = vmatpush1.bf16.msra.mxu0 %v5117_v29  ;;  %5154 = vmatprep.mubr.bf16.mxu0 %v14751_v5  ;;  %v14606_v29 = vld [vmem:[%s17992_s6 + $0x84] ss:$52 sps:$4 sm:$0xff]  }
 0x2da   : > { %5773 = vmatprep.subr.bf16.mxu0 %v14573_v48  ;;  %v14639_v48 = vld [vmem:[%s17992_s6 + $0xfc] ss:$52 sps:$4 sm:$0xff]  }
 0x2e4   : > { %12233 = vmatmul.mubr.msk.bf16.vlgmr.msra.gmra.mrb[0].mxu0 %vm891_vm1, %v5112_v21  ;;  %vm5769_vm1 = vcmask 523264   ;;  %v14601_v21 = vld [vmem:[%s17992_s6 + $0x70] ss:$52 sps:$4 sm:$0xff]  }
 0x2e5   : > { %5805 = vmatprep.mubr.bf16.mxu0 %v14751_v5  ;;  %5774 = vmatpush1.bf16.msra.mxu0 %v14571_v47  ;;  %v14634_v47 = vld [vmem:[%s17992_s6 + $0x90] ss:$52 sps:$4 sm:$0xff]  }
 0x2e6   : > { %5775 = vmatprep.subr.bf16.mxu0 %v14579_v51  ;;  %v14640_v51 = vld [vmem:[%s17992_s6 + $0x160] ss:$52 sps:$4 sm:$0xff]  }
 0x2e9   : > { %5776 = vmatpush1.bf16.msra.mxu0 %v14577_v1  ;;  %v14827_v1 = vmov 0.0  }
 0x2ea   : > { %5777 = vmatprep.subr.bf16.mxu0 %v14585_v35  ;;  %v14645_v35 = vld [vmem:[%s17992_s6 + $0x100] ss:$52 sps:$4 sm:$0xff]  }
 0x2ed   : > { %5778 = vmatpush1.bf16.msra.mxu0 %v14583_v37 }
 0x2ee   : > { %5779 = vmatprep.subr.bf16.mxu0 %v14591_v57 }
 0x2f1   : > { %5780 = vmatpush1.bf16.msra.mxu0 %v14589_v59 }
 0x2f2   : > { %5816 = vmatprep.subr.bf16.mxu0 %v14597_v63 }
 0x3b7   : > { %v5156_v14 = vpop.f32.mrb[0].mxu0 }
 0x3b8   : > { %v5181_v32 = vadd.f32 %v5174_v31, %v5156_v14  ;;  %v5158_v23 = vpop.f32.mrb[1].mxu0  ;;  %v14615_v14 = vld [vmem:[%s17992_s6 + $0x144] ss:$52 sps:$4 sm:$0xff]  }
 0x3b9   : > { %v5182_v33 = vadd.f32 %v5174_v31, %v5158_v23  ;;  %v5160_v22 = vpop.f32.mrb[2].mxu0  ;;  %v14610_v31 = vld [vmem:[%s17992_s6 + $0xe8] ss:$52 sps:$4 sm:$0xff]   ;;  %v14616_v23 = vld [vmem:[%s17992_s6 + $0x150] ss:$52 sps:$4 sm:$0xff]  }
 0x3ba   : > { %v5183_v36 = vadd.f32 %v5179_v50, %v5160_v22  ;;  %v5162_v38 = vpop.f32.mrb[3].mxu0  ;;  %v5185_v19 = vmax.f32 %v5181_v32, 0.0  ;;  %v14613_v32 = vld [vmem:[%s17992_s6 + $0x140] ss:$52 sps:$4 sm:$0xff]  }
 0x3bb   : > { %v5184_v41 = vadd.f32 %v5179_v50, %v5162_v38  ;;  %v5186_v27 = vmax.f32 %v5182_v33, 0.0  ;;  %v14618_v50 = vld [vmem:[%s17992_s6 + $0x154] ss:$52 sps:$4 sm:$0xff]   ;;  %v14621_v33 = vld [vmem:[%s17992_s6 + $0x24] ss:$52 sps:$4 sm:$0xff]  }
 0x3bc   : > { %v5187_v42 = vmax.f32 %v5183_v36, 0.0  ;;  %v14619_v22 = vld [vmem:[%s17992_s6 + $0x20] ss:$52 sps:$4 sm:$0xff]   ;;  %v14622_v38 = vld [vmem:[%s17992_s6 + $0x88] ss:$52 sps:$4 sm:$0xff]  }
 0x3bd   : > { %v5188_v44 = vmax.f32 %v5184_v41, 0.0  ;;  %v14624_v36 = vld [vmem:[%s17992_s6 + $0x8c] ss:$52 sps:$4 sm:$0xff]   ;;  %v14627_v41 = vld [vmem:[%s17992_s6 + $0xf4] ss:$52 sps:$4 sm:$0xff]  }
 0x3be   : > { %v5189_v45 = vpack.c.bf16 %v5187_v42, %v5185_v19  ;;  %v14625_v19 = vld [vmem:[%s17992_s6 + $0xf0] ss:$52 sps:$4 sm:$0xff]  }
 0x3bf   : > { %v5190_v46 = vpack.c.bf16 %v5188_v44, %v5186_v27  ;;  %v14630_v42 = vld [vmem:[%s17992_s6 + $0x15c] ss:$52 sps:$4 sm:$0xff]   ;;  %v14628_v27 = vld [vmem:[%s17992_s6 + $0x158] ss:$52 sps:$4 sm:$0xff]  }
 0x3c0   : > { %v14633_v44 = vld [vmem:[%s17992_s6 + $0x2c] ss:$52 sps:$4 sm:$0xff]  }
 0x3c1   : > { %5415 = vmatprep.mubr.bf16.mxu1 %v5190_v46  ;;  %v14636_v46 = vld [vmem:[%s17992_s6 + $0x94] ss:$52 sps:$4 sm:$0xff]  }
 0x3c2   : > { %5416 = vmatmul.mubr.bf16.vlgmr.msra.gmra.mrb[0].mxu1 %v5189_v45  ;;  %v14631_v45 = vld [vmem:[%s17992_s6 + $0x28] ss:$52 sps:$4 sm:$0xff]  }
 0x3c3   : > { %5891 = vmatprep.mubr.bf16.mxu1 %v14751_v5  ;;  %5860 = vmatpush1.bf16.msra.mxu1 %v14574_v39  ;;  %v14637_v39 = vld [vmem:[%s17992_s6 + $0xf8] ss:$52 sps:$4 sm:$0xff]  }
 0x3c4   : > { %5861 = vmatprep.subr.bf16.mxu1 %v14582_v53  ;;  %v14643_v53 = vld [vmem:[%s17992_s6 + $0x30] ss:$52 sps:$4 sm:$0xff]  }
 0x3c7   : > { %5862 = vmatpush1.bf16.msra.mxu1 %v14580_v54  ;;  %v14644_v54 = vld [vmem:[%s17992_s6 + $0x98] ss:$52 sps:$4 sm:$0xff]  }
 0x3c8   : > { %5863 = vmatprep.subr.bf16.mxu1 %v14588_v28  ;;  %v14646_v28 = vld [vmem:[%s17992_s6 + $0x168] ss:$52 sps:$4 sm:$0xff]   ;;  %s17913_s6 = smov 108  }
 0x3cb   : > { %5864 = vmatpush1.bf16.msra.mxu1 %v14586_v52 }
 0x3cc   : > { %5865 = vmatprep.subr.bf16.mxu1 %v14594_v58 }
 0x3cf   : > { %5866 = vmatpush1.bf16.msra.mxu1 %v14592_v60 }
 0x3d0   : > { %5902 = vmatprep.subr.bf16.mxu1 %v14600_v2 }
 0x495   : > { %v5417_v61 = vpop.f32.mrb[0].mxu1 }
 0x496   : > { %v5419_v62 = vpop.f32.mrb[1].mxu1 }
 0x497   : > { %v5421_v3 = vpop.f32.mrb[2].mxu1 }
 0x498   : > { %v14402_v25 = vpack.i.bf16 %v5421_v3, %v5417_v61  ;;  %v5423_v56 = vpop.f32.mrb[3].mxu1 }
 0x499   : > { %v14407_v0 = vpack.i.bf16 %v5423_v56, %v5419_v62 }
 0x49a   : > { %14403 = vrot.lane.b32.xlu1 %v14402_v25, %s17903_s0 }
 0x49e   : > { %14408 = vrot.lane.b32.xlu1 %v14407_v0, %s17903_s0  ;;  %v16515_v0 = vld [vmem:[%s17993_s4 + $0x20] ss:$16 sps:$4 sm:$0xff]   ;;  %s18009_s0 = smov 116  }
 0x4a2   : > { %6099 = vrot.lane.b32.xlu1 %v16366_v4, %s17985_s7 }
 0x4a6   : > { %6218 = vrot.lane.b32.xlu1 %v16366_v4, %s17994_s24 }
 0x50c   : > { %v14404_v6 = vpop.permute.xlu1 %14403 }
 0x50d   : > { %v14406_v12 = vunpack.i.h.bf16 %v14404_v6  ;;  %v14405_v55 = vunpack.i.l.bf16 %v14404_v6 }
 0x50f   : > { %v5435_v9 = vmax.f32 %v5421_v3, %v14406_v12  ;;  %v5434_v10 = vmax.f32 %v5417_v61, %v14405_v55 }
 0x510   : > { %v14409_v7 = vpop.permute.xlu1 %14408 }
 0x511   : > { %v14411_v30 = vunpack.i.h.bf16 %v14409_v7  ;;  %v14410_v8 = vunpack.i.l.bf16 %v14409_v7 }
 0x513   : > { %v5445_v40 = vmax.f32 %v5423_v56, %v14411_v30  ;;  %v5444_v20 = vmax.f32 %v5419_v62, %v14410_v8 }
 0x514   : > { %v6100_v37 = vpop.permute.xlu1 %6099 }
 0x515   : > { %v5447_v13 = vmax.f32 %v5435_v9, %v5445_v40  ;;  %v5446_v15 = vmax.f32 %v5434_v10, %v5444_v20 }
 0x517   : > { %v16378_v11 = vpack.c.bf16 %v5447_v13, %v5446_v15 }
 0x519   : > { %12318 = vmatmul.mubr.msk.bf16.vlgmr.msra.gmra.mrb[4].mxu0 %vm5769_vm1, %v16378_v11  ;;  %12320 = vmatmul.mubr.msk.bf16.vlgmr.msra.gmra.mrb[4].mxu1 %vm5769_vm1, %v16378_v11 }
 0x51a   : > { %5817 = vmatpush1.bf16.msra.mxu0 %v14595_v16  ;;  %5903 = vmatpush1.bf16.msra.mxu1 %v14598_v17  ;;  %v16554_v16 = vld [vmem:[%s17993_s4 + $0x4] ss:$16 sps:$4 sm:$0xff]  }
 0x51b   : > { %5818 = vmatprep.subr.bf16.mxu0 %v14603_v18  ;;  %5904 = vmatprep.subr.bf16.mxu1 %v14606_v29 }
 0x51c   : > { %5848 = vmatprep.mubr.bf16.mxu0 %v14751_v5  ;;  %5934 = vmatprep.mubr.bf16.mxu1 %v14751_v5 }
 0x51e   : > { %5819 = vmatpush1.bf16.msra.mxu0 %v14601_v21  ;;  %5905 = vmatpush1.bf16.msra.mxu1 %v14604_v34 }
 0x51f   : > { %5820 = vmatprep.subr.bf16.mxu0 %v14609_v24  ;;  %5906 = vmatprep.subr.bf16.mxu1 %v14612_v43  ;;  %v16573_v24 = vld [vmem:[%s17993_s4 + $0x24] ss:$16 sps:$4 sm:$0xff]  }
 0x522   : > { %5821 = vmatpush1.bf16.msra.mxu0 %v14607_v26  ;;  %5907 = vmatpush1.bf16.msra.mxu1 %v14610_v31 }
 0x523   : > { %5822 = vmatprep.subr.bf16.mxu0 %v14615_v14  ;;  %5908 = vmatprep.subr.bf16.mxu1 %v14618_v50 }
 0x526   : > { %5823 = vmatpush1.bf16.msra.mxu0 %v14613_v32  ;;  %5909 = vmatpush1.bf16.msra.mxu1 %v14616_v23 }
 0x527   : > { %5945 = vmatprep.subr.bf16.mxu1 %v14621_v33 }
 0x529   : > { %12319 = vmatmul.mubr.msk.bf16.vlgmr.msra.gmra.mrb[8].mxu0 %vm5769_vm1, %v16378_v11  ;;  %12321 = vmatmul.mubr.msk.bf16.vlgmr.msra.gmra.mrb[8].mxu1 %vm5769_vm1, %v16378_v11 }
 0x52a   : > { %5946 = vmatpush1.bf16.msra.mxu1 %v14619_v22  ;;  %5977 = vmatprep.mubr.bf16.mxu1 %v14751_v5 }
 0x52b   : > { %5947 = vmatprep.subr.bf16.mxu1 %v14624_v36  ;;  %7954 = vmatprep.mubr.bf16.mxu0 %v14751_v5  ;;  %v16608_v36 = vld [vmem:[%s17993_s4 + $0x8] ss:$16 sps:$4 sm:$0xff]  }
 0x52e   : > { %5948 = vmatpush1.bf16.msra.mxu1 %v14622_v38 }
 0x52f   : > { %5949 = vmatprep.subr.bf16.mxu1 %v14627_v41 }
 0x532   : > { %5950 = vmatpush1.bf16.msra.mxu1 %v14625_v19  ;;  %v16625_v19 = vld [vmem:[%s17993_s4 + $0x28] ss:$16 sps:$4 sm:$0xff]  }
 0x533   : > { %5951 = vmatprep.subr.bf16.mxu1 %v14630_v42  ;;  %v7742_v42 = vld [vmem:[%s17998_s9 + $0x8] sm:$0xff] }
 0x536   : > { %5952 = vmatpush1.bf16.msra.mxu1 %v14628_v27  ;;  %v7744_v27 = vld [vmem:[%s17998_s9 + $0x18] sm:$0xff] }
 0x537   : > { %5988 = vmatprep.subr.bf16.mxu1 %v14633_v44  ;;  %v7741_v44 = vld [vmem:[%s17998_s9] sm:$0xff] }
 0x539   : > { %12322 = vmatmul.mubr.msk.bf16.vlgmr.msra.gmra.mrb[12].mxu1 %vm5769_vm1, %v16378_v11 }
 0x53a   : > { %5989 = vmatpush1.bf16.msra.mxu1 %v14631_v45  ;;  %6020 = vmatprep.mubr.bf16.mxu1 %v14751_v5  ;;  %v7743_v45 = vld [vmem:[%s17998_s9 + $0x10] sm:$0xff] }
 0x53b   : > { %5990 = vmatprep.subr.bf16.mxu1 %v14636_v46 }
 0x53e   : > { %5991 = vmatpush1.bf16.msra.mxu1 %v14634_v47 }
 0x53f   : > { %5992 = vmatprep.subr.bf16.mxu1 %v14639_v48  ;;  %v6219_v48 = vpop.permute.xlu1 %6218 }
 0x542   : > { %5993 = vmatpush1.bf16.msra.mxu1 %v14637_v39 }
 0x543   : > { %5994 = vmatprep.subr.bf16.mxu1 %v14642_v49 }
 0x546   : > { %5995 = vmatpush1.bf16.msra.mxu1 %v14640_v51 }
 0x547   : > { %12925 = vmatprep.subr.bf16.mxu1 %v14827_v1 }
 0x549   : > { %12323 = vmatmul.mubr.msk.bf16.vlgmr.msra.gmra.mrb[16].mxu1 %vm5769_vm1, %v16378_v11 }
 0x54a   : > { %12926 = vmatpush3.bf16.msra.mxu1 %v14643_v53  ;;  %12933 = vmatprep.mubr.msk.bf16.mxu1 %vm14828_vm7, %v14827_v1 }
 0x54b   : > { %12927 = vmatprep.subr.bf16.mxu1 %v14827_v1 }
 0x54e   : > { %12928 = vmatpush3.bf16.msra.mxu1 %v14644_v54 }
 0x54f   : > { %12929 = vmatprep.subr.bf16.mxu1 %v14827_v1 }
 0x552   : > { %12930 = vmatpush3.bf16.msra.mxu1 %v14645_v35 }
 0x553   : > { %12931 = vmatprep.subr.bf16.mxu1 %v14827_v1 }
 0x556   : > { %12932 = vmatpush3.bf16.msra.mxu1 %v14646_v28 }
 0x559   : > { %12934 = vmatmul.mubr.msk.bf16.vlgmr.msra.gmra.mrb[20].mxu1 %vm5769_vm1, %v16378_v11 }
 0x55a   : > { %12939 = vmatprep.mubr.msk.bf16.mxu1 %vm6107_vm5, %v6100_v37 }
 0x5ec   : > { %v5807_v52 = vpop.f32.mrb[4].mxu0  ;;  %v5893_v57 = vpop.f32.mrb[4].mxu1 }
 0x5ed   : > { %v5809_v58 = vpop.f32.mrb[5].mxu0  ;;  %v5895_v59 = vpop.f32.mrb[5].mxu1 }
 0x5ee   : > { %v5811_v60 = vpop.f32.mrb[6].mxu0  ;;  %v5897_v61 = vpop.f32.mrb[6].mxu1 }
 0x5ef   : > { %v16502_v62 = vpack.c.bf16 %v5811_v60, %v5807_v52  ;;  %v16504_v63 = vpack.c.bf16 %v5897_v61, %v5893_v57  ;;  %v5813_v2 = vpop.f32.mrb[7].mxu0  ;;  %v5899_v3 = vpop.f32.mrb[7].mxu1 }
 0x5f0   : > { %v16506_v25 = vpack.c.bf16 %v5813_v2, %v5809_v58  ;;  %v16508_v56 = vpack.c.bf16 %v5899_v3, %v5895_v59 }
 0x5f1   : > { %6104 = vrot.lane.b32.xlu0 %v16502_v62, %s17995_s30 }
 0x5f2   : > { %6286 = vrot.lane.b32.xlu1 %v16506_v25, %s17995_s30 }
 0x5f5   : > { %6101 = vrot.lane.b32.xlu0 %v16515_v0, %s17985_s7 }
 0x5f6   : > { %6283 = vrot.lane.b32.xlu1 %v16515_v0, %s17980_s10 }
 0x5f9   : > { %6220 = vrot.lane.b32.xlu0 %v16515_v0, %s17994_s24 }
 0x5fa   : > { %6350 = vrot.lane.b32.xlu1 %v16515_v0, %s17995_s30 }
 0x5fc   : > { %v5850_v6 = vpop.f32.mrb[8].mxu0  ;;  %v5936_v12 = vpop.f32.mrb[8].mxu1 }
 0x5fd   : > { %v5852_v55 = vpop.f32.mrb[9].mxu0  ;;  %v5938_v7 = vpop.f32.mrb[9].mxu1  ;;  %6281 = vrot.lane.b32.xlu0 %v16366_v4, %s17980_s10 }
 0x5fe   : > { %v5940_v30 = vpop.f32.mrb[10].mxu1  ;;  %v5854_v8 = vpop.f32.mrb[10].mxu0  ;;  %6411 = vrot.lane.b32.xlu1 %v16366_v4, %s17996_s5 }
 0x5ff   : > { %v16531_v9 = vpack.c.bf16 %v5940_v30, %v5936_v12  ;;  %v16533_v10 = vpack.c.bf16 %v5854_v8, %v5850_v6  ;;  %v5942_v40 = vpop.f32.mrb[11].mxu1  ;;  %v5856_v20 = vpop.f32.mrb[11].mxu0 }
 0x600   : > { %v16535_v13 = vpack.c.bf16 %v5942_v40, %v5938_v7  ;;  %v16537_v15 = vpack.c.bf16 %v5856_v20, %v5852_v55 }
 0x601   : > { %6348 = vrot.lane.b32.xlu0 %v16366_v4, %s17995_s30 }
 0x602   : > { %6478 = vrot.lane.b32.xlu1 %v16366_v4, %s17973_s2 }
 0x605   : > { %6416 = vrot.lane.b32.xlu0 %v16533_v10, %s17995_s30 }
 0x606   : > { %6546 = vrot.lane.b32.xlu1 %v16537_v15, %s17995_s30 }
 0x609   : > { %6413 = vrot.lane.b32.xlu0 %v16515_v0, %s17996_s5 }
 0x60a   : > { %6543 = vrot.lane.b32.xlu1 %v16515_v0, %s17997_s28 }
 0x60c   : > { %v5979_v17 = vpop.f32.mrb[12].mxu1 }
 0x60d   : > { %v5981_v11 = vpop.f32.mrb[13].mxu1  ;;  %6480 = vrot.lane.b32.xlu0 %v16515_v0, %s17973_s2 }
 0x60e   : > { %v5983_v18 = vpop.f32.mrb[14].mxu1  ;;  %6681 = vrot.lane.b32.xlu1 %v16554_v16, %s17985_s7 }
 0x60f   : > { %v16560_v29 = vpack.c.bf16 %v5983_v18, %v5979_v17  ;;  %v5985_v21 = vpop.f32.mrb[15].mxu1 }
 0x610   : > { %v16562_v34 = vpack.c.bf16 %v5985_v21, %v5981_v11 }
 0x611   : > { %6541 = vrot.lane.b32.xlu0 %v16366_v4, %s17997_s28 }
 0x612   : > { %6748 = vrot.lane.b32.xlu1 %v16554_v16, %s17994_s24 }
 0x615   : > { %6686 = vrot.lane.b32.xlu0 %v16504_v63, %s17995_s30 }
 0x616   : > { %6816 = vrot.lane.b32.xlu1 %v16508_v56, %s17995_s30 }
 0x619   : > { %6683 = vrot.lane.b32.xlu0 %v16573_v24, %s17985_s7 }
 0x61a   : > { %6813 = vrot.lane.b32.xlu1 %v16573_v24, %s17980_s10 }
 0x61c   : > { %v6022_v43 = vpop.f32.mrb[16].mxu1 }
 0x61d   : > { %v6024_v26 = vpop.f32.mrb[17].mxu1  ;;  %6750 = vrot.lane.b32.xlu0 %v16573_v24, %s17994_s24 }
 0x61e   : > { %v6026_v31 = vpop.f32.mrb[18].mxu1  ;;  %6880 = vrot.lane.b32.xlu1 %v16573_v24, %s17995_s30 }
 0x61f   : > { %v16585_v14 = vpack.c.bf16 %v6026_v31, %v6022_v43  ;;  %v6028_v50 = vpop.f32.mrb[19].mxu1 }
 0x620   : > { %v16587_v32 = vpack.c.bf16 %v6028_v50, %v6024_v26 }
 0x621   : > { %6811 = vrot.lane.b32.xlu0 %v16554_v16, %s17980_s10 }
 0x622   : > { %6941 = vrot.lane.b32.xlu1 %v16554_v16, %s17996_s5 }
 0x625   : > { %6878 = vrot.lane.b32.xlu0 %v16554_v16, %s17995_s30 }
 0x626   : > { %7008 = vrot.lane.b32.xlu1 %v16554_v16, %s17973_s2 }
 0x629   : > { %6946 = vrot.lane.b32.xlu0 %v16531_v9, %s17995_s30 }
 0x62a   : > { %7076 = vrot.lane.b32.xlu1 %v16535_v13, %s17995_s30 }
 0x62c   : > { %v6065_v23 = vpop.f32.mrb[20].mxu1 }
 0x62d   : > { %v12935_v33 = vpop.f32.mrb[21].mxu1  ;;  %6943 = vrot.lane.b32.xlu0 %v16573_v24, %s17996_s5 }
 0x62e   : > { %v6068_v22 = vpop.f32.mrb[22].mxu1  ;;  %7073 = vrot.lane.b32.xlu1 %v16573_v24, %s17997_s28 }
 0x62f   : > { %v16610_v38 = vpack.c.bf16 %v6068_v22, %v6065_v23  ;;  %v12936_v41 = vpop.f32.mrb[23].mxu1  ;;  %v14653_v22 = vld [vmem:[%s17993_s4 + $0xc] ss:$16 sps:$4 sm:$0xff]  }
 0x630   : > { %v14654_v41 = vld [vmem:[%s17993_s4 + $0x2c] ss:$16 sps:$4 sm:$0xff]  }
 0x631   : > { %7010 = vrot.lane.b32.xlu0 %v16573_v24, %s17973_s2 }
 0x632   : > { %7211 = vrot.lane.b32.xlu1 %v16608_v36, %s17985_s7 }
 0x635   : > { %7071 = vrot.lane.b32.xlu0 %v16554_v16, %s17997_s28 }
 0x636   : > { %7278 = vrot.lane.b32.xlu1 %v16608_v36, %s17994_s24 }
 0x639   : > { %7216 = vrot.lane.b32.xlu0 %v16560_v29, %s17995_s30 }
 0x63a   : > { %7346 = vrot.lane.b32.xlu1 %v16562_v34, %s17995_s30 }
 0x63d   : > { %7213 = vrot.lane.b32.xlu0 %v16625_v19, %s17985_s7 }
 0x63e   : > { %7343 = vrot.lane.b32.xlu1 %v16625_v19, %s17980_s10 }
 0x641   : > { %7280 = vrot.lane.b32.xlu0 %v16625_v19, %s17994_s24 }
 0x642   : > { %7410 = vrot.lane.b32.xlu1 %v16625_v19, %s17995_s30 }
 0x645   : > { %7341 = vrot.lane.b32.xlu0 %v16608_v36, %s17980_s10 }
 0x646   : > { %7471 = vrot.lane.b32.xlu1 %v16608_v36, %s17996_s5 }
 0x649   : > { %7408 = vrot.lane.b32.xlu0 %v16608_v36, %s17995_s30 }
 0x64a   : > { %7538 = vrot.lane.b32.xlu1 %v16608_v36, %s17973_s2 }
 0x64d   : > { %7476 = vrot.lane.b32.xlu0 %v16585_v14, %s17995_s30 }
 0x64e   : > { %7606 = vrot.lane.b32.xlu1 %v16587_v32, %s17995_s30 }
 0x651   : > { %7473 = vrot.lane.b32.xlu0 %v16625_v19, %s17996_s5 }
 0x652   : > { %7603 = vrot.lane.b32.xlu1 %v16625_v19, %s17997_s28 }
 0x655   : > { %7540 = vrot.lane.b32.xlu0 %v16625_v19, %s17973_s2 }
 0x656   : > { %7752 = vperm.xlu1 %14400, %v7742_v42   ;;  %v14658_v42 = vld [vmem:[%s17999_s29 + $0x18] sm:$0xff]  }
 0x659   : > { %7601 = vrot.lane.b32.xlu0 %v16608_v36, %s17997_s28 }
 0x65a   : > { %7762 = vperm.xlu1 %14400, %v7744_v27  }
 0x65d   : > { %7747 = vperm.xlu0 %14401, %v7741_v44  }
 0x661   : > { %7757 = vperm.xlu0 %14401, %v7743_v45  }
 0x663   : > { %v6105_v46 = vpop.permute.xlu0 %6104 }
 0x664   : > { %12937 = vmatprep.subr.bf16.mxu1 %v6105_v46  ;;  %v6287_v39 = vpop.permute.xlu1 %6286 }
 0x665   : > { %12938 = vmatpush3.bf16.msra.mxu1 %v6105_v46 }
 0x666   : > { %12943 = vmatprep.subr.bf16.mxu1 %v16502_v62 }
 0x667   : > { %v6102_v47 = vpop.permute.xlu0 %6101 }
 0x668   : > { %12940 = vmatmul.mubr.msk.bf16.vlgmr.msra.gmra.mrb[24].mxu1 %vm6107_vm5, %v6102_v47  ;;  %v6284_v53 = vpop.permute.xlu1 %6283 }
 0x669   : > { %12944 = vmatpush3.bf16.msra.mxu1 %v16502_v62  ;;  %12945 = vmatprep.mubr.msk.bf16.mxu1 %vm6107_vm5, %v16366_v4 }
 0x66a   : > { %12949 = vmatprep.subr.bf16.mxu1 %v16506_v25 }
 0x66b   : > { %v6221_v49 = vpop.permute.xlu0 %6220 }
 0x66c   : > { %v6351_v35 = vpop.permute.xlu1 %6350 }
 0x66f   : > { %v6282_v51 = vpop.permute.xlu0 %6281 }
 0x670   : > { %v6412_v28 = vpop.permute.xlu1 %6411 }
 0x673   : > { %v6349_v4 = vpop.permute.xlu0 %6348 }
 0x674   : > { %12946 = vmatmul.mubr.msk.bf16.vlgmr.msra.gmra.mrb[24].mxu1 %vm6107_vm5, %v16515_v0  ;;  %v6479_v37 = vpop.permute.xlu1 %6478 }
 0x675   : > { %12950 = vmatpush3.bf16.msra.mxu1 %v16506_v25  ;;  %12951 = vmatprep.mubr.msk.bf16.mxu1 %vm6107_vm5, %v6219_v48 }
 0x676   : > { %12955 = vmatprep.subr.bf16.mxu1 %v6287_v39 }
 0x677   : > { %v6417_v54 = vpop.permute.xlu0 %6416 }
 0x678   : > { %v6547_v57 = vpop.permute.xlu1 %6546 }
 0x67b   : > { %v6414_v52 = vpop.permute.xlu0 %6413 }
 0x67c   : > { %v6544_v60 = vpop.permute.xlu1 %6543 }
 0x67f   : > { %v6481_v58 = vpop.permute.xlu0 %6480 }
 0x680   : > { %12952 = vmatmul.mubr.msk.bf16.vlgmr.msra.gmra.mrb[24].mxu1 %vm6107_vm5, %v6221_v49  ;;  %v6682_v62 = vpop.permute.xlu1 %6681 }
 0x681   : > { %12956 = vmatpush3.bf16.msra.mxu1 %v6287_v39  ;;  %12957 = vmatprep.mubr.msk.bf16.mxu1 %vm6107_vm5, %v6282_v51 }
 0x682   : > { %12961 = vmatprep.subr.bf16.mxu1 %v16533_v10 }
 0x683   : > { %v6542_v59 = vpop.permute.xlu0 %6541 }
 0x684   : > { %v6749_v2 = vpop.permute.xlu1 %6748 }
 0x687   : > { %v6687_v61 = vpop.permute.xlu0 %6686 }
 0x688   : > { %v6817_v25 = vpop.permute.xlu1 %6816 }
 0x68b   : > { %v6684_v3 = vpop.permute.xlu0 %6683 }
 0x68c   : > { %12958 = vmatmul.mubr.msk.bf16.vlgmr.msra.gmra.mrb[24].mxu1 %vm6107_vm5, %v6284_v53  ;;  %v6814_v12 = vpop.permute.xlu1 %6813 }
 0x68d   : > { %12962 = vmatpush3.bf16.msra.mxu1 %v16533_v10  ;;  %12963 = vmatprep.mubr.msk.bf16.mxu1 %vm6107_vm5, %v6349_v4 }
 0x68e   : > { %12967 = vmatprep.subr.bf16.mxu1 %v6417_v54 }
 0x698   : > { %12964 = vmatmul.mubr.msk.bf16.vlgmr.msra.gmra.mrb[24].mxu1 %vm6107_vm5, %v6351_v35 }
 0x699   : > { %12968 = vmatpush3.bf16.msra.mxu1 %v6417_v54  ;;  %12969 = vmatprep.mubr.msk.bf16.mxu1 %vm6107_vm5, %v6412_v28 }
 0x69a   : > { %12973 = vmatprep.subr.bf16.mxu1 %v16537_v15 }
 0x6a4   : > { %12970 = vmatmul.mubr.msk.bf16.vlgmr.msra.gmra.mrb[24].mxu1 %vm6107_vm5, %v6414_v52 }
 0x6a5   : > { %12974 = vmatpush3.bf16.msra.mxu1 %v16537_v15  ;;  %12975 = vmatprep.mubr.msk.bf16.mxu1 %vm6107_vm5, %v6479_v37 }
 0x6a6   : > { %12979 = vmatprep.subr.bf16.mxu1 %v6547_v57 }
 0x6b0   : > { %12976 = vmatmul.mubr.msk.bf16.vlgmr.msra.gmra.mrb[24].mxu1 %vm6107_vm5, %v6481_v58 }
 0x6b1   : > { %12980 = vmatpush3.bf16.msra.mxu1 %v6547_v57  ;;  %12981 = vmatprep.mubr.msk.bf16.mxu1 %vm6107_vm5, %v6542_v59 }
 0x6b2   : > { %12985 = vmatprep.subr.bf16.mxu1 %v16504_v63 }
 0x6bc   : > { %12982 = vmatmul.mubr.msk.bf16.vlgmr.msra.gmra.mrb[24].mxu1 %vm6107_vm5, %v6544_v60 }
 0x6bd   : > { %12986 = vmatpush3.bf16.msra.mxu1 %v16504_v63  ;;  %12987 = vmatprep.mubr.msk.bf16.mxu1 %vm6107_vm5, %v16554_v16  ;;  %v6751_v63 = vpop.permute.xlu0 %6750 }
 0x6be   : > { %12991 = vmatprep.subr.bf16.mxu1 %v6687_v61 }
 0x6c1   : > { %v6812_v0 = vpop.permute.xlu0 %6811 }
 0x6c5   : > { %v6879_v6 = vpop.permute.xlu0 %6878 }
 0x6c8   : > { %12988 = vmatmul.mubr.msk.bf16.vlgmr.msra.gmra.mrb[24].mxu1 %vm6107_vm5, %v16573_v24 }
 0x6c9   : > { %12992 = vmatpush3.bf16.msra.mxu1 %v6687_v61  ;;  %12993 = vmatprep.mubr.msk.bf16.mxu1 %vm6107_vm5, %v6682_v62  ;;  %v6947_v55 = vpop.permute.xlu0 %6946 }
 0x6ca   : > { %12997 = vmatprep.subr.bf16.mxu1 %v16508_v56 }
 0x6cd   : > { %v6944_v8 = vpop.permute.xlu0 %6943 }
 0x6d4   : > { %12994 = vmatmul.mubr.msk.bf16.vlgmr.msra.gmra.mrb[24].mxu1 %vm6107_vm5, %v6684_v3 }
 0x6d5   : > { %12998 = vmatpush3.bf16.msra.mxu1 %v16508_v56  ;;  %12999 = vmatprep.mubr.msk.bf16.mxu1 %vm6107_vm5, %v6749_v2  ;;  %v6881_v56 = vpop.permute.xlu1 %6880 }
 0x6d6   : > { %13003 = vmatprep.subr.bf16.mxu1 %v6817_v25 }
 0x6d9   : > { %v6942_v7 = vpop.permute.xlu1 %6941 }
 0x6dd   : > { %v7009_v30 = vpop.permute.xlu1 %7008 }
 0x6e0   : > { %13000 = vmatmul.mubr.msk.bf16.vlgmr.msra.gmra.mrb[24].mxu1 %vm6107_vm5, %v6751_v63  ;;  %v14659_v63 = vld [vmem:[%s18000_s25] ss:$8 sps:$4 sm:$0xff]  }
 0x6e1   : > { %13004 = vmatpush3.bf16.msra.mxu1 %v6817_v25  ;;  %13005 = vmatprep.mubr.msk.bf16.mxu1 %vm6107_vm5, %v6812_v0  ;;  %v7077_v10 = vpop.permute.xlu1 %7076  ;;  %v14661_v25 = vld [vmem:[%s18000_s25 + $0x4] ss:$8 sps:$4 sm:$0xff]  }
 0x6e2   : > { %13009 = vmatprep.subr.bf16.mxu1 %v16531_v9  ;;  %7922 = vmatprep.subr.bf16.mxu0 %v14661_v25 }
 0x6e3   : > { %7923 = vmatpush1.bf16.msra.mxu0 %v14659_v63 }
 0x6e5   : > { %v7074_v20 = vpop.permute.xlu1 %7073 }
 0x6ec   : > { %13006 = vmatmul.mubr.msk.bf16.vlgmr.msra.gmra.mrb[24].mxu1 %vm6107_vm5, %v6814_v12 }
 0x6ed   : > { %13010 = vmatpush3.bf16.msra.mxu1 %v16531_v9  ;;  %13011 = vmatprep.mubr.msk.bf16.mxu1 %vm6107_vm5, %v6879_v6  ;;  %v7011_v9 = vpop.permute.xlu0 %7010 }
 0x6ee   : > { %13015 = vmatprep.subr.bf16.mxu1 %v6947_v55 }
 0x6f1   : > { %v7072_v40 = vpop.permute.xlu0 %7071 }
 0x6f5   : > { %v7217_v15 = vpop.permute.xlu0 %7216 }
 0x6f8   : > { %13012 = vmatmul.mubr.msk.bf16.vlgmr.msra.gmra.mrb[24].mxu1 %vm6107_vm5, %v6881_v56 }
 0x6f9   : > { %13016 = vmatpush3.bf16.msra.mxu1 %v6947_v55  ;;  %13017 = vmatprep.mubr.msk.bf16.mxu1 %vm6107_vm5, %v6942_v7  ;;  %v7214_v17 = vpop.permute.xlu0 %7213 }
 0x6fa   : > { %13021 = vmatprep.subr.bf16.mxu1 %v16535_v13 }
 0x6fd   : > { %v7281_v18 = vpop.permute.xlu0 %7280 }
 0x704   : > { %13018 = vmatmul.mubr.msk.bf16.vlgmr.msra.gmra.mrb[24].mxu1 %vm6107_vm5, %v6944_v8 }
 0x705   : > { %13022 = vmatpush3.bf16.msra.mxu1 %v16535_v13  ;;  %13023 = vmatprep.mubr.msk.bf16.mxu1 %vm6107_vm5, %v7009_v30  ;;  %v7212_v13 = vpop.permute.xlu1 %7211 }
 0x706   : > { %13027 = vmatprep.subr.bf16.mxu1 %v7077_v10 }
 0x709   : > { %v7279_v16 = vpop.permute.xlu1 %7278 }
 0x70d   : > { %v7347_v11 = vpop.permute.xlu1 %7346 }
 0x710   : > { %13024 = vmatmul.mubr.msk.bf16.vlgmr.msra.gmra.mrb[24].mxu1 %vm6107_vm5, %v7011_v9 }
 0x711   : > { %13028 = vmatpush3.bf16.msra.mxu1 %v7077_v10  ;;  %13029 = vmatprep.mubr.msk.bf16.mxu1 %vm6107_vm5, %v7072_v40  ;;  %v7344_v24 = vpop.permute.xlu1 %7343 }
 0x712   : > { %13033 = vmatprep.subr.bf16.mxu1 %v16560_v29 }
 0x71c   : > { %13030 = vmatmul.mubr.msk.bf16.vlgmr.msra.gmra.mrb[24].mxu1 %vm6107_vm5, %v7074_v20 }
 0x71d   : > { %13034 = vmatpush3.bf16.msra.mxu1 %v16560_v29  ;;  %13035 = vmatprep.mubr.msk.bf16.mxu1 %vm6107_vm5, %v16608_v36  ;;  %v7342_v29 = vpop.permute.xlu0 %7341 }
 0x71e   : > { %13039 = vmatprep.subr.bf16.mxu1 %v7217_v15 }
 0x721   : > { %v7409_v21 = vpop.permute.xlu0 %7408 }
 0x725   : > { %v7477_v43 = vpop.permute.xlu0 %7476 }
 0x728   : > { %13036 = vmatmul.mubr.msk.bf16.vlgmr.msra.gmra.mrb[24].mxu1 %vm6107_vm5, %v16625_v19  ;;  %v14656_v19 = vld [vmem:[%s17999_s29 + $0x8] sm:$0xff]  }
 0x729   : > { %13040 = vmatpush3.bf16.msra.mxu1 %v7217_v15  ;;  %13041 = vmatprep.mubr.msk.bf16.mxu1 %vm6107_vm5, %v7212_v13  ;;  %v7474_v50 = vpop.permute.xlu0 %7473 }
 0x72a   : > { %13045 = vmatprep.subr.bf16.mxu1 %v16562_v34 }
 0x734   : > { %13042 = vmatmul.mubr.msk.bf16.vlgmr.msra.gmra.mrb[24].mxu1 %vm6107_vm5, %v7214_v17 }
 0x735   : > { %13046 = vmatpush3.bf16.msra.mxu1 %v16562_v34  ;;  %13047 = vmatprep.mubr.msk.bf16.mxu1 %vm6107_vm5, %v7279_v16  ;;  %v7411_v34 = vpop.permute.xlu1 %7410 }
 0x736   : > { %13051 = vmatprep.subr.bf16.mxu1 %v7347_v11 }
 0x739   : > { %v7472_v26 = vpop.permute.xlu1 %7471 }
 0x73d   : > { %v7539_v31 = vpop.permute.xlu1 %7538 }
 0x740   : > { %13048 = vmatmul.mubr.msk.bf16.vlgmr.msra.gmra.mrb[24].mxu1 %vm6107_vm5, %v7281_v18 }
 0x741   : > { %13052 = vmatpush3.bf16.msra.mxu1 %v7347_v11  ;;  %13053 = vmatprep.mubr.msk.bf16.mxu1 %vm6107_vm5, %v7342_v29  ;;  %v7607_v23 = vpop.permute.xlu1 %7606 }
 0x742   : > { %13057 = vmatprep.subr.bf16.mxu1 %v16585_v14 }
 0x745   : > { %v7604_v36 = vpop.permute.xlu1 %7603 }
 0x749   : > { %v7753_v44 = vpop.permute.xlu1 %7752 }
 0x74c   : > { %13054 = vmatmul.mubr.msk.bf16.vlgmr.msra.gmra.mrb[24].mxu1 %vm6107_vm5, %v7344_v24 }
 0x74d   : > { %13058 = vmatpush3.bf16.msra.mxu1 %v16585_v14  ;;  %13059 = vmatprep.mubr.msk.bf16.mxu1 %vm6107_vm5, %v7409_v21  ;;  %v7541_v14 = vpop.permute.xlu0 %7540  ;;  %v7763_v39 = vpop.permute.xlu1 %7762 }
 0x74e   : > { %13063 = vmatprep.subr.bf16.mxu1 %v7477_v43 }
 0x751   : > { %v7602_v33 = vpop.permute.xlu0 %7601 }
 0x755   : > { %v7748_v27 = vpop.permute.xlu0 %7747 }
 0x758   : > { %13060 = vmatmul.mubr.msk.bf16.vlgmr.msra.gmra.mrb[24].mxu1 %vm6107_vm5, %v7411_v34 }
 0x759   : > { %13064 = vmatpush3.bf16.msra.mxu1 %v7477_v43  ;;  %13065 = vmatprep.mubr.msk.bf16.mxu1 %vm6107_vm5, %v7472_v26  ;;  %v7758_v45 = vpop.permute.xlu0 %7757 }
 0x75a   : > { %13069 = vmatprep.subr.bf16.mxu1 %v16587_v32 }
 0x764   : > { %13066 = vmatmul.mubr.msk.bf16.vlgmr.msra.gmra.mrb[24].mxu1 %vm6107_vm5, %v7474_v50 }
 0x765   : > { %13070 = vmatpush3.bf16.msra.mxu1 %v16587_v32  ;;  %13071 = vmatprep.mubr.msk.bf16.mxu1 %vm6107_vm5, %v7539_v31  ;;  %v14655_v32 = vld [vmem:[%s17999_s29] sm:$0xff]  }
 0x766   : > { %13075 = vmatprep.subr.bf16.mxu1 %v7607_v23 }
 0x770   : > { %13072 = vmatmul.mubr.msk.bf16.vlgmr.msra.gmra.mrb[24].mxu1 %vm6107_vm5, %v7541_v14 }
 0x771   : > { %13076 = vmatpush3.bf16.msra.mxu1 %v7607_v23  ;;  %13077 = vmatprep.mubr.msk.bf16.mxu1 %vm6107_vm5, %v7602_v33 }
 0x772   : > { %13081 = vmatprep.subr.bf16.mxu1 %v16610_v38 }
 0x77c   : > { %13078 = vmatmul.mubr.msk.bf16.vlgmr.msra.gmra.mrb[24].mxu1 %vm6107_vm5, %v7604_v36 }
 0x77d   : > { %13082 = vmatpush3.bf16.msra.mxu1 %v16610_v38  ;;  %13083 = vmatprep.mubr.msk.bf16.mxu1 %vm6107_vm5, %v14653_v22  ;;  %v14657_v38 = vld [vmem:[%s17999_s29 + $0x10] sm:$0xff]  }
 0x77e   : > { %13087 = vmatprep.subr.bf16.mxu1 %v14655_v32 }
 0x788   : > { %13084 = vmatmul.mubr.msk.bf16.vlgmr.msra.gmra.mrb[24].mxu1 %vm6107_vm5, %v14654_v41  ;;  %v16799_v41 = vld [vmem:[%s18001_s1 + $0x30] ss:$12 sps:$4 sm:$0xff]  }
 0x789   : > { %13088 = vmatpush3.bf16.msra.mxu1 %v14655_v32 }
 0x78a   : > { %13089 = vmatprep.subr.bf16.mxu1 %v14656_v19 }
 0x78d   : > { %13090 = vmatpush3.bf16.msra.mxu1 %v14656_v19 }
 0x78e   : > { %13091 = vmatprep.subr.bf16.mxu1 %v14657_v38 }
 0x791   : > { %13092 = vmatpush3.bf16.msra.mxu1 %v14657_v38 }
 0x792   : > { %13093 = vmatprep.subr.bf16.mxu1 %v14658_v42 }
 0x795   : > { %13094 = vmatpush3.bf16.msra.mxu1 %v14658_v42 }
 0x85b   : > { %v13085_v46 = vpop.f32.mrb[24].mxu1 }
 0x85c   : > { %v7767_v47 = vadd.f32 %v13085_v46, %v7758_v45  ;;  %v7722_v48 = vpop.f32.mrb[25].mxu1  ;;  %v16821_v45 = vld [vmem:[%s18001_s1 + $0x48] ss:$12 sps:$4 sm:$0xff]   ;;  %v16854_v46 = vld [vmem:[%s18001_s1 + $0x4] ss:$12 sps:$4 sm:$0xff]  }
 0x85d   : > { %v7765_v49 = vadd.f32 %v7748_v27, %v7722_v48  ;;  %v13086_v51 = vpop.f32.mrb[26].mxu1  ;;  %v16872_v48 = vld [vmem:[%s18001_s1 + $0x1c] ss:$12 sps:$4 sm:$0xff]  }
 0x85e   : > { %v7768_v4 = vadd.f32 %v13086_v51, %v7763_v39  ;;  %v7725_v53 = vpop.f32.mrb[27].mxu1  ;;  %v7771_v35 = vmax.f32 %v7767_v47, 0.0  ;;  %v16863_v47 = vld [vmem:[%s18001_s1 + $0x34] ss:$12 sps:$4 sm:$0xff]   ;;  %v16881_v39 = vld [vmem:[%s18001_s1 + $0x4c] ss:$12 sps:$4 sm:$0xff]  }
 0x85f   : > { %v7766_v54 = vadd.f32 %v7753_v44, %v7725_v53  ;;  %v7769_v37 = vmax.f32 %v7765_v49, 0.0  ;;  %v16812_v44 = vld [vmem:[%s18001_s1 + $0x18] ss:$12 sps:$4 sm:$0xff]   ;;  %v8907_v51 = vld [vmem:[%s18002_s11 + $0x10] sm:$0xff]  ;;  %v8906_v53 = vld [vmem:[%s18002_s11 + $0x8] sm:$0xff] }
 0x860   : > { %v7772_v28 = vmax.f32 %v7768_v4, 0.0  ;;  %v8905_v49 = vld [vmem:[%s18002_s11] sm:$0xff] }
 0x861   : > { %v7770_v52 = vmax.f32 %v7766_v54, 0.0  ;;  %v8909_v4 = vld [vmem:[%s18002_s11 + $0x20] sm:$0xff]  ;;  %v8911_v54 = vld [vmem:[%s18002_s11 + $0x30] sm:$0xff] }
 0x862   : > { %v7774_v57 = vpack.c.bf16 %v7772_v28, %v7771_v35  ;;  %v8908_v35 = vld [vmem:[%s18002_s11 + $0x18] sm:$0xff]  ;;  %v8910_v28 = vld [vmem:[%s18002_s11 + $0x28] sm:$0xff] }
 0x863   : > { %v7773_v58 = vpack.c.bf16 %v7770_v52, %v7769_v37  ;;  %v8912_v37 = vld [vmem:[%s18002_s11 + $0x38] sm:$0xff] }
 0x865   : > { %13095 = vmatprep.mubr.msk.bf16.mxu1 %vm5769_vm1, %v7773_v58 }
 0x866   : > { %13096 = vmatmul.mubr.msk.bf16.vlgmr.msra.gmra.mrb[28].mxu1 %vm5769_vm1, %v7774_v57 }
 0x939   : > { %v13097_v59 = vpop.f32.mrb[28].mxu1 }
 0x93a   : > { %v7847_v60 = vpop.f32.mrb[29].mxu1 }
 0x93b   : > { %v13098_v61 = vpop.f32.mrb[30].mxu1 }
 0x93c   : > { %v14417_v62 = vpack.i.bf16 %v13098_v61, %v13097_v59  ;;  %v7850_v2 = vpop.f32.mrb[31].mxu1 }
 0x93d   : > { %v14412_v3 = vpack.i.bf16 %v7850_v2, %v7847_v60 }
 0x93e   : > { %14418 = vrot.lane.b32.xlu1 %v14417_v62, %s17985_s7 }
 0x93f   : > { %14413 = vrot.lane.b32.xlu0 %v14412_v3, %s17985_s7  ;;  %v14674_v3 = vld [vmem:[%s18003_s12] sm:$0xff]   ;;  %s18011_s12 = smov 108  }
 0x940   : > { %13207 = vmatprep.subr.bf16.mxu0 %v14674_v3 }
 0x9b0   : > { %v14419_v0 = vpop.permute.xlu1 %14418 }
 0x9b1   : > { %v14421_v6 = vunpack.i.h.bf16 %v14419_v0  ;;  %v14420_v12 = vunpack.i.l.bf16 %v14419_v0  ;;  %v14414_v55 = vpop.permute.xlu0 %14413 }
 0x9b2   : > { %v14416_v56 = vunpack.i.h.bf16 %v14414_v55  ;;  %v14415_v7 = vunpack.i.l.bf16 %v14414_v55 }
 0x9b3   : > { %v7881_v30 = vmax.f32 %v13098_v61, %v14421_v6  ;;  %v7880_v8 = vmax.f32 %v13097_v59, %v14420_v12 }
 0x9b4   : > { %v7879_v10 = vmax.f32 %v7850_v2, %v14416_v56  ;;  %v7878_v9 = vmax.f32 %v7847_v60, %v14415_v7 }
 0x9b5   : > { %v14427_v40 = vpack.i.bf16 %v7881_v30, %v7880_v8 }
 0x9b6   : > { %v14422_v20 = vpack.i.bf16 %v7879_v10, %v7878_v9 }
 0x9b7   : > { %14428 = vrot.lane.b32.xlu1 %v14427_v40, %s17994_s24 }
 0x9b8   : > { %14423 = vrot.lane.b32.xlu0 %v14422_v20, %s17994_s24 }
 0xa29   : > { %v14429_v17 = vpop.permute.xlu1 %14428 }
 0xa2a   : > { %v14424_v15 = vpop.permute.xlu0 %14423  ;;  %v14431_v29 = vunpack.i.h.bf16 %v14429_v17  ;;  %v14430_v21 = vunpack.i.l.bf16 %v14429_v17 }
 0xa2b   : > { %v14426_v13 = vunpack.i.h.bf16 %v14424_v15  ;;  %v14425_v16 = vunpack.i.l.bf16 %v14424_v15 }
 0xa2c   : > { %v7901_v43 = vmax.f32 %v7881_v30, %v14431_v29  ;;  %v7900_v34 = vmax.f32 %v7880_v8, %v14430_v21 }
 0xa2d   : > { %v7899_v11 = vmax.f32 %v7879_v10, %v14426_v13  ;;  %v7898_v18 = vmax.f32 %v7878_v9, %v14425_v16 }
 0xa2e   : > { %v7903_v26 = vpack.c.bf16 %v7901_v43, %v7900_v34 }
 0xa2f   : > { %v7902_v24 = vpack.c.bf16 %v7899_v11, %v7898_v18 }
 0xa31   : > { %12391 = vmatmul.mubr.msk.bf16.vlgmr.msra.gmra.mrb[12].mxu0 %vm6107_vm5, %v7902_v24 }
 0xa32   : > { %7964 = vmatprep.mubr.bf16.mxu0 %v14751_v5  ;;  %v16792_v5 = vld [vmem:[%s18001_s1] ss:$12 sps:$4 sm:$0xff]   ;;  %13208 = vmatpush3.bf16.msra.mxu0 %v14674_v3 }
 0xa39   : > { %12392 = vmatmul.mubr.msk.bf16.gmra.mrb[16].mxu0 %vm6107_vm5, %v7903_v26 }
 0xb04   : > { %v7956_v31 = vpop.f32.mrb[12].mxu0 }
 0xb05   : > { %v7958_v50 = vpop.f32.mrb[13].mxu0 }
 0xb06   : > { %v7960_v23 = vpop.f32.mrb[14].mxu0 }
 0xb07   : > { %v16783_v14 = vpack.c.bf16 %v7960_v23, %v7956_v31  ;;  %v7962_v33 = vpop.f32.mrb[15].mxu0 }
 0xb08   : > { %v16785_v22 = vpack.c.bf16 %v7962_v33, %v7958_v50 }
 0xb09   : > { %8017 = vrot.lane.b32.xlu0 %v16783_v14, %s17985_s7 }
 0xb0c   : > { %v7966_v32 = vpop.f32.mrb[16].mxu0 }
 0xb0d   : > { %8007 = vrot.lane.b32.xlu0 %v16792_v5, %s17994_s24  ;;  %v7968_v36 = vpop.f32.mrb[17].mxu0 }
 0xb0e   : > { %v7970_v19 = vpop.f32.mrb[18].mxu0 }
 0xb0f   : > { %v16801_v38 = vpack.c.bf16 %v7970_v19, %v7966_v32  ;;  %v7972_v42 = vpop.f32.mrb[19].mxu0  ;;  %v14673_v32 = vld [vmem:[%s18001_s1 + $0x50] ss:$12 sps:$4 sm:$0xff]  }
 0xb10   : > { %v16803_v27 = vpack.c.bf16 %v7972_v42, %v7968_v36 }
 0xb11   : > { %8011 = vrot.lane.b32.xlu0 %v16799_v41, %s17994_s24  ;;  %8019 = vrot.lane.b32.xlu1 %v16801_v38, %s17985_s7 }
 0xb15   : > { %8186 = vrot.lane.b32.xlu0 %v16783_v14, %s17994_s24  ;;  %8009 = vrot.lane.b32.xlu1 %v16812_v44, %s17994_s24 }
 0xb19   : > { %8178 = vrot.lane.b32.xlu0 %v16792_v5, %s17995_s30  ;;  %8013 = vrot.lane.b32.xlu1 %v16821_v45, %s17994_s24 }
 0xb1d   : > { %8182 = vrot.lane.b32.xlu0 %v16799_v41, %s17995_s30  ;;  %8188 = vrot.lane.b32.xlu1 %v16801_v38, %s17994_s24 }
 0xb21   : > { %8285 = vrot.lane.b32.xlu0 %v16783_v14, %s17980_s10  ;;  %8180 = vrot.lane.b32.xlu1 %v16812_v44, %s17995_s30 }
 0xb25   : > { %8277 = vrot.lane.b32.xlu0 %v16792_v5, %s17973_s2  ;;  %8184 = vrot.lane.b32.xlu1 %v16821_v45, %s17995_s30 }
 0xb29   : > { %8281 = vrot.lane.b32.xlu0 %v16799_v41, %s17973_s2  ;;  %8287 = vrot.lane.b32.xlu1 %v16801_v38, %s17980_s10 }
 0xb2d   : > { %8404 = vrot.lane.b32.xlu0 %v16783_v14, %s17995_s30  ;;  %8279 = vrot.lane.b32.xlu1 %v16812_v44, %s17973_s2 }
 0xb31   : > { %8503 = vrot.lane.b32.xlu0 %v16783_v14, %s17996_s5  ;;  %8283 = vrot.lane.b32.xlu1 %v16821_v45, %s17973_s2 }
 0xb35   : > { %8495 = vrot.lane.b32.xlu0 %v16854_v46, %s17994_s24  ;;  %8406 = vrot.lane.b32.xlu1 %v16801_v38, %s17995_s30 }
 0xb39   : > { %8499 = vrot.lane.b32.xlu0 %v16863_v47, %s17994_s24  ;;  %8505 = vrot.lane.b32.xlu1 %v16801_v38, %s17996_s5  ;;  %s17911_s5 = smov 100  }
 0xb3d   : > { %8602 = vrot.lane.b32.xlu0 %v16783_v14, %s17973_s2  ;;  %8497 = vrot.lane.b32.xlu1 %v16872_v48, %s17994_s24 }
 0xb41   : > { %8594 = vrot.lane.b32.xlu0 %v16854_v46, %s17995_s30  ;;  %8501 = vrot.lane.b32.xlu1 %v16881_v39, %s17994_s24 }
 0xb45   : > { %8598 = vrot.lane.b32.xlu0 %v16863_v47, %s17995_s30  ;;  %8604 = vrot.lane.b32.xlu1 %v16801_v38, %s17973_s2 }
 0xb49   : > { %8701 = vrot.lane.b32.xlu0 %v16783_v14, %s17997_s28  ;;  %8596 = vrot.lane.b32.xlu1 %v16872_v48, %s17995_s30 }
 0xb4d   : > { %8693 = vrot.lane.b32.xlu0 %v16854_v46, %s17973_s2  ;;  %8600 = vrot.lane.b32.xlu1 %v16881_v39, %s17995_s30 }
 0xb51   : > { %8697 = vrot.lane.b32.xlu0 %v16863_v47, %s17973_s2  ;;  %8703 = vrot.lane.b32.xlu1 %v16801_v38, %s17997_s28  ;;  %s18004_s28 = smov 124  }
 0xb55   : > { %8915 = vperm.xlu0 %14401, %v8905_v49   ;;  %8695 = vrot.lane.b32.xlu1 %v16872_v48, %s17973_s2 }
 0xb59   : > { %8925 = vperm.xlu0 %14401, %v8907_v51   ;;  %8699 = vrot.lane.b32.xlu1 %v16881_v39, %s17973_s2  ;;  %s18008_s2 = smov 120  }
 0xb5d   : > { %8935 = vperm.xlu0 %14401, %v8909_v4   ;;  %8920 = vperm.xlu1 %14400, %v8906_v53  }
 0xb61   : > { %8945 = vperm.xlu0 %14401, %v8911_v54   ;;  %8930 = vperm.xlu1 %14400, %v8908_v35  }
 0xb65   : > { %8940 = vperm.xlu1 %14400, %v8910_v28  }
 0xb69   : > { %8950 = vperm.xlu1 %14400, %v8912_v37  }
 0xb7b   : > { %v8018_v52 = vpop.permute.xlu0 %8017 }
 0xb7c   : > { %13099 = vmatprep.subr.bf16.mxu1 %v8018_v52 }
 0xb7d   : > { %13100 = vmatpush3.bf16.msra.mxu1 %v8018_v52 }
 0xb7f   : > { %v8008_v57 = vpop.permute.xlu0 %8007 }
 0xb80   : > { %13103 = vmatprep.mubr.msk.bf16.mxu1 %vm8023_vm12, %v8008_v57 }
 0xb83   : > { %v8012_v58 = vpop.permute.xlu0 %8011  ;;  %v8020_v59 = vpop.permute.xlu1 %8019 }
 0xb84   : > { %13101 = vmatprep.subr.bf16.mxu1 %v8020_v59 }
 0xb85   : > { %13102 = vmatpush3.bf16.msra.mxu1 %v8020_v59 }
 0xb86   : > { %13111 = vmatprep.subr.bf16.mxu1 %v16783_v14 }
 0xb87   : > { %v8010_v60 = vpop.permute.xlu1 %8009  ;;  %v8187_v61 = vpop.permute.xlu0 %8186 }
 0xb88   : > { %13104 = vmatmul.mubr.msk.bf16.vlgmr.msra.gmra.mrb[32].mxu1 %vm8023_vm12, %v8010_v60 }
 0xb89   : > { %13112 = vmatpush3.bf16.msra.mxu1 %v16783_v14  ;;  %13107 = vmatprep.mubr.msk.bf16.mxu1 %vm8023_vm12, %v8012_v58  ;;  %v14670_v14 = vld [vmem:[%s18001_s1 + $0x8] ss:$12 sps:$4 sm:$0xff]  }
 0xb8a   : > { %13113 = vmatprep.subr.bf16.mxu1 %v16801_v38 }
 0xb8b   : > { %v8179_v62 = vpop.permute.xlu0 %8178  ;;  %v8014_v2 = vpop.permute.xlu1 %8013 }
 0xb8d   : > { %13114 = vmatpush3.bf16.msra.mxu1 %v16801_v38 }
 0xb8e   : > { %13123 = vmatprep.subr.bf16.mxu1 %v8187_v61 }
 0xb8f   : > { %v8183_v25 = vpop.permute.xlu0 %8182  ;;  %v8189_v63 = vpop.permute.xlu1 %8188 }
 0xb90   : > { %13108 = vmatmul.mubr.msk.bf16.gmra.mrb[36].mxu1 %vm8023_vm12, %v8014_v2 }
 0xb91   : > { %13115 = vmatprep.mubr.msk.bf16.mxu1 %vm8023_vm12, %v16792_v5  ;;  %v14671_v5 = vld [vmem:[%s18001_s1 + $0x20] ss:$12 sps:$4 sm:$0xff]  }
 0xb93   : > { %v8286_v0 = vpop.permute.xlu0 %8285  ;;  %v8181_v6 = vpop.permute.xlu1 %8180 }
 0xb97   : > { %v8278_v12 = vpop.permute.xlu0 %8277  ;;  %v8185_v55 = vpop.permute.xlu1 %8184 }
 0xb98   : > { %13116 = vmatmul.mubr.msk.bf16.vlgmr.msra.gmra.mrb[32].mxu1 %vm8023_vm12, %v16812_v44 }
 0xb99   : > { %13124 = vmatpush3.bf16.msra.mxu1 %v8187_v61  ;;  %13119 = vmatprep.mubr.msk.bf16.mxu1 %vm8023_vm12, %v16799_v41 }
 0xb9a   : > { %13125 = vmatprep.subr.bf16.mxu1 %v8189_v63 }
 0xb9b   : > { %v8282_v56 = vpop.permute.xlu0 %8281  ;;  %v8288_v7 = vpop.permute.xlu1 %8287 }
 0xb9d   : > { %13126 = vmatpush3.bf16.msra.mxu1 %v8189_v63 }
 0xb9e   : > { %13135 = vmatprep.subr.bf16.mxu1 %v8286_v0 }
 0xb9f   : > { %v8405_v30 = vpop.permute.xlu0 %8404  ;;  %v8280_v8 = vpop.permute.xlu1 %8279 }
 0xba0   : > { %13120 = vmatmul.mubr.msk.bf16.gmra.mrb[36].mxu1 %vm8023_vm12, %v16821_v45 }
 0xba1   : > { %13127 = vmatprep.mubr.msk.bf16.mxu1 %vm8023_vm12, %v8179_v62 }
 0xba3   : > { %v8284_v10 = vpop.permute.xlu1 %8283  ;;  %v8504_v9 = vpop.permute.xlu0 %8503 }
 0xba7   : > { %v8407_v40 = vpop.permute.xlu1 %8406  ;;  %v8496_v20 = vpop.permute.xlu0 %8495 }
 0xba8   : > { %13128 = vmatmul.mubr.msk.bf16.vlgmr.msra.gmra.mrb[32].mxu1 %vm8023_vm12, %v8181_v6 }
 0xba9   : > { %13136 = vmatpush3.bf16.msra.mxu1 %v8286_v0  ;;  %13131 = vmatprep.mubr.msk.bf16.mxu1 %vm8023_vm12, %v8183_v25 }
 0xbaa   : > { %13137 = vmatprep.subr.bf16.mxu1 %v8288_v7 }
 0xbab   : > { %v8500_v15 = vpop.permute.xlu0 %8499  ;;  %v8506_v13 = vpop.permute.xlu1 %8505 }
 0xbad   : > { %13138 = vmatpush3.bf16.msra.mxu1 %v8288_v7 }
 0xbae   : > { %13147 = vmatprep.subr.bf16.mxu1 %v8405_v30 }
 0xbaf   : > { %v8603_v16 = vpop.permute.xlu0 %8602  ;;  %v8498_v17 = vpop.permute.xlu1 %8497 }
 0xbb0   : > { %13132 = vmatmul.mubr.msk.bf16.gmra.mrb[36].mxu1 %vm8023_vm12, %v8185_v55 }
 0xbb1   : > { %13139 = vmatprep.mubr.msk.bf16.mxu1 %vm8023_vm12, %v8278_v12 }
 0xbb3   : > { %v8595_v11 = vpop.permute.xlu0 %8594  ;;  %v8502_v18 = vpop.permute.xlu1 %8501 }
 0xbb7   : > { %v8599_v29 = vpop.permute.xlu0 %8598  ;;  %v8605_v21 = vpop.permute.xlu1 %8604 }
 0xbb8   : > { %13140 = vmatmul.mubr.msk.bf16.vlgmr.msra.gmra.mrb[32].mxu1 %vm8023_vm12, %v8280_v8 }
 0xbb9   : > { %13148 = vmatpush3.bf16.msra.mxu1 %v8405_v30  ;;  %13143 = vmatprep.mubr.msk.bf16.mxu1 %vm8023_vm12, %v8282_v56 }
 0xbba   : > { %13149 = vmatprep.subr.bf16.mxu1 %v8407_v40 }
 0xbbb   : > { %v8702_v24 = vpop.permute.xlu0 %8701  ;;  %v8597_v43 = vpop.permute.xlu1 %8596 }
 0xbbd   : > { %13150 = vmatpush3.bf16.msra.mxu1 %v8407_v40 }
 0xbbe   : > { %13159 = vmatprep.subr.bf16.mxu1 %v8504_v9 }
 0xbbf   : > { %v8601_v34 = vpop.permute.xlu1 %8600  ;;  %v8694_v31 = vpop.permute.xlu0 %8693 }
 0xbc0   : > { %13144 = vmatmul.mubr.msk.bf16.gmra.mrb[36].mxu1 %vm8023_vm12, %v8284_v10 }
 0xbc1   : > { %13151 = vmatprep.mubr.msk.bf16.mxu1 %vm8023_vm12, %v16854_v46 }
 0xbc3   : > { %v8704_v26 = vpop.permute.xlu1 %8703  ;;  %v8698_v23 = vpop.permute.xlu0 %8697 }
 0xbc7   : > { %v8696_v50 = vpop.permute.xlu1 %8695 }
 0xbc8   : > { %13152 = vmatmul.mubr.msk.bf16.vlgmr.msra.gmra.mrb[32].mxu1 %vm8023_vm12, %v16872_v48 }
 0xbc9   : > { %13160 = vmatpush3.bf16.msra.mxu1 %v8504_v9  ;;  %13155 = vmatprep.mubr.msk.bf16.mxu1 %vm8023_vm12, %v16863_v47 }
 0xbca   : > { %13161 = vmatprep.subr.bf16.mxu1 %v8506_v13 }
 0xbcb   : > { %v8700_v33 = vpop.permute.xlu1 %8699 }
 0xbcd   : > { %13162 = vmatpush3.bf16.msra.mxu1 %v8506_v13 }
 0xbce   : > { %13171 = vmatprep.subr.bf16.mxu1 %v8603_v16 }
 0xbd0   : > { %13156 = vmatmul.mubr.msk.bf16.gmra.mrb[36].mxu1 %vm8023_vm12, %v16881_v39 }
 0xbd1   : > { %13163 = vmatprep.mubr.msk.bf16.mxu1 %vm8023_vm12, %v8496_v20 }
 0xbd4   : > { %v8916_v36 = vpop.permute.xlu0 %8915 }
 0xbd8   : > { %13164 = vmatmul.mubr.msk.bf16.vlgmr.msra.gmra.mrb[32].mxu1 %vm8023_vm12, %v8498_v17  ;;  %v8926_v19 = vpop.permute.xlu0 %8925 }
 0xbd9   : > { %13172 = vmatpush3.bf16.msra.mxu1 %v8603_v16  ;;  %13167 = vmatprep.mubr.msk.bf16.mxu1 %vm8023_vm12, %v8500_v15 }
 0xbda   : > { %13173 = vmatprep.subr.bf16.mxu1 %v8605_v21 }
 0xbdc   : > { %v8921_v41 = vpop.permute.xlu1 %8920  ;;  %v8936_v45 = vpop.permute.xlu0 %8935 }
 0xbdd   : > { %13174 = vmatpush3.bf16.msra.mxu1 %v8605_v21 }
 0xbde   : > { %13183 = vmatprep.subr.bf16.mxu1 %v8702_v24 }
 0xbe0   : > { %13168 = vmatmul.mubr.msk.bf16.gmra.mrb[36].mxu1 %vm8023_vm12, %v8502_v18  ;;  %v8931_v38 = vpop.permute.xlu1 %8930  ;;  %v8946_v37 = vpop.permute.xlu0 %8945 }
 0xbe1   : > { %13175 = vmatprep.mubr.msk.bf16.mxu1 %vm8023_vm12, %v8595_v11 }
 0xbe4   : > { %v8941_v49 = vpop.permute.xlu1 %8940 }
 0xbe8   : > { %13176 = vmatmul.mubr.msk.bf16.vlgmr.msra.gmra.mrb[32].mxu1 %vm8023_vm12, %v8597_v43  ;;  %v8951_v60 = vpop.permute.xlu1 %8950 }
 0xbe9   : > { %13184 = vmatpush3.bf16.msra.mxu1 %v8702_v24  ;;  %13179 = vmatprep.mubr.msk.bf16.mxu1 %vm8023_vm12, %v8599_v29 }
 0xbea   : > { %13185 = vmatprep.subr.bf16.mxu1 %v8704_v26 }
 0xbed   : > { %13186 = vmatpush3.bf16.msra.mxu1 %v8704_v26 }
 0xbee   : > { %13195 = vmatprep.subr.bf16.mxu1 %v16785_v22 }
 0xbf0   : > { %13180 = vmatmul.mubr.msk.bf16.gmra.mrb[36].mxu1 %vm8023_vm12, %v8601_v34 }
 0xbf1   : > { %13187 = vmatprep.mubr.msk.bf16.mxu1 %vm8023_vm12, %v8694_v31 }
 0xbf8   : > { %13188 = vmatmul.mubr.msk.bf16.vlgmr.msra.gmra.mrb[32].mxu1 %vm8023_vm12, %v8696_v50 }
 0xbf9   : > { %13196 = vmatpush3.bf16.msra.mxu1 %v16785_v22  ;;  %13191 = vmatprep.mubr.msk.bf16.mxu1 %vm8023_vm12, %v8698_v23  ;;  %v14672_v22 = vld [vmem:[%s18001_s1 + $0x38] ss:$12 sps:$4 sm:$0xff]  }
 0xbfa   : > { %13197 = vmatprep.subr.bf16.mxu1 %v16803_v27 }
 0xbfd   : > { %13198 = vmatpush3.bf16.msra.mxu1 %v16803_v27 }
 0xc00   : > { %13192 = vmatmul.mubr.msk.bf16.gmra.mrb[36].mxu1 %vm8023_vm12, %v8700_v33 }
 0xc01   : > { %13199 = vmatprep.mubr.msk.bf16.mxu1 %vm8023_vm12, %v14670_v14 }
 0xc08   : > { %13200 = vmatmul.mubr.msk.bf16.vlgmr.msra.gmra.mrb[32].mxu1 %vm8023_vm12, %v14671_v5 }
 0xc09   : > { %13203 = vmatprep.mubr.msk.bf16.mxu1 %vm8023_vm12, %v14672_v22 }
 0xc10   : > { %13204 = vmatmul.mubr.msk.bf16.gmra.mrb[36].mxu1 %vm8023_vm12, %v14673_v32 }
 0xcdb   : > { %v13201_v42 = vpop.f32.mrb[32].mxu1 }
 0xcdc   : > { %v8955_v27 = vadd.f32 %v13201_v42, %v8926_v19  ;;  %v8866_v44 = vpop.f32.mrb[33].mxu1 }
 0xcdd   : > { %v8953_v46 = vadd.f32 %v8916_v36, %v8866_v44  ;;  %v13202_v47 = vpop.f32.mrb[34].mxu1 }
 0xcde   : > { %v8956_v48 = vadd.f32 %v13202_v47, %v8931_v38  ;;  %v8869_v39 = vpop.f32.mrb[35].mxu1  ;;  %v8963_v4 = vmax.f32 %v8955_v27, 0.0  ;;  %v14675_v47 = vld [vmem:[%s17844_s13] sm:$0xff]  }
 0xcdf   : > { %v8954_v51 = vadd.f32 %v8921_v41, %v8869_v39  ;;  %v8961_v54 = vmax.f32 %v8953_v46, 0.0  ;;  %v9150_v39 = vld [vmem:[%s17845_s14] sm:$0xff] }
 0xce0   : > { %v8964_v53 = vmax.f32 %v8956_v48, 0.0  ;;  %v9151_v48 = vld [vmem:[%s17845_s14 + $0x8] sm:$0xff] }
 0xce1   : > { %v8962_v35 = vmax.f32 %v8954_v51, 0.0  ;;  %v9152_v51 = vld [vmem:[%s17845_s14 + $0x10] sm:$0xff] }
 0xce2   : > { %v8970_v28 = vpack.c.bf16 %v8964_v53, %v8963_v4  ;;  %v9155_v4 = vld [vmem:[%s17845_s14 + $0x28] sm:$0xff]  ;;  %v9154_v53 = vld [vmem:[%s17845_s14 + $0x20] sm:$0xff] }
 0xce3   : > { %v8969_v52 = vpack.c.bf16 %v8962_v35, %v8961_v54  ;;  %v13205_v57 = vpop.f32.mrb[36].mxu1  ;;  %v9157_v54 = vld [vmem:[%s17845_s14 + $0x38] sm:$0xff]  ;;  %v9156_v35 = vld [vmem:[%s17845_s14 + $0x30] sm:$0xff] }
 0xce4   : > { %v8959_v58 = vadd.f32 %v13205_v57, %v8946_v37  ;;  %v8882_v59 = vpop.f32.mrb[37].mxu1 }
 0xce5   : > { %v8957_v61 = vadd.f32 %v8936_v45, %v8882_v59  ;;  %v13206_v62 = vpop.f32.mrb[38].mxu1  ;;  %13209 = vmatprep.mubr.msk.bf16.mxu0 %vm6107_vm5, %v8969_v52 }
 0xce6   : > { %v8960_v2 = vadd.f32 %v13206_v62, %v8951_v60  ;;  %v8885_v3 = vpop.f32.mrb[39].mxu1  ;;  %13210 = vmatmul.mubr.msk.bf16.vlgmr.msra.gmra.mrb[20].mxu0 %vm6107_vm5, %v8970_v28  ;;  %v8967_v63 = vmax.f32 %v8959_v58, 0.0  ;;  %v9307_v28 = vld [vmem:[%s17846_s15] sm:$0x3] }
 0xce7   : > { %v8958_v25 = vadd.f32 %v8941_v49, %v8885_v3  ;;  %v8965_v6 = vmax.f32 %v8957_v61, 0.0  ;;  %v9153_v49 = vld [vmem:[%s17845_s14 + $0x18] sm:$0xff]  ;;  %14066 = vmatprep.subr.msk.bf16.mxu1 %vm18005_vm2, %v9307_v28 }
 0xce8   : > { %v8968_v0 = vmax.f32 %v8960_v2, 0.0 }
 0xce9   : > { %v8966_v12 = vmax.f32 %v8958_v25, 0.0 }
 0xcea   : > { %v8972_v55 = vpack.c.bf16 %v8968_v0, %v8967_v63 }
 0xceb   : > { %v8971_v56 = vpack.c.bf16 %v8966_v12, %v8965_v6 }
 0xced   : > { %13213 = vmatprep.mubr.msk.bf16.mxu0 %vm6107_vm5, %v8971_v56 }
 0xcee   : > { %13214 = vmatmul.mubr.msk.bf16.gmra.mrb[24].mxu0 %vm6107_vm5, %v8972_v55 }
 0xcef   : > { %13225 = vmatprep.mubr.msk.bf16.mxu0 %vm5769_vm1, %v14675_v47 }
 0xdb9   : > { %v13211_v7 = vpop.f32.mrb[20].mxu0 }
 0xdba   : > { %v9027_v30 = vpop.f32.mrb[21].mxu0 }
 0xdbb   : > { %v13212_v8 = vpop.f32.mrb[22].mxu0 }
 0xdbc   : > { %v14437_v10 = vpack.i.bf16 %v13212_v8, %v13211_v7  ;;  %v9030_v9 = vpop.f32.mrb[23].mxu0 }
 0xdbd   : > { %v14432_v40 = vpack.i.bf16 %v9030_v9, %v9027_v30 }
 0xdbe   : > { %14438 = vrot.lane.b32.xlu1 %v14437_v10, %s18004_s28 }
 0xdbf   : > { %14433 = vrot.lane.b32.xlu0 %v14432_v40, %s18004_s28 }
 0xdc1   : > { %v13215_v20 = vpop.f32.mrb[24].mxu0 }
 0xdc2   : > { %v9043_v15 = vpop.f32.mrb[25].mxu0 }
 0xdc3   : > { %v13216_v13 = vpop.f32.mrb[26].mxu0 }
 0xdc4   : > { %v14447_v16 = vpack.i.bf16 %v13216_v13, %v13215_v20  ;;  %v9046_v17 = vpop.f32.mrb[27].mxu0 }
 0xdc5   : > { %v14442_v11 = vpack.i.bf16 %v9046_v17, %v9043_v15 }
 0xdc6   : > { %14448 = vrot.lane.b32.xlu1 %v14447_v16, %s18004_s28  ;;  %v14678_v16 = vld [vmem:[%s17844_s13 + $0x18] sm:$0xff]  }
 0xdc7   : > { %14443 = vrot.lane.b32.xlu0 %v14442_v11, %s18004_s28 }
 0xe30   : > { %v14439_v18 = vpop.permute.xlu1 %14438 }
 0xe31   : > { %v14441_v29 = vunpack.i.h.bf16 %v14439_v18  ;;  %v14440_v21 = vunpack.i.l.bf16 %v14439_v18  ;;  %v14434_v24 = vpop.permute.xlu0 %14433 }
 0xe32   : > { %v14436_v43 = vunpack.i.h.bf16 %v14434_v24  ;;  %v14435_v34 = vunpack.i.l.bf16 %v14434_v24 }
 0xe33   : > { %v9093_v26 = vmax.f32 %v13212_v8, %v14441_v29  ;;  %v9092_v31 = vmax.f32 %v13211_v7, %v14440_v21 }
 0xe34   : > { %v9091_v50 = vmax.f32 %v9030_v9, %v14436_v43  ;;  %v9090_v23 = vmax.f32 %v9027_v30, %v14435_v34 }
 0xe35   : > { %v14457_v14 = vpack.i.bf16 %v9093_v26, %v9092_v31 }
 0xe36   : > { %v14452_v33 = vpack.i.bf16 %v9091_v50, %v9090_v23 }
 0xe37   : > { %14458 = vrot.lane.b32.xlu1 %v14457_v14, %s17908_s27 }
 0xe38   : > { %v14449_v5 = vpop.permute.xlu1 %14448  ;;  %14453 = vrot.lane.b32.xlu0 %v14452_v33, %s17908_s27 }
 0xe39   : > { %v14451_v22 = vunpack.i.h.bf16 %v14449_v5  ;;  %v14450_v32 = vunpack.i.l.bf16 %v14449_v5  ;;  %v14444_v36 = vpop.permute.xlu0 %14443 }
 0xe3a   : > { %v14446_v41 = vunpack.i.h.bf16 %v14444_v36  ;;  %v14445_v19 = vunpack.i.l.bf16 %v14444_v36 }
 0xe3b   : > { %v9097_v38 = vmax.f32 %v13216_v13, %v14451_v22  ;;  %v9096_v42 = vmax.f32 %v13215_v20, %v14450_v32  ;;  %v14677_v13 = vld [vmem:[%s17844_s13 + $0x10] sm:$0xff]  }
 0xe3c   : > { %v9095_v27 = vmax.f32 %v9046_v17, %v14446_v41  ;;  %v9094_v44 = vmax.f32 %v9043_v15, %v14445_v19  ;;  %v14676_v15 = vld [vmem:[%s17844_s13 + $0x8] sm:$0xff]   ;;  %v9322_v17 = vsel %vm18007_vm10, %v9307_v28, 0 }
 0xe3d   : > { %v14467_v45 = vpack.i.bf16 %v9097_v38, %v9096_v42  ;;  %13388 = vmatpush3.bf16.msra.mxu1 %v9322_v17 }
 0xe3e   : > { %v14462_v46 = vpack.i.bf16 %v9095_v27, %v9094_v44 }
 0xe3f   : > { %14468 = vrot.lane.b32.xlu1 %v14467_v45, %s17908_s27 }
 0xe40   : > { %14463 = vrot.lane.b32.xlu0 %v14462_v46, %s17908_s27  ;;  %s18010_s27 = smov 104  }
 0xe43   : > { %9165 = vperm.xlu1 %14400, %v9151_v48  }
 0xe44   : > { %9160 = vperm.xlu0 %14401, %v9150_v39  }
 0xe47   : > { %9175 = vperm.xlu1 %14400, %v9153_v49  }
 0xe48   : > { %9170 = vperm.xlu0 %14401, %v9152_v51  }
 0xe4b   : > { %9185 = vperm.xlu1 %14400, %v9155_v4  }
 0xe4c   : > { %9180 = vperm.xlu0 %14401, %v9154_v53  }
 0xe4f   : > { %9195 = vperm.xlu1 %14400, %v9157_v54  }
 0xe50   : > { %9190 = vperm.xlu0 %14401, %v9156_v35  }
 0xea9   : > { %v14459_v37 = vpop.permute.xlu1 %14458 }
 0xeaa   : > { %v14461_v52 = vunpack.i.h.bf16 %v14459_v37  ;;  %v14460_v57 = vunpack.i.l.bf16 %v14459_v37  ;;  %v14454_v58 = vpop.permute.xlu0 %14453 }
 0xeab   : > { %v14456_v59 = vunpack.i.h.bf16 %v14454_v58  ;;  %v14455_v60 = vunpack.i.l.bf16 %v14454_v58 }
 0xeac   : > { %v9133_v61 = vmax.f32 %v9093_v26, %v14461_v52  ;;  %v9132_v62 = vmax.f32 %v9092_v31, %v14460_v57 }
 0xead   : > { %v9131_v2 = vmax.f32 %v9091_v50, %v14456_v59  ;;  %v9130_v3 = vmax.f32 %v9090_v23, %v14455_v60 }
 0xeae   : > { %v9147_v0 = vpack.c.bf16 %v9133_v61, %v9132_v62 }
 0xeaf   : > { %v9146_v25 = vpack.c.bf16 %v9131_v2, %v9130_v3 }
 0xeb1   : > { %v14469_v63 = vpop.permute.xlu1 %14468  ;;  %13217 = vmatprep.subr.bf16.mxu0 %v9146_v25 }
 0xeb2   : > { %v14471_v6 = vunpack.i.h.bf16 %v14469_v63  ;;  %v14470_v12 = vunpack.i.l.bf16 %v14469_v63  ;;  %13218 = vmatpush3.bf16.msra.mxu0 %v9146_v25  ;;  %v14464_v55 = vpop.permute.xlu0 %14463 }
 0xeb3   : > { %v14466_v56 = vunpack.i.h.bf16 %v14464_v55  ;;  %v14465_v7 = vunpack.i.l.bf16 %v14464_v55  ;;  %13219 = vmatprep.subr.bf16.mxu0 %v9147_v0  ;;  %v17131_v55 = vld [vmem:[%s17847_s16 + $0x78] ss:$20 sps:$4 sm:$0xff]  }
 0xeb4   : > { %v9137_v30 = vmax.f32 %v9097_v38, %v14471_v6  ;;  %v9136_v8 = vmax.f32 %v9096_v42, %v14470_v12  ;;  %v17117_v6 = vld [vmem:[%s17847_s16 + $0x28] ss:$20 sps:$4 sm:$0xff]   ;;  %v17124_v12 = vld [vmem:[%s17847_s16] ss:$20 sps:$4 sm:$0xff]  }
 0xeb5   : > { %v9135_v10 = vmax.f32 %v9095_v27, %v14466_v56  ;;  %v9134_v9 = vmax.f32 %v9094_v44, %v14465_v7  ;;  %v17138_v56 = vld [vmem:[%s17847_s16 + $0x50] ss:$20 sps:$4 sm:$0xff]   ;;  %v17161_v7 = vld [vmem:[%s17847_s16 + $0x2c] ss:$20 sps:$4 sm:$0xff]  }
 0xeb6   : > { %13220 = vmatpush3.bf16.msra.mxu0 %v9147_v0  ;;  %v9149_v20 = vpack.c.bf16 %v9137_v30, %v9136_v8  ;;  %v17168_v30 = vld [vmem:[%s17847_s16 + $0x4] ss:$20 sps:$4 sm:$0xff]   ;;  %v17179_v8 = vld [vmem:[%s17847_s16 + $0x7c] ss:$20 sps:$4 sm:$0xff]  }
 0xeb7   : > { %v9148_v40 = vpack.c.bf16 %v9135_v10, %v9134_v9  ;;  %v17186_v10 = vld [vmem:[%s17847_s16 + $0x54] ss:$20 sps:$4 sm:$0xff]   ;;  %v17205_v9 = vld [vmem:[%s17847_s16 + $0x30] ss:$20 sps:$4 sm:$0xff]  }
 0xeb9   : > { %13221 = vmatprep.subr.bf16.mxu0 %v9148_v40 }
 0xeba   : > { %13222 = vmatpush3.bf16.msra.mxu0 %v9148_v40  ;;  %v17212_v40 = vld [vmem:[%s17847_s16 + $0x8] ss:$20 sps:$4 sm:$0xff]  }
 0xebb   : > { %13223 = vmatprep.subr.bf16.mxu0 %v9149_v20 }
 0xebe   : > { %13224 = vmatpush3.bf16.msra.mxu0 %v9149_v20  ;;  %v17223_v20 = vld [vmem:[%s17847_s16 + $0x80] ss:$20 sps:$4 sm:$0xff]  }
 0xebf   : > { %14065 = vmatprep.subr.msk.bf16.mxu0 %vm18006_vm8, %v9307_v28 }
 0xec1   : > { %13226 = vmatmul.mubr.msk.bf16.vlgmr.msra.gmra.mrb[28].mxu0 %vm5769_vm1, %v14676_v15  ;;  %v17230_v15 = vld [vmem:[%s17847_s16 + $0x58] ss:$20 sps:$4 sm:$0xff]  }
 0xec2   : > { %13229 = vmatprep.mubr.msk.bf16.mxu0 %vm5769_vm1, %v14677_v13  ;;  %13234 = vmatpush3.bf16.msra.mxu0 %v9322_v17  ;;  %v9166_v11 = vpop.permute.xlu1 %9165  ;;  %v17249_v13 = vld [vmem:[%s17847_s16 + $0x34] ss:$20 sps:$4 sm:$0xff]   ;;  %v17267_v17 = vld [vmem:[%s17847_s16 + $0x84] ss:$20 sps:$4 sm:$0xff]  }
 0xec3   : > { %v9161_v18 = vpop.permute.xlu0 %9160 }
 0xec6   : > { %v9176_v29 = vpop.permute.xlu1 %9175 }
 0xec7   : > { %v9171_v21 = vpop.permute.xlu0 %9170 }
 0xec9   : > { %13230 = vmatmul.mubr.msk.bf16.gmra.mrb[32].mxu0 %vm5769_vm1, %v14678_v16  ;;  %v17256_v16 = vld [vmem:[%s17847_s16 + $0xc] ss:$20 sps:$4 sm:$0xff]  }
 0xeca   : > { %v9186_v31 = vpop.permute.xlu1 %9185 }
 0xecb   : > { %v9181_v33 = vpop.permute.xlu0 %9180 }
 0xece   : > { %v9196_v42 = vpop.permute.xlu1 %9195 }
 0xecf   : > { %v9191_v45 = vpop.permute.xlu0 %9190 }
 0xf94   : > { %v13227_v24 = vpop.f32.mrb[28].mxu0 }
 0xf95   : > { %v9264_v43 = vpop.f32.mrb[29].mxu0  ;;  %v17058_v50 = vadd.f32 %v13227_v24, %v9171_v21  ;;  %v10417_v21 = vld [vmem:[%s17848_s17 + $0x18] sm:$0xff]  ;;  %v10416_v24 = vld [vmem:[%s17848_s17 + $0x10] sm:$0xff] }
 0xf96   : > { %v17056_v34 = vadd.f32 %v9264_v43, %v9161_v18  ;;  %v13228_v26 = vpop.f32.mrb[30].mxu0  ;;  %v10415_v18 = vld [vmem:[%s17848_s17 + $0x8] sm:$0xff] }
 0xf97   : > { %v17060_v23 = vadd.f32 %v13228_v26, %v9176_v29  ;;  %v9267_v14 = vpop.f32.mrb[31].mxu0  ;;  %v9297_v41 = vmax.f32 %v17058_v50, 0.0  ;;  %v10414_v29 = vld [vmem:[%s17848_s17] sm:$0xff]  ;;  %v10419_v43 = vld [vmem:[%s17848_s17 + $0x28] sm:$0xff] }
 0xf98   : > { %v17062_v5 = vadd.f32 %v9267_v14, %v9166_v11  ;;  %v9295_v32 = vmax.f32 %v17056_v34, 0.0  ;;  %v17274_v11 = vld [vmem:[%s17847_s16 + $0x5c] ss:$20 sps:$4 sm:$0xff]   ;;  %v10418_v26 = vld [vmem:[%s17848_s17 + $0x20] sm:$0xff] }
 0xf99   : > { %v9298_v22 = vmax.f32 %v17060_v23, 0.0  ;;  %v10420_v14 = vld [vmem:[%s17848_s17 + $0x30] sm:$0xff] }
 0xf9a   : > { %v9296_v36 = vmax.f32 %v17062_v5, 0.0 }
 0xf9b   : > { %v9304_v27 = vpack.c.bf16 %v9298_v22, %v9297_v41 }
 0xf9c   : > { %v9303_v19 = vpack.c.bf16 %v9296_v36, %v9295_v32  ;;  %v13231_v38 = vpop.f32.mrb[32].mxu0 }
 0xf9d   : > { %v9280_v44 = vpop.f32.mrb[33].mxu0  ;;  %v17079_v48 = vadd.f32 %v13231_v38, %v9191_v45 }
 0xf9e   : > { %v17076_v46 = vadd.f32 %v9280_v44, %v9181_v33  ;;  %v13232_v47 = vpop.f32.mrb[34].mxu0  ;;  %13235 = vmatprep.mubr.msk.bf16.mxu0 %vm9308_vm13, %v9303_v19 }
 0xf9f   : > { %v17081_v39 = vadd.f32 %v13232_v47, %v9196_v42  ;;  %v9283_v49 = vpop.f32.mrb[35].mxu0  ;;  %13236 = vmatmul.mubr.msk.bf16.vlgmr.msra.gmra.mrb[36].mxu0 %vm9308_vm13, %v9304_v27  ;;  %v9301_v35 = vmax.f32 %v17079_v48, 0.0 }
 0xfa0   : > { %v17084_v51 = vadd.f32 %v9283_v49, %v9186_v31  ;;  %v9299_v53 = vmax.f32 %v17076_v46, 0.0  ;;  %v10421_v31 = vld [vmem:[%s17848_s17 + $0x38] sm:$0xff] }
 0xfa1   : > { %v9302_v4 = vmax.f32 %v17081_v39, 0.0 }
 0xfa2   : > { %v9300_v54 = vmax.f32 %v17084_v51, 0.0 }
 0xfa3   : > { %v9306_v37 = vpack.c.bf16 %v9302_v4, %v9301_v35 }
 0xfa4   : > { %v9305_v28 = vpack.c.bf16 %v9300_v54, %v9299_v53 }
 0xfa6   : > { %13239 = vmatprep.mubr.msk.bf16.mxu0 %vm9308_vm13, %v9305_v28 }
 0xfa7   : > { %13240 = vmatmul.mubr.msk.bf16.gmra.mrb[40].mxu0 %vm9308_vm13, %v9306_v37 }
0x1072   : > { %v13237_v52 = vpop.f32.mrb[36].mxu0 }
0x1073   : > { %v9358_v57 = vpop.f32.mrb[37].mxu0 }
0x1074   : > { %v13238_v58 = vpop.f32.mrb[38].mxu0 }
0x1075   : > { %v17100_v59 = vpack.c.bf16 %v13238_v58, %v13237_v52  ;;  %v9361_v60 = vpop.f32.mrb[39].mxu0 }
0x1076   : > { %v17102_v61 = vpack.c.bf16 %v9361_v60, %v9358_v57 }
0x1077   : > { %9435 = vrot.lane.b32.xlu1 %v17100_v59, %s18004_s28 }
0x1078   : > { %9433 = vrot.lane.b32.xlu0 %v17102_v61, %s18004_s28 }
0x107a   : > { %v13241_v62 = vpop.f32.mrb[40].mxu0 }
0x107b   : > { %v9374_v2 = vpop.f32.mrb[41].mxu0 }
0x107c   : > { %v13242_v3 = vpop.f32.mrb[42].mxu0 }
0x107d   : > { %v17108_v25 = vpack.c.bf16 %v13242_v3, %v13241_v62  ;;  %v9377_v63 = vpop.f32.mrb[43].mxu0 }
0x107e   : > { %v17110_v0 = vpack.c.bf16 %v9377_v63, %v9374_v2 }
0x107f   : > { %9439 = vrot.lane.b32.xlu1 %v17108_v25, %s18004_s28 }
0x1080   : > { %9437 = vrot.lane.b32.xlu0 %v17110_v0, %s18004_s28 }
0x1083   : > { %9423 = vrot.lane.b32.xlu1 %v17117_v6, %s17995_s30 }
0x1084   : > { %9421 = vrot.lane.b32.xlu0 %v17124_v12, %s17995_s30 }
0x1087   : > { %9427 = vrot.lane.b32.xlu1 %v17131_v55, %s17995_s30 }
0x1088   : > { %9425 = vrot.lane.b32.xlu0 %v17138_v56, %s17995_s30 }
0x108b   : > { %9629 = vrot.lane.b32.xlu1 %v17100_v59, %s18008_s2 }
0x108c   : > { %9627 = vrot.lane.b32.xlu0 %v17102_v61, %s18008_s2 }
0x108f   : > { %9633 = vrot.lane.b32.xlu1 %v17108_v25, %s18008_s2 }
0x1090   : > { %9631 = vrot.lane.b32.xlu0 %v17110_v0, %s18008_s2 }
0x1093   : > { %9734 = vrot.lane.b32.xlu1 %v17100_v59, %s18009_s0 }
0x1094   : > { %9732 = vrot.lane.b32.xlu0 %v17102_v61, %s18009_s0 }
0x1097   : > { %9738 = vrot.lane.b32.xlu1 %v17108_v25, %s18009_s0 }
0x1098   : > { %9736 = vrot.lane.b32.xlu0 %v17110_v0, %s18009_s0 }
0x109b   : > { %9726 = vrot.lane.b32.xlu1 %v17161_v7, %s17995_s30 }
0x109c   : > { %9724 = vrot.lane.b32.xlu0 %v17168_v30, %s17995_s30 }
0x109f   : > { %9859 = vrot.lane.b32.xlu1 %v17100_v59, %s17985_s7 }
0x10a0   : > { %9857 = vrot.lane.b32.xlu0 %v17102_v61, %s17985_s7 }
0x10a3   : > { %9730 = vrot.lane.b32.xlu1 %v17179_v8, %s17995_s30 }
0x10a4   : > { %9728 = vrot.lane.b32.xlu0 %v17186_v10, %s17995_s30 }
0x10a7   : > { %9863 = vrot.lane.b32.xlu1 %v17108_v25, %s17985_s7 }
0x10a8   : > { %9861 = vrot.lane.b32.xlu0 %v17110_v0, %s17985_s7 }
0x10ab   : > { %9964 = vrot.lane.b32.xlu1 %v17100_v59, %s17913_s6 }
0x10ac   : > { %9962 = vrot.lane.b32.xlu0 %v17102_v61, %s17913_s6 }
0x10af   : > { %9968 = vrot.lane.b32.xlu1 %v17108_v25, %s17913_s6 }
0x10b0   : > { %9966 = vrot.lane.b32.xlu0 %v17110_v0, %s17913_s6 }
0x10b3   : > { %9956 = vrot.lane.b32.xlu1 %v17205_v9, %s17995_s30 }
0x10b4   : > { %9954 = vrot.lane.b32.xlu0 %v17212_v40, %s17995_s30 }
0x10b7   : > { %10089 = vrot.lane.b32.xlu1 %v17100_v59, %s18010_s27 }
0x10b8   : > { %10087 = vrot.lane.b32.xlu0 %v17102_v61, %s18010_s27 }
0x10bb   : > { %9960 = vrot.lane.b32.xlu1 %v17223_v20, %s17995_s30 }
0x10bc   : > { %9958 = vrot.lane.b32.xlu0 %v17230_v15, %s17995_s30 }
0x10bf   : > { %10093 = vrot.lane.b32.xlu1 %v17108_v25, %s18010_s27 }
0x10c0   : > { %10091 = vrot.lane.b32.xlu0 %v17110_v0, %s18010_s27 }
0x10c3   : > { %10194 = vrot.lane.b32.xlu1 %v17100_v59, %s17911_s5 }
0x10c4   : > { %10192 = vrot.lane.b32.xlu0 %v17102_v61, %s17911_s5 }
0x10c7   : > { %10198 = vrot.lane.b32.xlu1 %v17108_v25, %s17911_s5 }
0x10c8   : > { %10196 = vrot.lane.b32.xlu0 %v17110_v0, %s17911_s5  ;;  %s18012_s5 = smov 100  }
0x10cb   : > { %10186 = vrot.lane.b32.xlu1 %v17249_v13, %s17995_s30 }
0x10cc   : > { %10184 = vrot.lane.b32.xlu0 %v17256_v16, %s17995_s30 }
0x10cf   : > { %10319 = vrot.lane.b32.xlu1 %v17100_v59, %s17994_s24 }
0x10d0   : > { %10317 = vrot.lane.b32.xlu0 %v17102_v61, %s17994_s24 }
0x10d3   : > { %10190 = vrot.lane.b32.xlu1 %v17267_v17, %s17995_s30 }
0x10d4   : > { %10188 = vrot.lane.b32.xlu0 %v17274_v11, %s17995_s30 }
0x10d7   : > { %10323 = vrot.lane.b32.xlu1 %v17108_v25, %s17994_s24 }
0x10d8   : > { %10321 = vrot.lane.b32.xlu0 %v17110_v0, %s17994_s24 }
0x10db   : > { %10429 = vperm.xlu1 %14400, %v10415_v18  }
0x10dc   : > { %10424 = vperm.xlu0 %14401, %v10414_v29  }
0x10df   : > { %10439 = vperm.xlu1 %14400, %v10417_v21  }
0x10e0   : > { %10434 = vperm.xlu0 %14401, %v10416_v24  }
0x10e3   : > { %10449 = vperm.xlu1 %14400, %v10419_v43  }
0x10e4   : > { %10444 = vperm.xlu0 %14401, %v10418_v26  }
0x10e7   : > { %10459 = vperm.xlu1 %14400, %v10421_v31  }
0x10e8   : > { %10454 = vperm.xlu0 %14401, %v10420_v14  }
0x10e9   : > { %v9436_v19 = vpop.permute.xlu1 %9435 }
0x10ea   : > { %v9434_v33 = vpop.permute.xlu0 %9433 }
0x10eb   : > { %13243 = vmatprep.subr.bf16.mxu0 %v9434_v33 }
0x10ec   : > { %13244 = vmatpush3.bf16.msra.mxu0 %v9434_v33 }
0x10ed   : > { %13245 = vmatprep.subr.bf16.mxu0 %v9436_v19 }
0x10f0   : > { %13246 = vmatpush3.bf16.msra.mxu0 %v9436_v19 }
0x10f1   : > { %v9440_v38 = vpop.permute.xlu1 %9439 }
0x10f2   : > { %v9438_v42 = vpop.permute.xlu0 %9437 }
0x10f3   : > { %13247 = vmatprep.subr.bf16.mxu0 %v9438_v42 }
0x10f4   : > { %13248 = vmatpush3.bf16.msra.mxu0 %v9438_v42  ;;  %v14697_v42 = vld [vmem:[%s17847_s16 + $0x60] ss:$20 sps:$4 sm:$0xff]  }
0x10f5   : > { %13249 = vmatprep.subr.bf16.mxu0 %v9440_v38  ;;  %v9424_v27 = vpop.permute.xlu1 %9423 }
0x10f6   : > { %v9422_v44 = vpop.permute.xlu0 %9421 }
0x10f7   : > { %13251 = vmatprep.mubr.msk.bf16.mxu0 %vm5769_vm1, %v9422_v44 }
0x10f8   : > { %13250 = vmatpush3.bf16.msra.mxu0 %v9440_v38  ;;  %v14696_v38 = vld [vmem:[%s17847_s16 + $0x38] ss:$20 sps:$4 sm:$0xff]  }
0x10f9   : > { %13259 = vmatprep.subr.bf16.mxu0 %v17102_v61  ;;  %v9428_v47 = vpop.permute.xlu1 %9427 }
0x10fa   : > { %v9426_v45 = vpop.permute.xlu0 %9425 }
0x10fb   : > { %13252 = vmatmul.mubr.msk.bf16.vlgmr.msra.gmra.mrb[44].mxu0 %vm5769_vm1, %v9424_v27  ;;  %v14698_v27 = vld [vmem:[%s17847_s16 + $0x88] ss:$20 sps:$4 sm:$0xff]  }
0x10fc   : > { %13260 = vmatpush3.bf16.msra.mxu0 %v17102_v61  ;;  %13255 = vmatprep.mubr.msk.bf16.mxu0 %vm5769_vm1, %v9426_v45 }
0x10fd   : > { %13261 = vmatprep.subr.bf16.mxu0 %v17100_v59  ;;  %v9630_v28 = vpop.permute.xlu1 %9629 }
0x10fe   : > { %v9628_v49 = vpop.permute.xlu0 %9627 }
0x1100   : > { %13262 = vmatpush3.bf16.msra.mxu0 %v17100_v59 }
0x1101   : > { %13263 = vmatprep.subr.bf16.mxu0 %v17110_v0  ;;  %v9634_v52 = vpop.permute.xlu1 %9633 }
0x1102   : > { %v9632_v37 = vpop.permute.xlu0 %9631 }
0x1103   : > { %13256 = vmatmul.mubr.msk.bf16.gmra.mrb[48].mxu0 %vm5769_vm1, %v9428_v47 }
0x1104   : > { %13264 = vmatpush3.bf16.msra.mxu0 %v17110_v0  ;;  %13267 = vmatprep.mubr.msk.bf16.mxu0 %vm5769_vm1, %v17124_v12 }
0x1105   : > { %13265 = vmatprep.subr.bf16.mxu0 %v17108_v25  ;;  %v9735_v58 = vpop.permute.xlu1 %9734 }
0x1106   : > { %v9733_v57 = vpop.permute.xlu0 %9732 }
0x1108   : > { %13266 = vmatpush3.bf16.msra.mxu0 %v17108_v25 }
0x1109   : > { %13275 = vmatprep.subr.bf16.mxu0 %v9628_v49  ;;  %v9739_v60 = vpop.permute.xlu1 %9738 }
0x110a   : > { %v9737_v59 = vpop.permute.xlu0 %9736 }
0x110b   : > { %13268 = vmatmul.mubr.msk.bf16.vlgmr.msra.gmra.mrb[44].mxu0 %vm5769_vm1, %v17117_v6 }
0x110c   : > { %13276 = vmatpush3.bf16.msra.mxu0 %v9628_v49  ;;  %13271 = vmatprep.mubr.msk.bf16.mxu0 %vm5769_vm1, %v17138_v56 }
0x110d   : > { %13277 = vmatprep.subr.bf16.mxu0 %v9630_v28  ;;  %v9727_v62 = vpop.permute.xlu1 %9726 }
0x110e   : > { %v9725_v61 = vpop.permute.xlu0 %9724 }
0x1110   : > { %13278 = vmatpush3.bf16.msra.mxu0 %v9630_v28 }
0x1111   : > { %13279 = vmatprep.subr.bf16.mxu0 %v9632_v37  ;;  %v9860_v3 = vpop.permute.xlu1 %9859 }
0x1112   : > { %v9858_v2 = vpop.permute.xlu0 %9857 }
0x1113   : > { %13272 = vmatmul.mubr.msk.bf16.gmra.mrb[48].mxu0 %vm5769_vm1, %v17131_v55 }
0x1114   : > { %13280 = vmatpush3.bf16.msra.mxu0 %v9632_v37  ;;  %13283 = vmatprep.mubr.msk.bf16.mxu0 %vm5769_vm1, %v17168_v30 }
0x1115   : > { %13281 = vmatprep.subr.bf16.mxu0 %v9634_v52  ;;  %v9731_v63 = vpop.permute.xlu1 %9730 }
0x1116   : > { %v9729_v25 = vpop.permute.xlu0 %9728 }
0x1118   : > { %13282 = vmatpush3.bf16.msra.mxu0 %v9634_v52 }
0x1119   : > { %13291 = vmatprep.subr.bf16.mxu0 %v9733_v57  ;;  %v9864_v6 = vpop.permute.xlu1 %9863 }
0x111a   : > { %v9862_v0 = vpop.permute.xlu0 %9861 }
0x111b   : > { %13284 = vmatmul.mubr.msk.bf16.vlgmr.msra.gmra.mrb[44].mxu0 %vm5769_vm1, %v17161_v7 }
0x111c   : > { %13292 = vmatpush3.bf16.msra.mxu0 %v9733_v57  ;;  %13287 = vmatprep.mubr.msk.bf16.mxu0 %vm5769_vm1, %v17186_v10 }
0x111d   : > { %13293 = vmatprep.subr.bf16.mxu0 %v9735_v58  ;;  %v9965_v55 = vpop.permute.xlu1 %9964 }
0x111e   : > { %v9963_v12 = vpop.permute.xlu0 %9962 }
0x1120   : > { %13294 = vmatpush3.bf16.msra.mxu0 %v9735_v58 }
0x1121   : > { %13295 = vmatprep.subr.bf16.mxu0 %v9737_v59  ;;  %v9969_v7 = vpop.permute.xlu1 %9968 }
0x1122   : > { %v9967_v56 = vpop.permute.xlu0 %9966 }
0x1123   : > { %13288 = vmatmul.mubr.msk.bf16.gmra.mrb[48].mxu0 %vm5769_vm1, %v17179_v8 }
0x1124   : > { %13296 = vmatpush3.bf16.msra.mxu0 %v9737_v59  ;;  %13299 = vmatprep.mubr.msk.bf16.mxu0 %vm5769_vm1, %v9725_v61 }
0x1125   : > { %13297 = vmatprep.subr.bf16.mxu0 %v9739_v60  ;;  %v9957_v8 = vpop.permute.xlu1 %9956 }
0x1126   : > { %v9955_v30 = vpop.permute.xlu0 %9954 }
0x1128   : > { %13298 = vmatpush3.bf16.msra.mxu0 %v9739_v60 }
0x1129   : > { %13307 = vmatprep.subr.bf16.mxu0 %v9858_v2 }
0x112a   : > { %v10088_v10 = vpop.permute.xlu0 %10087 }
0x112b   : > { %13300 = vmatmul.mubr.msk.bf16.vlgmr.msra.gmra.mrb[44].mxu0 %vm5769_vm1, %v9727_v62 }
0x112c   : > { %13308 = vmatpush3.bf16.msra.mxu0 %v9858_v2  ;;  %13303 = vmatprep.mubr.msk.bf16.mxu0 %vm5769_vm1, %v9729_v25 }
0x112d   : > { %13309 = vmatprep.subr.bf16.mxu0 %v9860_v3 }
0x112e   : > { %v9959_v18 = vpop.permute.xlu0 %9958 }
0x1130   : > { %13310 = vmatpush3.bf16.msra.mxu0 %v9860_v3 }
0x1131   : > { %13311 = vmatprep.subr.bf16.mxu0 %v9862_v0 }
0x1133   : > { %13304 = vmatmul.mubr.msk.bf16.gmra.mrb[48].mxu0 %vm5769_vm1, %v9731_v63 }
0x1134   : > { %13312 = vmatpush3.bf16.msra.mxu0 %v9862_v0  ;;  %13315 = vmatprep.mubr.msk.bf16.mxu0 %vm5769_vm1, %v17212_v40  ;;  %v10090_v40 = vpop.permute.xlu1 %10089 }
0x1135   : > { %13313 = vmatprep.subr.bf16.mxu0 %v9864_v6 }
0x1138   : > { %13314 = vmatpush3.bf16.msra.mxu0 %v9864_v6 }
0x1139   : > { %13323 = vmatprep.subr.bf16.mxu0 %v9963_v12 }
0x113b   : > { %13316 = vmatmul.mubr.msk.bf16.vlgmr.msra.gmra.mrb[44].mxu0 %vm5769_vm1, %v17205_v9  ;;  %v9961_v9 = vpop.permute.xlu1 %9960 }
0x113c   : > { %13324 = vmatpush3.bf16.msra.mxu0 %v9963_v12  ;;  %13319 = vmatprep.mubr.msk.bf16.mxu0 %vm5769_vm1, %v17230_v15  ;;  %v10092_v15 = vpop.permute.xlu0 %10091 }
0x113d   : > { %13325 = vmatprep.subr.bf16.mxu0 %v9965_v55 }
0x113f   : > { %v10094_v29 = vpop.permute.xlu1 %10093 }
0x1140   : > { %13326 = vmatpush3.bf16.msra.mxu0 %v9965_v55 }
0x1141   : > { %13327 = vmatprep.subr.bf16.mxu0 %v9967_v56 }
0x1143   : > { %13320 = vmatmul.mubr.msk.bf16.gmra.mrb[48].mxu0 %vm5769_vm1, %v17223_v20  ;;  %v10193_v20 = vpop.permute.xlu0 %10192  ;;  %v10195_v21 = vpop.permute.xlu1 %10194 }
0x1144   : > { %13328 = vmatpush3.bf16.msra.mxu0 %v9967_v56  ;;  %13331 = vmatprep.mubr.msk.bf16.mxu0 %vm5769_vm1, %v9955_v30 }
0x1145   : > { %13329 = vmatprep.subr.bf16.mxu0 %v9969_v7 }
0x1147   : > { %v10197_v24 = vpop.permute.xlu0 %10196  ;;  %v10199_v43 = vpop.permute.xlu1 %10198 }
0x1148   : > { %13330 = vmatpush3.bf16.msra.mxu0 %v9969_v7 }
0x1149   : > { %13339 = vmatprep.subr.bf16.mxu0 %v10088_v10 }
0x114b   : > { %13332 = vmatmul.mubr.msk.bf16.vlgmr.msra.gmra.mrb[44].mxu0 %vm5769_vm1, %v9957_v8  ;;  %v10185_v26 = vpop.permute.xlu0 %10184  ;;  %v10187_v31 = vpop.permute.xlu1 %10186 }
0x114c   : > { %13340 = vmatpush3.bf16.msra.mxu0 %v10088_v10  ;;  %13335 = vmatprep.mubr.msk.bf16.mxu0 %vm5769_vm1, %v9959_v18 }
0x114d   : > { %13341 = vmatprep.subr.bf16.mxu0 %v10090_v40 }
0x114f   : > { %v10320_v14 = vpop.permute.xlu1 %10319 }
0x1150   : > { %13342 = vmatpush3.bf16.msra.mxu0 %v10090_v40 }
0x1151   : > { %13343 = vmatprep.subr.bf16.mxu0 %v10092_v15 }
0x1153   : > { %13336 = vmatmul.mubr.msk.bf16.gmra.mrb[48].mxu0 %vm5769_vm1, %v9961_v9 }
0x1154   : > { %13344 = vmatpush3.bf16.msra.mxu0 %v10092_v15  ;;  %13347 = vmatprep.mubr.msk.bf16.mxu0 %vm5769_vm1, %v17256_v16  ;;  %v10318_v16 = vpop.permute.xlu0 %10317 }
0x1155   : > { %13345 = vmatprep.subr.bf16.mxu0 %v10094_v29 }
0x1158   : > { %13346 = vmatpush3.bf16.msra.mxu0 %v10094_v29 }
0x1159   : > { %13355 = vmatprep.subr.bf16.mxu0 %v10193_v20 }
0x115b   : > { %13348 = vmatmul.mubr.msk.bf16.vlgmr.msra.gmra.mrb[44].mxu0 %vm5769_vm1, %v17249_v13  ;;  %v10189_v13 = vpop.permute.xlu0 %10188 }
0x115c   : > { %13356 = vmatpush3.bf16.msra.mxu0 %v10193_v20  ;;  %13351 = vmatprep.mubr.msk.bf16.mxu0 %vm5769_vm1, %v17274_v11  ;;  %v10191_v11 = vpop.permute.xlu1 %10190 }
0x115d   : > { %13357 = vmatprep.subr.bf16.mxu0 %v10195_v21 }
0x115f   : > { %v10322_v33 = vpop.permute.xlu0 %10321 }
0x1160   : > { %13358 = vmatpush3.bf16.msra.mxu0 %v10195_v21  ;;  %v10324_v19 = vpop.permute.xlu1 %10323 }
0x1161   : > { %13359 = vmatprep.subr.bf16.mxu0 %v10197_v24 }
0x1163   : > { %13352 = vmatmul.mubr.msk.bf16.gmra.mrb[48].mxu0 %vm5769_vm1, %v17267_v17  ;;  %v14695_v17 = vld [vmem:[%s17847_s16 + $0x10] ss:$20 sps:$4 sm:$0xff]   ;;  %v10425_v44 = vpop.permute.xlu0 %10424 }
0x1164   : > { %13360 = vmatpush3.bf16.msra.mxu0 %v10197_v24  ;;  %13363 = vmatprep.mubr.msk.bf16.mxu0 %vm5769_vm1, %v10185_v26  ;;  %v10430_v45 = vpop.permute.xlu1 %10429 }
0x1165   : > { %13361 = vmatprep.subr.bf16.mxu0 %v10199_v43 }
0x1167   : > { %v10435_v47 = vpop.permute.xlu0 %10434 }
0x1168   : > { %13362 = vmatpush3.bf16.msra.mxu0 %v10199_v43  ;;  %v10440_v49 = vpop.permute.xlu1 %10439 }
0x1169   : > { %13371 = vmatprep.subr.bf16.mxu0 %v10318_v16 }
0x116b   : > { %13364 = vmatmul.mubr.msk.bf16.vlgmr.msra.gmra.mrb[44].mxu0 %vm5769_vm1, %v10187_v31  ;;  %v10445_v57 = vpop.permute.xlu0 %10444 }
0x116c   : > { %13372 = vmatpush3.bf16.msra.mxu0 %v10318_v16  ;;  %13367 = vmatprep.mubr.msk.bf16.mxu0 %vm5769_vm1, %v10189_v13  ;;  %v10450_v62 = vpop.permute.xlu1 %10449 }
0x116d   : > { %13373 = vmatprep.subr.bf16.mxu0 %v10320_v14 }
0x116f   : > { %v10455_v12 = vpop.permute.xlu0 %10454 }
0x1170   : > { %13374 = vmatpush3.bf16.msra.mxu0 %v10320_v14  ;;  %v10460_v8 = vpop.permute.xlu1 %10459 }
0x1171   : > { %13375 = vmatprep.subr.bf16.mxu0 %v10322_v33 }
0x1173   : > { %13368 = vmatmul.mubr.msk.bf16.gmra.mrb[48].mxu0 %vm5769_vm1, %v10191_v11 }
0x1174   : > { %13376 = vmatpush3.bf16.msra.mxu0 %v10322_v33  ;;  %13379 = vmatprep.mubr.msk.bf16.mxu0 %vm5769_vm1, %v14695_v17 }
0x1175   : > { %13377 = vmatprep.subr.bf16.mxu0 %v10324_v19 }
0x1178   : > { %13378 = vmatpush3.bf16.msra.mxu0 %v10324_v19 }
0x117b   : > { %13380 = vmatmul.mubr.msk.bf16.vlgmr.msra.gmra.mrb[44].mxu0 %vm5769_vm1, %v14696_v38 }
0x117c   : > { %13383 = vmatprep.mubr.msk.bf16.mxu0 %vm5769_vm1, %v14697_v42 }
0x1183   : > { %13384 = vmatmul.mubr.msk.bf16.gmra.mrb[48].mxu0 %vm5769_vm1, %v14698_v27 }
0x124e   : > { %v13381_v28 = vpop.f32.mrb[44].mxu0 }
0x124f   : > { %v10464_v37 = vadd.f32 %v13381_v28, %v10435_v47  ;;  %v10375_v52 = vpop.f32.mrb[45].mxu0  ;;  %v17408_v47 = vld [vmem:[%s17849_s18] ss:$20 sps:$4 sm:$0xff]   ;;  %v17422_v28 = vld [vmem:[%s17849_s18 + $0x50] ss:$20 sps:$4 sm:$0xff]  }
0x1250   : > { %v10462_v58 = vadd.f32 %v10425_v44, %v10375_v52  ;;  %v13382_v59 = vpop.f32.mrb[46].mxu0  ;;  %v17452_v52 = vld [vmem:[%s17849_s18 + $0x4] ss:$20 sps:$4 sm:$0xff]  }
0x1251   : > { %v10465_v60 = vadd.f32 %v13382_v59, %v10440_v49  ;;  %v10378_v61 = vpop.f32.mrb[47].mxu0  ;;  %v10472_v3 = vmax.f32 %v10464_v37, 0.0  ;;  %v17415_v49 = vld [vmem:[%s17849_s18 + $0x78] ss:$20 sps:$4 sm:$0xff]   ;;  %v17489_v59 = vld [vmem:[%s17849_s18 + $0x30] ss:$20 sps:$4 sm:$0xff]  }
0x1252   : > { %v10463_v2 = vadd.f32 %v10430_v45, %v10378_v61  ;;  %v10470_v63 = vmax.f32 %v10462_v58, 0.0  ;;  %v17401_v45 = vld [vmem:[%s17849_s18 + $0x28] ss:$20 sps:$4 sm:$0xff]   ;;  %v17445_v37 = vld [vmem:[%s17849_s18 + $0x2c] ss:$20 sps:$4 sm:$0xff]  }
0x1253   : > { %v10473_v25 = vmax.f32 %v10465_v60, 0.0  ;;  %v17470_v58 = vld [vmem:[%s17849_s18 + $0x54] ss:$20 sps:$4 sm:$0xff]  }
0x1254   : > { %v10471_v0 = vmax.f32 %v10463_v2, 0.0  ;;  %v17496_v60 = vld [vmem:[%s17849_s18 + $0x8] ss:$20 sps:$4 sm:$0xff]   ;;  %v17507_v61 = vld [vmem:[%s17849_s18 + $0x80] ss:$20 sps:$4 sm:$0xff]  }
0x1255   : > { %v10479_v6 = vpack.c.bf16 %v10473_v25, %v10472_v3  ;;  %v17533_v2 = vld [vmem:[%s17849_s18 + $0x34] ss:$20 sps:$4 sm:$0xff]   ;;  %v17540_v3 = vld [vmem:[%s17849_s18 + $0xc] ss:$20 sps:$4 sm:$0xff]   ;;  %v17551_v25 = vld [vmem:[%s17849_s18 + $0x84] ss:$20 sps:$4 sm:$0xff]  }
0x1256   : > { %v10478_v55 = vpack.c.bf16 %v10471_v0, %v10470_v63  ;;  %v13385_v56 = vpop.f32.mrb[48].mxu0  ;;  %v17558_v63 = vld [vmem:[%s17849_s18 + $0x5c] ss:$20 sps:$4 sm:$0xff]   ;;  %v11585_v0 = vld [vmem:[%s17850_s19 + $0x8] sm:$0xff] }
0x1257   : > { %v10468_v7 = vadd.f32 %v13385_v56, %v10455_v12  ;;  %v10391_v30 = vpop.f32.mrb[49].mxu0  ;;  %v11587_v12 = vld [vmem:[%s17850_s19 + $0x18] sm:$0xff]  ;;  %v11589_v56 = vld [vmem:[%s17850_s19 + $0x28] sm:$0xff] }
0x1258   : > { %v10466_v10 = vadd.f32 %v10445_v57, %v10391_v30  ;;  %v13386_v40 = vpop.f32.mrb[50].mxu0  ;;  %13389 = vmatprep.mubr.msk.bf16.mxu1 %vm9308_vm13, %v10478_v55  ;;  %v17463_v57 = vld [vmem:[%s17849_s18 + $0x7c] ss:$20 sps:$4 sm:$0xff]  }
0x1259   : > { %v10469_v18 = vadd.f32 %v13386_v40, %v10460_v8  ;;  %v10394_v9 = vpop.f32.mrb[51].mxu0  ;;  %13390 = vmatmul.mubr.msk.bf16.vlgmr.msra.gmra.mrb[40].mxu1 %vm9308_vm13, %v10479_v6  ;;  %v10476_v29 = vmax.f32 %v10468_v7, 0.0  ;;  %v11584_v6 = vld [vmem:[%s17850_s19] sm:$0xff]  ;;  %v11586_v55 = vld [vmem:[%s17850_s19 + $0x10] sm:$0xff]  ;;  %v11591_v30 = vld [vmem:[%s17850_s19 + $0x38] sm:$0xff] }
0x125a   : > { %v10467_v15 = vadd.f32 %v10450_v62, %v10394_v9  ;;  %v10474_v21 = vmax.f32 %v10466_v10, 0.0  ;;  %v17514_v62 = vld [vmem:[%s17849_s18 + $0x58] ss:$20 sps:$4 sm:$0xff]   ;;  %v11588_v7 = vld [vmem:[%s17850_s19 + $0x20] sm:$0xff]  ;;  %v11590_v8 = vld [vmem:[%s17850_s19 + $0x30] sm:$0xff] }
0x125b   : > { %v10477_v20 = vmax.f32 %v10469_v18, 0.0 }
0x125c   : > { %v10475_v24 = vmax.f32 %v10467_v15, 0.0 }
0x125d   : > { %v10481_v43 = vpack.c.bf16 %v10477_v20, %v10476_v29 }
0x125e   : > { %v10480_v26 = vpack.c.bf16 %v10475_v24, %v10474_v21 }
0x1260   : > { %13393 = vmatprep.mubr.msk.bf16.mxu1 %vm9308_vm13, %v10480_v26 }
0x1261   : > { %13394 = vmatmul.mubr.msk.bf16.gmra.mrb[44].mxu1 %vm9308_vm13, %v10481_v43 }
0x132c   : > { %v13391_v31 = vpop.f32.mrb[40].mxu1 }
0x132d   : > { %v10528_v16 = vpop.f32.mrb[41].mxu1 }
0x132e   : > { %v13392_v14 = vpop.f32.mrb[42].mxu1 }
0x132f   : > { %v17384_v13 = vpack.c.bf16 %v13392_v14, %v13391_v31  ;;  %v10531_v11 = vpop.f32.mrb[43].mxu1 }
0x1330   : > { %v17386_v33 = vpack.c.bf16 %v10531_v11, %v10528_v16 }
0x1331   : > { %10605 = vrot.lane.b32.xlu1 %v17384_v13, %s18004_s28 }
0x1332   : > { %10603 = vrot.lane.b32.xlu0 %v17386_v33, %s18004_s28 }
0x1334   : > { %v13395_v17 = vpop.f32.mrb[44].mxu1 }
0x1335   : > { %v10544_v19 = vpop.f32.mrb[45].mxu1 }
0x1336   : > { %v13396_v38 = vpop.f32.mrb[46].mxu1 }
0x1337   : > { %v17392_v42 = vpack.c.bf16 %v13396_v38, %v13395_v17  ;;  %v10547_v27 = vpop.f32.mrb[47].mxu1 }
0x1338   : > { %v17394_v44 = vpack.c.bf16 %v10547_v27, %v10544_v19 }
0x1339   : > { %10609 = vrot.lane.b32.xlu1 %v17392_v42, %s18004_s28 }
0x133a   : > { %10607 = vrot.lane.b32.xlu0 %v17394_v44, %s18004_s28 }
0x133d   : > { %10593 = vrot.lane.b32.xlu1 %v17401_v45, %s17995_s30 }
0x133e   : > { %10591 = vrot.lane.b32.xlu0 %v17408_v47, %s17995_s30 }
0x1341   : > { %10597 = vrot.lane.b32.xlu1 %v17415_v49, %s17995_s30 }
0x1342   : > { %10595 = vrot.lane.b32.xlu0 %v17422_v28, %s17995_s30 }
0x1345   : > { %10799 = vrot.lane.b32.xlu1 %v17384_v13, %s18008_s2 }
0x1346   : > { %10797 = vrot.lane.b32.xlu0 %v17386_v33, %s18008_s2 }
0x1349   : > { %10803 = vrot.lane.b32.xlu1 %v17392_v42, %s18008_s2 }
0x134a   : > { %10801 = vrot.lane.b32.xlu0 %v17394_v44, %s18008_s2 }
0x134d   : > { %10904 = vrot.lane.b32.xlu1 %v17384_v13, %s18009_s0 }
0x134e   : > { %10902 = vrot.lane.b32.xlu0 %v17386_v33, %s18009_s0 }
0x1351   : > { %10908 = vrot.lane.b32.xlu1 %v17392_v42, %s18009_s0 }
0x1352   : > { %10906 = vrot.lane.b32.xlu0 %v17394_v44, %s18009_s0 }
0x1355   : > { %10896 = vrot.lane.b32.xlu1 %v17445_v37, %s17995_s30 }
0x1356   : > { %10894 = vrot.lane.b32.xlu0 %v17452_v52, %s17995_s30 }
0x1359   : > { %11029 = vrot.lane.b32.xlu1 %v17384_v13, %s17985_s7 }
0x135a   : > { %11027 = vrot.lane.b32.xlu0 %v17386_v33, %s17985_s7 }
0x135d   : > { %10900 = vrot.lane.b32.xlu1 %v17463_v57, %s17995_s30 }
0x135e   : > { %10898 = vrot.lane.b32.xlu0 %v17470_v58, %s17995_s30 }
0x1361   : > { %11033 = vrot.lane.b32.xlu1 %v17392_v42, %s17985_s7 }
0x1362   : > { %11031 = vrot.lane.b32.xlu0 %v17394_v44, %s17985_s7 }
0x1365   : > { %11134 = vrot.lane.b32.xlu1 %v17384_v13, %s18011_s12 }
0x1366   : > { %11132 = vrot.lane.b32.xlu0 %v17386_v33, %s18011_s12 }
0x1369   : > { %11138 = vrot.lane.b32.xlu1 %v17392_v42, %s18011_s12 }
0x136a   : > { %11136 = vrot.lane.b32.xlu0 %v17394_v44, %s18011_s12 }
0x136d   : > { %11126 = vrot.lane.b32.xlu1 %v17489_v59, %s17995_s30 }
0x136e   : > { %11124 = vrot.lane.b32.xlu0 %v17496_v60, %s17995_s30 }
0x1371   : > { %11259 = vrot.lane.b32.xlu1 %v17384_v13, %s18010_s27 }
0x1372   : > { %11257 = vrot.lane.b32.xlu0 %v17386_v33, %s18010_s27 }
0x1375   : > { %11130 = vrot.lane.b32.xlu1 %v17507_v61, %s17995_s30 }
0x1376   : > { %11128 = vrot.lane.b32.xlu0 %v17514_v62, %s17995_s30 }
0x1379   : > { %11263 = vrot.lane.b32.xlu1 %v17392_v42, %s18010_s27 }
0x137a   : > { %11261 = vrot.lane.b32.xlu0 %v17394_v44, %s18010_s27  ;;  %s18013_s27 = sld [smem:[#allocation16_spill]] }
0x137d   : > { %11364 = vrot.lane.b32.xlu1 %v17384_v13, %s18012_s5 }
0x137e   : > { %11362 = vrot.lane.b32.xlu0 %v17386_v33, %s18012_s5 }
0x1380   : > { %s18014_s12 = smov %s18013_s27 }
0x1381   : > { %11368 = vrot.lane.b32.xlu1 %v17392_v42, %s18012_s5 }
0x1382   : > { %11366 = vrot.lane.b32.xlu0 %v17394_v44, %s18012_s5  ;;  %s12596_s5 = sshll.u32 %s18019_s3, 6 }
0x1383   : > { %s17670_s10 = scalar_lea.vmem %s17857_s26, %s12596_s5 }
0x1385   : > { %11356 = vrot.lane.b32.xlu1 %v17533_v2, %s17995_s30 }
0x1386   : > { %11354 = vrot.lane.b32.xlu0 %v17540_v3, %s17995_s30 }
0x1389   : > { %11489 = vrot.lane.b32.xlu1 %v17384_v13, %s17994_s24 }
0x138a   : > { %11487 = vrot.lane.b32.xlu0 %v17386_v33, %s17994_s24 }
0x138d   : > { %11360 = vrot.lane.b32.xlu1 %v17551_v25, %s17995_s30 }
0x138e   : > { %11358 = vrot.lane.b32.xlu0 %v17558_v63, %s17995_s30  ;;  %s18016_s30 = sld [smem:[#allocation17_spill]] }
0x1391   : > { %11493 = vrot.lane.b32.xlu1 %v17392_v42, %s17994_s24 }
0x1392   : > { %11491 = vrot.lane.b32.xlu0 %v17394_v44, %s17994_s24 }
0x1395   : > { %11599 = vperm.xlu1 %14400, %v11585_v0  }
0x1396   : > { %11594 = vperm.xlu0 %14401, %v11584_v6  }
0x1399   : > { %11609 = vperm.xlu1 %14400, %v11587_v12  }
0x139a   : > { %11604 = vperm.xlu0 %14401, %v11586_v55  }
0x139d   : > { %11619 = vperm.xlu1 %14400, %v11589_v56  }
0x139e   : > { %11614 = vperm.xlu0 %14401, %v11588_v7  }
0x13a1   : > { %11629 = vperm.xlu1 %14400, %v11591_v30  }
0x13a2   : > { %11624 = vperm.xlu0 %14401, %v11590_v8  }
0x13a3   : > { %v10606_v40 = vpop.permute.xlu1 %10605 }
0x13a4   : > { %v10604_v10 = vpop.permute.xlu0 %10603 }
0x13a5   : > { %13397 = vmatprep.subr.bf16.mxu1 %v10604_v10 }
0x13a6   : > { %13398 = vmatpush3.bf16.msra.mxu1 %v10604_v10 }
0x13a7   : > { %13399 = vmatprep.subr.bf16.mxu1 %v10606_v40 }
0x13aa   : > { %13400 = vmatpush3.bf16.msra.mxu1 %v10606_v40 }
0x13ab   : > { %v10610_v18 = vpop.permute.xlu1 %10609 }
0x13ac   : > { %v10608_v9 = vpop.permute.xlu0 %10607 }
0x13ad   : > { %13401 = vmatprep.subr.bf16.mxu1 %v10608_v9 }
0x13ae   : > { %13402 = vmatpush3.bf16.msra.mxu1 %v10608_v9  ;;  %v14717_v9 = vld [vmem:[%s17849_s18 + $0x60] ss:$20 sps:$4 sm:$0xff]  }
0x13af   : > { %13403 = vmatprep.subr.bf16.mxu1 %v10610_v18  ;;  %v10594_v15 = vpop.permute.xlu1 %10593 }
0x13b0   : > { %v10592_v29 = vpop.permute.xlu0 %10591 }
0x13b1   : > { %13405 = vmatprep.mubr.msk.bf16.mxu1 %vm5769_vm1, %v10592_v29 }
0x13b2   : > { %13404 = vmatpush3.bf16.msra.mxu1 %v10610_v18  ;;  %v14716_v18 = vld [vmem:[%s17849_s18 + $0x38] ss:$20 sps:$4 sm:$0xff]  }
0x13b3   : > { %13413 = vmatprep.subr.bf16.mxu1 %v17386_v33  ;;  %v10598_v21 = vpop.permute.xlu1 %10597 }
0x13b4   : > { %v10596_v20 = vpop.permute.xlu0 %10595 }
0x13b5   : > { %13406 = vmatmul.mubr.msk.bf16.vlgmr.msra.gmra.mrb[48].mxu1 %vm5769_vm1, %v10594_v15  ;;  %v14718_v15 = vld [vmem:[%s17849_s18 + $0x88] ss:$20 sps:$4 sm:$0xff]  }
0x13b6   : > { %13414 = vmatpush3.bf16.msra.mxu1 %v17386_v33  ;;  %13409 = vmatprep.mubr.msk.bf16.mxu1 %vm5769_vm1, %v10596_v20 }
0x13b7   : > { %13415 = vmatprep.subr.bf16.mxu1 %v17384_v13  ;;  %v10800_v43 = vpop.permute.xlu1 %10799 }
0x13b8   : > { %v10798_v24 = vpop.permute.xlu0 %10797 }
0x13ba   : > { %13416 = vmatpush3.bf16.msra.mxu1 %v17384_v13 }
0x13bb   : > { %13417 = vmatprep.subr.bf16.mxu1 %v17394_v44  ;;  %v10804_v31 = vpop.permute.xlu1 %10803 }
0x13bc   : > { %v10802_v26 = vpop.permute.xlu0 %10801 }
0x13bd   : > { %13410 = vmatmul.mubr.msk.bf16.gmra.mrb[52].mxu1 %vm5769_vm1, %v10598_v21 }
0x13be   : > { %13418 = vmatpush3.bf16.msra.mxu1 %v17394_v44  ;;  %13421 = vmatprep.mubr.msk.bf16.mxu1 %vm5769_vm1, %v17408_v47 }
0x13bf   : > { %13419 = vmatprep.subr.bf16.mxu1 %v17392_v42  ;;  %v10905_v14 = vpop.permute.xlu1 %10904 }
0x13c0   : > { %v10903_v16 = vpop.permute.xlu0 %10902 }
0x13c2   : > { %13420 = vmatpush3.bf16.msra.mxu1 %v17392_v42 }
0x13c3   : > { %13429 = vmatprep.subr.bf16.mxu1 %v10798_v24  ;;  %v10909_v11 = vpop.permute.xlu1 %10908 }
0x13c4   : > { %v10907_v13 = vpop.permute.xlu0 %10906 }
0x13c5   : > { %13422 = vmatmul.mubr.msk.bf16.vlgmr.msra.gmra.mrb[48].mxu1 %vm5769_vm1, %v17401_v45 }
0x13c6   : > { %13430 = vmatpush3.bf16.msra.mxu1 %v10798_v24  ;;  %13425 = vmatprep.mubr.msk.bf16.mxu1 %vm5769_vm1, %v17422_v28 }
0x13c7   : > { %13431 = vmatprep.subr.bf16.mxu1 %v10800_v43  ;;  %v10897_v17 = vpop.permute.xlu1 %10896 }
0x13c8   : > { %v10895_v33 = vpop.permute.xlu0 %10894 }
0x13ca   : > { %13432 = vmatpush3.bf16.msra.mxu1 %v10800_v43 }
0x13cb   : > { %13433 = vmatprep.subr.bf16.mxu1 %v10802_v26  ;;  %v11030_v38 = vpop.permute.xlu1 %11029 }
0x13cc   : > { %v11028_v19 = vpop.permute.xlu0 %11027 }
0x13cd   : > { %13426 = vmatmul.mubr.msk.bf16.gmra.mrb[52].mxu1 %vm5769_vm1, %v17415_v49 }
0x13ce   : > { %13434 = vmatpush3.bf16.msra.mxu1 %v10802_v26  ;;  %13437 = vmatprep.mubr.msk.bf16.mxu1 %vm5769_vm1, %v17452_v52 }
0x13cf   : > { %13435 = vmatprep.subr.bf16.mxu1 %v10804_v31  ;;  %v10901_v27 = vpop.permute.xlu1 %10900 }
0x13d0   : > { %v10899_v42 = vpop.permute.xlu0 %10898 }
0x13d2   : > { %13436 = vmatpush3.bf16.msra.mxu1 %v10804_v31 }
0x13d3   : > { %13445 = vmatprep.subr.bf16.mxu1 %v10903_v16  ;;  %v11034_v45 = vpop.permute.xlu1 %11033 }
0x13d4   : > { %v11032_v44 = vpop.permute.xlu0 %11031 }
0x13d5   : > { %13438 = vmatmul.mubr.msk.bf16.vlgmr.msra.gmra.mrb[48].mxu1 %vm5769_vm1, %v17445_v37 }
0x13d6   : > { %13446 = vmatpush3.bf16.msra.mxu1 %v10903_v16  ;;  %13441 = vmatprep.mubr.msk.bf16.mxu1 %vm5769_vm1, %v17470_v58 }
0x13d7   : > { %13447 = vmatprep.subr.bf16.mxu1 %v10905_v14  ;;  %v11135_v49 = vpop.permute.xlu1 %11134 }
0x13d8   : > { %v11133_v47 = vpop.permute.xlu0 %11132 }
0x13da   : > { %13448 = vmatpush3.bf16.msra.mxu1 %v10905_v14 }
0x13db   : > { %13449 = vmatprep.subr.bf16.mxu1 %v10907_v13  ;;  %v11139_v37 = vpop.permute.xlu1 %11138 }
0x13dc   : > { %v11137_v28 = vpop.permute.xlu0 %11136 }
0x13dd   : > { %13442 = vmatmul.mubr.msk.bf16.gmra.mrb[52].mxu1 %vm5769_vm1, %v17463_v57 }
0x13de   : > { %13450 = vmatpush3.bf16.msra.mxu1 %v10907_v13  ;;  %13453 = vmatprep.mubr.msk.bf16.mxu1 %vm5769_vm1, %v10895_v33 }
0x13df   : > { %13451 = vmatprep.subr.bf16.mxu1 %v10909_v11  ;;  %v11127_v57 = vpop.permute.xlu1 %11126 }
0x13e0   : > { %v11125_v52 = vpop.permute.xlu0 %11124 }
0x13e2   : > { %13452 = vmatpush3.bf16.msra.mxu1 %v10909_v11 }
0x13e3   : > { %13461 = vmatprep.subr.bf16.mxu1 %v11028_v19 }
0x13e4   : > { %v11258_v58 = vpop.permute.xlu0 %11257 }
0x13e5   : > { %13454 = vmatmul.mubr.msk.bf16.vlgmr.msra.gmra.mrb[48].mxu1 %vm5769_vm1, %v10897_v17 }
0x13e6   : > { %13462 = vmatpush3.bf16.msra.mxu1 %v11028_v19  ;;  %13457 = vmatprep.mubr.msk.bf16.mxu1 %vm5769_vm1, %v10899_v42 }
0x13e7   : > { %13463 = vmatprep.subr.bf16.mxu1 %v11030_v38 }
0x13e8   : > { %v11129_v0 = vpop.permute.xlu0 %11128 }
0x13ea   : > { %13464 = vmatpush3.bf16.msra.mxu1 %v11030_v38 }
0x13eb   : > { %13465 = vmatprep.subr.bf16.mxu1 %v11032_v44 }
0x13ed   : > { %13458 = vmatmul.mubr.msk.bf16.gmra.mrb[52].mxu1 %vm5769_vm1, %v10901_v27 }
0x13ee   : > { %13466 = vmatpush3.bf16.msra.mxu1 %v11032_v44  ;;  %13469 = vmatprep.mubr.msk.bf16.mxu1 %vm5769_vm1, %v17496_v60  ;;  %v11260_v60 = vpop.permute.xlu1 %11259 }
0x13ef   : > { %13467 = vmatprep.subr.bf16.mxu1 %v11034_v45 }
0x13f2   : > { %13468 = vmatpush3.bf16.msra.mxu1 %v11034_v45 }
0x13f3   : > { %13477 = vmatprep.subr.bf16.mxu1 %v11133_v47 }
0x13f5   : > { %13470 = vmatmul.mubr.msk.bf16.vlgmr.msra.gmra.mrb[48].mxu1 %vm5769_vm1, %v17489_v59  ;;  %v11131_v59 = vpop.permute.xlu1 %11130 }
0x13f6   : > { %13478 = vmatpush3.bf16.msra.mxu1 %v11133_v47  ;;  %13473 = vmatprep.mubr.msk.bf16.mxu1 %vm5769_vm1, %v17514_v62  ;;  %v11262_v62 = vpop.permute.xlu0 %11261 }
0x13f7   : > { %13479 = vmatprep.subr.bf16.mxu1 %v11135_v49 }
0x13f9   : > { %v11264_v6 = vpop.permute.xlu1 %11263 }
0x13fa   : > { %13480 = vmatpush3.bf16.msra.mxu1 %v11135_v49 }
0x13fb   : > { %13481 = vmatprep.subr.bf16.mxu1 %v11137_v28 }
0x13fd   : > { %13474 = vmatmul.mubr.msk.bf16.gmra.mrb[52].mxu1 %vm5769_vm1, %v17507_v61  ;;  %v11363_v61 = vpop.permute.xlu0 %11362  ;;  %v11365_v12 = vpop.permute.xlu1 %11364 }
0x13fe   : > { %13482 = vmatpush3.bf16.msra.mxu1 %v11137_v28  ;;  %13485 = vmatprep.mubr.msk.bf16.mxu1 %vm5769_vm1, %v11125_v52 }
0x13ff   : > { %13483 = vmatprep.subr.bf16.mxu1 %v11139_v37 }
0x1401   : > { %v11367_v55 = vpop.permute.xlu0 %11366  ;;  %v11369_v56 = vpop.permute.xlu1 %11368 }
0x1402   : > { %13484 = vmatpush3.bf16.msra.mxu1 %v11139_v37 }
0x1403   : > { %13493 = vmatprep.subr.bf16.mxu1 %v11258_v58 }
0x1405   : > { %13486 = vmatmul.mubr.msk.bf16.vlgmr.msra.gmra.mrb[48].mxu1 %vm5769_vm1, %v11127_v57  ;;  %v11355_v7 = vpop.permute.xlu0 %11354  ;;  %v11357_v30 = vpop.permute.xlu1 %11356 }
0x1406   : > { %13494 = vmatpush3.bf16.msra.mxu1 %v11258_v58  ;;  %13489 = vmatprep.mubr.msk.bf16.mxu1 %vm5769_vm1, %v11129_v0 }
0x1407   : > { %13495 = vmatprep.subr.bf16.mxu1 %v11260_v60 }
0x1409   : > { %v11490_v8 = vpop.permute.xlu1 %11489 }
0x140a   : > { %13496 = vmatpush3.bf16.msra.mxu1 %v11260_v60 }
0x140b   : > { %13497 = vmatprep.subr.bf16.mxu1 %v11262_v62 }
0x140d   : > { %13490 = vmatmul.mubr.msk.bf16.gmra.mrb[52].mxu1 %vm5769_vm1, %v11131_v59 }
0x140e   : > { %13498 = vmatpush3.bf16.msra.mxu1 %v11262_v62  ;;  %13501 = vmatprep.mubr.msk.bf16.mxu1 %vm5769_vm1, %v17540_v3  ;;  %v11488_v3 = vpop.permute.xlu0 %11487 }
0x140f   : > { %13499 = vmatprep.subr.bf16.mxu1 %v11264_v6 }
0x1412   : > { %13500 = vmatpush3.bf16.msra.mxu1 %v11264_v6 }
0x1413   : > { %13509 = vmatprep.subr.bf16.mxu1 %v11363_v61 }
0x1415   : > { %13502 = vmatmul.mubr.msk.bf16.vlgmr.msra.gmra.mrb[48].mxu1 %vm5769_vm1, %v17533_v2  ;;  %v11359_v2 = vpop.permute.xlu0 %11358 }
0x1416   : > { %13510 = vmatpush3.bf16.msra.mxu1 %v11363_v61  ;;  %13505 = vmatprep.mubr.msk.bf16.mxu1 %vm5769_vm1, %v17558_v63  ;;  %v11361_v63 = vpop.permute.xlu1 %11360 }
0x1417   : > { %13511 = vmatprep.subr.bf16.mxu1 %v11365_v12 }
0x1419   : > { %v11492_v10 = vpop.permute.xlu0 %11491 }
0x141a   : > { %13512 = vmatpush3.bf16.msra.mxu1 %v11365_v12  ;;  %v11494_v40 = vpop.permute.xlu1 %11493 }
0x141b   : > { %13513 = vmatprep.subr.bf16.mxu1 %v11367_v55 }
0x141d   : > { %13506 = vmatmul.mubr.msk.bf16.gmra.mrb[52].mxu1 %vm5769_vm1, %v17551_v25  ;;  %v14715_v25 = vld [vmem:[%s17849_s18 + $0x10] ss:$20 sps:$4 sm:$0xff]   ;;  %v11595_v29 = vpop.permute.xlu0 %11594 }
0x141e   : > { %13514 = vmatpush3.bf16.msra.mxu1 %v11367_v55  ;;  %13517 = vmatprep.mubr.msk.bf16.mxu1 %vm5769_vm1, %v11355_v7  ;;  %v11600_v20 = vpop.permute.xlu1 %11599 }
0x141f   : > { %13515 = vmatprep.subr.bf16.mxu1 %v11369_v56 }
0x1421   : > { %v11605_v21 = vpop.permute.xlu0 %11604 }
0x1422   : > { %13516 = vmatpush3.bf16.msra.mxu1 %v11369_v56  ;;  %v11610_v24 = vpop.permute.xlu1 %11609 }
0x1423   : > { %13525 = vmatprep.subr.bf16.mxu1 %v11488_v3 }
0x1425   : > { %13518 = vmatmul.mubr.msk.bf16.vlgmr.msra.gmra.mrb[48].mxu1 %vm5769_vm1, %v11357_v30  ;;  %v11615_v16 = vpop.permute.xlu0 %11614 }
0x1426   : > { %13526 = vmatpush3.bf16.msra.mxu1 %v11488_v3  ;;  %13521 = vmatprep.mubr.msk.bf16.mxu1 %vm5769_vm1, %v11359_v2  ;;  %v11620_v19 = vpop.permute.xlu1 %11619 }
0x1427   : > { %13527 = vmatprep.subr.bf16.mxu1 %v11490_v8 }
0x1429   : > { %v11625_v47 = vpop.permute.xlu0 %11624 }
0x142a   : > { %13528 = vmatpush3.bf16.msra.mxu1 %v11490_v8 }
0x142b   : > { %13529 = vmatprep.subr.bf16.mxu1 %v11492_v10 }
0x142d   : > { %13522 = vmatmul.mubr.msk.bf16.gmra.mrb[52].mxu1 %vm5769_vm1, %v11361_v63 }
0x142e   : > { %13530 = vmatpush3.bf16.msra.mxu1 %v11492_v10  ;;  %13533 = vmatprep.mubr.msk.bf16.mxu1 %vm5769_vm1, %v14715_v25 }
0x142f   : > { %13531 = vmatprep.subr.bf16.mxu1 %v11494_v40 }
0x1432   : > { %13532 = vmatpush3.bf16.msra.mxu1 %v11494_v40 }
0x1435   : > { %13534 = vmatmul.mubr.msk.bf16.vlgmr.msra.gmra.mrb[48].mxu1 %vm5769_vm1, %v14716_v18 }
0x1436   : > { %13537 = vmatprep.mubr.msk.bf16.mxu1 %vm5769_vm1, %v14717_v9 }
0x143d   : > { %13538 = vmatmul.mubr.msk.bf16.gmra.mrb[52].mxu1 %vm5769_vm1, %v14718_v15 }
0x1508   : > { %v13535_v43 = vpop.f32.mrb[48].mxu1 }
0x1509   : > { %v11634_v26 = vadd.f32 %v13535_v43, %v11605_v21  ;;  %v11545_v31 = vpop.f32.mrb[49].mxu1 }
0x150a   : > { %v11632_v14 = vadd.f32 %v11595_v29, %v11545_v31  ;;  %v13536_v13 = vpop.f32.mrb[50].mxu1  ;;  %v14720_v31 = vld [vmem:[%s17851_s20 + $0x8] sm:$0xff]  }
0x150b   : > { %v11642_v11 = vadd.f32 %v11634_v26, %v9297_v41  ;;  %v11635_v33 = vadd.f32 %v13536_v13, %v11610_v24  ;;  %v11548_v17 = vpop.f32.mrb[51].mxu1  ;;  %v14723_v13 = vld [vmem:[%s17851_s20 + $0x20] sm:$0xff]  }
0x150c   : > { %v11640_v38 = vadd.f32 %v11632_v14, %v9295_v32  ;;  %v11633_v42 = vadd.f32 %v11600_v20, %v11548_v17  ;;  %v14722_v14 = vld [vmem:[%s17851_s20 + $0x18] sm:$0xff]  }
0x150d   : > { %v11650_v27 = vmax.f32 %v11642_v11, 0.0  ;;  %v11643_v50 = vadd.f32 %v11635_v33, %v9298_v22  ;;  %v11630_v22 = vpop.permute.xlu1 %11629  ;;  %v14724_v11 = vld [vmem:[%s17851_s20 + $0x28] sm:$0xff]   ;;  %v14725_v33 = vld [vmem:[%s17851_s20 + $0x30] sm:$0xff]   ;;  %v14726_v17 = vld [vmem:[%s17851_s20 + $0x38] sm:$0xff]  }
0x150e   : > { %v11648_v41 = vmax.f32 %v11640_v38, 0.0  ;;  %v11641_v44 = vadd.f32 %v11633_v42, %v9296_v36  ;;  %v11716_v38 = vld [vmem:[%s17852_s21] sm:$0xff] }
0x150f   : > { %11658 = vst.msk [vmem:[%s17670_s10 + $0x10] sm:$0xff] %vm9308_vm13, %v11650_v27  ;;  %v11651_v45 = vmax.f32 %v11643_v50, 0.0  ;;  %v11670_v59 = vsel %vm9308_vm13, %v11650_v27, 0.0  ;;  %v11719_v27 = vld [vmem:[%s17852_s21 + $0x18] sm:$0xff] }
0x1510   : > { %11656 = vst.msk [vmem:[%s17670_s10] sm:$0xff] %vm9308_vm13, %v11648_v41  ;;  %v11649_v34 = vmax.f32 %v11641_v44, 0.0  ;;  %v13539_v49 = vpop.f32.mrb[52].mxu1  ;;  %v11664_v32 = vsel %vm9308_vm13, %v11648_v41, 0.0  ;;  %v11717_v44 = vld [vmem:[%s17852_s21 + $0x8] sm:$0xff] }
0x1511   : > { %11659 = vst.msk [vmem:[%s17670_s10 + $0x18] sm:$0xff] %vm9308_vm13, %v11651_v45  ;;  %v11638_v28 = vadd.f32 %v13539_v49, %v11625_v47  ;;  %v11561_v23 = vpop.f32.mrb[53].mxu1  ;;  %11665 = vadd.xlane.f32.xlu0 %v11664_v32 }
0x1512   : > { %11657 = vst.msk [vmem:[%s17670_s10 + $0x8] sm:$0xff] %vm9308_vm13, %v11649_v34  ;;  %v11636_v5 = vadd.f32 %v11615_v16, %v11561_v23  ;;  %v13540_v36 = vpop.f32.mrb[54].mxu1  ;;  %v11667_v37 = vsel %vm9308_vm13, %v11649_v34, 0.0  ;;  %v14721_v16 = vld [vmem:[%s17851_s20 + $0x10] sm:$0xff]  }
0x1513   : > { %v11646_v52 = vadd.f32 %v11638_v28, %v9301_v35  ;;  %v11639_v57 = vadd.f32 %v13540_v36, %v11630_v22  ;;  %11668 = vadd.xlane.f32.xlu1 %v11667_v37  ;;  %v11564_v58 = vpop.f32.mrb[55].mxu1  ;;  %v11722_v36 = vld [vmem:[%s17852_s21 + $0x30] sm:$0xff] }
0x1514   : > { %v11644_v60 = vadd.f32 %v11636_v5, %v9299_v53  ;;  %v11637_v0 = vadd.f32 %v11620_v19, %v11564_v58  ;;  %v11673_v53 = vsel %vm9308_vm13, %v11651_v45, 0.0  ;;  %v11718_v19 = vld [vmem:[%s17852_s21 + $0x10] sm:$0xff] }
0x1515   : > { %v11654_v62 = vmax.f32 %v11646_v52, 0.0  ;;  %v11647_v6 = vadd.f32 %v11639_v57, %v9302_v4  ;;  %11671 = vadd.xlane.f32.xlu0 %v11670_v59  ;;  %v11720_v52 = vld [vmem:[%s17852_s21 + $0x20] sm:$0xff] }
0x1516   : > { %v11652_v61 = vmax.f32 %v11644_v60, 0.0  ;;  %v11645_v48 = vadd.f32 %v11637_v0, %v9300_v54  ;;  %v14719_v54 = vld [vmem:[%s17851_s20] sm:$0xff]   ;;  %v11723_v60 = vld [vmem:[%s17852_s21 + $0x38] sm:$0xff] }
0x1517   : > { %11662 = vst.msk [vmem:[%s17670_s10 + $0x30] sm:$0xff] %vm9308_vm13, %v11654_v62  ;;  %v11655_v35 = vmax.f32 %v11647_v6, 0.0  ;;  %v11682_v51 = vsel %vm9308_vm13, %v11654_v62, 0.0  ;;  %13549 = vmatprep.mubr.msk.bf16.mxu0 %vm5769_vm1, %v14719_v54  ;;  %v11721_v62 = vld [vmem:[%s17852_s21 + $0x28] sm:$0xff] }
0x1518   : > { %11660 = vst.msk [vmem:[%s17670_s10 + $0x20] sm:$0xff] %vm9308_vm13, %v11652_v61  ;;  %v11653_v46 = vmax.f32 %v11645_v48, 0.0  ;;  %v11676_v12 = vsel %vm9308_vm13, %v11652_v61, 0.0 }
0x1519   : > { %11663 = vst.msk [vmem:[%s17670_s10 + $0x38] sm:$0xff] %vm9308_vm13, %v11655_v35  ;;  %11674 = vadd.xlane.f32.xlu0 %v11673_v53  ;;  %11677 = vadd.xlane.f32.xlu1 %v11676_v12  ;;  %v11685_v4 = vsel %vm9308_vm13, %v11655_v35, 0.0 }
0x151a   : > { %11661 = vst.msk [vmem:[%s17670_s10 + $0x28] sm:$0xff] %vm9308_vm13, %v11653_v46  ;;  %v11679_v39 = vsel %vm9308_vm13, %v11653_v46, 0.0  ;;  %s12594_s10 = sshll.u32 %s18019_s3, 4 }
0x151b   : > { %s811_s23 = scalar_lea.vmem %s18015_s8, %s12594_s10  ;;  %s806_s5 = scalar_lea.vmem %s18016_s30, %s12594_s10 }
0x151d   : > { %11680 = vadd.xlane.f32.xlu0 %v11679_v39  ;;  %11683 = vadd.xlane.f32.xlu1 %v11682_v51 }
0x1521   : > { %11686 = vadd.xlane.f32.xlu0 %v11685_v4  ;;  %v11726_v4 = vld [vmem:[%s17852_s21 + $0x50] sm:$0xff] }
0x159e   : > { %v11666_v55 = vpop.xlane.xlu0 %11665 }
0x159f   : > { %v11688_v7 = vmul.f32 0.25, %v11666_v55  ;;  %v11724_v55 = vld [vmem:[%s17852_s21 + $0x40] sm:$0xff] }
0x15a0   : > { %v11669_v56 = vpop.xlane.xlu1 %11668 }
0x15a1   : > { %v11689_v30 = vmul.f32 0.25, %v11669_v56 }
0x15a2   : > { %v11672_v3 = vpop.xlane.xlu0 %11671 }
0x15a3   : > { %v11712_v8 = vpack.c.bf16 %v11689_v30, %v11688_v7  ;;  %v11690_v10 = vmul.f32 0.25, %v11672_v3  ;;  %v11727_v30 = vld [vmem:[%s17852_s21 + $0x58] sm:$0xff] }
0x15a5   : > { %13541 = vmatprep.subr.bf16.mxu0 %v11712_v8 }
0x15a6   : > { %v11678_v2 = vpop.xlane.xlu1 %11677  ;;  %13542 = vmatpush3.bf16.msra.mxu0 %v11712_v8  ;;  %v11675_v63 = vpop.xlane.xlu0 %11674 }
0x15a7   : > { %v11691_v25 = vmul.f32 0.25, %v11675_v63  ;;  %v11692_v9 = vmul.f32 0.25, %v11678_v2  ;;  %v11725_v2 = vld [vmem:[%s17852_s21 + $0x48] sm:$0xff] }
0x15a9   : > { %v11713_v40 = vpack.c.bf16 %v11691_v25, %v11690_v10 }
0x15aa   : > { %v11681_v18 = vpop.xlane.xlu0 %11680  ;;  %v11684_v29 = vpop.xlane.xlu1 %11683 }
0x15ab   : > { %v11693_v15 = vmul.f32 0.25, %v11681_v18  ;;  %13543 = vmatprep.subr.bf16.mxu0 %v11713_v40  ;;  %v11694_v24 = vmul.f32 0.25, %v11684_v29 }
0x15ac   : > { %13544 = vmatpush3.bf16.msra.mxu0 %v11713_v40 }
0x15ad   : > { %v11714_v20 = vpack.c.bf16 %v11693_v15, %v11692_v9 }
0x15ae   : > { %v11687_v21 = vpop.xlane.xlu0 %11686 }
0x15af   : > { %v11695_v43 = vmul.f32 0.25, %v11687_v21  ;;  %13545 = vmatprep.subr.bf16.mxu0 %v11714_v20  ;;  %v11730_v21 = vld [vmem:[%s17852_s21 + $0x70] sm:$0xff] }
0x15b0   : > { %13546 = vmatpush3.bf16.msra.mxu0 %v11714_v20 }
0x15b1   : > { %v11715_v26 = vpack.c.bf16 %v11695_v43, %v11694_v24  ;;  %v11728_v43 = vld [vmem:[%s17852_s21 + $0x60] sm:$0xff] }
0x15b3   : > { %13547 = vmatprep.subr.bf16.mxu0 %v11715_v26 }
0x15b4   : > { %13548 = vmatpush3.bf16.msra.mxu0 %v11715_v26 }
0x15b5   : > { %13565 = vmatprep.subr.bf16.mxu0 %v14827_v1 }
0x15b7   : > { %13550 = vmatmul.mubr.msk.bf16.vlgmr.msra.gmra.mrb[52].mxu0 %vm5769_vm1, %v14720_v31 }
0x15b8   : > { %13553 = vmatprep.mubr.msk.bf16.mxu0 %vm5769_vm1, %v14721_v16  ;;  %v11731_v16 = vld [vmem:[%s17852_s21 + $0x78] sm:$0xff] }
0x15bf   : > { %13554 = vmatmul.mubr.msk.bf16.gmra.mrb[56].mxu0 %vm5769_vm1, %v14722_v14 }
0x15c0   : > { %13557 = vmatprep.mubr.msk.bf16.mxu0 %vm5769_vm1, %v14723_v13 }
0x15c7   : > { %13558 = vmatmul.mubr.msk.bf16.gmra.mrb[60].mxu0 %vm5769_vm1, %v14724_v11  ;;  %v11729_v11 = vld [vmem:[%s17852_s21 + $0x68] sm:$0xff] }
0x15c8   : > { %13561 = vmatprep.mubr.msk.bf16.mxu0 %vm5769_vm1, %v14725_v33 }
0x15cf   : > { %13562 = vmatmul.mubr.msk.bf16.gmra.mrb[64].mxu0 %vm5769_vm1, %v14726_v17 }
0x15d0   : > { %13581 = vmatprep.mubr.msk.bf16.mxu0 %vm14828_vm7, %v14827_v1 }
0x168a   : > { %v13551_v42 = vpop.f32.mrb[52].mxu0 }
0x168b   : > { %v11839_v50 = vadd.f32 %v13551_v42, %v11718_v19  ;;  %v11830_v41 = vpop.f32.mrb[53].mxu0 }
0x168c   : > { %v11831_v45 = vadd.f32 %v11830_v41, %v11716_v38  ;;  %v13552_v47 = vpop.f32.mrb[54].mxu0 }
0x168d   : > { %v11842_v34 = vadd.f32 %v13552_v47, %v11719_v27  ;;  %v11833_v49 = vpop.f32.mrb[55].mxu0  ;;  %v11895_v28 = vmax.f32 %v11839_v50, 0.0 }
0x168e   : > { %v11834_v32 = vadd.f32 %v11833_v49, %v11717_v44  ;;  %v11893_v22 = vmax.f32 %v11831_v45, 0.0  ;;  %v11919_v49 = vld [vmem:[%s18013_s27] sm:$0xff] }
0x168f   : > { %v11896_v23 = vmax.f32 %v11842_v34, 0.0  ;;  %v14727_v34 = vld [vmem:[%s17853_s22] sm:$0x1f]  }
0x1690   : > { %v11894_v5 = vmax.f32 %v11834_v32, 0.0 }
0x1691   : > { %v11912_v37 = vpack.c.bf16 %v11896_v23, %v11895_v28 }
0x1692   : > { %v11911_v57 = vpack.c.bf16 %v11894_v5, %v11893_v22  ;;  %v13555_v58 = vpop.f32.mrb[56].mxu0 }
0x1693   : > { %v11855_v0 = vadd.f32 %v13555_v58, %v11722_v36  ;;  %v11846_v59 = vpop.f32.mrb[57].mxu0 }
0x1694   : > { %v11847_v6 = vadd.f32 %v11846_v59, %v11720_v52  ;;  %v13556_v61 = vpop.f32.mrb[58].mxu0  ;;  %13566 = vmatpush3.bf16.msra.mxu0 %v11911_v57 }
0x1695   : > { %v11858_v48 = vadd.f32 %v13556_v61, %v11723_v60  ;;  %v11849_v35 = vpop.f32.mrb[59].mxu0  ;;  %13567 = vmatprep.subr.bf16.mxu0 %v14827_v1  ;;  %v11899_v53 = vmax.f32 %v11855_v0, 0.0 }
0x1696   : > { %v11850_v46 = vadd.f32 %v11849_v35, %v11721_v62  ;;  %v11897_v39 = vmax.f32 %v11847_v6, 0.0 }
0x1697   : > { %v11900_v12 = vmax.f32 %v11858_v48, 0.0 }
0x1698   : > { %v11898_v51 = vmax.f32 %v11850_v46, 0.0  ;;  %13568 = vmatpush3.bf16.msra.mxu0 %v11912_v37 }
0x1699   : > { %v11914_v54 = vpack.c.bf16 %v11900_v12, %v11899_v53  ;;  %13569 = vmatprep.subr.bf16.mxu0 %v14827_v1 }
0x169a   : > { %v11913_v56 = vpack.c.bf16 %v11898_v51, %v11897_v39  ;;  %v13559_v7 = vpop.f32.mrb[60].mxu0 }
0x169b   : > { %v11871_v3 = vadd.f32 %v13559_v7, %v11726_v4  ;;  %v11862_v8 = vpop.f32.mrb[61].mxu0 }
0x169c   : > { %v11863_v63 = vadd.f32 %v11862_v8, %v11724_v55  ;;  %v13560_v10 = vpop.f32.mrb[62].mxu0  ;;  %13570 = vmatpush3.bf16.msra.mxu0 %v11913_v56 }
0x169d   : > { %v11874_v25 = vadd.f32 %v13560_v10, %v11727_v30  ;;  %v11865_v40 = vpop.f32.mrb[63].mxu0  ;;  %13571 = vmatprep.subr.bf16.mxu0 %v14827_v1  ;;  %v11903_v9 = vmax.f32 %v11871_v3, 0.0 }
0x169e   : > { %v11866_v18 = vadd.f32 %v11865_v40, %v11725_v2  ;;  %v11901_v29 = vmax.f32 %v11863_v63, 0.0 }
0x169f   : > { %v11904_v15 = vmax.f32 %v11874_v25, 0.0 }
0x16a0   : > { %v11902_v20 = vmax.f32 %v11866_v18, 0.0  ;;  %13572 = vmatpush3.bf16.msra.mxu0 %v11914_v54 }
0x16a1   : > { %v11916_v24 = vpack.c.bf16 %v11904_v15, %v11903_v9  ;;  %13573 = vmatprep.subr.bf16.mxu0 %v14827_v1 }
0x16a2   : > { %v11915_v26 = vpack.c.bf16 %v11902_v20, %v11901_v29  ;;  %v13563_v31 = vpop.f32.mrb[64].mxu0 }
0x16a3   : > { %v11887_v14 = vadd.f32 %v13563_v31, %v11730_v21  ;;  %v11878_v13 = vpop.f32.mrb[65].mxu0 }
0x16a4   : > { %v11879_v33 = vadd.f32 %v11878_v13, %v11728_v43  ;;  %v13564_v17 = vpop.f32.mrb[66].mxu0  ;;  %13574 = vmatpush3.bf16.msra.mxu0 %v11915_v26 }
0x16a5   : > { %v11890_v19 = vadd.f32 %v13564_v17, %v11731_v16  ;;  %v11881_v38 = vpop.f32.mrb[67].mxu0  ;;  %13575 = vmatprep.subr.bf16.mxu0 %v14827_v1  ;;  %v11907_v27 = vmax.f32 %v11887_v14, 0.0 }
0x16a6   : > { %v11882_v42 = vadd.f32 %v11881_v38, %v11729_v11  ;;  %v11905_v41 = vmax.f32 %v11879_v33, 0.0 }
0x16a7   : > { %v11908_v50 = vmax.f32 %v11890_v19, 0.0 }
0x16a8   : > { %v11906_v44 = vmax.f32 %v11882_v42, 0.0  ;;  %13576 = vmatpush3.bf16.msra.mxu0 %v11916_v24 }
0x16a9   : > { %v11918_v45 = vpack.c.bf16 %v11908_v50, %v11907_v27  ;;  %13577 = vmatprep.subr.bf16.mxu0 %v14827_v1 }
0x16aa   : > { %v11917_v47 = vpack.c.bf16 %v11906_v44, %v11905_v41 }
0x16ac   : > { %13578 = vmatpush3.bf16.msra.mxu0 %v11917_v47 }
0x16ad   : > { %13579 = vmatprep.subr.bf16.mxu0 %v14827_v1  ;;  %v11920_v1 = vld [vmem:[%s18014_s12 + $0x8] sm:$0x1] }
0x16b0   : > { %13580 = vmatpush3.bf16.msra.mxu0 %v11918_v45 }
0x16b3   : > { %13582 = vmatmul.mubr.bf16.vlgmr.msra.gmra.mrb[68].mxu0 %v14727_v34 }
0x1786   : > { %v11961_v32 = vpop.f32.mrb[68].mxu0 }
0x1787   : > { %v11962_v28 = vadd.f32 %v11961_v32, %v11919_v49  ;;  %v13583_v23 = vpop.f32.mrb[69].mxu0 }
0x1788   : > { %v11964_v22 = vpop.f32.mrb[70].mxu0 }
0x1789   : > { %11999 = vst.msk [vmem:[%s811_s23] sm:$0xff] %vm11968_vm4, %v11962_v28  ;;  %v11965_v5 = vadd.f32 %v11964_v22, %v11920_v1  ;;  %v13584_v36 = vpop.f32.mrb[71].mxu0  ;;  %v11969_v37 = vsel %vm11968_vm4, %v11962_v28, -inf }
0x178b   : > { %v11971_v52 = vsel %vm11970_vm6, %v11965_v5, -inf  ;;  %12000 = vst.msk [vmem:[%s811_s23 + $0x8] sm:$0x1] %vm11970_vm6, %v11965_v5 }
0x178c   : > { %v11972_v57 = vmax.f32 %v11969_v37, %v11971_v52 }
0x178e   : > { %v11973_v58 = vrot.slane %v11972_v57, 4 }
0x1790   : > { %v11974_v60 = vmax.f32 %v11972_v57, %v11973_v58 }
0x1792   : > { %v11975_v0 = vrot.slane %v11974_v60, 2 }
0x1794   : > { %v11976_v59 = vmax.f32 %v11974_v60, %v11975_v0 }
0x1796   : > { %v11977_v62 = vrot.slane %v11976_v59, 1 }
0x1798   : > { %v11978_v6 = vmax.f32 %v11976_v59, %v11977_v62 }
0x179a   : > { %v11979_v61 = vsub.f32 %v11962_v28, %v11978_v6  ;;  %v11980_v48 = vsub.f32 %v11965_v5, %v11978_v6 }
0x179c   : > { %v11981_v35 = vmul.f32 1.442695, %v11979_v61  ;;  %v11983_v46 = vmul.f32 1.442695, %v11980_v48 }
0x179e   : > { %14728 = vpow2.f32 %v11981_v35 }
0x179f   : > { %14730 = vpow2.f32 %v11983_v46 }
0x17a8   : > { %v14729_v53 = vpop.eup %14728 }
0x17a9   : > { %v14731_v12 = vpop.eup %14730  ;;  %v11985_v39 = vsel %vm11968_vm4, %v14729_v53, 0.0 }
0x17aa   : > { %v11986_v51 = vsel %vm11970_vm6, %v14731_v12, 0.0 }
0x17ab   : > { %v11987_v4 = vadd.f32 %v11986_v51, %v11985_v39 }
0x17ad   : > { %v11988_v54 = vrot.slane %v11987_v4, 4 }
0x17af   : > { %v11989_v55 = vadd.f32 %v11988_v54, %v11987_v4 }
0x17b1   : > { %v11990_v56 = vrot.slane %v11989_v55, 2 }
0x17b3   : > { %v11991_v7 = vadd.f32 %v11990_v56, %v11989_v55 }
0x17b5   : > { %v11992_v30 = vrot.slane %v11991_v7, 1 }
0x17b7   : > { %v11993_v3 = vadd.f32 %v11992_v30, %v11991_v7 }
0x17b9   : > { %14732 = vrcp.f32 %v11993_v3 }
0x17c3   : > { %v14733_v8 = vpop.eup %14732 }
0x17c4   : > { %v11995_v2 = vmul.f32 %v14733_v8, %v14729_v53  ;;  %v11996_v63 = vmul.f32 %v14733_v8, %v14731_v12 }
0x17c6   : > { %11997 = vst.msk [vmem:[%s806_s5] sm:$0xff] %vm11968_vm4, %v11995_v2 }
0x17c7   : > { %11998 = vst.msk [vmem:[%s806_s5 + $0x8] sm:$0x1] %vm11970_vm6, %v11996_v63 }
0x17c8 PF: > { %s18017_s24 = sld [smem:[#allocation2_spill]] }
0x17ce   : > { %s37_s27 = sadd.s32 1, %s18017_s24  }
0x17cf   : > { %p34_p4 = scmp.ge.s32.totalorder %s37_s27, 4  }
0x17d1   :  { %36 = sbr.rel (!%p34_p4) target bundleno = 17 (0x11), region = 171 }

</bundles_post_ra>
